<compile_context>
chip_gen: v5e
topology: v5e:2x2
jax: 0.10.0
libtpu: 0.0.40
codegen_flags: <defaults>
</compile_context>

<pallas_src>
import math
from functools import partial

import numpy as np
import jax
import jax.numpy as jnp
from jax.experimental import pallas as pl
from jax.experimental.pallas import tpu as pltpu


# ----------------------------------------------------------------------------
# Fused encoder kernel (embedding LN + all transformer layers)
# ----------------------------------------------------------------------------
def _bert_encoder_kernel(B, L, NH, D, eps,
                         x_ref, mask_ref, eg_ref, eb_ref,
                         wqkv_ref, bqkv_ref, wo_ref, bo_ref,
                         ln1g_ref, ln1b_ref,
                         w1_ref, b1_ref, w2_ref, b2_ref,
                         ln2g_ref, ln2b_ref,
                         o_ref, act_ref):
    """Grid axis = layer index. Activations live in `act_ref` VMEM scratch."""
    H = NH * D
    BL = B * L
    scale = 1.0 / math.sqrt(D)
    lyr = pl.program_id(0)

    def ln(y, g, b):
        mu = jnp.mean(y, axis=-1, keepdims=True)
        var = jnp.mean((y - mu) ** 2, axis=-1, keepdims=True)
        return (y - mu) * jax.lax.rsqrt(var + eps) * g + b

    # --- layer 0: embedding LayerNorm into the resident activation scratch ---
    @pl.when(lyr == 0)
    def _():
        act_ref[...] = ln(x_ref[...].astype(jnp.float32), eg_ref[...], eb_ref[...])

    x = act_ref[...]                                       # [BL, H] f32
    mask = mask_ref[...]                                   # [B, L] additive mask

    # --- fused QKV projection: one whole-batch matmul, bf16 MXU operands ---
    qkv = (jnp.dot(x.astype(jnp.bfloat16), wqkv_ref[0],
                   preferred_element_type=jnp.float32)
           + bqkv_ref[0])                                  # [BL, 3H] f32
    qkv3 = qkv.reshape(B, L, 3 * H)

    # --- multi-head attention; batched over B per head, one output proj ---
    # TODO(synk): head slices are 16-lane sub-vreg selects (H=64 < one vreg);
    # no vreg-aligned head layout exists at this toy width.
    ctx_heads = []
    for h in range(NH):                                    # NH small -> static unroll
        q = qkv3[:, :, h * D:(h + 1) * D].astype(jnp.bfloat16)
        k = qkv3[:, :, H + h * D:H + (h + 1) * D].astype(jnp.bfloat16)
        v = qkv3[:, :, 2 * H + h * D:2 * H + (h + 1) * D].astype(jnp.bfloat16)
        s = (jnp.einsum('bqd,bkd->bqk', q, k,
                        preferred_element_type=jnp.float32) * scale
             + mask[:, None, :])                           # [B, L, L]
        s = s - jnp.max(s, axis=-1, keepdims=True)
        p = jnp.exp(s)
        p = p * pl.reciprocal(jnp.sum(p, axis=-1, keepdims=True), approx=True)
        ctx_heads.append(jnp.einsum('bqk,bkd->bqd', p.astype(jnp.bfloat16), v,
                                    preferred_element_type=jnp.float32))
    ctx = jnp.concatenate(ctx_heads, axis=-1).reshape(BL, H)   # [BL, H]

    attn = (jnp.dot(ctx.astype(jnp.bfloat16), wo_ref[0],
                    preferred_element_type=jnp.float32) + bo_ref[0])

    # --- add & norm 1 ---
    x1 = ln(attn + x, ln1g_ref[0], ln1b_ref[0])

    # --- feed-forward (w1 + GELU + w2), add & norm 2 ---
    # TODO(synk): HF BERT default act is exact erf-GELU; tanh approximation used.
    h1 = (jnp.dot(x1.astype(jnp.bfloat16), w1_ref[0],
                  preferred_element_type=jnp.float32) + b1_ref[0])
    h1 = jax.nn.gelu(h1, approximate=True)
    y2 = (jnp.dot(h1.astype(jnp.bfloat16), w2_ref[0],
                  preferred_element_type=jnp.float32) + b2_ref[0])
    x2 = ln(y2 + x1, ln2g_ref[0], ln2b_ref[0])

    act_ref[...] = x2                                      # carry to next layer

    @pl.when(lyr == pl.num_programs(0) - 1)
    def _():
        o_ref[...] = x2.astype(o_ref.dtype)                # single HBM writeback


def bert_encoder(x_emb, add_mask, P, cfg, eps=1e-12):
    """x_emb: [B*L, H] bf16 (pre-LN embeddings); add_mask: [B, L] additive."""
    B, L = add_mask.shape
    H, NH, NL = cfg["hidden"], cfg["heads"], cfg["layers"]
    D = H // NH
    BL = B * L

    def stacked(a):   # per-layer stacked params: block one layer per grid step
        z = (0,) * (a.ndim - 1)
        return pl.BlockSpec((1,) + a.shape[1:], lambda l, _z=z: (l,) + _z)

    def const(a):     # constant blocks, resident across the layer grid
        z = (0,) * a.ndim
        return pl.BlockSpec(a.shape, lambda l, _z=z: _z)

    args = (x_emb, add_mask, P["emb_ln_g"], P["emb_ln_b"],
            P["wqkv"], P["bqkv"], P["wo"], P["bo"],
            P["ln1_g"], P["ln1_b"],
            P["w1"], P["b1"], P["w2"], P["b2"],
            P["ln2_g"], P["ln2_b"])
    specs = [const(x_emb), const(add_mask),
             const(P["emb_ln_g"]), const(P["emb_ln_b"]),
             stacked(P["wqkv"]), stacked(P["bqkv"]),
             stacked(P["wo"]), stacked(P["bo"]),
             stacked(P["ln1_g"]), stacked(P["ln1_b"]),
             stacked(P["w1"]), stacked(P["b1"]),
             stacked(P["w2"]), stacked(P["b2"]),
             stacked(P["ln2_g"]), stacked(P["ln2_b"])]

    # TODO(synk): on v7x, a leading "parallel" batch-half grid axis would use
    # both TensorCores; omitted here (single slab is optimal on v5e/v6e).
    return pl.pallas_call(
        partial(_bert_encoder_kernel, B, L, NH, D, eps),
        out_shape=jax.ShapeDtypeStruct((BL, H), jnp.float32),
        grid=(NL,),
        in_specs=specs,
        out_specs=pl.BlockSpec((BL, H), lambda l: (0, 0)),
        scratch_shapes=[pltpu.VMEM((BL, H), jnp.float32)],
        compiler_params=pltpu.CompilerParams(
            dimension_semantics=("arbitrary",)),
    )(*args)


# ----------------------------------------------------------------------------
# Parameter construction (deterministic, synthetic BERT)
# ----------------------------------------------------------------------------
def init_params(key, cfg):
    std = 0.02
    H, I, C, NL = cfg["hidden"], cfg["inter"], cfg["num_classes"], cfg["layers"]
    keys = iter(jax.random.split(key, 6 + 4 * NL))

    def normal(shape):
        return jax.random.normal(next(keys), shape, jnp.float32) * std

    zeros = lambda s: jnp.zeros(s, jnp.float32)
    ones = lambda s: jnp.ones(s, jnp.float32)

    P = {
        "word_emb": normal((cfg["vocab"], H)),
        "pos_emb": normal((cfg["max_pos"], H)),
        "type_emb": normal((cfg["type_vocab"], H)),
        "emb_ln_g": ones((1, H)), "emb_ln_b": zeros((1, H)),
        "pool_w": normal((H, H)), "pool_b": zeros((H,)),
        "wsd_w": normal((H, C)), "wsd_b": zeros((C,)),
        "md_w": normal((H, C)), "md_b": zeros((C,)),
    }
    # Stacked per-layer weights ([NL, ...]); matmul weights stored bf16 (MXU
    # operands + halved DMA/VMEM), biases / LN params f32.
    wqkv, wo, w1, w2 = [], [], [], []
    for _ in range(NL):
        wqkv.append(normal((H, 3 * H)))
        wo.append(normal((H, H)))
        w1.append(normal((H, I)))
        w2.append(normal((I, H)))
    P.update({
        "wqkv": jnp.stack(wqkv).astype(jnp.bfloat16),
        "bqkv": zeros((NL, 1, 3 * H)),
        "wo": jnp.stack(wo).astype(jnp.bfloat16),
        "bo": zeros((NL, 1, H)),
        "ln1_g": ones((NL, 1, H)), "ln1_b": zeros((NL, 1, H)),
        "w1": jnp.stack(w1).astype(jnp.bfloat16),
        "b1": zeros((NL, 1, I)),
        "w2": jnp.stack(w2).astype(jnp.bfloat16),
        "b2": zeros((NL, 1, H)),
        "ln2_g": ones((NL, 1, H)), "ln2_b": zeros((NL, 1, H)),
    })
    return P


# ----------------------------------------------------------------------------
# BERT_base forward
# ----------------------------------------------------------------------------
def bert_base_forward(P, cfg, input_ids, type_ids, att_mask, domains):
    B, L = input_ids.shape
    H, C = cfg["hidden"], cfg["num_classes"]

    # --- embeddings (table gathers are XLA glue) ---
    x = (jnp.take(P["word_emb"], input_ids, axis=0)
         + P["pos_emb"][None, :L, :]
         + jnp.take(P["type_emb"], type_ids, axis=0))            # [B, L, H]
    x_emb = x.reshape(B * L, H).astype(jnp.bfloat16)             # halve boundary DMA
    add_mask = (1.0 - att_mask.astype(jnp.float32)) * -1e9       # [B, L]

    # --- full encoder (embedding LN + all layers) in ONE Pallas kernel ---
    y = bert_encoder(x_emb, add_mask, P, cfg)                    # [B*L, H] f32

    # --- pooler + both classification heads: tiny matmuls, left to XLA ---
    cls = y.reshape(B, L, H)[:, 0, :]                            # [B, H]
    pooled = jnp.tanh(cls @ P["pool_w"] + P["pool_b"])
    # dropout: inference mode -> identity
    # TODO(synk): training-mode dropout randomness not reproduced (identity at eval).
    wsd_logits = pooled @ P["wsd_w"] + P["wsd_b"]
    md_logits = pooled @ P["md_w"] + P["md_b"]

    # --- domain split (torch.nonzero / index_select: dynamic shapes host-side) ---
    dom = np.asarray(domains)
    wsd_idx = jnp.asarray(np.nonzero(dom == 0)[0], jnp.int32)
    md_idx = jnp.asarray(np.nonzero(dom == 1)[0], jnp.int32)
    return (jnp.take(wsd_logits, wsd_idx, axis=0),
            jnp.take(md_logits, md_idx, axis=0))


# ----------------------------------------------------------------------------
# Main
# ----------------------------------------------------------------------------
if __name__ == "__main__":
    cfg = dict(vocab=100, hidden=64, heads=4, layers=2, inter=128,
               max_pos=32, type_vocab=2, num_classes=4)
    B, L = 8, 16

    key = jax.random.PRNGKey(0)
    pkey, k_ids, k_types = jax.random.split(key, 3)
    params = init_params(pkey, cfg)

    input_ids = jax.random.randint(k_ids, (B, L), 0, cfg["vocab"], dtype=jnp.int32)
    type_ids = jax.random.randint(k_types, (B, L), 0, cfg["type_vocab"], dtype=jnp.int32)
    att_mask = jnp.ones((B, L), jnp.int32)
    att_mask = att_mask.at[0, 12:].set(0).at[3, 10:].set(0)      # some padding
    domains = jnp.array([0, 1, 0, 1, 0, 0, 1, 1], jnp.int32)

    wsd_out, md_out = bert_base_forward(params, cfg, input_ids, type_ids,
                                        att_mask, domains)
    jax.block_until_ready((wsd_out, md_out))

    assert wsd_out.shape == (4, cfg["num_classes"])
    assert md_out.shape == (4, cfg["num_classes"])
    assert bool(jnp.all(jnp.isfinite(wsd_out))) and bool(jnp.all(jnp.isfinite(md_out)))
    print("KERNEL_OK")
</pallas_src>

<mosaic_0001>
module attributes {stable_mosaic.version = 11 : i64} {
  func.func @_bert_encoder_kernel(%arg0: i32, %arg1: memref<128x64xbf16, #tpu.memory_space<vmem>>, %arg2: memref<8x16xf32, #tpu.memory_space<vmem>>, %arg3: memref<1x64xf32, #tpu.memory_space<vmem>>, %arg4: memref<1x64xf32, #tpu.memory_space<vmem>>, %arg5: memref<1x64x192xbf16, #tpu.memory_space<vmem>>, %arg6: memref<1x1x192xf32, #tpu.memory_space<vmem>>, %arg7: memref<1x64x64xbf16, #tpu.memory_space<vmem>>, %arg8: memref<1x1x64xf32, #tpu.memory_space<vmem>>, %arg9: memref<1x1x64xf32, #tpu.memory_space<vmem>>, %arg10: memref<1x1x64xf32, #tpu.memory_space<vmem>>, %arg11: memref<1x64x128xbf16, #tpu.memory_space<vmem>>, %arg12: memref<1x1x128xf32, #tpu.memory_space<vmem>>, %arg13: memref<1x128x64xbf16, #tpu.memory_space<vmem>>, %arg14: memref<1x1x64xf32, #tpu.memory_space<vmem>>, %arg15: memref<1x1x64xf32, #tpu.memory_space<vmem>>, %arg16: memref<1x1x64xf32, #tpu.memory_space<vmem>>, %arg17: memref<128x64xf32, #tpu.memory_space<vmem>>, %arg18: memref<128x64xf32, #tpu.memory_space<vmem>>) attributes {dimension_semantics = [#tpu.dimension_semantics<arbitrary>], iteration_bounds = array<i64: 2>, scalar_prefetch = 0 : i64, scratch_operands = 1 : i64, tpu.core_type = #tpu.core_type<tc>, window_params = [{pipeline_mode = #tpu.pipeline_mode<synchronous>, transform_indices = @transform_0, window_bounds = array<i64: 128, 64>}, {pipeline_mode = #tpu.pipeline_mode<synchronous>, transform_indices = @transform_1, window_bounds = array<i64: 8, 16>}, {pipeline_mode = #tpu.pipeline_mode<synchronous>, transform_indices = @transform_2, window_bounds = array<i64: 1, 64>}, {pipeline_mode = #tpu.pipeline_mode<synchronous>, transform_indices = @transform_3, window_bounds = array<i64: 1, 64>}, {transform_indices = @transform_4, window_bounds = array<i64: 1, 64, 192>}, {transform_indices = @transform_5, window_bounds = array<i64: 1, 1, 192>}, {transform_indices = @transform_6, window_bounds = array<i64: 1, 64, 64>}, {transform_indices = @transform_7, window_bounds = array<i64: 1, 1, 64>}, {transform_indices = @transform_8, window_bounds = array<i64: 1, 1, 64>}, {transform_indices = @transform_9, window_bounds = array<i64: 1, 1, 64>}, {transform_indices = @transform_10, window_bounds = array<i64: 1, 64, 128>}, {transform_indices = @transform_11, window_bounds = array<i64: 1, 1, 128>}, {transform_indices = @transform_12, window_bounds = array<i64: 1, 128, 64>}, {transform_indices = @transform_13, window_bounds = array<i64: 1, 1, 64>}, {transform_indices = @transform_14, window_bounds = array<i64: 1, 1, 64>}, {transform_indices = @transform_15, window_bounds = array<i64: 1, 1, 64>}, {pipeline_mode = #tpu.pipeline_mode<synchronous>, transform_indices = @transform_16, window_bounds = array<i64: 128, 64>}]} {
    %c0_i32 = arith.constant 0 : i32
    %0 = arith.cmpi eq, %arg0, %c0_i32 : i32
    %1 = arith.extui %0 : i1 to i32
    %c0_i32_0 = arith.constant 0 : i32
    %2 = arith.cmpi ne, %1, %c0_i32_0 : i32
    scf.if %2 {
      %c0_80 = arith.constant 0 : index
      %c0_81 = arith.constant 0 : index
      %207 = vector.load %arg1[%c0_80, %c0_81] : memref<128x64xbf16, #tpu.memory_space<vmem>>, vector<128x64xbf16>
      %208 = arith.extf %207 : vector<128x64xbf16> to vector<128x64xf32>
      %c0_82 = arith.constant 0 : index
      %c0_83 = arith.constant 0 : index
      %209 = vector.load %arg3[%c0_82, %c0_83] : memref<1x64xf32, #tpu.memory_space<vmem>>, vector<1x64xf32>
      %c0_84 = arith.constant 0 : index
      %c0_85 = arith.constant 0 : index
      %210 = vector.load %arg4[%c0_84, %c0_85] : memref<1x64xf32, #tpu.memory_space<vmem>>, vector<1x64xf32>
      %cst_86 = arith.constant dense<0.000000e+00> : vector<128xf32>
      %211 = vector.multi_reduction <add>, %208, %cst_86 [1] : vector<128x64xf32> to vector<128xf32>
      %212 = vector.shape_cast %211 : vector<128xf32> to vector<128x1xf32>
      %cst_87 = arith.constant 6.400000e+01 : f32
      %213 = vector.broadcast %cst_87 : f32 to vector<128x1xf32>
      %214 = arith.divf %212, %213 : vector<128x1xf32>
      %215 = vector.broadcast %214 : vector<128x1xf32> to vector<128x64xf32>
      %216 = arith.subf %208, %215 : vector<128x64xf32>
      %217 = arith.mulf %216, %216 : vector<128x64xf32>
      %cst_88 = arith.constant dense<0.000000e+00> : vector<128xf32>
      %218 = vector.multi_reduction <add>, %217, %cst_88 [1] : vector<128x64xf32> to vector<128xf32>
      %219 = vector.shape_cast %218 : vector<128xf32> to vector<128x1xf32>
      %cst_89 = arith.constant 6.400000e+01 : f32
      %220 = vector.broadcast %cst_89 : f32 to vector<128x1xf32>
      %221 = arith.divf %219, %220 : vector<128x1xf32>
      %222 = vector.broadcast %214 : vector<128x1xf32> to vector<128x64xf32>
      %223 = arith.subf %208, %222 : vector<128x64xf32>
      %cst_90 = arith.constant 9.99999996E-13 : f32
      %224 = vector.broadcast %cst_90 : f32 to vector<128x1xf32>
      %225 = arith.addf %221, %224 : vector<128x1xf32>
      %226 = math.rsqrt %225 : vector<128x1xf32>
      %227 = vector.broadcast %226 : vector<128x1xf32> to vector<128x64xf32>
      %228 = arith.mulf %223, %227 : vector<128x64xf32>
      %229 = vector.broadcast %209 : vector<1x64xf32> to vector<128x64xf32>
      %230 = arith.mulf %228, %229 : vector<128x64xf32>
      %231 = vector.broadcast %210 : vector<1x64xf32> to vector<128x64xf32>
      %232 = arith.addf %230, %231 : vector<128x64xf32>
      %c0_91 = arith.constant 0 : index
      %c0_92 = arith.constant 0 : index
      %233 = vector.load %arg18[%c0_91, %c0_92] : memref<128x64xf32, #tpu.memory_space<vmem>>, vector<128x64xf32>
      tpu.vector_store %arg18[%c0_91, %c0_92], %232 {strides = array<i32>} : memref<128x64xf32, #tpu.memory_space<vmem>>, vector<128x64xf32>,
    } else {
    }
    %c0 = arith.constant 0 : index
    %c0_1 = arith.constant 0 : index
    %3 = vector.load %arg18[%c0, %c0_1] : memref<128x64xf32, #tpu.memory_space<vmem>>, vector<128x64xf32>
    %c0_2 = arith.constant 0 : index
    %c0_3 = arith.constant 0 : index
    %4 = vector.load %arg2[%c0_2, %c0_3] : memref<8x16xf32, #tpu.memory_space<vmem>>, vector<8x16xf32>
    %5 = arith.truncf %3 : vector<128x64xf32> to vector<128x64xbf16>
    %c0_4 = arith.constant 0 : index
    %c0_5 = arith.constant 0 : index
    %c0_6 = arith.constant 0 : index
    %6 = vector.load %arg5[%c0_4, %c0_5, %c0_6] : memref<1x64x192xbf16, #tpu.memory_space<vmem>>, vector<1x64x192xbf16>
    %7 = vector.shape_cast %6 : vector<1x64x192xbf16> to vector<64x192xbf16>
    %cst = arith.constant dense<0.000000e+00> : vector<128x192xf32>
    %8 = tpu.matmul %5, %7, %cst {dimension_numbers = #tpu.dot_dimension_numbers<[1], [0], [0], [1], [0, 0, 1, 1], [], []>} : vector<128x64xbf16>, vector<64x192xbf16>, vector<128x192xf32> -> vector<128x192xf32>
    %c0_7 = arith.constant 0 : index
    %c0_8 = arith.constant 0 : index
    %c0_9 = arith.constant 0 : index
    %9 = vector.load %arg6[%c0_7, %c0_8, %c0_9] : memref<1x1x192xf32, #tpu.memory_space<vmem>>, vector<1x1x192xf32>
    %10 = vector.shape_cast %9 : vector<1x1x192xf32> to vector<1x192xf32>
    %11 = vector.broadcast %10 : vector<1x192xf32> to vector<128x192xf32>
    %12 = arith.addf %8, %11 : vector<128x192xf32>
    %13 = vector.shape_cast %12 : vector<128x192xf32> to vector<8x16x192xf32>
    %14 = vector.extract_strided_slice %13 {offsets = [0, 0, 0], sizes = [8, 16, 16], strides = [1, 1, 1]} : vector<8x16x192xf32> to vector<8x16x16xf32>
    %15 = arith.truncf %14 : vector<8x16x16xf32> to vector<8x16x16xbf16>
    %16 = vector.extract_strided_slice %13 {offsets = [0, 0, 64], sizes = [8, 16, 16], strides = [1, 1, 1]} : vector<8x16x192xf32> to vector<8x16x16xf32>
    %17 = arith.truncf %16 : vector<8x16x16xf32> to vector<8x16x16xbf16>
    %18 = vector.extract_strided_slice %13 {offsets = [0, 0, 128], sizes = [8, 16, 16], strides = [1, 1, 1]} : vector<8x16x192xf32> to vector<8x16x16xf32>
    %19 = arith.truncf %18 : vector<8x16x16xf32> to vector<8x16x16xbf16>
    "tpu.trace_start"() <{level = 10 : i32, message = "bqd,bkd->bqk"}> : () -> ()
    %cst_10 = arith.constant dense<0.000000e+00> : vector<8x16x16xf32>
    %20 = tpu.matmul %15, %17, %cst_10 {dimension_numbers = #tpu.dot_dimension_numbers<[2], [2], [1], [1], [0, 0, 0, 1, 1, 1], [0], [0]>} : vector<8x16x16xbf16>, vector<8x16x16xbf16>, vector<8x16x16xf32> -> vector<8x16x16xf32>
    "tpu.trace_stop"() : () -> ()
    %cst_11 = arith.constant 2.500000e-01 : f32
    %21 = vector.broadcast %cst_11 : f32 to vector<8x16x16xf32>
    %22 = arith.mulf %20, %21 : vector<8x16x16xf32>
    %23 = vector.shape_cast %4 : vector<8x16xf32> to vector<8x1x16xf32>
    %24 = vector.broadcast %23 : vector<8x1x16xf32> to vector<8x16x16xf32>
    %25 = arith.addf %22, %24 : vector<8x16x16xf32>
    %cst_12 = arith.constant dense<0xFF800000> : vector<8x16xf32>
    %26 = vector.multi_reduction <maximumf>, %25, %cst_12 [2] : vector<8x16x16xf32> to vector<8x16xf32>
    %27 = vector.shape_cast %26 : vector<8x16xf32> to vector<8x16x1xf32>
    %28 = vector.broadcast %27 : vector<8x16x1xf32> to vector<8x16x16xf32>
    %29 = arith.subf %25, %28 : vector<8x16x16xf32>
    %30 = math.exp %29 : vector<8x16x16xf32>
    %cst_13 = arith.constant dense<0.000000e+00> : vector<8x16xf32>
    %31 = vector.multi_reduction <add>, %30, %cst_13 [2] : vector<8x16x16xf32> to vector<8x16xf32>
    %32 = vector.shape_cast %31 : vector<8x16xf32> to vector<8x16x1xf32>
    %33 = tpu.reciprocal %32 {approx = true} : vector<8x16x1xf32> -> vector<8x16x1xf32>
    %34 = vector.broadcast %33 : vector<8x16x1xf32> to vector<8x16x16xf32>
    %35 = arith.mulf %30, %34 : vector<8x16x16xf32>
    %36 = arith.truncf %35 : vector<8x16x16xf32> to vector<8x16x16xbf16>
    "tpu.trace_start"() <{level = 10 : i32, message = "bqk,bkd->bqd"}> : () -> ()
    %cst_14 = arith.constant dense<0.000000e+00> : vector<8x16x16xf32>
    %37 = tpu.matmul %36, %19, %cst_14 {dimension_numbers = #tpu.dot_dimension_numbers<[2], [1], [1], [2], [0, 0, 0, 1, 1, 2], [0], [0]>} : vector<8x16x16xbf16>, vector<8x16x16xbf16>, vector<8x16x16xf32> -> vector<8x16x16xf32>
    "tpu.trace_stop"() : () -> ()
    %38 = vector.extract_strided_slice %13 {offsets = [0, 0, 16], sizes = [8, 16, 16], strides = [1, 1, 1]} : vector<8x16x192xf32> to vector<8x16x16xf32>
    %39 = arith.truncf %38 : vector<8x16x16xf32> to vector<8x16x16xbf16>
    %40 = vector.extract_strided_slice %13 {offsets = [0, 0, 80], sizes = [8, 16, 16], strides = [1, 1, 1]} : vector<8x16x192xf32> to vector<8x16x16xf32>
    %41 = arith.truncf %40 : vector<8x16x16xf32> to vector<8x16x16xbf16>
    %42 = vector.extract_strided_slice %13 {offsets = [0, 0, 144], sizes = [8, 16, 16], strides = [1, 1, 1]} : vector<8x16x192xf32> to vector<8x16x16xf32>
    %43 = arith.truncf %42 : vector<8x16x16xf32> to vector<8x16x16xbf16>
    "tpu.trace_start"() <{level = 10 : i32, message = "bqd,bkd->bqk"}> : () -> ()
    %cst_15 = arith.constant dense<0.000000e+00> : vector<8x16x16xf32>
    %44 = tpu.matmul %39, %41, %cst_15 {dimension_numbers = #tpu.dot_dimension_numbers<[2], [2], [1], [1], [0, 0, 0, 1, 1, 1], [0], [0]>} : vector<8x16x16xbf16>, vector<8x16x16xbf16>, vector<8x16x16xf32> -> vector<8x16x16xf32>
    "tpu.trace_stop"() : () -> ()
    %cst_16 = arith.constant 2.500000e-01 : f32
    %45 = vector.broadcast %cst_16 : f32 to vector<8x16x16xf32>
    %46 = arith.mulf %44, %45 : vector<8x16x16xf32>
    %47 = vector.shape_cast %4 : vector<8x16xf32> to vector<8x1x16xf32>
    %48 = vector.broadcast %47 : vector<8x1x16xf32> to vector<8x16x16xf32>
    %49 = arith.addf %46, %48 : vector<8x16x16xf32>
    %cst_17 = arith.constant dense<0xFF800000> : vector<8x16xf32>
    %50 = vector.multi_reduction <maximumf>, %49, %cst_17 [2] : vector<8x16x16xf32> to vector<8x16xf32>
    %51 = vector.shape_cast %50 : vector<8x16xf32> to vector<8x16x1xf32>
    %52 = vector.broadcast %51 : vector<8x16x1xf32> to vector<8x16x16xf32>
    %53 = arith.subf %49, %52 : vector<8x16x16xf32>
    %54 = math.exp %53 : vector<8x16x16xf32>
    %cst_18 = arith.constant dense<0.000000e+00> : vector<8x16xf32>
    %55 = vector.multi_reduction <add>, %54, %cst_18 [2] : vector<8x16x16xf32> to vector<8x16xf32>
    %56 = vector.shape_cast %55 : vector<8x16xf32> to vector<8x16x1xf32>
    %57 = tpu.reciprocal %56 {approx = true} : vector<8x16x1xf32> -> vector<8x16x1xf32>
    %58 = vector.broadcast %57 : vector<8x16x1xf32> to vector<8x16x16xf32>
    %59 = arith.mulf %54, %58 : vector<8x16x16xf32>
    %60 = arith.truncf %59 : vector<8x16x16xf32> to vector<8x16x16xbf16>
    "tpu.trace_start"() <{level = 10 : i32, message = "bqk,bkd->bqd"}> : () -> ()
    %cst_19 = arith.constant dense<0.000000e+00> : vector<8x16x16xf32>
    %61 = tpu.matmul %60, %43, %cst_19 {dimension_numbers = #tpu.dot_dimension_numbers<[2], [1], [1], [2], [0, 0, 0, 1, 1, 2], [0], [0]>} : vector<8x16x16xbf16>, vector<8x16x16xbf16>, vector<8x16x16xf32> -> vector<8x16x16xf32>
    "tpu.trace_stop"() : () -> ()
    %62 = vector.extract_strided_slice %13 {offsets = [0, 0, 32], sizes = [8, 16, 16], strides = [1, 1, 1]} : vector<8x16x192xf32> to vector<8x16x16xf32>
    %63 = arith.truncf %62 : vector<8x16x16xf32> to vector<8x16x16xbf16>
    %64 = vector.extract_strided_slice %13 {offsets = [0, 0, 96], sizes = [8, 16, 16], strides = [1, 1, 1]} : vector<8x16x192xf32> to vector<8x16x16xf32>
    %65 = arith.truncf %64 : vector<8x16x16xf32> to vector<8x16x16xbf16>
    %66 = vector.extract_strided_slice %13 {offsets = [0, 0, 160], sizes = [8, 16, 16], strides = [1, 1, 1]} : vector<8x16x192xf32> to vector<8x16x16xf32>
    %67 = arith.truncf %66 : vector<8x16x16xf32> to vector<8x16x16xbf16>
    "tpu.trace_start"() <{level = 10 : i32, message = "bqd,bkd->bqk"}> : () -> ()
    %cst_20 = arith.constant dense<0.000000e+00> : vector<8x16x16xf32>
    %68 = tpu.matmul %63, %65, %cst_20 {dimension_numbers = #tpu.dot_dimension_numbers<[2], [2], [1], [1], [0, 0, 0, 1, 1, 1], [0], [0]>} : vector<8x16x16xbf16>, vector<8x16x16xbf16>, vector<8x16x16xf32> -> vector<8x16x16xf32>
    "tpu.trace_stop"() : () -> ()
    %cst_21 = arith.constant 2.500000e-01 : f32
    %69 = vector.broadcast %cst_21 : f32 to vector<8x16x16xf32>
    %70 = arith.mulf %68, %69 : vector<8x16x16xf32>
    %71 = vector.shape_cast %4 : vector<8x16xf32> to vector<8x1x16xf32>
    %72 = vector.broadcast %71 : vector<8x1x16xf32> to vector<8x16x16xf32>
    %73 = arith.addf %70, %72 : vector<8x16x16xf32>
    %cst_22 = arith.constant dense<0xFF800000> : vector<8x16xf32>
    %74 = vector.multi_reduction <maximumf>, %73, %cst_22 [2] : vector<8x16x16xf32> to vector<8x16xf32>
    %75 = vector.shape_cast %74 : vector<8x16xf32> to vector<8x16x1xf32>
    %76 = vector.broadcast %75 : vector<8x16x1xf32> to vector<8x16x16xf32>
    %77 = arith.subf %73, %76 : vector<8x16x16xf32>
    %78 = math.exp %77 : vector<8x16x16xf32>
    %cst_23 = arith.constant dense<0.000000e+00> : vector<8x16xf32>
    %79 = vector.multi_reduction <add>, %78, %cst_23 [2] : vector<8x16x16xf32> to vector<8x16xf32>
    %80 = vector.shape_cast %79 : vector<8x16xf32> to vector<8x16x1xf32>
    %81 = tpu.reciprocal %80 {approx = true} : vector<8x16x1xf32> -> vector<8x16x1xf32>
    %82 = vector.broadcast %81 : vector<8x16x1xf32> to vector<8x16x16xf32>
    %83 = arith.mulf %78, %82 : vector<8x16x16xf32>
    %84 = arith.truncf %83 : vector<8x16x16xf32> to vector<8x16x16xbf16>
    "tpu.trace_start"() <{level = 10 : i32, message = "bqk,bkd->bqd"}> : () -> ()
    %cst_24 = arith.constant dense<0.000000e+00> : vector<8x16x16xf32>
    %85 = tpu.matmul %84, %67, %cst_24 {dimension_numbers = #tpu.dot_dimension_numbers<[2], [1], [1], [2], [0, 0, 0, 1, 1, 2], [0], [0]>} : vector<8x16x16xbf16>, vector<8x16x16xbf16>, vector<8x16x16xf32> -> vector<8x16x16xf32>
    "tpu.trace_stop"() : () -> ()
    %86 = vector.extract_strided_slice %13 {offsets = [0, 0, 48], sizes = [8, 16, 16], strides = [1, 1, 1]} : vector<8x16x192xf32> to vector<8x16x16xf32>
    %87 = arith.truncf %86 : vector<8x16x16xf32> to vector<8x16x16xbf16>
    %88 = vector.extract_strided_slice %13 {offsets = [0, 0, 112], sizes = [8, 16, 16], strides = [1, 1, 1]} : vector<8x16x192xf32> to vector<8x16x16xf32>
    %89 = arith.truncf %88 : vector<8x16x16xf32> to vector<8x16x16xbf16>
    %90 = vector.extract_strided_slice %13 {offsets = [0, 0, 176], sizes = [8, 16, 16], strides = [1, 1, 1]} : vector<8x16x192xf32> to vector<8x16x16xf32>
    %91 = arith.truncf %90 : vector<8x16x16xf32> to vector<8x16x16xbf16>
    "tpu.trace_start"() <{level = 10 : i32, message = "bqd,bkd->bqk"}> : () -> ()
    %cst_25 = arith.constant dense<0.000000e+00> : vector<8x16x16xf32>
    %92 = tpu.matmul %87, %89, %cst_25 {dimension_numbers = #tpu.dot_dimension_numbers<[2], [2], [1], [1], [0, 0, 0, 1, 1, 1], [0], [0]>} : vector<8x16x16xbf16>, vector<8x16x16xbf16>, vector<8x16x16xf32> -> vector<8x16x16xf32>
    "tpu.trace_stop"() : () -> ()
    %cst_26 = arith.constant 2.500000e-01 : f32
    %93 = vector.broadcast %cst_26 : f32 to vector<8x16x16xf32>
    %94 = arith.mulf %92, %93 : vector<8x16x16xf32>
    %95 = vector.shape_cast %4 : vector<8x16xf32> to vector<8x1x16xf32>
    %96 = vector.broadcast %95 : vector<8x1x16xf32> to vector<8x16x16xf32>
    %97 = arith.addf %94, %96 : vector<8x16x16xf32>
    %cst_27 = arith.constant dense<0xFF800000> : vector<8x16xf32>
    %98 = vector.multi_reduction <maximumf>, %97, %cst_27 [2] : vector<8x16x16xf32> to vector<8x16xf32>
    %99 = vector.shape_cast %98 : vector<8x16xf32> to vector<8x16x1xf32>
    %100 = vector.broadcast %99 : vector<8x16x1xf32> to vector<8x16x16xf32>
    %101 = arith.subf %97, %100 : vector<8x16x16xf32>
    %102 = math.exp %101 : vector<8x16x16xf32>
    %cst_28 = arith.constant dense<0.000000e+00> : vector<8x16xf32>
    %103 = vector.multi_reduction <add>, %102, %cst_28 [2] : vector<8x16x16xf32> to vector<8x16xf32>
    %104 = vector.shape_cast %103 : vector<8x16xf32> to vector<8x16x1xf32>
    %105 = tpu.reciprocal %104 {approx = true} : vector<8x16x1xf32> -> vector<8x16x1xf32>
    %106 = vector.broadcast %105 : vector<8x16x1xf32> to vector<8x16x16xf32>
    %107 = arith.mulf %102, %106 : vector<8x16x16xf32>
    %108 = arith.truncf %107 : vector<8x16x16xf32> to vector<8x16x16xbf16>
    "tpu.trace_start"() <{level = 10 : i32, message = "bqk,bkd->bqd"}> : () -> ()
    %cst_29 = arith.constant dense<0.000000e+00> : vector<8x16x16xf32>
    %109 = tpu.matmul %108, %91, %cst_29 {dimension_numbers = #tpu.dot_dimension_numbers<[2], [1], [1], [2], [0, 0, 0, 1, 1, 2], [0], [0]>} : vector<8x16x16xbf16>, vector<8x16x16xbf16>, vector<8x16x16xf32> -> vector<8x16x16xf32>
    "tpu.trace_stop"() : () -> ()
    %110 = tpu.concatenate %37, %61, %85, %109 in 2 : vector<8x16x16xf32>, vector<8x16x16xf32>, vector<8x16x16xf32>, vector<8x16x16xf32> -> vector<8x16x64xf32>
    %111 = vector.shape_cast %110 : vector<8x16x64xf32> to vector<128x64xf32>
    %112 = arith.truncf %111 : vector<128x64xf32> to vector<128x64xbf16>
    %c0_30 = arith.constant 0 : index
    %c0_31 = arith.constant 0 : index
    %c0_32 = arith.constant 0 : index
    %113 = vector.load %arg7[%c0_30, %c0_31, %c0_32] : memref<1x64x64xbf16, #tpu.memory_space<vmem>>, vector<1x64x64xbf16>
    %114 = vector.shape_cast %113 : vector<1x64x64xbf16> to vector<64x64xbf16>
    %cst_33 = arith.constant dense<0.000000e+00> : vector<128x64xf32>
    %115 = tpu.matmul %112, %114, %cst_33 {dimension_numbers = #tpu.dot_dimension_numbers<[1], [0], [0], [1], [0, 0, 1, 1], [], []>} : vector<128x64xbf16>, vector<64x64xbf16>, vector<128x64xf32> -> vector<128x64xf32>
    %c0_34 = arith.constant 0 : index
    %c0_35 = arith.constant 0 : index
    %c0_36 = arith.constant 0 : index
    %116 = vector.load %arg8[%c0_34, %c0_35, %c0_36] : memref<1x1x64xf32, #tpu.memory_space<vmem>>, vector<1x1x64xf32>
    %117 = vector.shape_cast %116 : vector<1x1x64xf32> to vector<1x64xf32>
    %118 = vector.broadcast %117 : vector<1x64xf32> to vector<128x64xf32>
    %119 = arith.addf %115, %118 : vector<128x64xf32>
    %120 = arith.addf %119, %3 : vector<128x64xf32>
    %c0_37 = arith.constant 0 : index
    %c0_38 = arith.constant 0 : index
    %c0_39 = arith.constant 0 : index
    %121 = vector.load %arg9[%c0_37, %c0_38, %c0_39] : memref<1x1x64xf32, #tpu.memory_space<vmem>>, vector<1x1x64xf32>
    %122 = vector.shape_cast %121 : vector<1x1x64xf32> to vector<1x64xf32>
    %c0_40 = arith.constant 0 : index
    %c0_41 = arith.constant 0 : index
    %c0_42 = arith.constant 0 : index
    %123 = vector.load %arg10[%c0_40, %c0_41, %c0_42] : memref<1x1x64xf32, #tpu.memory_space<vmem>>, vector<1x1x64xf32>
    %124 = vector.shape_cast %123 : vector<1x1x64xf32> to vector<1x64xf32>
    %cst_43 = arith.constant dense<0.000000e+00> : vector<128xf32>
    %125 = vector.multi_reduction <add>, %120, %cst_43 [1] : vector<128x64xf32> to vector<128xf32>
    %126 = vector.shape_cast %125 : vector<128xf32> to vector<128x1xf32>
    %cst_44 = arith.constant 6.400000e+01 : f32
    %127 = vector.broadcast %cst_44 : f32 to vector<128x1xf32>
    %128 = arith.divf %126, %127 : vector<128x1xf32>
    %129 = vector.broadcast %128 : vector<128x1xf32> to vector<128x64xf32>
    %130 = arith.subf %120, %129 : vector<128x64xf32>
    %131 = arith.mulf %130, %130 : vector<128x64xf32>
    %cst_45 = arith.constant dense<0.000000e+00> : vector<128xf32>
    %132 = vector.multi_reduction <add>, %131, %cst_45 [1] : vector<128x64xf32> to vector<128xf32>
    %133 = vector.shape_cast %132 : vector<128xf32> to vector<128x1xf32>
    %cst_46 = arith.constant 6.400000e+01 : f32
    %134 = vector.broadcast %cst_46 : f32 to vector<128x1xf32>
    %135 = arith.divf %133, %134 : vector<128x1xf32>
    %136 = vector.broadcast %128 : vector<128x1xf32> to vector<128x64xf32>
    %137 = arith.subf %120, %136 : vector<128x64xf32>
    %cst_47 = arith.constant 9.99999996E-13 : f32
    %138 = vector.broadcast %cst_47 : f32 to vector<128x1xf32>
    %139 = arith.addf %135, %138 : vector<128x1xf32>
    %140 = math.rsqrt %139 : vector<128x1xf32>
    %141 = vector.broadcast %140 : vector<128x1xf32> to vector<128x64xf32>
    %142 = arith.mulf %137, %141 : vector<128x64xf32>
    %143 = vector.broadcast %122 : vector<1x64xf32> to vector<128x64xf32>
    %144 = arith.mulf %142, %143 : vector<128x64xf32>
    %145 = vector.broadcast %124 : vector<1x64xf32> to vector<128x64xf32>
    %146 = arith.addf %144, %145 : vector<128x64xf32>
    %147 = arith.truncf %146 : vector<128x64xf32> to vector<128x64xbf16>
    %c0_48 = arith.constant 0 : index
    %c0_49 = arith.constant 0 : index
    %c0_50 = arith.constant 0 : index
    %148 = vector.load %arg11[%c0_48, %c0_49, %c0_50] : memref<1x64x128xbf16, #tpu.memory_space<vmem>>, vector<1x64x128xbf16>
    %149 = vector.shape_cast %148 : vector<1x64x128xbf16> to vector<64x128xbf16>
    %cst_51 = arith.constant dense<0.000000e+00> : vector<128x128xf32>
    %150 = tpu.matmul %147, %149, %cst_51 {dimension_numbers = #tpu.dot_dimension_numbers<[1], [0], [0], [1], [0, 0, 1, 1], [], []>} : vector<128x64xbf16>, vector<64x128xbf16>, vector<128x128xf32> -> vector<128x128xf32>
    %c0_52 = arith.constant 0 : index
    %c0_53 = arith.constant 0 : index
    %c0_54 = arith.constant 0 : index
    %151 = vector.load %arg12[%c0_52, %c0_53, %c0_54] : memref<1x1x128xf32, #tpu.memory_space<vmem>>, vector<1x1x128xf32>
    %152 = vector.shape_cast %151 : vector<1x1x128xf32> to vector<1x128xf32>
    %153 = vector.broadcast %152 : vector<1x128xf32> to vector<128x128xf32>
    %154 = arith.addf %150, %153 : vector<128x128xf32>
    %155 = arith.mulf %154, %154 : vector<128x128xf32>
    %156 = arith.mulf %154, %155 : vector<128x128xf32>
    %cst_55 = arith.constant 4.471500e-02 : f32
    %157 = vector.broadcast %cst_55 : f32 to vector<128x128xf32>
    %158 = arith.mulf %157, %156 : vector<128x128xf32>
    %159 = arith.addf %154, %158 : vector<128x128xf32>
    %cst_56 = arith.constant 0.797884583 : f32
    %160 = vector.broadcast %cst_56 : f32 to vector<128x128xf32>
    %161 = arith.mulf %160, %159 : vector<128x128xf32>
    %162 = math.tanh %161 : vector<128x128xf32>
    %cst_57 = arith.constant 1.000000e+00 : f32
    %163 = vector.broadcast %cst_57 : f32 to vector<128x128xf32>
    %164 = arith.addf %163, %162 : vector<128x128xf32>
    %cst_58 = arith.constant 5.000000e-01 : f32
    %165 = vector.broadcast %cst_58 : f32 to vector<128x128xf32>
    %166 = arith.mulf %165, %164 : vector<128x128xf32>
    %167 = arith.mulf %154, %166 : vector<128x128xf32>
    %168 = arith.truncf %167 : vector<128x128xf32> to vector<128x128xbf16>
    %c0_59 = arith.constant 0 : index
    %c0_60 = arith.constant 0 : index
    %c0_61 = arith.constant 0 : index
    %169 = vector.load %arg13[%c0_59, %c0_60, %c0_61] : memref<1x128x64xbf16, #tpu.memory_space<vmem>>, vector<1x128x64xbf16>
    %170 = vector.shape_cast %169 : vector<1x128x64xbf16> to vector<128x64xbf16>
    %cst_62 = arith.constant dense<0.000000e+00> : vector<128x64xf32>
    %171 = tpu.matmul %168, %170, %cst_62 {dimension_numbers = #tpu.dot_dimension_numbers<[1], [0], [0], [1], [0, 0, 1, 1], [], []>} : vector<128x128xbf16>, vector<128x64xbf16>, vector<128x64xf32> -> vector<128x64xf32>
    %c0_63 = arith.constant 0 : index
    %c0_64 = arith.constant 0 : index
    %c0_65 = arith.constant 0 : index
    %172 = vector.load %arg14[%c0_63, %c0_64, %c0_65] : memref<1x1x64xf32, #tpu.memory_space<vmem>>, vector<1x1x64xf32>
    %173 = vector.shape_cast %172 : vector<1x1x64xf32> to vector<1x64xf32>
    %174 = vector.broadcast %173 : vector<1x64xf32> to vector<128x64xf32>
    %175 = arith.addf %171, %174 : vector<128x64xf32>
    %176 = arith.addf %175, %146 : vector<128x64xf32>
    %c0_66 = arith.constant 0 : index
    %c0_67 = arith.constant 0 : index
    %c0_68 = arith.constant 0 : index
    %177 = vector.load %arg15[%c0_66, %c0_67, %c0_68] : memref<1x1x64xf32, #tpu.memory_space<vmem>>, vector<1x1x64xf32>
    %178 = vector.shape_cast %177 : vector<1x1x64xf32> to vector<1x64xf32>
    %c0_69 = arith.constant 0 : index
    %c0_70 = arith.constant 0 : index
    %c0_71 = arith.constant 0 : index
    %179 = vector.load %arg16[%c0_69, %c0_70, %c0_71] : memref<1x1x64xf32, #tpu.memory_space<vmem>>, vector<1x1x64xf32>
    %180 = vector.shape_cast %179 : vector<1x1x64xf32> to vector<1x64xf32>
    %cst_72 = arith.constant dense<0.000000e+00> : vector<128xf32>
    %181 = vector.multi_reduction <add>, %176, %cst_72 [1] : vector<128x64xf32> to vector<128xf32>
    %182 = vector.shape_cast %181 : vector<128xf32> to vector<128x1xf32>
    %cst_73 = arith.constant 6.400000e+01 : f32
    %183 = vector.broadcast %cst_73 : f32 to vector<128x1xf32>
    %184 = arith.divf %182, %183 : vector<128x1xf32>
    %185 = vector.broadcast %184 : vector<128x1xf32> to vector<128x64xf32>
    %186 = arith.subf %176, %185 : vector<128x64xf32>
    %187 = arith.mulf %186, %186 : vector<128x64xf32>
    %cst_74 = arith.constant dense<0.000000e+00> : vector<128xf32>
    %188 = vector.multi_reduction <add>, %187, %cst_74 [1] : vector<128x64xf32> to vector<128xf32>
    %189 = vector.shape_cast %188 : vector<128xf32> to vector<128x1xf32>
    %cst_75 = arith.constant 6.400000e+01 : f32
    %190 = vector.broadcast %cst_75 : f32 to vector<128x1xf32>
    %191 = arith.divf %189, %190 : vector<128x1xf32>
    %192 = vector.broadcast %184 : vector<128x1xf32> to vector<128x64xf32>
    %193 = arith.subf %176, %192 : vector<128x64xf32>
    %cst_76 = arith.constant 9.99999996E-13 : f32
    %194 = vector.broadcast %cst_76 : f32 to vector<128x1xf32>
    %195 = arith.addf %191, %194 : vector<128x1xf32>
    %196 = math.rsqrt %195 : vector<128x1xf32>
    %197 = vector.broadcast %196 : vector<128x1xf32> to vector<128x64xf32>
    %198 = arith.mulf %193, %197 : vector<128x64xf32>
    %199 = vector.broadcast %178 : vector<1x64xf32> to vector<128x64xf32>
    %200 = arith.mulf %198, %199 : vector<128x64xf32>
    %201 = vector.broadcast %180 : vector<1x64xf32> to vector<128x64xf32>
    %202 = arith.addf %200, %201 : vector<128x64xf32>
    %c0_77 = arith.constant 0 : index
    %c0_78 = arith.constant 0 : index
    %203 = vector.load %arg18[%c0_77, %c0_78] : memref<128x64xf32, #tpu.memory_space<vmem>>, vector<128x64xf32>
    tpu.vector_store %arg18[%c0_77, %c0_78], %202 {strides = array<i32>} : memref<128x64xf32, #tpu.memory_space<vmem>>, vector<128x64xf32>,
    %c1_i32 = arith.constant 1 : i32
    %204 = arith.cmpi eq, %arg0, %c1_i32 : i32
    %205 = arith.extui %204 : i1 to i32
    %c0_i32_79 = arith.constant 0 : i32
    %206 = arith.cmpi ne, %205, %c0_i32_79 : i32
    scf.if %206 {
      %c0_80 = arith.constant 0 : index
      %c0_81 = arith.constant 0 : index
      %207 = vector.load %arg17[%c0_80, %c0_81] : memref<128x64xf32, #tpu.memory_space<vmem>>, vector<128x64xf32>
      tpu.vector_store %arg17[%c0_80, %c0_81], %202 {strides = array<i32>} : memref<128x64xf32, #tpu.memory_space<vmem>>, vector<128x64xf32>,
    } else {
    }
    return
  }
  func.func @transform_0(%arg0: i32) -> (i32, i32) {
    %c0_i32 = arith.constant 0 : i32
    %c0_i32_0 = arith.constant 0 : i32
    %c0_i32_1 = arith.constant 0 : i32
    return %c0_i32, %c0_i32_0 : i32, i32
  }
  func.func @transform_1(%arg0: i32) -> (i32, i32) {
    %c0_i32 = arith.constant 0 : i32
    %c0_i32_0 = arith.constant 0 : i32
    %c0_i32_1 = arith.constant 0 : i32
    return %c0_i32, %c0_i32_0 : i32, i32
  }
  func.func @transform_2(%arg0: i32) -> (i32, i32) {
    %c0_i32 = arith.constant 0 : i32
    %c0_i32_0 = arith.constant 0 : i32
    %c0_i32_1 = arith.constant 0 : i32
    return %c0_i32, %c0_i32_0 : i32, i32
  }
  func.func @transform_3(%arg0: i32) -> (i32, i32) {
    %c0_i32 = arith.constant 0 : i32
    %c0_i32_0 = arith.constant 0 : i32
    %c0_i32_1 = arith.constant 0 : i32
    return %c0_i32, %c0_i32_0 : i32, i32
  }
  func.func @transform_4(%arg0: i32) -> (i32, i32, i32) {
    %c0_i32 = arith.constant 0 : i32
    %c0_i32_0 = arith.constant 0 : i32
    %c0_i32_1 = arith.constant 0 : i32
    return %arg0, %c0_i32, %c0_i32_0 : i32, i32, i32
  }
  func.func @transform_5(%arg0: i32) -> (i32, i32, i32) {
    %c0_i32 = arith.constant 0 : i32
    %c0_i32_0 = arith.constant 0 : i32
    %c0_i32_1 = arith.constant 0 : i32
    return %arg0, %c0_i32, %c0_i32_0 : i32, i32, i32
  }
  func.func @transform_6(%arg0: i32) -> (i32, i32, i32) {
    %c0_i32 = arith.constant 0 : i32
    %c0_i32_0 = arith.constant 0 : i32
    %c0_i32_1 = arith.constant 0 : i32
    return %arg0, %c0_i32, %c0_i32_0 : i32, i32, i32
  }
  func.func @transform_7(%arg0: i32) -> (i32, i32, i32) {
    %c0_i32 = arith.constant 0 : i32
    %c0_i32_0 = arith.constant 0 : i32
    %c0_i32_1 = arith.constant 0 : i32
    return %arg0, %c0_i32, %c0_i32_0 : i32, i32, i32
  }
  func.func @transform_8(%arg0: i32) -> (i32, i32, i32) {
    %c0_i32 = arith.constant 0 : i32
    %c0_i32_0 = arith.constant 0 : i32
    %c0_i32_1 = arith.constant 0 : i32
    return %arg0, %c0_i32, %c0_i32_0 : i32, i32, i32
  }
  func.func @transform_9(%arg0: i32) -> (i32, i32, i32) {
    %c0_i32 = arith.constant 0 : i32
    %c0_i32_0 = arith.constant 0 : i32
    %c0_i32_1 = arith.constant 0 : i32
    return %arg0, %c0_i32, %c0_i32_0 : i32, i32, i32
  }
  func.func @transform_10(%arg0: i32) -> (i32, i32, i32) {
    %c0_i32 = arith.constant 0 : i32
    %c0_i32_0 = arith.constant 0 : i32
    %c0_i32_1 = arith.constant 0 : i32
    return %arg0, %c0_i32, %c0_i32_0 : i32, i32, i32
  }
  func.func @transform_11(%arg0: i32) -> (i32, i32, i32) {
    %c0_i32 = arith.constant 0 : i32
    %c0_i32_0 = arith.constant 0 : i32
    %c0_i32_1 = arith.constant 0 : i32
    return %arg0, %c0_i32, %c0_i32_0 : i32, i32, i32
  }
  func.func @transform_12(%arg0: i32) -> (i32, i32, i32) {
    %c0_i32 = arith.constant 0 : i32
    %c0_i32_0 = arith.constant 0 : i32
    %c0_i32_1 = arith.constant 0 : i32
    return %arg0, %c0_i32, %c0_i32_0 : i32, i32, i32
  }
  func.func @transform_13(%arg0: i32) -> (i32, i32, i32) {
    %c0_i32 = arith.constant 0 : i32
    %c0_i32_0 = arith.constant 0 : i32
    %c0_i32_1 = arith.constant 0 : i32
    return %arg0, %c0_i32, %c0_i32_0 : i32, i32, i32
  }
  func.func @transform_14(%arg0: i32) -> (i32, i32, i32) {
    %c0_i32 = arith.constant 0 : i32
    %c0_i32_0 = arith.constant 0 : i32
    %c0_i32_1 = arith.constant 0 : i32
    return %arg0, %c0_i32, %c0_i32_0 : i32, i32, i32
  }
  func.func @transform_15(%arg0: i32) -> (i32, i32, i32) {
    %c0_i32 = arith.constant 0 : i32
    %c0_i32_0 = arith.constant 0 : i32
    %c0_i32_1 = arith.constant 0 : i32
    return %arg0, %c0_i32, %c0_i32_0 : i32, i32, i32
  }
  func.func @transform_16(%arg0: i32) -> (i32, i32) {
    %c0_i32 = arith.constant 0 : i32
    %c0_i32_0 = arith.constant 0 : i32
    %c0_i32_1 = arith.constant 0 : i32
    return %c0_i32, %c0_i32_0 : i32, i32
  }
}

</mosaic_0001>

<bundles_post_ra>
// kernel: tpu_custom_call.1
= control target key start
LH: loop header
LB: loop body
LE: loop exit
PB: predicated region body
PF: predicated region fallthrough
CT: control target
= control target key end

     0   :  { %s9622_s0 = inlined_call_operand.vmem [shape: bf16[128,64], index: 0, kind: input, shape index: {}]   ;;  %s9623_s1 = inlined_call_operand.vmem [shape: f32[8,16], index: 1, kind: input, shape index: {}]   ;;  %s9624_s2 = inlined_call_operand.vmem [shape: f32[1,64], index: 2, kind: input, shape index: {}]   ;;  %s9625_s3 = inlined_call_operand.vmem [shape: f32[1,64], index: 3, kind: input, shape index: {}]   ;;  %s9626_s4 = inlined_call_operand.vmem [shape: bf16[2,64,192], index: 4, kind: input, shape index: {}]   ;;  %s9627_s5 = inlined_call_operand.vmem [shape: f32[2,1,192], index: 5, kind: input, shape index: {}]   ;;  %s9628_s6 = inlined_call_operand.vmem [shape: bf16[2,64,64], index: 6, kind: input, shape index: {}]   ;;  %s9629_s7 = inlined_call_operand.vmem [shape: f32[2,1,64], index: 7, kind: input, shape index: {}]   ;;  %s9630_s8 = inlined_call_operand.vmem [shape: f32[2,1,64], index: 8, kind: input, shape index: {}]   ;;  %s9631_s9 = inlined_call_operand.vmem [shape: f32[2,1,64], index: 9, kind: input, shape index: {}]   ;;  %s9632_s10 = inlined_call_operand.hbm [shape: bf16[2,64,128], index: 10, kind: input, shape index: {}]   ;;  %s9633_s11 = inlined_call_operand.vmem [shape: f32[2,1,128], index: 11, kind: input, shape index: {}]   ;;  %s9634_s12 = inlined_call_operand.vmem [shape: bf16[2,128,64], index: 12, kind: input, shape index: {}]   ;;  %s9635_s13 = inlined_call_operand.vmem [shape: f32[2,1,64], index: 13, kind: input, shape index: {}]   ;;  %s9636_s14 = inlined_call_operand.vmem [shape: f32[2,1,64], index: 14, kind: input, shape index: {}]   ;;  %s9637_s15 = inlined_call_operand.vmem [shape: f32[2,1,64], index: 15, kind: input, shape index: {}]   ;;  %s9638_s16 = inlined_call_operand.vmem [shape: f32[128,64], index: 16, kind: output, shape index: {}]  }
   0x1   :  { %9662 = sst [smem:[#allocation38_spill]] %s9622_s0 }
   0x2   :  { %9663 = sst [smem:[#allocation39_spill]] %s9623_s1 }
   0x3   :  { %9664 = sst [smem:[#allocation40_spill]] %s9625_s3 }
   0x4   :  { %9665 = sst [smem:[#allocation41_spill]] %s9626_s4 }
   0x5   :  { %9666 = sst [smem:[#allocation42_spill]] %s9627_s5 }
   0x6   :  { %9667 = sst [smem:[#allocation43_spill]] %s9632_s10 }
   0x7   :  { %9668 = sst [smem:[#allocation44_spill]] %s9638_s16 }
   0x8   :  { %21 = vsyncpa [#allocation4], 0 }
   0x9   :  { %23 = vsyncpa [#allocation4 + $0x1], 0  ;;  %s6709_s21 = smov 0   ;;  %s6711_s22 = smov 0  }
   0xa   :  { %s6713_s23 = smov 0   ;;  %s6715_s24 = smov 0  }
   0xb LB: > { %9669 = sst [smem:[#allocation6_spill]] %s6603_s22  ;;  %s6728_s25 = sadd.s32 4294967295, %s6611_s24   ;;  %s6611_s24 = sphi %s6715_s24, %s9754_s24   ;;  %s6607_s23 = sphi %s6713_s23, %s9757_s23   ;;  %s6603_s22 = sphi %s6711_s22, %s9756_s22   ;;  %s6599_s21 = sphi %s6709_s21, %s9755_s21  }
   0xc   : > { %9670 = sst [smem:[#allocation7_spill]] %s6607_s23  ;;  %s6731_s26 = sadd.s32 1, %s6611_s24  }
   0xd   : > { %9671 = sst [smem:[#allocation8_spill]] %s6731_s26  ;;  %s273_s27 = ssub.s32 %s6611_s24, %s6731_s26 }
   0xe   : > { %s276_s28 = sadd.s32 1, %s6607_s23  ;;  %p274_p0 = scmp.eq.s32.totalorder %s273_s27, 0 }
   0xf   : > { %p283_p1 = scmp.ne.s32.totalorder %s6607_s23, %s6603_s22  ;;  %p284_p2 = scmp.eq.s32.totalorder %s6611_s24, 0 }
  0x10   : > { %p289_p3 = scmp.ne.s32.totalorder %s6603_s22, %s6599_s21  ;;  %p290_p5 = scmp.eq.s32.totalorder %s6728_s25, 0 }
  0x11   : > { %s6741_s29 = scalar_select %p274_p0, %s6607_s23, %s276_s28  }
  0x12   : > { %p6743_p4 = por %p284_p2, %p283_p1  ;;  %p5970_p6 = scmp.lt.s32.totalorder %s6611_s24, 2 }
  0x13   : > { %9672 = sst [smem:[#allocation9_spill]] %s6741_s29  ;;  %p6749_p7 = por %p290_p5, %p289_p3 }
  0x14   : > { %s517_s17 = sand.u32 1, %s6607_s23   ;;  %s5893_s19 = sshll.u32 %s6611_s24, 5 }
  0x15   : > { %s5685_s18 = sshll.u32 %s517_s17, 5  ;;  %s9675_s10 = sld [smem:[#allocation43_spill]] }
  0x16   : > { %s521_s28 = scalar_lea.vmem [#allocation3], %s5685_s18  ;;  %p6760_p8 = pnand %p5970_p6, %p6743_p4 }
  0x17   : > { %s529_s29 = sshll.u32 %s521_s28, 4  ;;  %p5688_p9 = scmp.ge.s32.totalorder %s6611_s24, 1  ;;  %s530_s29 = int_to_ptr.vmem [resolvable:$true] %s529_s29 }
  0x18   : > { %s518_s1 = scalar_lea.sflag [#allocation4], %s517_s17  ;;  %p6551_p11 = pneg %p6760_p8 }
  0x1b   : > { %s526_s21 = scalar_lea.hbm %s9675_s10, %s5893_s19  ;;  %s6554_s20 = scalar_lea.hbm %s9675_s10, 64 }
  0x1c   : > { %s527_s26 = sshll.u32 %s526_s21, 4  ;;  %s528_s26 = int_to_ptr.hbm [resolvable:$true] %s527_s26 }
  0x1d   : > { %s6547_s23 = sshra.s32 %s528_s26, 4  ;;  %s6548_s23 = int_to_ptr.hbm [resolvable:$true] %s6547_s23 }
  0x1e   : > { %s6549_s3 = scalar_lea.hbm %s6548_s23, 32  ;;  %p6555_p0 = scmp.lt.s32.totalorder %s6548_s23, %s9675_s10 }
  0x1f   : > { %p6550_p10 = scmp.ne.s32.totalorder %s6548_s23, %s6549_s3  ;;  %p6556_p1 = scmp.lt.s32.totalorder %s6554_s20, %s6549_s3 }
  0x21   : > { %p6552_p12 = pnand %p6551_p11, %p6550_p10  ;;  %p6557_p2 = por %p6556_p1, %p6555_p0 }
  0x23   : > { %p6553_p13 = pneg %p6552_p12 }
  0x25   : > { %p6558_p3 = pnand %p6557_p2, %p6553_p13 }
  0x27   : > { %6561 = shalt.err (!%p6558_p3)
}
  0x28   : > { %s6613_s17 = smov 64   ;;  %s6614_s21 = smov 4  }
  0x29   : > { %5969 = dma.hbm_to_vmem [thread:$0]  (!%p6760_p8), %s528_s26, 512, %s530_s29, %s518_s1, %s6613_s17, %s6613_s17, %s6614_s21  }
  0x2a   : > { %p569_p4 = scmp.lt.s32.totalorder %s6611_s24, 3 }
  0x2c   : > { %p570_p5 = pnand %p5688_p9, %p569_p4 }
  0x2e   : > { %573 = sbr.rel (%p570_p5) target bundleno = 4476 (0x117c), region = 84 }
  0x33   : > { %s575_s28 = sand.u32 1, %s6603_s22  }
  0x34   : > { %s5689_s18 = sshll.u32 %s575_s28, 5  ;;  %s576_s23 = scalar_lea.sflag [#allocation4], %s575_s28 }
  0x35   : > { %s6779_s3 = scalar_lea.vmem [#allocation3], %s5689_s18 }
  0x36   : > { %9677 = sst [smem:[#allocation10_spill]] %s6779_s3 }
  0x37   : > { %6594 = dma.done.wait (%p6749_p7), %s576_s23, 512  }
  0x38   : > { %6596 = vsyncadd (%p6749_p7), %s576_s23, 4294966784  ;;  %p664_p6 = scmp.lt.s32.totalorder %s6728_s25, 1  ;;  %s9678_s4 = sld [smem:[#allocation41_spill]] }
  0x39   : > { %s9679_s5 = sld [smem:[#allocation42_spill]]  ;;  %p5697_p7 = scmp.ne.s32.totalorder %s6728_s25, 0 }
  0x3a   : > { %s6787_s1 = scalar_select %p664_p6, %s6728_s25, 1 }
  0x3c   : > { %s5894_s16 = sshll.u32 %s6787_s1, 6  ;;  %s5692_s24 = sshll.u32 %s6787_s1, 1 }
  0x3d   : > { %s5895_s27 = sshll.u32 %s6787_s1, 5  ;;  %s686_s19 = scalar_lea.vmem %s9631_s9, %s6787_s1 }
  0x3e   : > { %s6794_s0 = scalar_lea.vmem %s9678_s4, %s5894_s16  ;;  %s6809_s10 = scalar_lea.vmem %s9628_s6, %s5895_s27 }
  0x3f   : > { %s6799_s30 = scalar_lea.vmem %s9679_s5, %s5692_s24  ;;  %s689_s5 = scalar_lea.vmem %s9633_s11, %s6787_s1 }
  0x40   : > { %9680 = sst [smem:[#allocation11_spill]] %s6799_s30  ;;  %s6826_s21 = scalar_lea.vmem %s9634_s12, %s5894_s16 }
  0x41   : > { %s697_s23 = scalar_lea.vmem %s9635_s13, %s6787_s1  ;;  %s700_s3 = scalar_lea.vmem %s9636_s14, %s6787_s1 }
  0x42   : > { %s703_s29 = scalar_lea.vmem %s9637_s15, %s6787_s1  ;;  %708 = sbr.rel (%p5697_p7) target bundleno = 394 (0x18a), region = 92 }
  0x43   : > { %s9681_s30 = sld [smem:[#allocation38_spill]] (!%p5697_p7) }
  0x44   : > { %s9682_s24 = sld [smem:[#allocation40_spill]] (!%p5697_p7) }
  0x47   : > { %vm743_vm0 = vcmask 523264   ;;  %v6615_v40 = vmov 64.0  }
  0x48   : > { %6016 = vrcp.f32 %v6615_v40 }
  0x49   : > { %v6844_v0 = vld [vmem:[%s9681_s30 + $0x10] sm:$0xff]   ;;  %v6849_v1 = vld [vmem:[%s9681_s30 + $0x8] sm:$0xff]   ;;  %v6854_v2 = vld [vmem:[%s9681_s30] sm:$0xff]  }
  0x4a   : > { %v5931_v3 = vunpack.c.l.bf16 %v6844_v0  ;;  %v5927_v4 = vunpack.c.l.bf16 %v6849_v1  ;;  %v5923_v5 = vunpack.c.l.bf16 %v6854_v2  ;;  %v5932_v9 = vunpack.c.h.bf16 %v6844_v0  ;;  %v6883_v15 = vld [vmem:[%s9681_s30 + $0x20] sm:$0xff]   ;;  %v6888_v16 = vld [vmem:[%s9681_s30 + $0x18] sm:$0xff]   ;;  %v6905_v23 = vld [vmem:[%s9681_s30 + $0x28] sm:$0xff]  }
  0x4b   : > { %v5928_v10 = vunpack.c.h.bf16 %v6849_v1  ;;  %v5924_v11 = vunpack.c.h.bf16 %v6854_v2  ;;  %v5939_v17 = vunpack.c.l.bf16 %v6883_v15  ;;  %v5936_v18 = vunpack.c.h.bf16 %v6888_v16  ;;  %v6922_v30 = vld [vmem:[%s9681_s30 + $0x38] sm:$0xff]   ;;  %v6927_v31 = vld [vmem:[%s9681_s30 + $0x30] sm:$0xff]  }
  0x4c   : > { %v756_v6 = vsel %vm743_vm0, %v5931_v3, 0.0  ;;  %v750_v7 = vsel %vm743_vm0, %v5927_v4, 0.0  ;;  %v744_v8 = vsel %vm743_vm0, %v5923_v5, 0.0  ;;  %v759_v12 = vsel %vm743_vm0, %v5932_v9, 0.0 }
  0x4d   : > { %757 = vadd.xlane.f32.xlu2 %v756_v6  ;;  %751 = vadd.xlane.f32.xlu1 %v750_v7  ;;  %v753_v13 = vsel %vm743_vm0, %v5928_v10, 0.0  ;;  %v747_v14 = vsel %vm743_vm0, %v5924_v11, 0.0  ;;  %v5935_v19 = vunpack.c.l.bf16 %v6888_v16  ;;  %v768_v20 = vsel %vm743_vm0, %v5939_v17, 0.0 }
  0x4e   : > { %745 = vadd.xlane.f32.xlu0 %v744_v8  ;;  %v765_v21 = vsel %vm743_vm0, %v5936_v18, 0.0  ;;  %v5944_v24 = vunpack.c.h.bf16 %v6905_v23  ;;  %v5943_v25 = vunpack.c.l.bf16 %v6905_v23  ;;  %v5940_v26 = vunpack.c.h.bf16 %v6883_v15  ;;  %v6017_v41 = vpop.eup %6016 }
  0x4f   : > { %v762_v22 = vsel %vm743_vm0, %v5935_v19, 0.0  ;;  %v5951_v32 = vunpack.c.l.bf16 %v6922_v30  ;;  %v5948_v33 = vunpack.c.h.bf16 %v6927_v31  ;;  %v5947_v34 = vunpack.c.l.bf16 %v6927_v31 }
  0x50   : > { %v777_v27 = vsel %vm743_vm0, %v5944_v24, 0.0  ;;  %v774_v28 = vsel %vm743_vm0, %v5943_v25, 0.0  ;;  %v771_v29 = vsel %vm743_vm0, %v5940_v26, 0.0  ;;  %v5952_v38 = vunpack.c.h.bf16 %v6922_v30 }
  0x51   : > { %v786_v35 = vsel %vm743_vm0, %v5951_v32, 0.0  ;;  %v783_v36 = vsel %vm743_vm0, %v5948_v33, 0.0  ;;  %v780_v37 = vsel %vm743_vm0, %v5947_v34, 0.0  ;;  %v793_v42 = vmul.f32 64.0, %v6017_v41 }
  0x52   : > { %v789_v39 = vsel %vm743_vm0, %v5952_v38, 0.0  ;;  %vm797_vm1 = vweird.f32 %v6017_v41 }
  0x53   : > { %v794_v43 = vsub.f32 1.0, %v793_v42 }
  0x55   : > { %760 = vadd.xlane.f32.xlu2 %v759_v12  ;;  %754 = vadd.xlane.f32.xlu1 %v753_v13  ;;  %v795_v44 = vmul.f32 %v6017_v41, %v794_v43 }
  0x56   : > { %748 = vadd.xlane.f32.xlu0 %v747_v14 }
  0x57   : > { %v796_v45 = vadd.f32 %v6017_v41, %v795_v44 }
  0x59   : > { %v6945_v46 = vsel %vm797_vm1, %v6017_v41, %v796_v45 }
  0x5d   : > { %769 = vadd.xlane.f32.xlu2 %v768_v20  ;;  %766 = vadd.xlane.f32.xlu1 %v765_v21 }
  0x5e   : > { %763 = vadd.xlane.f32.xlu0 %v762_v22 }
  0x65   : > { %778 = vadd.xlane.f32.xlu2 %v777_v27  ;;  %775 = vadd.xlane.f32.xlu1 %v774_v28 }
  0x66   : > { %772 = vadd.xlane.f32.xlu0 %v771_v29 }
  0x6d   : > { %787 = vadd.xlane.f32.xlu2 %v786_v35  ;;  %784 = vadd.xlane.f32.xlu1 %v783_v36 }
  0x6e   : > { %781 = vadd.xlane.f32.xlu0 %v780_v37 }
  0x76   : > { %790 = vadd.xlane.f32.xlu0 %v789_v39 }
  0xc0   : > { %v758_v47 = vpop.xlane.xlu2 %757  ;;  %v752_v48 = vpop.xlane.xlu1 %751 }
  0xc1   : > { %v801_v49 = vmul.f32 %v6945_v46, %v752_v48  ;;  %v746_v50 = vpop.xlane.xlu0 %745  ;;  %v803_v6 = vmul.f32 %v6945_v46, %v758_v47 }
  0xc2   : > { %v799_v51 = vmul.f32 %v6945_v46, %v746_v50 }
  0xc3   : > { %v6951_v52 = vsub.f32 %v5927_v4, %v801_v49 }
  0xc4   : > { %v6955_v53 = vsub.f32 %v5923_v5, %v799_v51 }
  0xc5   : > { %v833_v54 = vmul.f32 %v6951_v52, %v6951_v52 }
  0xc6   : > { %v831_v55 = vmul.f32 %v6955_v53, %v6955_v53 }
  0xc7   : > { %v853_v56 = vsel %vm743_vm0, %v833_v54, 0.0 }
  0xc8   : > { %v761_v57 = vpop.xlane.xlu2 %760  ;;  %v755_v58 = vpop.xlane.xlu1 %754  ;;  %854 = vadd.xlane.f32.xlu0 %v853_v56  ;;  %v847_v59 = vsel %vm743_vm0, %v831_v55, 0.0 }
  0xc9   : > { %v804_v60 = vmul.f32 %v6945_v46, %v761_v57  ;;  %v802_v61 = vmul.f32 %v6945_v46, %v755_v58  ;;  %848 = vadd.xlane.f32.xlu1 %v847_v59  ;;  %v749_v62 = vpop.xlane.xlu0 %748 }
  0xca   : > { %v800_v63 = vmul.f32 %v6945_v46, %v749_v62 }
  0xcb   : > { %v6968_v4 = vsub.f32 %v5932_v9, %v804_v60  ;;  %v6972_v5 = vsub.f32 %v5928_v10, %v802_v61  ;;  %v6989_v10 = vsub.f32 %v5931_v3, %v803_v6 }
  0xcc   : > { %v6977_v7 = vsub.f32 %v5924_v11, %v800_v63 }
  0xcd   : > { %v836_v8 = vmul.f32 %v6968_v4, %v6968_v4  ;;  %v834_v12 = vmul.f32 %v6972_v5, %v6972_v5  ;;  %v835_v3 = vmul.f32 %v6989_v10, %v6989_v10 }
  0xce   : > { %v832_v9 = vmul.f32 %v6977_v7, %v6977_v7 }
  0xcf   : > { %v862_v13 = vsel %vm743_vm0, %v836_v8, 0.0  ;;  %v856_v1 = vsel %vm743_vm0, %v834_v12, 0.0 }
  0xd0   : > { %v770_v2 = vpop.xlane.xlu2 %769  ;;  %863 = vadd.xlane.f32.xlu0 %v862_v13  ;;  %v850_v11 = vsel %vm743_vm0, %v832_v9, 0.0  ;;  %v767_v14 = vpop.xlane.xlu1 %766 }
  0xd1   : > { %v807_v20 = vmul.f32 %v6945_v46, %v770_v2  ;;  %857 = vadd.xlane.f32.xlu1 %v856_v1  ;;  %851 = vadd.xlane.f32.xlu2 %v850_v11  ;;  %v764_v21 = vpop.xlane.xlu0 %763  ;;  %v806_v27 = vmul.f32 %v6945_v46, %v767_v14 }
  0xd2   : > { %v805_v22 = vmul.f32 %v6945_v46, %v764_v21 }
  0xd3   : > { %v6997_v28 = vsub.f32 %v5939_v17, %v807_v20  ;;  %v7009_v35 = vsub.f32 %v5936_v18, %v806_v27 }
  0xd4   : > { %v7001_v0 = vsub.f32 %v5935_v19, %v805_v22  ;;  %v859_v19 = vsel %vm743_vm0, %v835_v3, 0.0 }
  0xd5   : > { %v839_v29 = vmul.f32 %v6997_v28, %v6997_v28  ;;  %v838_v43 = vmul.f32 %v7009_v35, %v7009_v35 }
  0xd6   : > { %v837_v36 = vmul.f32 %v7001_v0, %v7001_v0 }
  0xd7   : > { %v871_v17 = vsel %vm743_vm0, %v839_v29, 0.0  ;;  %v868_v49 = vsel %vm743_vm0, %v838_v43, 0.0 }
  0xd8   : > { %v779_v37 = vpop.xlane.xlu2 %778  ;;  %872 = vadd.xlane.f32.xlu0 %v871_v17  ;;  %v865_v39 = vsel %vm743_vm0, %v837_v36, 0.0  ;;  %v776_v40 = vpop.xlane.xlu1 %775 }
  0xd9   : > { %v810_v41 = vmul.f32 %v6945_v46, %v779_v37  ;;  %860 = vadd.xlane.f32.xlu2 %v859_v19  ;;  %866 = vadd.xlane.f32.xlu1 %v865_v39  ;;  %v773_v42 = vpop.xlane.xlu0 %772  ;;  %v809_v18 = vmul.f32 %v6945_v46, %v776_v40 }
  0xda   : > { %v808_v16 = vmul.f32 %v6945_v46, %v773_v42 }
  0xdb   : > { %v7023_v44 = vsub.f32 %v5944_v24, %v810_v41  ;;  %v7033_v48 = vsub.f32 %v5943_v25, %v809_v18 }
  0xdc   : > { %v7027_v45 = vsub.f32 %v5940_v26, %v808_v16 }
  0xdd   : > { %v842_v47 = vmul.f32 %v7023_v44, %v7023_v44  ;;  %v841_v56 = vmul.f32 %v7033_v48, %v7033_v48 }
  0xde   : > { %v840_v50 = vmul.f32 %v7027_v45, %v7027_v45 }
  0xdf   : > { %v880_v51 = vsel %vm743_vm0, %v842_v47, 0.0  ;;  %v877_v61 = vsel %vm743_vm0, %v841_v56, 0.0 }
  0xe0   : > { %v788_v24 = vpop.xlane.xlu2 %787  ;;  %881 = vadd.xlane.f32.xlu0 %v880_v51  ;;  %v874_v15 = vsel %vm743_vm0, %v840_v50, 0.0  ;;  %v785_v26 = vpop.xlane.xlu1 %784 }
  0xe1   : > { %v813_v54 = vmul.f32 %v6945_v46, %v788_v24  ;;  %869 = vadd.xlane.f32.xlu2 %v868_v49  ;;  %875 = vadd.xlane.f32.xlu1 %v874_v15  ;;  %v782_v55 = vpop.xlane.xlu0 %781  ;;  %v812_v25 = vmul.f32 %v6945_v46, %v785_v26 }
  0xe2   : > { %v811_v23 = vmul.f32 %v6945_v46, %v782_v55 }
  0xe3   : > { %v7047_v57 = vsub.f32 %v5951_v32, %v813_v54  ;;  %v7057_v60 = vsub.f32 %v5948_v33, %v812_v25 }
  0xe4   : > { %v7051_v58 = vsub.f32 %v5947_v34, %v811_v23 }
  0xe5   : > { %v845_v59 = vmul.f32 %v7047_v57, %v7047_v57  ;;  %v844_v31 = vmul.f32 %v7057_v60, %v7057_v60 }
  0xe6   : > { %v843_v62 = vmul.f32 %v7051_v58, %v7051_v58 }
  0xe7   : > { %v889_v63 = vsel %vm743_vm0, %v845_v59, 0.0  ;;  %v886_v8 = vsel %vm743_vm0, %v844_v31, 0.0 }
  0xe8   : > { %890 = vadd.xlane.f32.xlu0 %v889_v63  ;;  %v883_v32 = vsel %vm743_vm0, %v843_v62, 0.0 }
  0xe9   : > { %878 = vadd.xlane.f32.xlu2 %v877_v61  ;;  %884 = vadd.xlane.f32.xlu1 %v883_v32  ;;  %v791_v34 = vpop.xlane.xlu0 %790  ;;  %v7105_v61 = vld [vmem:[%s9624_s2] ss:$0 sm:$0xff] }
  0xea   : > { %v814_v6 = vmul.f32 %v6945_v46, %v791_v34 }
  0xec   : > { %v7069_v33 = vsub.f32 %v5952_v38, %v814_v6 }
  0xee   : > { %v846_v12 = vmul.f32 %v7069_v33, %v7069_v33 }
  0xf0   : > { %v892_v9 = vsel %vm743_vm0, %v846_v12, 0.0  ;;  %v7120_v12 = vld [vmem:[%s9682_s24] ss:$0 sm:$0xff] }
  0xf1   : > { %887 = vadd.xlane.f32.xlu2 %v886_v8  ;;  %893 = vadd.xlane.f32.xlu1 %v892_v9 }
 0x13b   : > { %v855_v13 = vpop.xlane.xlu0 %854 }
 0x13c   : > { %v849_v1 = vpop.xlane.xlu1 %848  ;;  %v897_v2 = vmul.f32 %v855_v13, %v6945_v46 }
 0x13d   : > { %v895_v11 = vmul.f32 %v849_v1, %v6945_v46 }
 0x13e   : > { %v913_v14 = vadd.f32 1e-12, %v897_v2 }
 0x13f   : > { %v911_v20 = vadd.f32 1e-12, %v895_v11 }
 0x140   : > { %6018 = vrsqrt.f32 %v913_v14  ;;  %vm953_vm4 = vweird.f32 %v913_v14 }
 0x141   : > { %6020 = vrsqrt.f32 %v911_v20  ;;  %vm933_vm5 = vweird.f32 %v911_v20 }
 0x143   : > { %v864_v30 = vpop.xlane.xlu0 %863 }
 0x144   : > { %v858_v38 = vpop.xlane.xlu1 %857  ;;  %v852_v21 = vpop.xlane.xlu2 %851  ;;  %v900_v22 = vmul.f32 %v864_v30, %v6945_v46 }
 0x145   : > { %v898_v27 = vmul.f32 %v858_v38, %v6945_v46  ;;  %v896_v3 = vmul.f32 %v852_v21, %v6945_v46 }
 0x146   : > { %v6019_v29 = vpop.eup %6018  ;;  %v7080_v36 = vadd.f32 1e-12, %v900_v22 }
 0x147   : > { %v6021_v17 = vpop.eup %6020  ;;  %v948_v37 = vmul.f32 %v6019_v29, %v913_v14  ;;  %v7082_v19 = vadd.f32 1e-12, %v898_v27  ;;  %v7084_v39 = vadd.f32 1e-12, %v896_v3  ;;  %vm954_vm2 = vweird.f32 %v6019_v29 }
 0x148   : > { %v928_v40 = vmul.f32 %v6021_v17, %v911_v20  ;;  %6022 = vrsqrt.f32 %v7080_v36  ;;  %vm934_vm3 = vweird.f32 %v6021_v17  ;;  %vm955_vm6 = vmor %vm953_vm4, %vm954_vm2  ;;  %vm983_vm8 = vweird.f32 %v7080_v36 }
 0x149   : > { %v949_v41 = vmul.f32 %v6019_v29, %v948_v37  ;;  %6024 = vrsqrt.f32 %v7082_v19  ;;  %vm935_vm7 = vmor %vm933_vm5, %vm934_vm3  ;;  %vm963_vm12 = vweird.f32 %v7082_v19  ;;  %vm943_vm13 = vweird.f32 %v7084_v39 }
 0x14a   : > { %v929_v42 = vmul.f32 %v6021_v17, %v928_v40  ;;  %6026 = vrsqrt.f32 %v7084_v39 }
 0x14b   : > { %v950_v16 = vmul.f32 0.5, %v949_v41  ;;  %v873_v18 = vpop.xlane.xlu0 %872 }
 0x14c   : > { %v930_v43 = vmul.f32 0.5, %v929_v42  ;;  %v861_v47 = vpop.xlane.xlu2 %860  ;;  %v867_v49 = vpop.xlane.xlu1 %866  ;;  %v903_v15 = vmul.f32 %v873_v18, %v6945_v46 }
 0x14d   : > { %v951_v50 = vsub.f32 1.5, %v950_v16  ;;  %v899_v51 = vmul.f32 %v861_v47, %v6945_v46  ;;  %v901_v24 = vmul.f32 %v867_v49, %v6945_v46 }
 0x14e   : > { %v7092_v26 = vpop.eup %6022  ;;  %v931_v54 = vsub.f32 1.5, %v930_v43  ;;  %v7115_v8 = vadd.f32 1e-12, %v903_v15 }
 0x14f   : > { %v7094_v55 = vpop.eup %6024  ;;  %v952_v23 = vmul.f32 %v6019_v29, %v951_v50  ;;  %v978_v25 = vmul.f32 %v7092_v26, %v7080_v36  ;;  %v7098_v56 = vadd.f32 1e-12, %v899_v51  ;;  %v7110_v32 = vadd.f32 1e-12, %v901_v24 }
 0x150   : > { %v7100_v59 = vpop.eup %6026  ;;  %v932_v62 = vmul.f32 %v6021_v17, %v931_v54  ;;  %v958_v63 = vmul.f32 %v7094_v55, %v7082_v19  ;;  %vm984_vm9 = vweird.f32 %v7092_v26  ;;  %vm964_vm10 = vweird.f32 %v7094_v55 }
 0x151   : > { %v956_v34 = vsel %vm955_vm6, %v6019_v29, %v952_v23  ;;  %v938_v6 = vmul.f32 %v7100_v59, %v7084_v39  ;;  %v979_v31 = vmul.f32 %v7092_v26, %v978_v25  ;;  %6028 = vrsqrt.f32 %v7098_v56  ;;  %vm985_vm14 = vmor %vm983_vm8, %vm984_vm9 }
 0x152   : > { %v936_v9 = vsel %vm935_vm7, %v6021_v17, %v932_v62  ;;  %v1089_v13 = vmul.f32 %v956_v34, %v6951_v52  ;;  %v959_v1 = vmul.f32 %v7094_v55, %v958_v63  ;;  %6030 = vrsqrt.f32 %v7110_v32  ;;  %vm965_vm15 = vmor %vm963_vm12, %vm964_vm10 }
 0x153   : > { %v1087_v2 = vmul.f32 %v936_v9, %v6955_v53  ;;  %v939_v11 = vmul.f32 %v7100_v59, %v938_v6  ;;  %v980_v14 = vmul.f32 0.5, %v979_v31  ;;  %6032 = vrsqrt.f32 %v7115_v8  ;;  %v882_v41 = vpop.xlane.xlu0 %881 }
 0x154   : > { %v1108_v20 = vmul.f32 %v7105_v61, %v1089_v13  ;;  %v960_v30 = vmul.f32 0.5, %v959_v1  ;;  %v870_v38 = vpop.xlane.xlu2 %869  ;;  %v876_v29 = vpop.xlane.xlu1 %875  ;;  %vm944_vm11 = vweird.f32 %v7100_v59  ;;  %vm973_vm1 = vweird.f32 %v7098_v56 }
 0x155   : > { %v1106_v52 = vmul.f32 %v7105_v61, %v1087_v2  ;;  %v940_v21 = vmul.f32 0.5, %v939_v11  ;;  %v981_v22 = vsub.f32 1.5, %v980_v14  ;;  %v902_v3 = vmul.f32 %v870_v38, %v6945_v46  ;;  %vm945_vm2 = vmor %vm943_vm13, %vm944_vm11 }
 0x156   : > { %v1127_v53 = vadd.f32 %v7120_v12, %v1108_v20  ;;  %v961_v27 = vsub.f32 1.5, %v960_v30  ;;  %v904_v39 = vmul.f32 %v876_v29, %v6945_v46  ;;  %v906_v51 = vmul.f32 %v882_v41, %v6945_v46 }
 0x157   : > { %v1125_v17 = vadd.f32 %v7120_v12, %v1106_v52  ;;  %v941_v37 = vsub.f32 1.5, %v940_v21  ;;  %v982_v40 = vmul.f32 %v7092_v26, %v981_v22  ;;  %v7139_v42 = vpop.eup %6028  ;;  %v7149_v18 = vadd.f32 1e-12, %v902_v3 }
 0x158   : > { %1143 = vst.msk [vmem:[#allocation2 + $0x10] sm:$0xff] %vm743_vm0, %v1127_v53  ;;  %v962_v16 = vmul.f32 %v7094_v55, %v961_v27  ;;  %v968_v19 = vmul.f32 %v7139_v42, %v7098_v56  ;;  %v7160_v36 = vpop.eup %6030  ;;  %vm993_vm3 = vweird.f32 %v7110_v32  ;;  %vm974_vm4 = vweird.f32 %v7139_v42 }
 0x159   : > { %1141 = vst.msk [vmem:[#allocation2] sm:$0xff] %vm743_vm0, %v1125_v17  ;;  %v942_v43 = vmul.f32 %v7100_v59, %v941_v37  ;;  %v986_v47 = vsel %vm985_vm14, %v7092_v26, %v982_v40  ;;  %6034 = vrsqrt.f32 %v7149_v18  ;;  %v6033_v24 = vpop.eup %6032  ;;  %v988_v23 = vmul.f32 %v7160_v36, %v7110_v32  ;;  %vm975_vm7 = vmor %vm973_vm1, %vm974_vm4 }
 0x15a   : > { %v966_v49 = vsel %vm965_vm15, %v7094_v55, %v962_v16  ;;  %v1092_v50 = vmul.f32 %v986_v47, %v6968_v4  ;;  %v969_v54 = vmul.f32 %v7139_v42, %v968_v19  ;;  %v1008_v4 = vmul.f32 %v6033_v24, %v7115_v8 }
 0x15b   : > { %v1090_v15 = vmul.f32 %v966_v49, %v6972_v5  ;;  %v946_v26 = vsel %vm945_vm2, %v7100_v59, %v942_v43  ;;  %v989_v5 = vmul.f32 %v7160_v36, %v988_v23  ;;  %v7185_v2 = vadd.f32 1e-12, %v906_v51  ;;  %v891_v27 = vpop.xlane.xlu0 %890 }
 0x15c   : > { %v1088_v55 = vmul.f32 %v946_v26, %v6977_v7  ;;  %v1111_v25 = vmul.f32 %v7105_v61, %v1092_v50  ;;  %v879_v62 = vpop.xlane.xlu2 %878  ;;  %v970_v34 = vmul.f32 0.5, %v969_v54  ;;  %v1009_v31 = vmul.f32 %v6033_v24, %v1008_v4  ;;  %v885_v30 = vpop.xlane.xlu1 %884 }
 0x15d   : > { %v1109_v63 = vmul.f32 %v7105_v61, %v1090_v15  ;;  %v7182_v7 = vadd.f32 1e-12, %v904_v39  ;;  %v990_v1 = vmul.f32 0.5, %v989_v5  ;;  %vm1013_vm5 = vweird.f32 %v7115_v8 }
 0x15e   : > { %v1107_v59 = vmul.f32 %v7105_v61, %v1088_v55  ;;  %v1130_v6 = vadd.f32 %v7120_v12, %v1111_v25  ;;  %v971_v13 = vsub.f32 1.5, %v970_v34  ;;  %v1010_v20 = vmul.f32 0.5, %v1009_v31 }
 0x15f   : > { %v1128_v9 = vadd.f32 %v7120_v12, %v1109_v63  ;;  %v7187_v11 = vpop.eup %6034  ;;  %6036 = vrsqrt.f32 %v7182_v7  ;;  %v991_v52 = vsub.f32 1.5, %v990_v1  ;;  %vm994_vm6 = vweird.f32 %v7160_v36 }
 0x160   : > { %v1126_v14 = vadd.f32 %v7120_v12, %v1107_v59  ;;  %1146 = vst.msk [vmem:[#allocation2 + $0x28] sm:$0xff] %vm743_vm0, %v1130_v6  ;;  %v972_v38 = vmul.f32 %v7139_v42, %v971_v13  ;;  %v998_v21 = vmul.f32 %v7187_v11, %v7149_v18  ;;  %v1011_v22 = vsub.f32 1.5, %v1010_v20  ;;  %vm995_vm9 = vmor %vm993_vm3, %vm994_vm6 }
 0x161   : > { %1144 = vst.msk [vmem:[#allocation2 + $0x18] sm:$0xff] %vm743_vm0, %v1128_v9  ;;  %vm1014_vm8 = vweird.f32 %v6033_v24  ;;  %6038 = vrsqrt.f32 %v7185_v2  ;;  %v905_v53 = vmul.f32 %v879_v62, %v6945_v46  ;;  %v992_v29 = vmul.f32 %v7160_v36, %v991_v52 }
 0x162   : > { %1142 = vst.msk [vmem:[#allocation2 + $0x8] sm:$0xff] %vm743_vm0, %v1126_v14  ;;  %v976_v3 = vsel %vm975_vm7, %v7139_v42, %v972_v38  ;;  %v999_v17 = vmul.f32 %v7187_v11, %v998_v21  ;;  %v907_v37 = vmul.f32 %v885_v30, %v6945_v46  ;;  %v1012_v56 = vmul.f32 %v6033_v24, %v1011_v22  ;;  %vm1015_vm11 = vmor %vm1013_vm5, %vm1014_vm8 }
 0x163   : > { %v1091_v40 = vmul.f32 %v976_v3, %v6989_v10  ;;  %vm1003_vm10 = vweird.f32 %v7149_v18  ;;  %v7213_v41 = vadd.f32 1e-12, %v905_v53  ;;  %v996_v16 = vsel %vm995_vm9, %v7160_v36, %v992_v29 }
 0x164   : > { %v1000_v42 = vmul.f32 0.5, %v999_v17  ;;  %v7218_v43 = vadd.f32 1e-12, %v907_v37  ;;  %v909_v47 = vmul.f32 %v891_v27, %v6945_v46  ;;  %v888_v19 = vpop.xlane.xlu2 %887  ;;  %v1093_v39 = vmul.f32 %v996_v16, %v7001_v0  ;;  %v894_v5 = vpop.xlane.xlu1 %893 }
 0x165   : > { %v6037_v10 = vpop.eup %6036  ;;  %v1110_v32 = vmul.f32 %v7105_v61, %v1091_v40  ;;  %v1016_v49 = vsel %vm1015_vm11, %v6033_v24, %v1012_v56  ;;  %6040 = vrsqrt.f32 %v7213_v41  ;;  %vm1004_vm12 = vweird.f32 %v7187_v11 }
 0x166   : > { %v1095_v50 = vmul.f32 %v1016_v49, %v6997_v28  ;;  %v1001_v36 = vsub.f32 1.5, %v1000_v42  ;;  %v1018_v8 = vmul.f32 %v6037_v10, %v7182_v7  ;;  %v1112_v26 = vmul.f32 %v7105_v61, %v1093_v39  ;;  %vm1005_vm13 = vmor %vm1003_vm10, %vm1004_vm12 }
 0x167   : > { %v6039_v51 = vpop.eup %6038  ;;  %v1129_v15 = vadd.f32 %v7120_v12, %v1110_v32  ;;  %6042 = vrsqrt.f32 %v7218_v43  ;;  %v908_v54 = vmul.f32 %v888_v19, %v6945_v46  ;;  %vm1023_vm14 = vweird.f32 %v7182_v7 }
 0x168   : > { %v1114_v0 = vmul.f32 %v7105_v61, %v1095_v50  ;;  %v1002_v24 = vmul.f32 %v7187_v11, %v1001_v36  ;;  %v1019_v23 = vmul.f32 %v6037_v10, %v1018_v8  ;;  %v1038_v28 = vmul.f32 %v6039_v51, %v7185_v2 }
 0x169   : > { %1145 = vst.msk [vmem:[#allocation2 + $0x20] sm:$0xff] %vm743_vm0, %v1129_v15  ;;  %v1131_v55 = vadd.f32 %v7120_v12, %v1112_v26  ;;  %v7239_v25 = vadd.f32 1e-12, %v909_v47  ;;  %vm1043_vm15 = vweird.f32 %v7185_v2  ;;  %v7247_v18 = vadd.f32 1e-12, %v908_v54 }
 0x16a   : > { %v1133_v4 = vadd.f32 %v7120_v12, %v1114_v0  ;;  %v1006_v62 = vsel %vm1005_vm13, %v7187_v11, %v1002_v24  ;;  %v1020_v63 = vmul.f32 0.5, %v1019_v23  ;;  %v1039_v34 = vmul.f32 %v6039_v51, %v1038_v28 }
 0x16b   : > { %v6041_v59 = vpop.eup %6040  ;;  %1147 = vst.msk [vmem:[#allocation2 + $0x30] sm:$0xff] %vm743_vm0, %v1131_v55  ;;  %v1094_v6 = vmul.f32 %v1006_v62, %v7009_v35  ;;  %6044 = vrsqrt.f32 %v7239_v25  ;;  %vm1024_vm1 = vweird.f32 %v6037_v10  ;;  %vm1044_vm2 = vweird.f32 %v6039_v51 }
 0x16c   : > { %1149 = vst.msk [vmem:[#allocation2 + $0x40] sm:$0xff] %vm743_vm0, %v1133_v4  ;;  %v1021_v31 = vsub.f32 1.5, %v1020_v63  ;;  %v1040_v9 = vmul.f32 0.5, %v1039_v34  ;;  %v1028_v13 = vmul.f32 %v6041_v59, %v7213_v41  ;;  %6046 = vrsqrt.f32 %v7247_v18  ;;  %vm1025_vm3 = vmor %vm1023_vm14, %vm1024_vm1 }
 0x16d   : > { %v6043_v1 = vpop.eup %6042  ;;  %v1113_v11 = vmul.f32 %v7105_v61, %v1094_v6  ;;  %v910_v35 = vmul.f32 %v894_v5, %v6945_v46  ;;  %vm1045_vm4 = vmor %vm1043_vm15, %vm1044_vm2  ;;  %vm1034_vm5 = vweird.f32 %v6041_v59  ;;  %vm1033_vm6 = vweird.f32 %v7213_v41 }
 0x16e   : > { %v1022_v14 = vmul.f32 %v6037_v10, %v1021_v31  ;;  %v1041_v20 = vsub.f32 1.5, %v1040_v9  ;;  %v1029_v30 = vmul.f32 %v6041_v59, %v1028_v13  ;;  %v1048_v38 = vmul.f32 %v6043_v1, %v7218_v43  ;;  %vm1035_vm8 = vmor %vm1033_vm6, %vm1034_vm5 }
 0x16f   : > { %v1132_v52 = vadd.f32 %v7120_v12, %v1113_v11  ;;  %v7258_v21 = vadd.f32 1e-12, %v910_v35  ;;  %vm1054_vm7 = vweird.f32 %v6043_v1  ;;  %vm1053_vm9 = vweird.f32 %v7218_v43 }
 0x170   : > { %v1026_v22 = vsel %vm1025_vm3, %v6037_v10, %v1022_v14  ;;  %v1042_v53 = vmul.f32 %v6039_v51, %v1041_v20  ;;  %v1030_v27 = vmul.f32 0.5, %v1029_v30  ;;  %v1049_v3 = vmul.f32 %v6043_v1, %v1048_v38  ;;  %vm1055_vm10 = vmor %vm1053_vm9, %vm1054_vm7 }
 0x171   : > { %v6045_v29 = vpop.eup %6044  ;;  %1148 = vst.msk [vmem:[#allocation2 + $0x38] sm:$0xff] %vm743_vm0, %v1132_v52  ;;  %v1096_v46 = vmul.f32 %v1026_v22, %v7027_v45  ;;  %6048 = vrsqrt.f32 %v7258_v21  ;;  %vm1073_vm11 = vweird.f32 %v7239_v25  ;;  %vm1063_vm15 = vweird.f32 %v7247_v18 }
 0x172   : > { %v1046_v7 = vsel %vm1045_vm4, %v6039_v51, %v1042_v53  ;;  %v1031_v17 = vsub.f32 1.5, %v1030_v27  ;;  %v1050_v37 = vmul.f32 0.5, %v1049_v3  ;;  %v1068_v40 = vmul.f32 %v6045_v29, %v7239_v25  ;;  %v6047_v56 = vpop.eup %6046 }
 0x173   : > { %v1115_v16 = vmul.f32 %v7105_v61, %v1096_v46  ;;  %v1098_v42 = vmul.f32 %v1046_v7, %v7023_v44  ;;  %v1058_v19 = vmul.f32 %v6047_v56, %v7247_v18  ;;  %vm1074_vm12 = vweird.f32 %v6045_v29 }
 0x174   : > { %v1032_v45 = vmul.f32 %v6041_v59, %v1031_v17  ;;  %v1051_v47 = vsub.f32 1.5, %v1050_v37  ;;  %v1069_v2 = vmul.f32 %v6045_v29, %v1068_v40  ;;  %vm1064_vm13 = vweird.f32 %v6047_v56  ;;  %vm1075_vm14 = vmor %vm1073_vm11, %vm1074_vm12 }
 0x175   : > { %v1134_v10 = vadd.f32 %v7120_v12, %v1115_v16  ;;  %v1117_v32 = vmul.f32 %v7105_v61, %v1098_v42  ;;  %v1059_v44 = vmul.f32 %v6047_v56, %v1058_v19  ;;  %vm1065_vm1 = vmor %vm1063_vm15, %vm1064_vm13  ;;  %vm1083_vm3 = vweird.f32 %v7258_v21 }
 0x176   : > { %v1036_v39 = vsel %vm1035_vm8, %v6041_v59, %v1032_v45  ;;  %v1052_v49 = vmul.f32 %v6043_v1, %v1051_v47  ;;  %v1070_v50 = vmul.f32 0.5, %v1069_v2 }
 0x177   : > { %v6049_v36 = vpop.eup %6048  ;;  %1150 = vst.msk [vmem:[#allocation2 + $0x48] sm:$0xff] %vm743_vm0, %v1134_v10  ;;  %v1136_v41 = vadd.f32 %v7120_v12, %v1117_v32  ;;  %v1097_v8 = vmul.f32 %v1036_v39, %v7033_v48  ;;  %v1060_v26 = vmul.f32 0.5, %v1059_v44 }
 0x178   : > { %v1056_v51 = vsel %vm1055_vm10, %v6043_v1, %v1052_v49  ;;  %v1071_v15 = vsub.f32 1.5, %v1070_v50  ;;  %v1078_v43 = vmul.f32 %v6049_v36, %v7258_v21  ;;  %vm1084_vm2 = vweird.f32 %v6049_v36 }
 0x179   : > { %1152 = vst.msk [vmem:[#allocation2 + $0x58] sm:$0xff] %vm743_vm0, %v1136_v41  ;;  %v1116_v54 = vmul.f32 %v7105_v61, %v1097_v8  ;;  %v1099_v0 = vmul.f32 %v1056_v51, %v7051_v58  ;;  %v1061_v23 = vsub.f32 1.5, %v1060_v26  ;;  %vm1085_vm4 = vmor %vm1083_vm3, %vm1084_vm2 }
 0x17a   : > { %v1072_v24 = vmul.f32 %v6045_v29, %v1071_v15  ;;  %v1079_v48 = vmul.f32 %v6049_v36, %v1078_v43 }
 0x17b   : > { %v1135_v28 = vadd.f32 %v7120_v12, %v1116_v54  ;;  %v1118_v55 = vmul.f32 %v7105_v61, %v1099_v0  ;;  %v1062_v62 = vmul.f32 %v6047_v56, %v1061_v23 }
 0x17c   : > { %v1076_v4 = vsel %vm1075_vm14, %v6045_v29, %v1072_v24  ;;  %v1080_v63 = vmul.f32 0.5, %v1079_v48 }
 0x17d   : > { %1151 = vst.msk [vmem:[#allocation2 + $0x50] sm:$0xff] %vm743_vm0, %v1135_v28  ;;  %v1137_v58 = vadd.f32 %v7120_v12, %v1118_v55  ;;  %v1101_v34 = vmul.f32 %v1076_v4, %v7047_v57  ;;  %v1066_v5 = vsel %vm1065_vm1, %v6047_v56, %v1062_v62 }
 0x17e   : > { %v1081_v59 = vsub.f32 1.5, %v1080_v63  ;;  %v1100_v6 = vmul.f32 %v1066_v5, %v7057_v60 }
 0x17f   : > { %1153 = vst.msk [vmem:[#allocation2 + $0x60] sm:$0xff] %vm743_vm0, %v1137_v58  ;;  %v1120_v25 = vmul.f32 %v7105_v61, %v1101_v34 }
 0x180   : > { %v1082_v31 = vmul.f32 %v6049_v36, %v1081_v59  ;;  %v1119_v9 = vmul.f32 %v7105_v61, %v1100_v6 }
 0x181   : > { %v1139_v18 = vadd.f32 %v7120_v12, %v1120_v25 }
 0x182   : > { %v1086_v13 = vsel %vm1085_vm4, %v6049_v36, %v1082_v31  ;;  %v1138_v57 = vadd.f32 %v7120_v12, %v1119_v9 }
 0x183   : > { %1155 = vst.msk [vmem:[#allocation2 + $0x70] sm:$0xff] %vm743_vm0, %v1139_v18  ;;  %v1102_v1 = vmul.f32 %v1086_v13, %v7069_v33 }
 0x184   : > { %1154 = vst.msk [vmem:[#allocation2 + $0x68] sm:$0xff] %vm743_vm0, %v1138_v57 }
 0x185   : > { %v1121_v11 = vmul.f32 %v7105_v61, %v1102_v1 }
 0x187   : > { %v1140_v60 = vadd.f32 %v7120_v12, %v1121_v11 }
 0x189   : > { %1156 = vst.msk [vmem:[#allocation2 + $0x78] sm:$0xff] %vm743_vm0, %v1140_v60 }
 0x18a PF: > { %v5724_v35 = vld [vmem:[%s6794_s0 + $0x30] sm:$0xf]  ;;  %v5904_v14 = vld [vmem:[%s6794_s0 + $0x34] sm:$0xf0]  ;;  %v5716_v33 = vld [vmem:[%s6794_s0 + $0x20] sm:$0xf]  ;;  %s9752_s18 = scalar_lea.vmem %s9630_s8, %s6787_s1 }
 0x18b   : > { %v5725_v20 = vor.u32 %v5904_v14, %v5724_v35  ;;  %v5902_v30 = vld [vmem:[%s6794_s0 + $0x24] sm:$0xf0]  ;;  %v5708_v12 = vld [vmem:[%s6794_s0 + $0x10] sm:$0xf]  ;;  %v5900_v38 = vld [vmem:[%s6794_s0 + $0x14] sm:$0xf0] }
 0x18c   : > { %v5717_v61 = vor.u32 %v5902_v30, %v5716_v33  ;;  %v5709_v52 = vor.u32 %v5900_v38, %v5708_v12  ;;  %v5700_v21 = vld [vmem:[%s6794_s0] sm:$0xf]  ;;  %v5898_v22 = vld [vmem:[%s6794_s0 + $0x4] sm:$0xf0]  ;;  %v1167_v29 = vld [vmem:[#allocation2 + $0x50] sm:$0xff]  ;;  %vm1236_vm0 = vcmask 523264  }
 0x18d   : > { %1265 = vmatpush.bf16.msra.mxu0 %v5725_v20  ;;  %5960 = vmatpush.bf16.msra.mxu1 %v5725_v20  ;;  %v1157_v53 = vld [vmem:[#allocation2] sm:$0xff]  ;;  %v5701_v27 = vor.u32 %v5898_v22, %v5700_v21  ;;  %v1158_v3 = vld [vmem:[#allocation2 + $0x8] sm:$0xff]  ;;  %v1168_v46 = vld [vmem:[#allocation2 + $0x58] sm:$0xff]  ;;  %s9683_s20 = sld [smem:[#allocation11_spill]]  ;;  %s6617_s16 = smov 48   ;;  %vm1398_vm5 = vcmask 130048  }
 0x18e   : > { %v1174_v7 = vpack.c.bf16 %v1158_v3, %v1157_v53  ;;  %v7313_v17 = vpack.c.bf16 %v1168_v46, %v1167_v29  ;;  %v1159_v37 = vld [vmem:[#allocation2 + $0x10] sm:$0xff]  ;;  %v1160_v40 = vld [vmem:[#allocation2 + $0x18] sm:$0xff]  ;;  %v1169_v56 = vld [vmem:[#allocation2 + $0x60] sm:$0xff]  ;;  %s6618_s17 = smov 112   ;;  %s9689_s26 = sld [smem:[#allocation39_spill]]  ;;  %vm4136_vm6 = vcmask 261120  }
 0x18f   : > { %v1170_v16 = vld [vmem:[#allocation2 + $0x68] sm:$0xff]  ;;  %v1175_v42 = vpack.c.bf16 %v1160_v40, %v1159_v37  ;;  %v1161_v47 = vld [vmem:[#allocation2 + $0x20] sm:$0xff]  ;;  %v1171_v19 = vld [vmem:[#allocation2 + $0x70] sm:$0xff]  ;;  %s6619_s27 = smov 32   ;;  %s6620_s22 = smov 96   ;;  %vm4153_vm7 = vcmask 392192  }
 0x190   : > { %v7318_v45 = vpack.c.bf16 %v1170_v16, %v1169_v56  ;;  %v1162_v2 = vld [vmem:[#allocation2 + $0x28] sm:$0xff]  ;;  %v1172_v10 = vld [vmem:[#allocation2 + $0x78] sm:$0xff]  ;;  %v5903_v49 = vld [vmem:[%s6794_s0 + $0x34] sm:$0xf]  ;;  %s6621_s4 = smov 16   ;;  %s6622_s24 = smov 80  }
 0x191   : > { %1266 = vmatpush.bf16.msra.mxu0 %v5717_v61  ;;  %5961 = vmatpush.bf16.msra.mxu1 %v5717_v61  ;;  %v1176_v32 = vpack.c.bf16 %v1162_v2, %v1161_v47  ;;  %v7323_v39 = vpack.c.bf16 %v1172_v10, %v1171_v19  ;;  %v5726_v50 = vld [vmem:[%s6794_s0 + $0x38] sm:$0xf0]  ;;  %v1163_v36 = vld [vmem:[#allocation2 + $0x30] sm:$0xff]  ;;  %v1165_v51 = vld [vmem:[#allocation2 + $0x40] sm:$0xff]  ;;  %p5890_p8 = scmp.ne.s32.totalorder %s6728_s25, 1 }
 0x192   : > { %v5729_v44 = vor.u32 %v5903_v49, %v5726_v50  ;;  %v1164_v41 = vld [vmem:[#allocation2 + $0x38] sm:$0xff]  ;;  %v1166_v15 = vld [vmem:[#allocation2 + $0x48] sm:$0xff]  ;;  %v5901_v43 = vld [vmem:[%s6794_s0 + $0x24] sm:$0xf] }
 0x193   : > { %v1177_v8 = vpack.c.bf16 %v1164_v41, %v1163_v36  ;;  %v1178_v26 = vpack.c.bf16 %v1166_v15, %v1165_v51  ;;  %v5718_v54 = vld [vmem:[%s6794_s0 + $0x28] sm:$0xf0]  ;;  %v5899_v24 = vld [vmem:[%s6794_s0 + $0x14] sm:$0xf]  ;;  %v5710_v23 = vld [vmem:[%s6794_s0 + $0x18] sm:$0xf0] }
 0x194   : > { %v5721_v0 = vor.u32 %v5901_v43, %v5718_v54  ;;  %v5713_v48 = vor.u32 %v5899_v24, %v5710_v23  ;;  %v5897_v28 = vld [vmem:[%s6794_s0 + $0x4] sm:$0xf]  ;;  %v5702_v55 = vld [vmem:[%s6794_s0 + $0x8] sm:$0xf0]  ;;  %v7341_v62 = vld [vmem:[%s9683_s20] sm:$0x3] }
 0x195   : > { %1267 = vmatpush.bf16.msra.mxu0 %v5709_v52  ;;  %5962 = vmatpush.bf16.msra.mxu1 %v5709_v52  ;;  %v5705_v4 = vor.u32 %v5897_v28, %v5702_v55  ;;  %v7346_v34 = vperm.slane %v7341_v62, 0  ;;  %s6616_s0 = smov 64  }
 0x199   : > { %1268 = vmatpush.bf16.msra.mxu0 %v5701_v27  ;;  %5963 = vmatpush.bf16.msra.mxu1 %v5701_v27 }
 0x19c   : > { %5730 = vmatmul.msk.bf16.vlgmr.msra.gmra.mxu0 %vm1236_vm0, %v1174_v7  ;;  %5735 = vmatmul.msk.bf16.vlgmr.msra.gmra.mxu1 %vm1236_vm0, %v7313_v17 }
 0x19d   : > { %1314 = vmatpush.bf16.msrb.mxu1 %v5729_v44 }
 0x1a1   : > { %1315 = vmatpush.bf16.msrb.mxu1 %v5721_v0 }
 0x1a5   : > { %1316 = vmatpush.bf16.msrb.mxu1 %v5713_v48 }
 0x1a9   : > { %1317 = vmatpush.bf16.msrb.mxu1 %v5705_v4 }
 0x1ac   : > { %5731 = vmatmul.msk.bf16.gmra.mxu0 %vm1236_vm0, %v1175_v42  ;;  %5736 = vmatmul.msk.bf16.gmra.mxu1 %vm1236_vm0, %v7318_v45 }
 0x1bc   : > { %5732 = vmatmul.msk.bf16.gmra.mxu0 %vm1236_vm0, %v1176_v32  ;;  %5737 = vmatmul.msk.bf16.gmra.mxu1 %vm1236_vm0, %v7323_v39 }
 0x1cc   : > { %5733 = vmatmul.msk.bf16.gmra.mxu0 %vm1236_vm0, %v1177_v8  ;;  %5738 = vmatmul.msk.bf16.vlgmr.msrb.gmra.mxu1 %vm1236_vm0, %v1174_v7 }
 0x1dc   : > { %5734 = vmatmul.msk.bf16.gmra.mxu0 %vm1236_vm0, %v1178_v26  ;;  %5739 = vmatmul.msk.bf16.gmra.mxu1 %vm1236_vm0, %v1175_v42 }
 0x1ec   : > { %5740 = vmatmul.msk.bf16.gmra.mxu1 %vm1236_vm0, %v1176_v32 }
 0x1fc   : > { %5741 = vmatmul.msk.bf16.gmra.mxu1 %vm1236_vm0, %v1177_v8 }
 0x20c   : > { %5742 = vmatmul.msk.bf16.gmra.mxu1 %vm1236_vm0, %v1178_v26 }
 0x219   : > { %v1270_v63 = vpop.f32.mrf.mxu0  ;;  %v7343_v58 = vpop.f32.mrf.mxu1 }
 0x21a   : > { %v1271_v5 = vadd.f32 %v1270_v63, %v7346_v34  ;;  %v1296_v63 = vadd.f32 %v7343_v58, %v7346_v34 }
 0x21c   : > { %v1359_v6 = vpack.c.bf16 %v1271_v5, %v1271_v5  ;;  %5743 = vmatmul.msk.bf16.gmra.mxu1 %vm1236_vm0, %v7313_v17 }
 0x21e   : > { %v1393_v9 = vunpack.c.l.b16 %v1359_v6 }
 0x221   : > { %v1272_v59 = vpop.f32.mrf.mxu0  ;;  %v7350_v25 = vpop.f32.mrf.mxu1 }
 0x222   : > { %v1273_v31 = vadd.f32 %v1272_v59, %v7346_v34  ;;  %v1298_v5 = vadd.f32 %v7350_v25, %v7346_v34 }
 0x224   : > { %v1360_v18 = vpack.c.bf16 %v1273_v31, %v1273_v31 }
 0x226   : > { %v1394_v13 = vunpack.c.l.b16 %v1360_v18  ;;  %v1369_v18 = vpack.c.bf16 %v1296_v63, %v1296_v63 }
 0x228   : > { %v7353_v57 = vpack.c.b16 %v1394_v13, %v1393_v9  ;;  %v1370_v9 = vpack.c.bf16 %v1298_v5, %v1298_v5 }
 0x229   : > { %v1275_v1 = vpop.f32.mrf.mxu0  ;;  %v1300_v11 = vpop.f32.mrf.mxu1 }
 0x22a   : > { %1396 = vrot.lane.b32.xlu0 %v7353_v57, %s6616_s0  ;;  %v1276_v60 = vadd.f32 %v1275_v1, %v7346_v34  ;;  %v1301_v30 = vadd.f32 %v1300_v11, %v7346_v34  ;;  %v1529_v1 = vunpack.c.l.b16 %v1369_v18  ;;  %v1530_v11 = vunpack.c.l.b16 %v1370_v9 }
 0x22c   : > { %v1361_v33 = vpack.c.bf16 %v1276_v60, %v1276_v60  ;;  %v1371_v21 = vpack.c.bf16 %v1301_v30, %v1301_v30  ;;  %5744 = vmatmul.msk.bf16.gmra.mxu1 %vm1236_vm0, %v7318_v45  ;;  %v7413_v58 = vpack.c.b16 %v1530_v11, %v1529_v1 }
 0x22e   : > { %v1421_v38 = vunpack.c.l.b16 %v1361_v33  ;;  %v1556_v3 = vunpack.c.l.b16 %v1371_v21 }
 0x231   : > { %v1277_v35 = vpop.f32.mrf.mxu0  ;;  %v1302_v14 = vpop.f32.mrf.mxu1 }
 0x232   : > { %v1278_v20 = vadd.f32 %v1277_v35, %v7346_v34  ;;  %v1303_v61 = vadd.f32 %v1302_v14, %v7346_v34 }
 0x234   : > { %v1362_v12 = vpack.c.bf16 %v1278_v20, %v1278_v20  ;;  %v1372_v22 = vpack.c.bf16 %v1303_v61, %v1303_v61 }
 0x236   : > { %v1422_v52 = vunpack.c.l.b16 %v1362_v12  ;;  %v1557_v29 = vunpack.c.l.b16 %v1372_v22 }
 0x238   : > { %v7362_v53 = vpack.c.b16 %v1422_v52, %v1421_v38  ;;  %v7368_v7 = vpack.c.b16 %v1557_v29, %v1556_v3  ;;  %v7436_v38 = vperm.slane %v7341_v62, 1 }
 0x239   : > { %v1280_v27 = vpop.f32.mrf.mxu0  ;;  %v1305_v42 = vpop.f32.mrf.mxu1 }
 0x23a   : > { %1424 = vrot.lane.b32.xlu0 %v7362_v53, %s6616_s0  ;;  %v1281_v46 = vadd.f32 %v1280_v27, %v7346_v34  ;;  %v1306_v41 = vadd.f32 %v1305_v42, %v7346_v34 }
 0x23c   : > { %v1363_v40 = vpack.c.bf16 %v1281_v46, %v1281_v46  ;;  %v1373_v43 = vpack.c.bf16 %v1306_v41, %v1306_v41  ;;  %5745 = vmatmul.msk.bf16.gmra.mxu1 %vm1236_vm0, %v7323_v39 }
 0x23e   : > { %v1448_v47 = vunpack.c.l.b16 %v1363_v40  ;;  %v1583_v24 = vunpack.c.l.b16 %v1373_v43 }
 0x241   : > { %v1282_v37 = vpop.f32.mrf.mxu0  ;;  %v1307_v49 = vpop.f32.mrf.mxu1 }
 0x242   : > { %v1283_v56 = vadd.f32 %v1282_v37, %v7346_v34  ;;  %1559 = vrot.lane.b32.xlu0 %v7368_v7, %s6616_s0  ;;  %v1308_v8 = vadd.f32 %v1307_v49, %v7346_v34 }
 0x244   : > { %v1364_v16 = vpack.c.bf16 %v1283_v56, %v1283_v56  ;;  %v1374_v54 = vpack.c.bf16 %v1308_v8, %v1308_v8 }
 0x246   : > { %v1449_v2 = vunpack.c.l.b16 %v1364_v16  ;;  %v1584_v23 = vunpack.c.l.b16 %v1374_v54 }
 0x248   : > { %v7373_v19 = vpack.c.b16 %v1449_v2, %v1448_v47  ;;  %v7394_v28 = vpack.c.b16 %v1584_v23, %v1583_v24 }
 0x249   : > { %v1285_v10 = vpop.f32.mrf.mxu0  ;;  %v1319_v39 = vpop.f32.mrf.mxu1 }
 0x24a   : > { %9684 = vst [vmem:[#allocation12_spill] sm:$0xff] %v7373_v19  ;;  %1451 = vrot.lane.b32.xlu1 %v7373_v19, %s6616_s0  ;;  %2082 = vrot.lane.b32.xlu0 %v7353_v57, %s6617_s16  ;;  %v1286_v32 = vadd.f32 %v1285_v10, %v7346_v34  ;;  %v1320_v3 = vadd.f32 %v1319_v39, %v7436_v38 }
 0x24c   : > { %v1365_v50 = vpack.c.bf16 %v1286_v32, %v1286_v32  ;;  %v1375_v46 = vpack.c.bf16 %v1320_v3, %v1320_v3 }
 0x24e   : > { %v1475_v51 = vunpack.c.l.b16 %v1365_v50  ;;  %v1863_v47 = vunpack.c.l.b16 %v1375_v46 }
 0x251   : > { %v1287_v44 = vpop.f32.mrf.mxu0 }
 0x252   : > { %v1288_v36 = vadd.f32 %v1287_v44, %v7346_v34  ;;  %2130 = vrot.lane.b32.xlu0 %v7373_v19, %s6617_s16 }
 0x254   : > { %v1366_v15 = vpack.c.bf16 %v1288_v36, %v1288_v36 }
 0x256   : > { %v1476_v26 = vunpack.c.l.b16 %v1366_v15 }
 0x258   : > { %v7387_v0 = vpack.c.b16 %v1476_v26, %v1475_v51 }
 0x259   : > { %v1290_v17 = vpop.f32.mrf.mxu0 }
 0x25a   : > { %9685 = vst [vmem:[#allocation13_spill] sm:$0xff] %v7387_v0  ;;  %1478 = vrot.lane.b32.xlu1 %v7387_v0, %s6616_s0  ;;  %v1291_v48 = vadd.f32 %v1290_v17, %v7346_v34 }
 0x25c   : > { %v1367_v55 = vpack.c.bf16 %v1291_v48, %v1291_v48 }
 0x25e   : > { %v1502_v6 = vunpack.c.l.b16 %v1367_v55 }
 0x261   : > { %v1292_v4 = vpop.f32.mrf.mxu0 }
 0x262   : > { %1586 = vrot.lane.b32.xlu1 %v7394_v28, %s6616_s0  ;;  %v1293_v59 = vadd.f32 %v1292_v4, %v7346_v34  ;;  %v1321_v34 = vpop.f32.mrf.mxu1 }
 0x263   : > { %v1322_v29 = vadd.f32 %v1321_v34, %v7436_v38 }
 0x264   : > { %v1368_v31 = vpack.c.bf16 %v1293_v59, %v1293_v59 }
 0x265   : > { %v1376_v37 = vpack.c.bf16 %v1322_v29, %v1322_v29 }
 0x266   : > { %v1503_v45 = vunpack.c.l.b16 %v1368_v31 }
 0x267   : > { %v1864_v2 = vunpack.c.l.b16 %v1376_v37 }
 0x268   : > { %v7403_v13 = vpack.c.b16 %v1503_v45, %v1502_v6 }
 0x269   : > { %v7448_v32 = vpack.c.b16 %v1864_v2, %v1863_v47 }
 0x26a   : > { %9686 = vst [vmem:[#allocation14_spill] sm:$0xff] %v7403_v13  ;;  %2080 = vrot.lane.b32.xlu1 %v7353_v57, %s6618_s17  ;;  %1505 = vrot.lane.b32.xlu2 %v7403_v13, %s6616_s0  ;;  %v1324_v25 = vpop.f32.mrf.mxu1 }
 0x26b   : > { %2178 = vrot.lane.b32.xlu0 %v7403_v13, %s6617_s16  ;;  %v1325_v24 = vadd.f32 %v1324_v25, %v7436_v38 }
 0x26d   : > { %v1377_v4 = vpack.c.bf16 %v1325_v24, %v1325_v24 }
 0x26f   : > { %v1891_v31 = vunpack.c.l.b16 %v1377_v4 }
 0x272   : > { %1532 = vrot.lane.b32.xlu2 %v7413_v58, %s6616_s0  ;;  %2104 = vrot.lane.b32.xlu1 %v7362_v53, %s6618_s17  ;;  %v1326_v14 = vpop.f32.mrf.mxu1  ;;  %s9748_s0 = scalar_lea.vmem %s9629_s7, %s6787_s1 }
 0x273   : > { %2176 = vrot.lane.b32.xlu0 %v7403_v13, %s6618_s17  ;;  %v1327_v23 = vadd.f32 %v1326_v14, %v7436_v38 }
 0x275   : > { %v1378_v63 = vpack.c.bf16 %v1327_v23, %v1327_v23 }
 0x277   : > { %v1892_v18 = vunpack.c.l.b16 %v1378_v63 }
 0x279   : > { %v7475_v9 = vpack.c.b16 %v1892_v18, %v1891_v31 }
 0x27a   : > { %2106 = vrot.lane.b32.xlu2 %v7362_v53, %s6617_s16  ;;  %2200 = vrot.lane.b32.xlu1 %v7413_v58, %s6618_s17  ;;  %v1329_v33 = vpop.f32.mrf.mxu1 }
 0x27b   : > { %v1330_v41 = vadd.f32 %v1329_v33, %v7436_v38 }
 0x27d   : > { %v1379_v15 = vpack.c.bf16 %v1330_v41, %v1330_v41 }
 0x27f   : > { %v1919_v48 = vunpack.c.l.b16 %v1379_v15 }
 0x282   : > { %2202 = vrot.lane.b32.xlu2 %v7413_v58, %s6617_s16  ;;  %v1331_v12 = vpop.f32.mrf.mxu1 }
 0x283   : > { %v1332_v8 = vadd.f32 %v1331_v12, %v7436_v38 }
 0x285   : > { %v1380_v26 = vpack.c.bf16 %v1332_v8, %v1332_v8 }
 0x287   : > { %v1920_v55 = vunpack.c.l.b16 %v1380_v26 }
 0x289   : > { %v7466_v5 = vpack.c.b16 %v1920_v55, %v1919_v48 }
 0x28a   : > { %2128 = vrot.lane.b32.xlu2 %v7373_v19, %s6618_s17  ;;  %v1334_v27 = vpop.f32.mrf.mxu1 }
 0x28b   : > { %9687 = vst [vmem:[#allocation15_spill] sm:$0xff] %v7466_v5  ;;  %v1335_v1 = vadd.f32 %v1334_v27, %v7436_v38 }
 0x28d   : > { %v1381_v34 = vpack.c.bf16 %v1335_v1, %v1335_v1 }
 0x292   : > { %v1336_v10 = vpop.f32.mrf.mxu1 }
 0x293   : > { %v1337_v11 = vadd.f32 %v1336_v10, %v7436_v38 }
 0x295   : > { %v1382_v25 = vpack.c.bf16 %v1337_v11, %v1337_v11 }
 0x29a   : > { %v7457_v51 = vpop.f32.mrf.mxu1 }
 0x29c   : > { %v1397_v60 = vpop.permute.xlu0 %1396 }
 0x29d   : > { %v1403_v35 = vsel %vm1398_vm5, %v1397_v60, 0  ;;  %v1947_v60 = vunpack.c.l.b16 %v1381_v34 }
 0x29e   : > { %1412 = vmatpush.bf16.xpose.msra.mxu1 %v1403_v35  ;;  %v1948_v35 = vunpack.c.l.b16 %v1382_v25 }
 0x2a0   : > { %v7487_v33 = vpack.c.b16 %v1948_v35, %v1947_v60 }
 0x2a2   : > { %v7472_v6 = vpop.f32.mrf.mxu1  ;;  %9688 = vst [vmem:[#allocation16_spill] sm:$0xff] %v7487_v33 }
 0x2a5   : > { %5746 = vmatmul.msk.bf16.vlgmr.msra.gmra.mxu1 %vm1398_vm5, %v7353_v57 }
 0x2aa   : > { %v7483_v39 = vpop.f32.mrf.mxu1 }
 0x2ac   : > { %v1425_v20 = vpop.permute.xlu0 %1424 }
 0x2ad   : > { %v1430_v30 = vsel %vm1398_vm5, %v1425_v20, 0 }
 0x2ae   : > { %1439 = vmatpush.bf16.xpose.msrb.mxu1 %v1430_v30 }
 0x2b2   : > { %v7485_v14 = vpop.f32.mrf.mxu1 }
 0x2b4   : > { %v1560_v61 = vpop.permute.xlu0 %1559 }
 0x2b5   : > { %5747 = vmatmul.msk.bf16.vlgmr.msrb.gmra.mxu1 %vm1398_vm5, %v7362_v53  ;;  %v1565_v56 = vsel %vm1398_vm5, %v1560_v61, 0 }
 0x2ba   : > { %v7492_v20 = vpop.f32.mrf.mxu1 }
 0x2bc   : > { %v1452_v52 = vpop.permute.xlu1 %1451  ;;  %v7438_v21 = vpop.permute.xlu0 %2082 }
 0x2bd   : > { %v1457_v22 = vsel %vm1398_vm5, %v1452_v52, 0  ;;  %v7503_v52 = vld [vmem:[%s9689_s26] sm:$0xff] }
 0x2be   : > { %1466 = vmatpush.bf16.xpose.msra.mxu1 %v1457_v22  ;;  %v7506_v22 = vperm.slane %v7503_v52, 0  ;;  %v1626_v41 = vrot.slane %v7503_v52, 2  ;;  %v1628_v55 = vrot.slane %v7503_v52, 4  ;;  %v1627_v11 = vrot.slane %v7503_v52, 3 }
 0x2c0   : > { %v7532_v15 = vperm.slane %v1626_v41, 0  ;;  %v7545_v31 = vperm.slane %v1628_v55, 0  ;;  %v7553_v25 = vperm.slane %v1627_v11, 0 }
 0x2c2   : > { %v7494_v30 = vpop.f32.mrf.mxu1  ;;  %9690 = vst [vmem:[#allocation17_spill] sm:$0xff] %v7545_v31 }
 0x2c4   : > { %v1506_v40 = vpop.permute.xlu2 %1505  ;;  %v2131_v16 = vpop.permute.xlu0 %2130 }
 0x2c5   : > { %5748 = vmatmul.msk.bf16.vlgmr.msra.gmra.mxu1 %vm1398_vm5, %v7373_v19  ;;  %v1511_v62 = vsel %vm1398_vm5, %v1506_v40, 0  ;;  %v2136_v42 = vsel %vm1398_vm5, %v2131_v16, 0  ;;  %v1625_v16 = vrot.slane %v7503_v52, 1 }
 0x2c6   : > { %1520 = vmatpush.bf16.xpose.msra.mxu2 %v1511_v62  ;;  %2145 = vmatpush.bf16.xpose.msrb.mxu0 %v2136_v42 }
 0x2c7   : > { %v7519_v42 = vperm.slane %v1625_v16, 0 }
 0x2ca   : > { %v7496_v61 = vpop.f32.mrf.mxu1 }
 0x2cc   : > { %v1479_v49 = vpop.permute.xlu1 %1478  ;;  %v1533_v50 = vpop.permute.xlu2 %1532 }
 0x2cd   : > { %v1484_v44 = vsel %vm1398_vm5, %v1479_v49, 0  ;;  %5750 = vmatmul.msk.bf16.vlgmr.msra.gmra.mxu2 %vm1398_vm5, %v7403_v13  ;;  %v1538_v36 = vsel %vm1398_vm5, %v1533_v50, 0 }
 0x2ce   : > { %1574 = vmatpush.bf16.xpose.msrb.mxu2 %v1565_v56  ;;  %1493 = vmatpush.bf16.xpose.msra.mxu3 %v1484_v44 }
 0x2d2   : > { %v7498_v12 = vpop.f32.mrf.mxu1 }
 0x2d4   : > { %v1587_v43 = vpop.permute.xlu1 %1586  ;;  %v7459_v54 = vpop.permute.xlu2 %2106 }
 0x2d5   : > { %v1592_v17 = vsel %vm1398_vm5, %v1587_v43, 0  ;;  %5749 = vmatmul.msk.bf16.vlgmr.msra.gmra.mxu3 %vm1398_vm5, %v7387_v0 }
 0x2d6   : > { %1877 = vmatpush.bf16.msra.mxu2 %v7448_v32  ;;  %1547 = vmatpush.bf16.xpose.msrb.mxu3 %v1538_v36 }
 0x2dc   : > { %v7468_v59 = vpop.permute.xlu2 %2202 }
 0x2dd   : > { %5752 = vmatmul.msk.bf16.vlgmr.msrb.gmra.mxu2 %vm1398_vm5, %v7368_v7 }
 0x2de   : > { %1601 = vmatpush.bf16.xpose.msra.mxu3 %v1592_v17  ;;  %1933 = vmatpush.bf16.msrb.mxu2 %v7466_v5 }
 0x2e4   : > { %v2129_v45 = vpop.permute.xlu2 %2128 }
 0x2e5   : > { %5751 = vmatmul.msk.bf16.vlgmr.msrb.gmra.mxu3 %vm1398_vm5, %v7413_v58  ;;  %5764 = vmatmul.msk.bf16.vlgmr.msrb.gmra.mxu0 %vm1398_vm5, %v2129_v45 }
 0x2e6   : > { %1905 = vmatpush.bf16.msrb.mxu3 %v7475_v9 }
 0x2f5   : > { %5753 = vmatmul.msk.bf16.vlgmr.msra.gmra.mxu3 %vm1398_vm5, %v7394_v28 }
 0x2f6   : > { %1961 = vmatpush.bf16.msra.mxu3 %v7487_v33 }
 0x322   : > { %v1414_v27 = vpop.f32.mrf.mxu1 }
 0x323   : > { %v1608_v3 = vmul.f32 0.25, %v1414_v27 }
 0x325   : > { %v7509_v29 = vadd.f32 %v7506_v22, %v1608_v3 }
 0x327   : > { %v1664_v46 = vsel %vm1398_vm5, %v7509_v29, -inf }
 0x328   : > { %1665 = vmax.xlane.f32.xlu2 %v1664_v46 }
 0x32a   : > { %v1416_v37 = vpop.f32.mrf.mxu1 }
 0x32b   : > { %v1609_v40 = vmul.f32 0.25, %v1416_v37 }
 0x32d   : > { %v7514_v56 = vadd.f32 %v7506_v22, %v1609_v40 }
 0x32f   : > { %v1667_v62 = vsel %vm1398_vm5, %v7514_v56, -inf }
 0x330   : > { %1668 = vmax.xlane.f32.xlu0 %v1667_v62 }
 0x332   : > { %v1441_v47 = vpop.f32.mrf.mxu1 }
 0x333   : > { %v1610_v2 = vmul.f32 0.25, %v1441_v47  ;;  %v1630_v47 = vrot.slane %v7503_v52, 6 }
 0x335   : > { %v7522_v10 = vadd.f32 %v7519_v42, %v1610_v2 }
 0x337   : > { %v1670_v49 = vsel %vm1398_vm5, %v7522_v10, -inf }
 0x338   : > { %1671 = vmax.xlane.f32.xlu1 %v1670_v49 }
 0x33a   : > { %v1443_v50 = vpop.f32.mrf.mxu1 }
 0x33b   : > { %v1611_v44 = vmul.f32 0.25, %v1443_v50  ;;  %v1629_v50 = vrot.slane %v7503_v52, 5 }
 0x33d   : > { %v7527_v36 = vadd.f32 %v7519_v42, %v1611_v44 }
 0x33f   : > { %v1673_v8 = vsel %vm1398_vm5, %v7527_v36, -inf }
 0x340   : > { %1674 = vmax.xlane.f32.xlu2 %v1673_v8 }
 0x342   : > { %v1468_v26 = vpop.f32.mrf.mxu1 }
 0x343   : > { %v1612_v43 = vmul.f32 0.25, %v1468_v26  ;;  %v7572_v26 = vperm.slane %v1630_v47, 0 }
 0x345   : > { %v7535_v17 = vadd.f32 %v7532_v15, %v1612_v43  ;;  %v7574_v43 = vperm.slane %v1629_v50, 0 }
 0x347   : > { %v1676_v24 = vsel %vm1398_vm5, %v7535_v17, -inf }
 0x348   : > { %1677 = vmax.xlane.f32.xlu2 %v1676_v24 }
 0x34a   : > { %v1470_v23 = vpop.f32.mrf.mxu1 }
 0x34b   : > { %v1613_v48 = vmul.f32 0.25, %v1470_v23 }
 0x34d   : > { %v7541_v4 = vadd.f32 %v7532_v15, %v1613_v48 }
 0x34f   : > { %v1679_v63 = vsel %vm1398_vm5, %v7541_v4, -inf }
 0x350   : > { %1680 = vmax.xlane.f32.xlu0 %v1679_v63  ;;  %v1522_v18 = vpop.f32.mrf.mxu2 }
 0x351   : > { %v1616_v45 = vmul.f32 0.25, %v1522_v18 }
 0x353   : > { %v7548_v1 = vadd.f32 %v7545_v31, %v1616_v45 }
 0x355   : > { %v1688_v34 = vsel %vm1398_vm5, %v7548_v1, -inf }
 0x358   : > { %v1495_v60 = vpop.f32.mrf.mxu3  ;;  %1689 = vmax.xlane.f32.xlu0 %v1688_v34  ;;  %v1524_v35 = vpop.f32.mrf.mxu2 }
 0x359   : > { %v1614_v27 = vmul.f32 0.25, %v1495_v60  ;;  %v1617_v37 = vmul.f32 0.25, %v1524_v35  ;;  %v1631_v60 = vrot.slane %v7503_v52, 7 }
 0x35b   : > { %v7556_v3 = vadd.f32 %v7553_v25, %v1614_v27  ;;  %v7561_v62 = vadd.f32 %v7545_v31, %v1617_v37  ;;  %v7592_v27 = vperm.slane %v1631_v60, 0 }
 0x35d   : > { %v1682_v46 = vsel %vm1398_vm5, %v7556_v3, -inf  ;;  %v1691_v44 = vsel %vm1398_vm5, %v7561_v62, -inf }
 0x35e   : > { %1683 = vmax.xlane.f32.xlu1 %v1682_v46 }
 0x360   : > { %v1497_v40 = vpop.f32.mrf.mxu3  ;;  %v1576_v2 = vpop.f32.mrf.mxu2 }
 0x361   : > { %v1615_v16 = vmul.f32 0.25, %v1497_v40  ;;  %v1620_v8 = vmul.f32 0.25, %v1576_v2 }
 0x363   : > { %v7565_v49 = vadd.f32 %v7553_v25, %v1615_v16  ;;  %v7577_v48 = vadd.f32 %v7572_v26, %v1620_v8 }
 0x365   : > { %v1685_v41 = vsel %vm1398_vm5, %v7565_v49, -inf  ;;  %v1700_v18 = vsel %vm1398_vm5, %v7577_v48, -inf }
 0x366   : > { %1692 = vmax.xlane.f32.xlu1 %v1691_v44  ;;  %1686 = vmax.xlane.f32.xlu2 %v1685_v41 }
 0x368   : > { %v1549_v24 = vpop.f32.mrf.mxu3  ;;  %v1578_v40 = vpop.f32.mrf.mxu2 }
 0x369   : > { %v1618_v23 = vmul.f32 0.25, %v1549_v24  ;;  %v1621_v47 = vmul.f32 0.25, %v1578_v40 }
 0x36b   : > { %v7580_v55 = vadd.f32 %v7574_v43, %v1618_v23  ;;  %v7600_v52 = vadd.f32 %v7572_v26, %v1621_v47  ;;  %v7609_v23 = vpop.permute.xlu1 %2080 }
 0x36d   : > { %v1694_v63 = vsel %vm1398_vm5, %v7580_v55, -inf  ;;  %v1703_v24 = vsel %vm1398_vm5, %v7600_v52, -inf }
 0x36e   : > { %1695 = vmax.xlane.f32.xlu2 %v1694_v63  ;;  %1701 = vmax.xlane.f32.xlu1 %v1700_v18  ;;  %v7611_v63 = vpop.permute.xlu0 %2178 }
 0x370   : > { %v1551_v45 = vpop.f32.mrf.mxu3 }
 0x371   : > { %v1619_v11 = vmul.f32 0.25, %v1551_v45 }
 0x373   : > { %v7587_v34 = vadd.f32 %v7574_v43, %v1619_v11  ;;  %v7613_v18 = vpop.permute.xlu1 %2104 }
 0x375   : > { %v1697_v35 = vsel %vm1398_vm5, %v7587_v34, -inf }
 0x376   : > { %1698 = vmax.xlane.f32.xlu0 %v1697_v35  ;;  %v7615_v45 = vpop.permute.xlu0 %2176 }
 0x378   : > { %v1603_v46 = vpop.f32.mrf.mxu3 }
 0x379   : > { %v1622_v37 = vmul.f32 0.25, %v1603_v46 }
 0x37b   : > { %v7595_v16 = vadd.f32 %v7592_v27, %v1622_v37  ;;  %v7618_v46 = vpop.permute.xlu1 %2200 }
 0x37d   : > { %v1706_v2 = vsel %vm1398_vm5, %v7595_v16, -inf }
 0x37e   : > { %1707 = vmax.xlane.f32.xlu2 %v1706_v2 }
 0x380   : > { %v1605_v50 = vpop.f32.mrf.mxu3 }
 0x381   : > { %v1623_v44 = vmul.f32 0.25, %v1605_v50 }
 0x383   : > { %v7603_v41 = vadd.f32 %v7592_v27, %v1623_v44 }
 0x385   : > { %v1709_v8 = vsel %vm1398_vm5, %v7603_v41, -inf }
 0x386   : > { %1710 = vmax.xlane.f32.xlu0 %v1709_v8  ;;  %1704 = vmax.xlane.f32.xlu2 %v1703_v24 }
 0x39b   : > { %v1666_v11 = vpop.xlane.xlu2 %1665 }
 0x39c   : > { %v1712_v60 = vsub.f32 %v7509_v29, %v1666_v11 }
 0x39e   : > { %v1728_v35 = vmul.f32 1.442695, %v1712_v60 }
 0x3a0   : > { %6177 = vpow2.f32 %v1728_v35 }
 0x3a3   : > { %v1669_v37 = vpop.xlane.xlu0 %1668 }
 0x3a4   : > { %v1713_v40 = vsub.f32 %v7514_v56, %v1669_v37 }
 0x3a6   : > { %v7621_v47 = vpop.eup %6177  ;;  %v1730_v2 = vmul.f32 1.442695, %v1713_v40 }
 0x3a7   : > { %v1760_v50 = vsel %vm1398_vm5, %v7621_v47, 0.0 }
 0x3a8   : > { %6179 = vpow2.f32 %v1730_v2  ;;  %1761 = vadd.xlane.f32.xlu0 %v1760_v50 }
 0x3ab   : > { %v1672_v44 = vpop.xlane.xlu1 %1671 }
 0x3ac   : > { %v1714_v8 = vsub.f32 %v7522_v10, %v1672_v44 }
 0x3ae   : > { %v7626_v24 = vpop.eup %6179  ;;  %v1732_v29 = vmul.f32 1.442695, %v1714_v8 }
 0x3af   : > { %v1763_v11 = vsel %vm1398_vm5, %v7626_v24, 0.0 }
 0x3b0   : > { %6181 = vpow2.f32 %v1732_v29  ;;  %1764 = vadd.xlane.f32.xlu1 %v1763_v11 }
 0x3b3   : > { %v1675_v56 = vpop.xlane.xlu2 %1674 }
 0x3b4   : > { %v1715_v60 = vsub.f32 %v7527_v36, %v1675_v56 }
 0x3b6   : > { %v7631_v35 = vpop.eup %6181  ;;  %v1734_v37 = vmul.f32 1.442695, %v1715_v60 }
 0x3b7   : > { %v1766_v40 = vsel %vm1398_vm5, %v7631_v35, 0.0 }
 0x3b8   : > { %6183 = vpow2.f32 %v1734_v37  ;;  %1767 = vadd.xlane.f32.xlu1 %v1766_v40 }
 0x3bb   : > { %v1678_v10 = vpop.xlane.xlu2 %1677 }
 0x3bc   : > { %v1716_v2 = vsub.f32 %v7535_v17, %v1678_v10 }
 0x3be   : > { %v7636_v50 = vpop.eup %6183  ;;  %v1736_v44 = vmul.f32 1.442695, %v1716_v2 }
 0x3bf   : > { %v1769_v8 = vsel %vm1398_vm5, %v7636_v50, 0.0 }
 0x3c0   : > { %6185 = vpow2.f32 %v1736_v44  ;;  %1770 = vadd.xlane.f32.xlu2 %v1769_v8 }
 0x3c3   : > { %v1681_v36 = vpop.xlane.xlu0 %1680 }
 0x3c4   : > { %v1717_v29 = vsub.f32 %v7541_v4, %v1681_v36 }
 0x3c6   : > { %v7641_v11 = vpop.eup %6185  ;;  %v1738_v56 = vmul.f32 1.442695, %v1717_v29 }
 0x3c7   : > { %v1772_v60 = vsel %vm1398_vm5, %v7641_v11, 0.0 }
 0x3c8   : > { %6187 = vpow2.f32 %v1738_v56  ;;  %1773 = vadd.xlane.f32.xlu0 %v1772_v60 }
 0x3cb   : > { %v1690_v36 = vpop.xlane.xlu0 %1689 }
 0x3ce   : > { %v7645_v17 = vpop.eup %6187 }
 0x3cf   : > { %v1775_v37 = vsel %vm1398_vm5, %v7645_v17, 0.0 }
 0x3d0   : > { %1776 = vadd.xlane.f32.xlu1 %v1775_v37 }
 0x3d1   : > { %v1684_v40 = vpop.xlane.xlu1 %1683 }
 0x3d2   : > { %v1718_v10 = vsub.f32 %v7556_v3, %v1684_v40 }
 0x3d4   : > { %v1740_v8 = vmul.f32 1.442695, %v1718_v10 }
 0x3d6   : > { %6189 = vpow2.f32 %v1740_v8 }
 0x3d8   : > { %2152 = vrot.lane.b32.xlu2 %v7387_v0, %s6618_s17 }
 0x3d9   : > { %v1687_v4 = vpop.xlane.xlu2 %1686  ;;  %v1693_v44 = vpop.xlane.xlu1 %1692 }
 0x3da   : > { %v1719_v29 = vsub.f32 %v7565_v49, %v1687_v4  ;;  %v1721_v56 = vsub.f32 %v7561_v62, %v1693_v44  ;;  %v1720_v4 = vsub.f32 %v7548_v1, %v1690_v36 }
 0x3dc   : > { %2226 = vrot.lane.b32.xlu0 %v7368_v7, %s6617_s16  ;;  %v1742_v37 = vmul.f32 1.442695, %v1719_v29  ;;  %v1746_v19 = vmul.f32 1.442695, %v1721_v56 }
 0x3de   : > { %6191 = vpow2.f32 %v1742_v37 }
 0x3df   : > { %6193 = vpow2.f32 %v1746_v19  ;;  %v1744_v19 = vmul.f32 1.442695, %v1720_v4 }
 0x3e1   : > { %v1696_v2 = vpop.xlane.xlu2 %1695  ;;  %v1702_v31 = vpop.xlane.xlu1 %1701 }
 0x3e2   : > { %v1722_v33 = vsub.f32 %v7580_v55, %v1696_v2  ;;  %v1724_v3 = vsub.f32 %v7577_v48, %v1702_v31 }
 0x3e4   : > { %v1748_v40 = vmul.f32 1.442695, %v1722_v33  ;;  %v1752_v44 = vmul.f32 1.442695, %v1724_v3 }
 0x3e6   : > { %6195 = vpow2.f32 %v1748_v40 }
 0x3e7   : > { %6197 = vpow2.f32 %v1752_v44 }
 0x3e8   : > { %6199 = vpow2.f32 %v1744_v19 }
 0x3e9   : > { %2154 = vrot.lane.b32.xlu1 %v7387_v0, %s6617_s16  ;;  %v1699_v5 = vpop.xlane.xlu0 %1698  ;;  %v7659_v0 = vpop.eup %6189 }
 0x3ea   : > { %v1778_v49 = vsel %vm1398_vm5, %v7659_v0, 0.0  ;;  %v7665_v10 = vpop.eup %6191  ;;  %v1723_v36 = vsub.f32 %v7587_v34, %v1699_v5 }
 0x3eb   : > { %v7668_v8 = vpop.eup %6193  ;;  %v1781_v33 = vsel %vm1398_vm5, %v7665_v10, 0.0 }
 0x3ec   : > { %v1787_v48 = vsel %vm1398_vm5, %v7668_v8, 0.0  ;;  %v1750_v37 = vmul.f32 1.442695, %v1723_v36  ;;  %v1342_v36 = vadd.f32 %v7472_v6, %v7436_v38 }
 0x3f1   : > { %v1708_v60 = vpop.xlane.xlu2 %1707 }
 0x3f2   : > { %v1726_v5 = vsub.f32 %v7595_v16, %v1708_v60 }
 0x3f9   : > { %v1705_v62 = vpop.xlane.xlu2 %1704  ;;  %v1711_v2 = vpop.xlane.xlu0 %1710 }
 0x3fa   : > { %v1725_v55 = vsub.f32 %v7600_v52, %v1705_v62  ;;  %v1727_v31 = vsub.f32 %v7603_v41, %v1711_v2  ;;  %v7676_v52 = vpop.eup %6195  ;;  %v1756_v62 = vmul.f32 1.442695, %v1726_v5 }
 0x3fb   : > { %v7678_v56 = vpop.eup %6197  ;;  %v1790_v3 = vsel %vm1398_vm5, %v7676_v52, 0.0 }
 0x3fc   : > { %v1754_v1 = vmul.f32 1.442695, %v1725_v55  ;;  %v1758_v29 = vmul.f32 1.442695, %v1727_v31  ;;  %v7682_v41 = vpop.eup %6199  ;;  %v1796_v40 = vsel %vm1398_vm5, %v7678_v56, 0.0 }
 0x3fe   : > { %6201 = vpow2.f32 %v1754_v1 }
 0x3ff   : > { %6203 = vpow2.f32 %v1758_v29 }
 0x400   : > { %6205 = vpow2.f32 %v1750_v37 }
 0x401   : > { %1779 = vadd.xlane.f32.xlu2 %v1778_v49  ;;  %v1784_v49 = vsel %vm1398_vm5, %v7682_v41, 0.0  ;;  %6207 = vpow2.f32 %v1756_v62 }
 0x404   : > { %v7687_v34 = vpop.eup %6201 }
 0x405   : > { %v7691_v4 = vpop.eup %6203  ;;  %v1799_v44 = vsel %vm1398_vm5, %v7687_v34, 0.0 }
 0x406   : > { %1782 = vadd.xlane.f32.xlu0 %v1781_v33  ;;  %v7695_v55 = vpop.eup %6205  ;;  %v1805_v2 = vsel %vm1398_vm5, %v7691_v4, 0.0 }
 0x407   : > { %v1793_v16 = vsel %vm1398_vm5, %v7695_v55, 0.0  ;;  %v7701_v19 = vpop.eup %6207 }
 0x408   : > { %v1802_v33 = vsel %vm1398_vm5, %v7701_v19, 0.0 }
 0x409   : > { %1788 = vadd.xlane.f32.xlu2 %v1787_v48  ;;  %v1340_v48 = vadd.f32 %v7457_v51, %v7436_v38 }
 0x40e   : > { %1791 = vadd.xlane.f32.xlu0 %v1790_v3  ;;  %v1383_v3 = vpack.c.bf16 %v1340_v48, %v1340_v48 }
 0x411   : > { %1797 = vadd.xlane.f32.xlu2 %v1796_v40  ;;  %v1384_v40 = vpack.c.bf16 %v1342_v36, %v1342_v36 }
 0x413   : > { %1785 = vadd.xlane.f32.xlu1 %v1784_v49 }
 0x416   : > { %1800 = vadd.xlane.f32.xlu0 %v1799_v44 }
 0x419   : > { %1806 = vadd.xlane.f32.xlu2 %v1805_v2  ;;  %v1975_v2 = vunpack.c.l.b16 %v1383_v3 }
 0x41b   : > { %1794 = vadd.xlane.f32.xlu1 %v1793_v16  ;;  %v1762_v60 = vpop.xlane.xlu0 %1761  ;;  %v1976_v16 = vunpack.c.l.b16 %v1384_v40 }
 0x41c   : > { %6209 = vrcp.f32 %v1762_v60 }
 0x41d   : > { %v7715_v6 = vpack.c.b16 %v1976_v16, %v1975_v2 }
 0x422   : > { %v6210_v1 = vpop.eup %6209 }
 0x423   : > { %v1765_v31 = vpop.xlane.xlu1 %1764  ;;  %1803 = vadd.xlane.f32.xlu1 %v1802_v33  ;;  %v1824_v29 = vmul.f32 %v6210_v1, %v7621_v47  ;;  %v1347_v1 = vadd.f32 %v7485_v14, %v7436_v38 }
 0x424   : > { %6211 = vrcp.f32 %v1765_v31 }
 0x425   : > { %v1840_v5 = vpack.c.bf16 %v1824_v29, %v1824_v29 }
 0x427   : > { %v1858_v51 = vunpack.c.l.b16 %v1840_v5 }
 0x42a   : > { %v6212_v37 = vpop.eup %6211  ;;  %2250 = vrot.lane.b32.xlu0 %v7394_v28, %s6617_s16 }
 0x42b   : > { %v1825_v49 = vmul.f32 %v6212_v37, %v7626_v24  ;;  %v1768_v62 = vpop.xlane.xlu1 %1767  ;;  %v1345_v24 = vadd.f32 %v7483_v39, %v7436_v38  ;;  %v1386_v37 = vpack.c.bf16 %v1347_v1, %v1347_v1 }
 0x42c   : > { %6213 = vrcp.f32 %v1768_v62 }
 0x42d   : > { %v1841_v44 = vpack.c.bf16 %v1825_v49, %v1825_v49  ;;  %v1385_v29 = vpack.c.bf16 %v1345_v24, %v1345_v24 }
 0x42f   : > { %v1859_v60 = vunpack.c.l.b16 %v1841_v44  ;;  %v2003_v62 = vunpack.c.l.b16 %v1385_v29  ;;  %v2004_v44 = vunpack.c.l.b16 %v1386_v37 }
 0x431   : > { %v1860_v33 = vpack.c.b16 %v1859_v60, %v1858_v51  ;;  %2248 = vrot.lane.b32.xlu2 %v7394_v28, %s6618_s17  ;;  %v7727_v14 = vpack.c.b16 %v2004_v44, %v2003_v62  ;;  %v1352_v60 = vadd.f32 %v7494_v30, %v7436_v38 }
 0x432   : > { %v6214_v31 = vpop.eup %6213 }
 0x433   : > { %v1771_v47 = vpop.xlane.xlu2 %1770  ;;  %5754 = vmatmul.msk.bf16.vlgmr.msra.gmra.mxu2 %vm1398_vm5, %v1860_v33  ;;  %v1826_v48 = vmul.f32 %v6214_v31, %v7631_v35  ;;  %v1388_v24 = vpack.c.bf16 %v1352_v60, %v1352_v60 }
 0x434   : > { %6215 = vrcp.f32 %v1771_v47  ;;  %1989 = vmatpush.bf16.msra.mxu2 %v7715_v6 }
 0x435   : > { %v1842_v3 = vpack.c.bf16 %v1826_v48, %v1826_v48  ;;  %v2032_v37 = vunpack.c.l.b16 %v1388_v24  ;;  %v1355_v24 = vadd.f32 %v7496_v61, %v7436_v38 }
 0x437   : > { %v1886_v39 = vunpack.c.l.b16 %v1842_v3  ;;  %v2147_v3 = vpop.f32.mrf.mxu0 }
 0x438   : > { %v2276_v62 = vmul.f32 0.25, %v2147_v3 }
 0x43a   : > { %v6216_v36 = vpop.eup %6215 }
 0x43b   : > { %v1827_v40 = vmul.f32 %v6216_v36, %v7636_v50  ;;  %v1774_v5 = vpop.xlane.xlu0 %1773  ;;  %v1350_v50 = vadd.f32 %v7492_v20, %v7436_v38 }
 0x43c   : > { %2224 = vrot.lane.b32.xlu1 %v7368_v7, %s6618_s17  ;;  %6217 = vrcp.f32 %v1774_v5 }
 0x43d   : > { %v1843_v49 = vpack.c.bf16 %v1827_v40, %v1827_v40  ;;  %v1387_v31 = vpack.c.bf16 %v1350_v50, %v1350_v50  ;;  %v2153_v50 = vpop.permute.xlu2 %2152 }
 0x43f   : > { %v1887_v2 = vunpack.c.l.b16 %v1843_v49  ;;  %v2031_v29 = vunpack.c.l.b16 %v1387_v31 }
 0x441   : > { %v1888_v16 = vpack.c.b16 %v1887_v2, %v1886_v39  ;;  %v7738_v44 = vpack.c.b16 %v2032_v37, %v2031_v29  ;;  %v2149_v39 = vpop.f32.mrf.mxu0  ;;  %v1389_v37 = vpack.c.bf16 %v1355_v24, %v1355_v24 }
 0x442   : > { %v6218_v51 = vpop.eup %6217 }
 0x443   : > { %5755 = vmatmul.msk.bf16.vlgmr.msrb.gmra.mxu3 %vm1398_vm5, %v1888_v16  ;;  %v1777_v35 = vpop.xlane.xlu1 %1776  ;;  %v1828_v33 = vmul.f32 %v6218_v51, %v7641_v11  ;;  %9691 = vst [vmem:[#allocation18_spill] sm:$0xff] %v7738_v44  ;;  %v7743_v11 = vadd.f32 %v2276_v62, %v7532_v15  ;;  %v2059_v62 = vunpack.c.l.b16 %v1389_v37  ;;  %v2088_v37 = vsel %vm1398_vm5, %v7438_v21, 0 }
 0x444   : > { %2017 = vmatpush.bf16.msrb.mxu3 %v7727_v14  ;;  %6219 = vrcp.f32 %v1777_v35  ;;  %v2277_v35 = vmul.f32 0.25, %v2149_v39 }
 0x445   : > { %v1844_v1 = vpack.c.bf16 %v1828_v33, %v1828_v33 }
 0x446   : > { %v7749_v51 = vadd.f32 %v2277_v35, %v7532_v15 }
 0x447   : > { %v1914_v5 = vunpack.c.l.b16 %v1844_v1  ;;  %v1357_v1 = vadd.f32 %v7498_v12, %v7436_v38 }
 0x448   : > { %v2319_v60 = vsel %vm1398_vm5, %v7749_v51, -inf }
 0x449   : > { %v1390_v3 = vpack.c.bf16 %v1357_v1, %v1357_v1 }
 0x44a   : > { %v6220_v47 = vpop.eup %6219 }
 0x44b   : > { %v1829_v48 = vmul.f32 %v6220_v47, %v7645_v17  ;;  %v2316_v17 = vsel %vm1398_vm5, %v7743_v11, -inf  ;;  %v2060_v61 = vunpack.c.l.b16 %v1390_v3 }
 0x44d   : > { %v1845_v36 = vpack.c.bf16 %v1829_v48, %v1829_v48  ;;  %v7764_v39 = vpack.c.b16 %v2060_v61, %v2059_v62 }
 0x44e   : > { %v2227_v40 = vpop.permute.xlu0 %2226 }
 0x44f   : > { %v1915_v49 = vunpack.c.l.b16 %v1845_v36  ;;  %v2232_v20 = vsel %vm1398_vm5, %v2227_v40, 0 }
 0x450   : > { %2241 = vmatpush.bf16.xpose.msra.mxu0 %v2232_v20 }
 0x451   : > { %v1916_v30 = vpack.c.b16 %v1915_v49, %v1914_v5 }
 0x453   : > { %5756 = vmatmul.msk.bf16.vlgmr.msrb.gmra.mxu2 %vm1398_vm5, %v1916_v30 }
 0x454   : > { %2045 = vmatpush.bf16.msrb.mxu2 %v7738_v44 }
 0x45a   : > { %2317 = vmax.xlane.f32.xlu2 %v2316_v17 }
 0x45b   : > { %v2155_v2 = vpop.permute.xlu1 %2154 }
 0x45c   : > { %v2160_v16 = vsel %vm1398_vm5, %v2155_v2, 0 }
 0x45d   : > { %2169 = vmatpush.bf16.xpose.msrb.mxu1 %v2160_v16 }
 0x464   : > { %5765 = vmatmul.msk.bf16.vlgmr.msrb.gmra.mxu1 %vm1398_vm5, %v2153_v50 }
 0x466   : > { %2320 = vmax.xlane.f32.xlu1 %v2319_v60 }
 0x474   : > { %v1780_v33 = vpop.xlane.xlu2 %1779 }
 0x475   : > { %6221 = vrcp.f32 %v1780_v33 }
 0x479   : > { %v1783_v47 = vpop.xlane.xlu0 %1782 }
 0x47a   : > { %6223 = vrcp.f32 %v1783_v47 }
 0x47b   : > { %v6222_v31 = vpop.eup %6221 }
 0x47c   : > { %v1830_v48 = vmul.f32 %v6222_v31, %v7659_v0  ;;  %v1789_v36 = vpop.xlane.xlu2 %1788 }
 0x47d   : > { %6225 = vrcp.f32 %v1789_v36 }
 0x47e   : > { %v1846_v40 = vpack.c.bf16 %v1830_v48, %v1830_v48 }
 0x47f   : > { %2501 = vrot.lane.b32.xlu1 %v7448_v32, %s6618_s17 }
 0x480   : > { %v6224_v29 = vpop.eup %6223  ;;  %v1942_v30 = vunpack.c.l.b16 %v1846_v40 }
 0x481   : > { %v1831_v5 = vmul.f32 %v6224_v29, %v7665_v10  ;;  %v1792_v49 = vpop.xlane.xlu0 %1791 }
 0x483   : > { %v1847_v20 = vpack.c.bf16 %v1831_v5, %v1831_v5  ;;  %v6226_v12 = vpop.eup %6225 }
 0x484   : > { %v1833_v10 = vmul.f32 %v6226_v12, %v7668_v8  ;;  %v1798_v16 = vpop.xlane.xlu2 %1797 }
 0x485   : > { %v1943_v17 = vunpack.c.l.b16 %v1847_v20 }
 0x486   : > { %v1786_v38 = vpop.xlane.xlu1 %1785  ;;  %v1849_v50 = vpack.c.bf16 %v1833_v10, %v1833_v10 }
 0x487   : > { %v1944_v0 = vpack.c.b16 %v1943_v17, %v1942_v30  ;;  %6227 = vrcp.f32 %v1786_v38  ;;  %2698 = vrot.lane.b32.xlu1 %v7353_v57, %s6619_s27 }
 0x488   : > { %6229 = vrcp.f32 %v1792_v49  ;;  %v1971_v24 = vunpack.c.l.b16 %v1849_v50 }
 0x489   : > { %5757 = vmatmul.msk.bf16.vlgmr.msra.gmra.mxu3 %vm1398_vm5, %v1944_v0  ;;  %v1801_v2 = vpop.xlane.xlu0 %1800  ;;  %v2112_v0 = vsel %vm1398_vm5, %v7459_v54, 0  ;;  %v2184_v54 = vsel %vm1398_vm5, %v7611_v63, 0 }
 0x48a   : > { %2073 = vmatpush.bf16.msra.mxu3 %v7764_v39  ;;  %6231 = vrcp.f32 %v1801_v2 }
 0x48c   : > { %v1807_v40 = vpop.xlane.xlu2 %1806 }
 0x48d   : > { %v6228_v35 = vpop.eup %6227 }
 0x48e   : > { %v1832_v60 = vmul.f32 %v6228_v35, %v7682_v41  ;;  %v1795_v33 = vpop.xlane.xlu1 %1794  ;;  %v6230_v47 = vpop.eup %6229 }
 0x48f   : > { %6233 = vrcp.f32 %v1795_v33  ;;  %v1834_v1 = vmul.f32 %v6230_v47, %v7676_v52 }
 0x490   : > { %v1848_v31 = vpack.c.bf16 %v1832_v60, %v1832_v60  ;;  %6235 = vrcp.f32 %v1798_v16  ;;  %v6232_v36 = vpop.eup %6231 }
 0x491   : > { %v1850_v3 = vpack.c.bf16 %v1834_v1, %v1834_v1  ;;  %v1837_v20 = vmul.f32 %v6232_v36, %v7687_v34 }
 0x492   : > { %v1970_v48 = vunpack.c.l.b16 %v1848_v31 }
 0x493   : > { %v1998_v62 = vunpack.c.l.b16 %v1850_v3  ;;  %v1853_v17 = vpack.c.bf16 %v1837_v20, %v1837_v20 }
 0x494   : > { %v1972_v8 = vpack.c.b16 %v1971_v24, %v1970_v48  ;;  %v2249_v60 = vpop.permute.xlu2 %2248 }
 0x495   : > { %v6234_v29 = vpop.eup %6233  ;;  %v2027_v2 = vunpack.c.l.b16 %v1853_v17 }
 0x496   : > { %v1835_v41 = vmul.f32 %v6234_v29, %v7695_v55  ;;  %v1804_v5 = vpop.xlane.xlu1 %1803  ;;  %5758 = vmatmul.msk.bf16.vlgmr.msra.gmra.mxu2 %vm1398_vm5, %v1972_v8  ;;  %v6236_v49 = vpop.eup %6235 }
 0x497   : > { %6237 = vrcp.f32 %v1804_v5  ;;  %2097 = vmatpush.bf16.xpose.msra.mxu2 %v2088_v37  ;;  %v1836_v61 = vmul.f32 %v6236_v49, %v7678_v56 }
 0x498   : > { %v1851_v52 = vpack.c.bf16 %v1835_v41, %v1835_v41  ;;  %6239 = vrcp.f32 %v1807_v40 }
 0x499   : > { %v1852_v10 = vpack.c.bf16 %v1836_v61, %v1836_v61 }
 0x49a   : > { %v1999_v30 = vunpack.c.l.b16 %v1851_v52 }
 0x49b   : > { %v2026_v56 = vunpack.c.l.b16 %v1852_v10 }
 0x49c   : > { %v2000_v21 = vpack.c.b16 %v1999_v30, %v1998_v62  ;;  %v2251_v38 = vpop.permute.xlu0 %2250 }
 0x49d   : > { %v6238_v12 = vpop.eup %6237  ;;  %v2256_v55 = vsel %vm1398_vm5, %v2251_v38, 0  ;;  %v2028_v50 = vpack.c.b16 %v2027_v2, %v2026_v56 }
 0x49e   : > { %5759 = vmatmul.msk.bf16.vlgmr.msrb.gmra.mxu3 %vm1398_vm5, %v2000_v21  ;;  %2265 = vmatpush.bf16.xpose.msra.mxu1 %v2256_v55  ;;  %v6240_v34 = vpop.eup %6239  ;;  %v1838_v16 = vmul.f32 %v6238_v12, %v7701_v19  ;;  %v2208_v19 = vsel %vm1398_vm5, %v7468_v59, 0 }
 0x49f   : > { %2121 = vmatpush.bf16.xpose.msrb.mxu3 %v2112_v0  ;;  %v1839_v35 = vmul.f32 %v6240_v34, %v7691_v4 }
 0x4a0   : > { %v1854_v33 = vpack.c.bf16 %v1838_v16, %v1838_v16 }
 0x4a1   : > { %v1855_v47 = vpack.c.bf16 %v1839_v35, %v1839_v35 }
 0x4a2   : > { %v2054_v31 = vunpack.c.l.b16 %v1854_v33 }
 0x4a3   : > { %v2055_v24 = vunpack.c.l.b16 %v1855_v47 }
 0x4a5   : > { %5769 = vmatmul.msk.bf16.vlgmr.msra.gmra.mxu1 %vm1398_vm5, %v2249_v60  ;;  %v2056_v1 = vpack.c.b16 %v2055_v24, %v2054_v31 }
 0x4a6   : > { %5760 = vmatmul.msk.bf16.vlgmr.msrb.gmra.mxu2 %vm1398_vm5, %v2028_v50 }
 0x4a7   : > { %2193 = vmatpush.bf16.xpose.msrb.mxu2 %v2184_v54 }
 0x4ae   : > { %v2225_v48 = vpop.permute.xlu1 %2224  ;;  %5761 = vmatmul.msk.bf16.vlgmr.msra.gmra.mxu3 %vm1398_vm5, %v2056_v1 }
 0x4af   : > { %2217 = vmatpush.bf16.xpose.msra.mxu3 %v2208_v19  ;;  %5768 = vmatmul.msk.bf16.vlgmr.msra.gmra.mxu0 %vm1398_vm5, %v2225_v48 }
 0x4b6   : > { %5762 = vmatmul.msk.bf16.vlgmr.msra.gmra.mxu2 %vm1398_vm5, %v7609_v23  ;;  %v7816_v5 = vpop.f32.mrf.mxu2 }
 0x4b7   : > { %9692 = vst [vmem:[#allocation19_spill] sm:$0xff] %v7816_v5 }
 0x4be   : > { %5763 = vmatmul.msk.bf16.vlgmr.msrb.gmra.mxu3 %vm1398_vm5, %v7613_v18  ;;  %v7820_v20 = vpop.f32.mrf.mxu2 }
 0x4bf   : > { %9694 = vst [vmem:[#allocation21_spill] sm:$0xff] %v7820_v20 }
 0x4c6   : > { %5766 = vmatmul.msk.bf16.vlgmr.msrb.gmra.mxu2 %vm1398_vm5, %v7615_v45  ;;  %v7818_v49 = vpop.f32.mrf.mxu3 }
 0x4c7   : > { %9693 = vst [vmem:[#allocation20_spill] sm:$0xff] %v7818_v49 }
 0x4cd   : > { %v2318_v63 = vpop.xlane.xlu2 %2317 }
 0x4ce   : > { %v2356_v4 = vsub.f32 %v7743_v11, %v2318_v63  ;;  %5767 = vmatmul.msk.bf16.vlgmr.msra.gmra.mxu3 %vm1398_vm5, %v7618_v46  ;;  %v7822_v52 = vpop.f32.mrf.mxu3 }
 0x4cf   : > { %9695 = vst [vmem:[#allocation22_spill] sm:$0xff] %v7822_v52 }
 0x4d0   : > { %v2376_v59 = vmul.f32 1.442695, %v2356_v4 }
 0x4d2   : > { %6241 = vpow2.f32 %v2376_v59 }
 0x4d6   : > { %v7824_v62 = vpop.f32.mrf.mxu2 }
 0x4d7   : > { %9696 = vst [vmem:[#allocation23_spill] sm:$0xff] %v7824_v62 }
 0x4d8   : > { %v7800_v36 = vpop.eup %6241 }
 0x4d9   : > { %v2412_v8 = vsel %vm1398_vm5, %v7800_v36, 0.0  ;;  %v7809_v11 = vpop.xlane.xlu1 %2320 }
 0x4da   : > { %2413 = vadd.xlane.f32.xlu1 %v2412_v8 }
 0x4de   : > { %v7828_v30 = vpop.f32.mrf.mxu2 }
 0x4df   : > { %9698 = vst [vmem:[#allocation25_spill] sm:$0xff] %v7828_v30 }
 0x4e1   : > { %v2171_v23 = vpop.f32.mrf.mxu1 }
 0x4e2   : > { %v2278_v29 = vmul.f32 0.25, %v2171_v23 }
 0x4e4   : > { %v7805_v18 = vadd.f32 %v2278_v29, %v7553_v25 }
 0x4e6   : > { %v2322_v45 = vsel %vm1398_vm5, %v7805_v18, -inf }
 0x4e7   : > { %2323 = vmax.xlane.f32.xlu0 %v2322_v45 }
 0x4e9   : > { %v2173_v46 = vpop.f32.mrf.mxu1 }
 0x4ea   : > { %v2279_v37 = vmul.f32 0.25, %v2173_v46 }
 0x4ec   : > { %v7812_v3 = vadd.f32 %v2279_v37, %v7553_v25 }
 0x4ee   : > { %v2325_v40 = vsel %vm1398_vm5, %v7812_v3, -inf }
 0x4ef   : > { %2326 = vmax.xlane.f32.xlu2 %v2325_v40 }
 0x4f1   : > { %v2502_v41 = vpop.permute.xlu1 %2501 }
 0x4f2   : > { %2514 = vmatpush.bf16.msra.mxu2 %v2502_v41 }
 0x50c   : > { %v7826_v61 = vpop.f32.mrf.mxu3 }
 0x50d   : > { %9697 = vst [vmem:[#allocation24_spill] sm:$0xff] %v7826_v61 }
 0x514   : > { %v7830_v17 = vpop.f32.mrf.mxu3 }
 0x515   : > { %9699 = vst [vmem:[#allocation26_spill] sm:$0xff] %v7830_v17 }
 0x519   : > { %v7832_v21 = vpop.f32.mrf.mxu2 }
 0x51a   : > { %9700 = vst [vmem:[#allocation27_spill] sm:$0xff] %v7832_v21 }
 0x521   : > { %v7834_v38 = vpop.f32.mrf.mxu2  ;;  %v7836_v12 = vpop.f32.mrf.mxu3 }
 0x522   : > { %9701 = vst [vmem:[#allocation28_spill] sm:$0xff] %v7834_v38  ;;  %v2267_v37 = vpop.f32.mrf.mxu1 }
 0x523   : > { %9702 = vst [vmem:[#allocation29_spill] sm:$0xff] %v7836_v12 }
 0x529   : > { %v7838_v55 = vpop.f32.mrf.mxu3  ;;  %v7840_v0 = vpop.f32.mrf.mxu2 }
 0x52a   : > { %9703 = vst [vmem:[#allocation30_spill] sm:$0xff] %v7838_v55  ;;  %v2269_v40 = vpop.f32.mrf.mxu1 }
 0x52b   : > { %9704 = vst [vmem:[#allocation31_spill] sm:$0xff] %v7840_v0  ;;  %v2287_v41 = vmul.f32 0.25, %v2269_v40 }
 0x52c   : > { %v2243_v10 = vpop.f32.mrf.mxu0 }
 0x52d   : > { %v2284_v34 = vmul.f32 0.25, %v2243_v10  ;;  %v7880_v10 = vadd.f32 %v2287_v41, %v7592_v27 }
 0x52f   : > { %v7843_v2 = vadd.f32 %v2284_v34, %v7572_v26  ;;  %v2349_v34 = vsel %vm1398_vm5, %v7880_v10, -inf }
 0x531   : > { %v7845_v16 = vpop.f32.mrf.mxu2  ;;  %v7847_v56 = vpop.f32.mrf.mxu3  ;;  %v2340_v35 = vsel %vm1398_vm5, %v7843_v2, -inf }
 0x532   : > { %9705 = vst [vmem:[#allocation32_spill] sm:$0xff] %v7845_v16  ;;  %2341 = vmax.xlane.f32.xlu0 %v2340_v35  ;;  %v2286_v35 = vmul.f32 0.25, %v2267_v37 }
 0x533   : > { %9706 = vst [vmem:[#allocation33_spill] sm:$0xff] %v7847_v56 }
 0x534   : > { %v2245_v50 = vpop.f32.mrf.mxu0 }
 0x535   : > { %v2285_v60 = vmul.f32 0.25, %v2245_v50  ;;  %v7887_v50 = vadd.f32 %v2286_v35, %v7592_v27 }
 0x537   : > { %v7852_v33 = vadd.f32 %v2285_v60, %v7572_v26  ;;  %v2346_v60 = vsel %vm1398_vm5, %v7887_v50, -inf }
 0x539   : > { %v7854_v54 = vpop.f32.mrf.mxu3  ;;  %v2099_v47 = vpop.f32.mrf.mxu2  ;;  %v2343_v31 = vsel %vm1398_vm5, %v7852_v33, -inf }
 0x53a   : > { %9707 = vst [vmem:[#allocation34_spill] sm:$0xff] %v7854_v54  ;;  %v2272_v24 = vmul.f32 0.25, %v2099_v47  ;;  %2344 = vmax.xlane.f32.xlu2 %v2343_v31  ;;  %v2357_v47 = vsub.f32 %v7749_v51, %v7809_v11 }
 0x53c   : > { %v7859_v1 = vadd.f32 %v2272_v24, %v7506_v22  ;;  %v2378_v31 = vmul.f32 1.442695, %v2357_v47 }
 0x53e   : > { %v2304_v19 = vsel %vm1398_vm5, %v7859_v1, -inf  ;;  %6243 = vpow2.f32 %v2378_v31 }
 0x53f   : > { %2305 = vmax.xlane.f32.xlu1 %v2304_v19 }
 0x541   : > { %v7863_v48 = vpop.f32.mrf.mxu3  ;;  %v2101_v19 = vpop.f32.mrf.mxu2 }
 0x546   : > { %2601 = vrot.lane.b32.xlu0 %v7715_v6, %s6618_s17 }
 0x549   : > { %v2125_v63 = vpop.f32.mrf.mxu3  ;;  %v2195_v41 = vpop.f32.mrf.mxu2 }
 0x54a   : > { %v2275_v4 = vmul.f32 0.25, %v2125_v63 }
 0x54c   : > { %v7868_v59 = vadd.f32 %v2275_v4, %v7519_v42  ;;  %v7909_v4 = vpop.permute.xlu1 %2698 }
 0x54e   : > { %v2313_v8 = vsel %vm1398_vm5, %v7868_v59, -inf }
 0x54f   : > { %2314 = vmax.xlane.f32.xlu1 %v2313_v8  ;;  %v7911_v8 = vpop.eup %6243 }
 0x550   : > { %v2415_v51 = vsel %vm1398_vm5, %v7911_v8, 0.0 }
 0x551   : > { %v2219_v23 = vpop.f32.mrf.mxu3 }
 0x552   : > { %v2282_v29 = vmul.f32 0.25, %v2219_v23  ;;  %2526 = vrot.lane.b32.xlu2 %v7475_v9, %s6618_s17  ;;  %v9708_v23 = vld [vmem:[#allocation15_spill] sm:$0xff] }
 0x554   : > { %v7875_v45 = vadd.f32 %v2282_v29, %v7574_v43  ;;  %v2273_v29 = vmul.f32 0.25, %v2101_v19  ;;  %v2414_v37 = vpop.xlane.xlu1 %2413  ;;  %v9709_v19 = vld [vmem:[#allocation17_spill] sm:$0xff] }
 0x556   : > { %v2334_v46 = vsel %vm1398_vm5, %v7875_v45, -inf  ;;  %v2289_v40 = vadd.f32 %v2273_v29, %v7506_v22 }
 0x557   : > { %2335 = vmax.xlane.f32.xlu1 %v2334_v46 }
 0x559   : > { %v2221_v54 = vpop.f32.mrf.mxu3 }
 0x55a   : > { %v7907_v63 = vpop.xlane.xlu0 %2323  ;;  %v2283_v0 = vmul.f32 0.25, %v2221_v54 }
 0x562   : > { %v7905_v24 = vpop.xlane.xlu2 %2326 }
 0x570   : > { %2792 = vrot.lane.b32.xlu1 %v7403_v13, %s6620_s22  ;;  %2350 = vmax.xlane.f32.xlu0 %v2349_v34  ;;  %v2280_v34 = vmul.f32 0.25, %v2195_v41  ;;  %v7927_v41 = vadd.f32 %v2283_v0, %v7574_v43 }
 0x572   : > { %v2296_v56 = vadd.f32 %v2280_v34, %v9709_v19  ;;  %v2274_v34 = vmul.f32 0.25, %v7863_v48 }
 0x574   : > { %v2328_v16 = vsel %vm1398_vm5, %v2296_v56, -inf  ;;  %v7937_v54 = vadd.f32 %v2274_v34, %v7519_v42 }
 0x576   : > { %v2310_v0 = vsel %vm1398_vm5, %v7937_v54, -inf }
 0x578   : > { %2818 = vrot.lane.b32.xlu1 %v7413_v58, %s6619_s27 }
 0x57b   : > { %2347 = vmax.xlane.f32.xlu2 %v2346_v60  ;;  %v2307_v60 = vsel %vm1398_vm5, %v2289_v40, -inf }
 0x580   : > { %2651 = vrot.lane.b32.xlu1 %v7738_v44, %s6618_s17 }
 0x584   : > { %2696 = vrot.lane.b32.xlu0 %v7353_v57, %s6620_s22 }
 0x593   : > { %2626 = vrot.lane.b32.xlu2 %v7727_v14, %s6618_s17 }
 0x59b   : > { %2722 = vrot.lane.b32.xlu2 %v7362_v53, %s6619_s27 }
 0x5a3   : > { %2794 = vrot.lane.b32.xlu2 %v7403_v13, %s6619_s27 }
 0x5a5   : > { %v7919_v11 = vpop.xlane.xlu0 %2341 }
 0x5ab   : > { %2551 = vrot.lane.b32.xlu2 %v9708_v23, %s6618_s17 }
 0x5ad   : > { %v7915_v46 = vpop.xlane.xlu2 %2344 }
 0x5ae   : > { %2416 = vadd.xlane.f32.xlu0 %v2415_v51 }
 0x5b2   : > { %v2306_v31 = vpop.xlane.xlu1 %2305 }
 0x5b3   : > { %v2352_v51 = vsub.f32 %v7859_v1, %v2306_v31 }
 0x5b5   : > { %v2527_v35 = vpop.permute.xlu2 %2526  ;;  %v2368_v29 = vmul.f32 1.442695, %v2352_v51 }
 0x5b6   : > { %2539 = vmatpush.bf16.msrb.mxu3 %v2527_v35  ;;  %2308 = vmax.xlane.f32.xlu0 %v2307_v60  ;;  %v2337_v35 = vsel %vm1398_vm5, %v7927_v41, -inf }
 0x5b7   : > { %6245 = vpow2.f32 %v2368_v29 }
 0x5b8   : > { %v2602_v47 = vpop.permute.xlu0 %2601  ;;  %6247 = vrcp.f32 %v2414_v37 }
 0x5b9   : > { %2614 = vmatpush.bf16.msrb.mxu2 %v2602_v47 }
 0x5bd   : > { %v7931_v60 = vpop.eup %6245 }
 0x5be   : > { %2329 = vmax.xlane.f32.xlu0 %v2328_v16  ;;  %v2400_v1 = vsel %vm1398_vm5, %v7931_v60, 0.0  ;;  %v2197_v16 = vpop.f32.mrf.mxu2  ;;  %v6248_v61 = vpop.eup %6247 }
 0x5bf   : > { %v2281_v47 = vmul.f32 0.25, %v2197_v16 }
 0x5c1   : > { %v7942_v31 = vadd.f32 %v2281_v47, %v9709_v19 }
 0x5c2   : > { %v2315_v48 = vpop.xlane.xlu1 %2314 }
 0x5c3   : > { %v2331_v51 = vsel %vm1398_vm5, %v7942_v31, -inf }
 0x5c6   : > { %2338 = vmax.xlane.f32.xlu0 %v2337_v35 }
 0x5ca   : > { %v2336_v35 = vpop.xlane.xlu1 %2335 }
 0x5ce   : > { %2401 = vadd.xlane.f32.xlu0 %v2400_v1 }
 0x5d4   : > { %2311 = vmax.xlane.f32.xlu2 %v2310_v0 }
 0x5dc   : > { %2332 = vmax.xlane.f32.xlu2 %v2331_v51 }
 0x5e2   : > { %v7948_v34 = vpop.permute.xlu1 %2792 }
 0x5e3   : > { %v7956_v21 = vpop.xlane.xlu0 %2350 }
 0x5ea   : > { %v7952_v12 = vpop.permute.xlu1 %2818 }
 0x5ee   : > { %v7946_v29 = vpop.xlane.xlu2 %2347 }
 0x5f2   : > { %v2652_v55 = vpop.permute.xlu1 %2651 }
 0x5f6   : > { %v2627_v1 = vpop.permute.xlu2 %2626  ;;  %v7958_v51 = vpop.permute.xlu0 %2696 }
 0x5f7   : > { %2639 = vmatpush.bf16.msra.mxu3 %v2627_v1  ;;  %v2468_v1 = vmul.f32 %v6248_v61, %v7800_v36  ;;  %v2362_v61 = vsub.f32 %v7875_v45, %v2336_v35 }
 0x5f9   : > { %v2484_v62 = vpack.c.bf16 %v2468_v1, %v2468_v1 }
 0x5fb   : > { %v2548_v20 = vunpack.c.l.b16 %v2484_v62 }
 0x5fe   : > { %v7950_v16 = vpop.permute.xlu2 %2722 }
 0x606   : > { %v7954_v0 = vpop.permute.xlu2 %2794 }
 0x60e   : > { %v2552_v47 = vpop.permute.xlu2 %2551 }
 0x60f   : > { %2564 = vmatpush.bf16.msrb.mxu0 %v2552_v47  ;;  %v2355_v47 = vsub.f32 %v7868_v59, %v2315_v48 }
 0x611   : > { %v2374_v37 = vmul.f32 1.442695, %v2355_v47 }
 0x613   : > { %2664 = vmatpush.bf16.msra.mxu0 %v2652_v55 }
 0x621   : > { %v2417_v38 = vpop.xlane.xlu0 %2416 }
 0x622   : > { %6249 = vrcp.f32 %v2417_v38 }
 0x628   : > { %v6250_v17 = vpop.eup %6249 }
 0x629   : > { %v2469_v30 = vmul.f32 %v6250_v17, %v7911_v8  ;;  %v2309_v49 = vpop.xlane.xlu0 %2308 }
 0x62a   : > { %v2353_v52 = vsub.f32 %v2289_v40, %v2309_v49 }
 0x62b   : > { %v2485_v5 = vpack.c.bf16 %v2469_v30, %v2469_v30 }
 0x62c   : > { %v2370_v55 = vmul.f32 1.442695, %v2353_v52  ;;  %v2388_v52 = vmul.f32 1.442695, %v2362_v61 }
 0x62d   : > { %v2549_v13 = vunpack.c.l.b16 %v2485_v5 }
 0x62e   : > { %6251 = vpow2.f32 %v2370_v55  ;;  %v2364_v55 = vsub.f32 %v7843_v2, %v7919_v11 }
 0x62f   : > { %v2550_v44 = vpack.c.b16 %v2549_v13, %v2548_v20  ;;  %6253 = vpow2.f32 %v2374_v37 }
 0x630   : > { %v2392_v37 = vmul.f32 1.442695, %v2364_v55 }
 0x631   : > { %5772 = vmatmul.msk.bf16.vlgmr.msrb.gmra.mxu0 %vm1398_vm5, %v2550_v44  ;;  %v2330_v38 = vpop.xlane.xlu0 %2329 }
 0x632   : > { %v2360_v23 = vsub.f32 %v2296_v56, %v2330_v38 }
 0x634   : > { %v7964_v36 = vpop.eup %6251  ;;  %v2384_v17 = vmul.f32 1.442695, %v2360_v23 }
 0x635   : > { %v2403_v49 = vsel %vm1398_vm5, %v7964_v36, 0.0  ;;  %v7969_v62 = vpop.eup %6253 }
 0x636   : > { %6255 = vpow2.f32 %v2384_v17  ;;  %2404 = vadd.xlane.f32.xlu2 %v2403_v49  ;;  %v2409_v20 = vsel %vm1398_vm5, %v7969_v62, 0.0 }
 0x637   : > { %6257 = vpow2.f32 %v2388_v52  ;;  %v2366_v52 = vsub.f32 %v7887_v50, %v7946_v29 }
 0x639   : > { %v2339_v5 = vpop.xlane.xlu0 %2338 }
 0x63a   : > { %v2363_v44 = vsub.f32 %v7927_v41, %v2339_v5  ;;  %v2359_v41 = vsub.f32 %v7812_v3, %v7905_v24  ;;  %v2365_v24 = vsub.f32 %v7852_v33, %v7915_v46  ;;  %v2358_v46 = vsub.f32 %v7805_v18, %v7907_v63 }
 0x63b   : > { %v2396_v5 = vmul.f32 1.442695, %v2366_v52 }
 0x63c   : > { %v7971_v13 = vpop.eup %6255  ;;  %v2390_v56 = vmul.f32 1.442695, %v2363_v44  ;;  %v2382_v1 = vmul.f32 1.442695, %v2359_v41  ;;  %v2394_v61 = vmul.f32 1.442695, %v2365_v24 }
 0x63d   : > { %v2424_v30 = vsel %vm1398_vm5, %v7971_v13, 0.0  ;;  %v7978_v59 = vpop.eup %6257  ;;  %v2380_v49 = vmul.f32 1.442695, %v2358_v46  ;;  %v2704_v46 = vsel %vm1398_vm5, %v7909_v4, 0 }
 0x63e   : > { %2410 = vadd.xlane.f32.xlu2 %v2409_v20  ;;  %2425 = vadd.xlane.f32.xlu1 %v2424_v30  ;;  %6259 = vpow2.f32 %v2390_v56  ;;  %v2430_v45 = vsel %vm1398_vm5, %v7978_v59, 0.0  ;;  %v2367_v30 = vsub.f32 %v7880_v10, %v7956_v21  ;;  %v9710_v56 = vld [vmem:[#allocation16_spill] sm:$0xff] }
 0x640   : > { %v2398_v63 = vmul.f32 1.442695, %v2367_v30 }
 0x641   : > { %v2402_v41 = vpop.xlane.xlu0 %2401 }
 0x644   : > { %v7983_v40 = vpop.eup %6259 }
 0x645   : > { %v2433_v35 = vsel %vm1398_vm5, %v7983_v40, 0.0 }
 0x646   : > { %2431 = vadd.xlane.f32.xlu1 %v2430_v45 }
 0x647   : > { %v2312_v8 = vpop.xlane.xlu2 %2311 }
 0x648   : > { %v2354_v23 = vsub.f32 %v7937_v54, %v2312_v8 }
 0x64a   : > { %v2372_v48 = vmul.f32 1.442695, %v2354_v23  ;;  %v9711_v23 = vld [vmem:[#allocation12_spill] sm:$0xff] }
 0x64c   : > { %6261 = vpow2.f32 %v2372_v48 }
 0x64d   : > { %6263 = vpow2.f32 %v2382_v1 }
 0x64e   : > { %2434 = vadd.xlane.f32.xlu1 %v2433_v35  ;;  %6265 = vpow2.f32 %v2392_v37 }
 0x64f   : > { %6267 = vpow2.f32 %v2394_v61  ;;  %v2333_v8 = vpop.xlane.xlu2 %2332 }
 0x650   : > { %6269 = vpow2.f32 %v2380_v49  ;;  %v2361_v21 = vsub.f32 %v7942_v31, %v2333_v8 }
 0x651   : > { %6271 = vpow2.f32 %v2396_v5 }
 0x652   : > { %v7989_v47 = vpop.eup %6261  ;;  %6273 = vpow2.f32 %v2398_v63  ;;  %v2386_v10 = vmul.f32 1.442695, %v2361_v21  ;;  %v9712_v63 = vld [vmem:[#allocation13_spill] sm:$0xff] }
 0x653   : > { %v2406_v54 = vsel %vm1398_vm5, %v7989_v47, 0.0  ;;  %v7997_v3 = vpop.eup %6263 }
 0x654   : > { %2407 = vadd.xlane.f32.xlu0 %v2406_v54  ;;  %v2421_v38 = vsel %vm1398_vm5, %v7997_v3, 0.0  ;;  %v8003_v2 = vpop.eup %6265  ;;  %6275 = vpow2.f32 %v2386_v10 }
 0x655   : > { %v2436_v11 = vsel %vm1398_vm5, %v8003_v2, 0.0  ;;  %v8009_v17 = vpop.eup %6267  ;;  %6277 = vrcp.f32 %v2402_v41 }
 0x656   : > { %2720 = vrot.lane.b32.xlu2 %v7362_v53, %s6620_s22  ;;  %v2439_v33 = vsel %vm1398_vm5, %v8009_v17, 0.0  ;;  %v8017_v44 = vpop.eup %6269 }
 0x657   : > { %v2418_v20 = vsel %vm1398_vm5, %v8017_v44, 0.0  ;;  %v8025_v18 = vpop.eup %6271 }
 0x658   : > { %v2442_v50 = vsel %vm1398_vm5, %v8025_v18, 0.0  ;;  %v8029_v29 = vpop.eup %6273 }
 0x659   : > { %v2445_v45 = vsel %vm1398_vm5, %v8029_v29, 0.0 }
 0x65a   : > { %v8036_v48 = vpop.eup %6275 }
 0x65b   : > { %v2427_v1 = vsel %vm1398_vm5, %v8036_v48, 0.0  ;;  %v6278_v55 = vpop.eup %6277 }
 0x65c   : > { %2422 = vadd.xlane.f32.xlu0 %v2421_v38  ;;  %v2464_v31 = vmul.f32 %v6278_v55, %v7931_v60 }
 0x65e   : > { %v2480_v37 = vpack.c.bf16 %v2464_v31, %v2464_v31 }
 0x660   : > { %v2498_v61 = vunpack.c.l.b16 %v2480_v37 }
 0x664   : > { %2437 = vadd.xlane.f32.xlu0 %v2436_v11 }
 0x667   : > { %2816 = vrot.lane.b32.xlu1 %v7413_v58, %s6620_s22 }
 0x66c   : > { %2440 = vadd.xlane.f32.xlu0 %v2439_v33 }
 0x67f   : > { %2419 = vadd.xlane.f32.xlu2 %v2418_v20 }
 0x680   : > { %2576 = vrot.lane.b32.xlu0 %v9710_v56, %s6618_s17 }
 0x687   : > { %2443 = vadd.xlane.f32.xlu2 %v2442_v50 }
 0x691   : > { %2446 = vadd.xlane.f32.xlu1 %v2445_v45 }
 0x69f   : > { %2746 = vrot.lane.b32.xlu2 %v9711_v23, %s6619_s27 }
 0x6a7   : > { %2842 = vrot.lane.b32.xlu2 %v7368_v7, %s6619_s27 }
 0x6a9   : > { %v2405_v35 = vpop.xlane.xlu2 %2404 }
 0x6aa   : > { %6279 = vrcp.f32 %v2405_v35  ;;  %2428 = vadd.xlane.f32.xlu0 %v2427_v1 }
 0x6af   : > { %2840 = vrot.lane.b32.xlu2 %v7368_v7, %s6620_s22 }
 0x6b0   : > { %v6280_v54 = vpop.eup %6279 }
 0x6b1   : > { %v2465_v24 = vmul.f32 %v6280_v54, %v7964_v36  ;;  %v8050_v49 = vpop.xlane.xlu1 %2425  ;;  %v2411_v60 = vpop.xlane.xlu2 %2410 }
 0x6b2   : > { %6281 = vrcp.f32 %v2411_v60 }
 0x6b3   : > { %v2481_v38 = vpack.c.bf16 %v2465_v24, %v2465_v24 }
 0x6b5   : > { %v2499_v11 = vunpack.c.l.b16 %v2481_v38 }
 0x6b7   : > { %v2500_v33 = vpack.c.b16 %v2499_v11, %v2498_v61  ;;  %2864 = vrot.lane.b32.xlu2 %v7394_v28, %s6620_s22 }
 0x6b8   : > { %v6282_v5 = vpop.eup %6281 }
 0x6b9   : > { %5770 = vmatmul.msk.bf16.vlgmr.msra.gmra.mxu2 %vm1398_vm5, %v2500_v33  ;;  %v2432_v36 = vpop.xlane.xlu1 %2431  ;;  %v2467_v20 = vmul.f32 %v6282_v5, %v7969_v62  ;;  %v2728_v62 = vsel %vm1398_vm5, %v7950_v16, 0  ;;  %v2721_v5 = vpop.permute.xlu2 %2720 }
 0x6ba   : > { %2713 = vmatpush.bf16.xpose.msra.mxu2 %v2704_v46 }
 0x6bb   : > { %v2483_v50 = vpack.c.bf16 %v2467_v20, %v2467_v20 }
 0x6bd   : > { %v2524_v10 = vunpack.c.l.b16 %v2483_v50 }
 0x6be   : > { %2676 = vrot.lane.b32.xlu0 %v7764_v39, %s6618_s17 }
 0x6c1   : > { %v2435_v4 = vpop.xlane.xlu1 %2434 }
 0x6c6   : > { %2744 = vrot.lane.b32.xlu0 %v9711_v23, %s6620_s22 }
 0x6c7   : > { %v2408_v52 = vpop.xlane.xlu0 %2407 }
 0x6c8   : > { %6283 = vrcp.f32 %v2408_v52 }
 0x6c9   : > { %6285 = vrcp.f32 %v2435_v4 }
 0x6ca   : > { %6287 = vrcp.f32 %v2432_v36 }
 0x6ce   : > { %v6284_v30 = vpop.eup %6283  ;;  %2770 = vrot.lane.b32.xlu0 %v9712_v63, %s6619_s27 }
 0x6cf   : > { %v2466_v45 = vmul.f32 %v6284_v30, %v7989_v47  ;;  %v2423_v8 = vpop.xlane.xlu0 %2422  ;;  %v6286_v1 = vpop.eup %6285 }
 0x6d0   : > { %v6288_v31 = vpop.eup %6287  ;;  %v2475_v47 = vmul.f32 %v6286_v1, %v7983_v40  ;;  %v2824_v40 = vsel %vm1398_vm5, %v7952_v12, 0 }
 0x6d1   : > { %v2482_v21 = vpack.c.bf16 %v2466_v45, %v2466_v45  ;;  %v2474_v54 = vmul.f32 %v6288_v31, %v7978_v59 }
 0x6d2   : > { %v2491_v37 = vpack.c.bf16 %v2475_v47, %v2475_v47 }
 0x6d3   : > { %v2523_v41 = vunpack.c.l.b16 %v2482_v21  ;;  %v2490_v24 = vpack.c.bf16 %v2474_v54, %v2474_v54 }
 0x6d4   : > { %v2624_v11 = vunpack.c.l.b16 %v2491_v37 }
 0x6d5   : > { %v2525_v35 = vpack.c.b16 %v2524_v10, %v2523_v41  ;;  %v2623_v16 = vunpack.c.l.b16 %v2490_v24 }
 0x6d6   : > { %2768 = vrot.lane.b32.xlu0 %v9712_v63, %s6620_s22 }
 0x6d7   : > { %5771 = vmatmul.msk.bf16.vlgmr.msrb.gmra.mxu3 %vm1398_vm5, %v2525_v35  ;;  %v2438_v55 = vpop.xlane.xlu0 %2437  ;;  %v2625_v46 = vpack.c.b16 %v2624_v11, %v2623_v16 }
 0x6d8   : > { %2737 = vmatpush.bf16.xpose.msrb.mxu3 %v2728_v62  ;;  %6289 = vrcp.f32 %v2438_v55 }
 0x6d9   : > { %v2817_v47 = vpop.permute.xlu1 %2816 }
 0x6de   : > { %2866 = vrot.lane.b32.xlu0 %v7394_v28, %s6619_s27  ;;  %v6290_v61 = vpop.eup %6289 }
 0x6df   : > { %v2441_v38 = vpop.xlane.xlu0 %2440  ;;  %v2476_v33 = vmul.f32 %v6290_v61, %v8003_v2 }
 0x6e0   : > { %6291 = vrcp.f32 %v2441_v38 }
 0x6e1   : > { %v2492_v36 = vpack.c.bf16 %v2476_v33, %v2476_v33  ;;  %6293 = vrcp.f32 %v2423_v8 }
 0x6e3   : > { %v2648_v20 = vunpack.c.l.b16 %v2492_v36 }
 0x6e6   : > { %v6292_v60 = vpop.eup %6291 }
 0x6e7   : > { %v2477_v59 = vmul.f32 %v6292_v60, %v8009_v17  ;;  %5775 = vmatmul.msk.bf16.vlgmr.msra.gmra.mxu3 %vm1398_vm5, %v2625_v46  ;;  %v6294_v45 = vpop.eup %6293 }
 0x6e8   : > { %2833 = vmatpush.bf16.xpose.msra.mxu3 %v2824_v40  ;;  %v2471_v12 = vmul.f32 %v6294_v45, %v7997_v3 }
 0x6e9   : > { %v2493_v52 = vpack.c.bf16 %v2477_v59, %v2477_v59 }
 0x6ea   : > { %v2487_v21 = vpack.c.bf16 %v2471_v12, %v2471_v12 }
 0x6eb   : > { %v2649_v4 = vunpack.c.l.b16 %v2493_v52 }
 0x6ec   : > { %v2574_v1 = vunpack.c.l.b16 %v2487_v21 }
 0x6ed   : > { %v2650_v30 = vpack.c.b16 %v2649_v4, %v2648_v20  ;;  %v2800_v4 = vsel %vm1398_vm5, %v7954_v0, 0 }
 0x6ef   : > { %5776 = vmatmul.msk.bf16.vlgmr.msra.gmra.mxu0 %vm1398_vm5, %v2650_v30 }
 0x6f2   : > { %v2420_v2 = vpop.xlane.xlu2 %2419  ;;  %v2577_v50 = vpop.permute.xlu0 %2576 }
 0x6f3   : > { %6295 = vrcp.f32 %v2420_v2  ;;  %2589 = vmatpush.bf16.msrb.mxu1 %v2577_v50 }
 0x6f4   : > { %6297 = vrcp.f32 %v8050_v49 }
 0x6f7   : > { %5779 = vmatmul.msk.bf16.vlgmr.msrb.gmra.mxu3 %vm1398_vm5, %v2721_v5 }
 0x6f9   : > { %v6296_v17 = vpop.eup %6295 }
 0x6fa   : > { %v2470_v10 = vmul.f32 %v6296_v17, %v8017_v44  ;;  %v2444_v41 = vpop.xlane.xlu2 %2443  ;;  %v6298_v24 = vpop.eup %6297 }
 0x6fb   : > { %v2472_v38 = vmul.f32 %v6298_v24, %v7971_v13 }
 0x6fc   : > { %v2486_v35 = vpack.c.bf16 %v2470_v10, %v2470_v10 }
 0x6fd   : > { %v2488_v33 = vpack.c.bf16 %v2472_v38, %v2472_v38 }
 0x6fe   : > { %v2573_v8 = vunpack.c.l.b16 %v2486_v35  ;;  %v8108_v35 = vpop.f32.mrf.mxu0 }
 0x6ff   : > { %v2598_v49 = vunpack.c.l.b16 %v2488_v33 }
 0x700   : > { %v2575_v62 = vpack.c.b16 %v2574_v1, %v2573_v8 }
 0x702   : > { %v2747_v55 = vpop.permute.xlu2 %2746  ;;  %5773 = vmatmul.msk.bf16.vlgmr.msrb.gmra.mxu1 %vm1398_vm5, %v2575_v62 }
 0x703   : > { %v2752_v31 = vsel %vm1398_vm5, %v2747_v55, 0 }
 0x704   : > { %2761 = vmatpush.bf16.xpose.msrb.mxu0 %v2752_v31  ;;  %v2447_v44 = vpop.xlane.xlu1 %2446 }
 0x705   : > { %6299 = vrcp.f32 %v2447_v44 }
 0x706   : > { %v8110_v1 = vpop.f32.mrf.mxu0 }
 0x707   : > { %5783 = vmatmul.msk.bf16.vlgmr.msra.gmra.mxu3 %vm1398_vm5, %v2817_v47 }
 0x70a   : > { %v2843_v3 = vpop.permute.xlu2 %2842 }
 0x70b   : > { %v2848_v54 = vsel %vm1398_vm5, %v2843_v3, 0  ;;  %v6300_v61 = vpop.eup %6299 }
 0x70c   : > { %2857 = vmatpush.bf16.xpose.msra.mxu0 %v2848_v54  ;;  %v2479_v60 = vmul.f32 %v6300_v61, %v8029_v29 }
 0x70e   : > { %v2495_v52 = vpack.c.bf16 %v2479_v60, %v2479_v60 }
 0x710   : > { %v2674_v13 = vunpack.c.l.b16 %v2495_v52 }
 0x712   : > { %v2841_v0 = vpop.permute.xlu2 %2840 }
 0x71a   : > { %v2865_v21 = vpop.permute.xlu2 %2864 }
 0x71d   : > { %v2429_v37 = vpop.xlane.xlu0 %2428 }
 0x71e   : > { %6301 = vrcp.f32 %v2429_v37 }
 0x71f   : > { %6303 = vrcp.f32 %v2444_v41 }
 0x724   : > { %v6302_v11 = vpop.eup %6301 }
 0x725   : > { %v6304_v16 = vpop.eup %6303  ;;  %v2473_v46 = vmul.f32 %v6302_v11, %v8036_v48 }
 0x726   : > { %v2478_v36 = vmul.f32 %v6304_v16, %v8025_v18 }
 0x727   : > { %v2489_v40 = vpack.c.bf16 %v2473_v46, %v2473_v46 }
 0x728   : > { %v2494_v20 = vpack.c.bf16 %v2478_v36, %v2478_v36 }
 0x729   : > { %v2599_v59 = vunpack.c.l.b16 %v2489_v40 }
 0x72a   : > { %v2673_v30 = vunpack.c.l.b16 %v2494_v20 }
 0x72b   : > { %v2600_v5 = vpack.c.b16 %v2599_v59, %v2598_v49 }
 0x72c   : > { %v2675_v48 = vpack.c.b16 %v2674_v13, %v2673_v30 }
 0x72d   : > { %5774 = vmatmul.msk.bf16.vlgmr.msrb.gmra.mxu2 %vm1398_vm5, %v2600_v5 }
 0x72e   : > { %2809 = vmatpush.bf16.xpose.msrb.mxu2 %v2800_v4 }
 0x730   : > { %v2677_v2 = vpop.permute.xlu0 %2676 }
 0x731   : > { %2689 = vmatpush.bf16.msra.mxu1 %v2677_v2 }
 0x734   : > { %5777 = vmatmul.msk.bf16.vlgmr.msra.gmra.mxu1 %vm1398_vm5, %v2675_v48 }
 0x738   : > { %v2745_v29 = vpop.permute.xlu0 %2744 }
 0x739   : > { %5780 = vmatmul.msk.bf16.vlgmr.msrb.gmra.mxu0 %vm1398_vm5, %v2745_v29 }
 0x73d   : > { %5778 = vmatmul.msk.bf16.vlgmr.msra.gmra.mxu2 %vm1398_vm5, %v7958_v51 }
 0x740   : > { %v2771_v18 = vpop.permute.xlu0 %2770 }
 0x741   : > { %v2776_v50 = vsel %vm1398_vm5, %v2771_v18, 0 }
 0x742   : > { %2785 = vmatpush.bf16.xpose.msrb.mxu1 %v2776_v50 }
 0x748   : > { %v2769_v45 = vpop.permute.xlu0 %2768 }
 0x749   : > { %5781 = vmatmul.msk.bf16.vlgmr.msrb.gmra.mxu1 %vm1398_vm5, %v2769_v45  ;;  %5784 = vmatmul.msk.bf16.vlgmr.msra.gmra.mxu0 %vm1398_vm5, %v2841_v0 }
 0x74d   : > { %5782 = vmatmul.msk.bf16.vlgmr.msrb.gmra.mxu2 %vm1398_vm5, %v7948_v34 }
 0x750   : > { %v2867_v12 = vpop.permute.xlu0 %2866 }
 0x751   : > { %v2872_v17 = vsel %vm1398_vm5, %v2867_v12, 0 }
 0x752   : > { %2881 = vmatpush.bf16.xpose.msra.mxu1 %v2872_v17 }
 0x759   : > { %5785 = vmatmul.msk.bf16.vlgmr.msra.gmra.mxu1 %vm1398_vm5, %v2865_v21  ;;  %v8160_v21 = vpop.f32.mrf.mxu2 }
 0x76c   : > { %v8112_v8 = vpop.f32.mrf.mxu0 }
 0x76d   : > { %9713 = vst [vmem:[#allocation17_spill] sm:$0xff] %v8112_v8 }
 0x774   : > { %v8114_v34 = vpop.f32.mrf.mxu0 }
 0x775   : > { %9714 = vst [vmem:[#allocation16_spill] sm:$0xff] %v8114_v34 }
 0x77f   : > { %v8102_v51 = vpop.f32.mrf.mxu1 }
 0x787   : > { %v8104_v10 = vpop.f32.mrf.mxu1 }
 0x7b1   : > { %v8116_v62 = vpop.f32.mrf.mxu1 }
 0x7b2   : > { %9715 = vst [vmem:[#allocation12_spill] sm:$0xff] %v8116_v62 }
 0x7b6   : > { %v2763_v55 = vpop.f32.mrf.mxu0 }
 0x7b7   : > { %v2892_v31 = vmul.f32 0.25, %v2763_v55  ;;  %v8168_v55 = vpop.f32.mrf.mxu2 }
 0x7b9   : > { %v8118_v47 = vpop.f32.mrf.mxu1  ;;  %v2908_v3 = vadd.f32 %v2892_v31, %v7532_v15 }
 0x7ba   : > { %9716 = vst [vmem:[#allocation13_spill] sm:$0xff] %v8118_v47 }
 0x7bb   : > { %v2932_v44 = vsel %vm1398_vm5, %v2908_v3, -inf }
 0x7bc   : > { %2933 = vmax.xlane.f32.xlu0 %v2932_v44 }
 0x7be   : > { %v2765_v37 = vpop.f32.mrf.mxu0 }
 0x7bf   : > { %v2893_v24 = vmul.f32 0.25, %v2765_v37  ;;  %v8170_v31 = vpop.f32.mrf.mxu2  ;;  %v8174_v37 = vpop.f32.mrf.mxu3 }
 0x7c1   : > { %v2909_v38 = vadd.f32 %v2893_v24, %v7532_v15 }
 0x7c3   : > { %v2935_v61 = vsel %vm1398_vm5, %v2909_v38, -inf }
 0x7c4   : > { %2936 = vmax.xlane.f32.xlu2 %v2935_v61 }
 0x7c6   : > { %v2787_v11 = vpop.f32.mrf.mxu1  ;;  %v2859_v16 = vpop.f32.mrf.mxu0 }
 0x7c7   : > { %v2894_v33 = vmul.f32 0.25, %v2787_v11  ;;  %v2900_v46 = vmul.f32 0.25, %v2859_v16  ;;  %v8172_v44 = vpop.f32.mrf.mxu2  ;;  %v8176_v11 = vpop.f32.mrf.mxu3 }
 0x7c8   : > { %9717 = vst [vmem:[#allocation35_spill] sm:$0xff] %v8172_v44 }
 0x7c9   : > { %v8127_v60 = vadd.f32 %v2900_v46, %v7572_v26  ;;  %v8130_v40 = vadd.f32 %v2894_v33, %v7553_v25 }
 0x7cb   : > { %v2956_v36 = vsel %vm1398_vm5, %v8127_v60, -inf  ;;  %v2938_v49 = vsel %vm1398_vm5, %v8130_v40, -inf }
 0x7cc   : > { %2957 = vmax.xlane.f32.xlu0 %v2956_v36  ;;  %2939 = vmax.xlane.f32.xlu2 %v2938_v49 }
 0x7ce   : > { %v2789_v59 = vpop.f32.mrf.mxu1  ;;  %v2861_v52 = vpop.f32.mrf.mxu0 }
 0x7cf   : > { %v2895_v5 = vmul.f32 0.25, %v2789_v59  ;;  %v2901_v20 = vmul.f32 0.25, %v2861_v52  ;;  %v2715_v24 = vpop.f32.mrf.mxu2  ;;  %v8183_v46 = vpop.f32.mrf.mxu3 }
 0x7d0   : > { %v2888_v61 = vmul.f32 0.25, %v2715_v24  ;;  %9718 = vst [vmem:[#allocation36_spill] sm:$0xff] %v8183_v46 }
 0x7d1   : > { %v8137_v4 = vadd.f32 %v2901_v20, %v7572_v26  ;;  %v8140_v13 = vadd.f32 %v2895_v5, %v7553_v25 }
 0x7d2   : > { %v8179_v16 = vadd.f32 %v2888_v61, %v7506_v22 }
 0x7d3   : > { %v2959_v30 = vsel %vm1398_vm5, %v8137_v4, -inf  ;;  %v2941_v2 = vsel %vm1398_vm5, %v8140_v13, -inf }
 0x7d4   : > { %2960 = vmax.xlane.f32.xlu2 %v2959_v30  ;;  %2942 = vmax.xlane.f32.xlu1 %v2941_v2  ;;  %v2920_v33 = vsel %vm1398_vm5, %v8179_v16, -inf }
 0x7d6   : > { %v2883_v48 = vpop.f32.mrf.mxu1 }
 0x7d7   : > { %v2902_v29 = vmul.f32 0.25, %v2883_v48  ;;  %v8185_v52 = vpop.f32.mrf.mxu3  ;;  %v2717_v20 = vpop.f32.mrf.mxu2 }
 0x7d8   : > { %9719 = vst [vmem:[#allocation37_spill] sm:$0xff] %v8185_v52 }
 0x7d9   : > { %v8147_v18 = vadd.f32 %v2902_v29, %v7592_v27  ;;  %v2889_v29 = vmul.f32 0.25, %v2717_v20 }
 0x7db   : > { %v2962_v50 = vsel %vm1398_vm5, %v8147_v18, -inf }
 0x7dc   : > { %2963 = vmax.xlane.f32.xlu0 %v2962_v50 }
 0x7de   : > { %v2885_v0 = vpop.f32.mrf.mxu1 }
 0x7df   : > { %v2903_v45 = vmul.f32 0.25, %v2885_v0  ;;  %v8192_v0 = vadd.f32 %v2889_v29, %v7506_v22 }
 0x7e1   : > { %v8152_v12 = vadd.f32 %v2903_v45, %v7592_v27  ;;  %v2923_v24 = vsel %vm1398_vm5, %v8192_v0, -inf }
 0x7e3   : > { %v2965_v17 = vsel %vm1398_vm5, %v8152_v12, -inf }
 0x7e4   : > { %2966 = vmax.xlane.f32.xlu2 %v2965_v17 }
 0x7ed   : > { %3117 = vrot.lane.b32.xlu1 %v7448_v32, %s6620_s22 }
 0x7f0   : > { %3217 = vrot.lane.b32.xlu0 %v7715_v6, %s6620_s22 }
 0x7f5   : > { %3142 = vrot.lane.b32.xlu1 %v7475_v9, %s6620_s22 }
 0x7fc   : > { %3314 = vrot.lane.b32.xlu2 %v7353_v57, %s6621_s4 }
 0x7fd   : > { %3242 = vrot.lane.b32.xlu1 %v7727_v14, %s6620_s22 }
 0x827   : > { %2921 = vmax.xlane.f32.xlu1 %v2920_v33 }
 0x82f   : > { %v2934_v36 = vpop.xlane.xlu0 %2933 }
 0x830   : > { %v2972_v49 = vsub.f32 %v2908_v3, %v2934_v36  ;;  %v2739_v3 = vpop.f32.mrf.mxu3 }
 0x831   : > { %v2890_v17 = vmul.f32 0.25, %v2739_v3 }
 0x832   : > { %v2992_v59 = vmul.f32 1.442695, %v2972_v49 }
 0x833   : > { %v8203_v61 = vadd.f32 %v2890_v17, %v7519_v42 }
 0x834   : > { %6305 = vpow2.f32 %v2992_v59 }
 0x835   : > { %v2926_v33 = vsel %vm1398_vm5, %v8203_v61, -inf }
 0x837   : > { %v2937_v5 = vpop.xlane.xlu2 %2936 }
 0x838   : > { %v2973_v30 = vsub.f32 %v2909_v38, %v2937_v5  ;;  %v2741_v5 = vpop.f32.mrf.mxu3 }
 0x83a   : > { %v8187_v2 = vpop.eup %6305  ;;  %v2994_v48 = vmul.f32 1.442695, %v2973_v30  ;;  %v2891_v30 = vmul.f32 0.25, %v2741_v5 }
 0x83b   : > { %v3028_v50 = vsel %vm1398_vm5, %v8187_v2, 0.0 }
 0x83c   : > { %6307 = vpow2.f32 %v2994_v48  ;;  %3029 = vadd.xlane.f32.xlu0 %v3028_v50  ;;  %v8216_v29 = vadd.f32 %v2891_v30, %v7519_v42  ;;  %v2811_v50 = vpop.f32.mrf.mxu2 }
 0x83d   : > { %v2896_v17 = vmul.f32 0.25, %v2811_v50 }
 0x83f   : > { %v8207_v36 = vpop.xlane.xlu0 %2957 }
 0x840   : > { %3338 = vrot.lane.b32.xlu1 %v7362_v53, %s6621_s4 }
 0x842   : > { %v8196_v45 = vpop.eup %6307 }
 0x843   : > { %v3031_v38 = vsel %vm1398_vm5, %v8196_v45, 0.0 }
 0x844   : > { %3032 = vadd.xlane.f32.xlu2 %v3031_v38  ;;  %2924 = vmax.xlane.f32.xlu0 %v2923_v24  ;;  %v2929_v38 = vsel %vm1398_vm5, %v8216_v29, -inf  ;;  %v2835_v24 = vpop.f32.mrf.mxu3 }
 0x845   : > { %v2898_v5 = vmul.f32 0.25, %v2835_v24 }
 0x847   : > { %v8209_v49 = vpop.xlane.xlu1 %2942  ;;  %v8226_v30 = vadd.f32 %v2898_v5, %v7574_v43 }
 0x84c   : > { %2927 = vmax.xlane.f32.xlu2 %v2926_v33 }
 0x84f   : > { %v8213_v59 = vpop.xlane.xlu0 %2963 }
 0x858   : > { %3312 = vrot.lane.b32.xlu0 %v7353_v57, %s6622_s24  ;;  %v8221_v57 = vadd.f32 %v2896_v17, %v9709_v19 }
 0x85f   : > { %v3118_v20 = vpop.permute.xlu1 %3117 }
 0x860   : > { %3130 = vmatpush.bf16.msra.mxu2 %v3118_v20  ;;  %v2944_v20 = vsel %vm1398_vm5, %v8221_v57, -inf }
 0x862   : > { %v3218_v48 = vpop.permute.xlu0 %3217 }
 0x864   : > { %3230 = vmatpush.bf16.msrb.mxu2 %v3218_v48  ;;  %v2813_v48 = vpop.f32.mrf.mxu2 }
 0x865   : > { %v2897_v50 = vmul.f32 0.25, %v2813_v48 }
 0x867   : > { %v3143_v3 = vpop.permute.xlu1 %3142  ;;  %v8231_v17 = vadd.f32 %v2897_v50, %v9709_v19 }
 0x868   : > { %3155 = vmatpush.bf16.msrb.mxu3 %v3143_v3  ;;  %v2950_v3 = vsel %vm1398_vm5, %v8226_v30, -inf }
 0x869   : > { %v2947_v24 = vsel %vm1398_vm5, %v8231_v17, -inf }
 0x86a   : > { %2930 = vmax.xlane.f32.xlu1 %v2929_v38  ;;  %v2837_v38 = vpop.f32.mrf.mxu3 }
 0x86b   : > { %v2899_v54 = vmul.f32 0.25, %v2837_v38 }
 0x86f   : > { %v3243_v33 = vpop.permute.xlu1 %3242 }
 0x870   : > { %3255 = vmatpush.bf16.msra.mxu3 %v3243_v33  ;;  %v8236_v33 = vadd.f32 %v2899_v54, %v7574_v43 }
 0x872   : > { %2945 = vmax.xlane.f32.xlu1 %v2944_v20  ;;  %v2953_v5 = vsel %vm1398_vm5, %v8236_v33, -inf  ;;  %v2940_v20 = vpop.xlane.xlu2 %2939 }
 0x873   : > { %v2974_v50 = vsub.f32 %v8130_v40, %v2940_v20 }
 0x875   : > { %v2996_v38 = vmul.f32 1.442695, %v2974_v50 }
 0x87a   : > { %2951 = vmax.xlane.f32.xlu1 %v2950_v3  ;;  %v2961_v41 = vpop.xlane.xlu2 %2960 }
 0x87b   : > { %v2981_v54 = vsub.f32 %v8137_v4, %v2961_v41 }
 0x87d   : > { %v3010_v34 = vmul.f32 1.442695, %v2981_v54 }
 0x882   : > { %2948 = vmax.xlane.f32.xlu1 %v2947_v24  ;;  %v8245_v24 = vpop.xlane.xlu2 %2966 }
 0x88a   : > { %2954 = vmax.xlane.f32.xlu1 %v2953_v5 }
 0x89a   : > { %v2922_v48 = vpop.xlane.xlu1 %2921 }
 0x89b   : > { %v2968_v3 = vsub.f32 %v8179_v16, %v2922_v48 }
 0x89d   : > { %v2984_v62 = vmul.f32 1.442695, %v2968_v3 }
 0x89f   : > { %6309 = vpow2.f32 %v2984_v62  ;;  %v8253_v62 = vpop.permute.xlu2 %3314 }
 0x8a0   : > { %6311 = vpow2.f32 %v2996_v38 }
 0x8a1   : > { %6313 = vpow2.f32 %v3010_v34 }
 0x8a5   : > { %v8242_v47 = vpop.eup %6309 }
 0x8a6   : > { %v3016_v5 = vsel %vm1398_vm5, %v8242_v47, 0.0  ;;  %v8249_v8 = vpop.eup %6311 }
 0x8a7   : > { %3017 = vadd.xlane.f32.xlu1 %v3016_v5  ;;  %v3034_v40 = vsel %vm1398_vm5, %v8249_v8, 0.0  ;;  %v8255_v16 = vpop.eup %6313 }
 0x8a8   : > { %v3055_v41 = vsel %vm1398_vm5, %v8255_v16, 0.0 }
 0x8af   : > { %3035 = vadd.xlane.f32.xlu1 %v3034_v40  ;;  %v8257_v20 = vpop.xlane.xlu0 %3029 }
 0x8b2   : > { %v8273_v46 = vpop.permute.xlu1 %3338 }
 0x8b7   : > { %3056 = vadd.xlane.f32.xlu1 %v3055_v41  ;;  %v8261_v4 = vpop.xlane.xlu2 %3032  ;;  %v2925_v48 = vpop.xlane.xlu0 %2924 }
 0x8b8   : > { %v2969_v50 = vsub.f32 %v8192_v0, %v2925_v48 }
 0x8ba   : > { %v2986_v54 = vmul.f32 1.442695, %v2969_v50 }
 0x8bf   : > { %v2928_v3 = vpop.xlane.xlu2 %2927 }
 0x8c0   : > { %v2970_v34 = vsub.f32 %v8203_v61, %v2928_v3 }
 0x8c2   : > { %v2988_v38 = vmul.f32 1.442695, %v2970_v34 }
 0x8c4   : > { %6315 = vpow2.f32 %v2988_v38  ;;  %v2975_v38 = vsub.f32 %v8140_v13, %v8209_v49 }
 0x8c5   : > { %6317 = vpow2.f32 %v2986_v54 }
 0x8ca   : > { %v8265_v5 = vpop.eup %6315 }
 0x8cb   : > { %v3022_v40 = vsel %vm1398_vm5, %v8265_v5, 0.0  ;;  %v8269_v52 = vpop.eup %6317 }
 0x8cc   : > { %3023 = vadd.xlane.f32.xlu0 %v3022_v40  ;;  %v3019_v41 = vsel %vm1398_vm5, %v8269_v52, 0.0 }
 0x8d4   : > { %3020 = vadd.xlane.f32.xlu0 %v3019_v41  ;;  %v2998_v41 = vmul.f32 1.442695, %v2975_v38 }
 0x8dd   : > { %v2931_v61 = vpop.xlane.xlu1 %2930 }
 0x8de   : > { %v2971_v0 = vsub.f32 %v8216_v29, %v2931_v61 }
 0x8e0   : > { %v2990_v48 = vmul.f32 1.442695, %v2971_v0 }
 0x8e2   : > { %6319 = vpow2.f32 %v2990_v48 }
 0x8e5   : > { %v2946_v3 = vpop.xlane.xlu1 %2945 }
 0x8e6   : > { %v2976_v34 = vsub.f32 %v8221_v57, %v2946_v3 }
 0x8e8   : > { %v8277_v50 = vpop.eup %6319  ;;  %v3000_v54 = vmul.f32 1.442695, %v2976_v34 }
 0x8e9   : > { %v3025_v40 = vsel %vm1398_vm5, %v8277_v50, 0.0 }
 0x8ea   : > { %6321 = vpow2.f32 %v3000_v54  ;;  %3026 = vadd.xlane.f32.xlu2 %v3025_v40 }
 0x8eb   : > { %6323 = vpow2.f32 %v2998_v41 }
 0x8ed   : > { %v2952_v44 = vpop.xlane.xlu1 %2951 }
 0x8ee   : > { %v2978_v29 = vsub.f32 %v8226_v30, %v2952_v44 }
 0x8f0   : > { %v8284_v61 = vpop.eup %6321  ;;  %v3004_v0 = vmul.f32 1.442695, %v2978_v29 }
 0x8f1   : > { %v3040_v57 = vsel %vm1398_vm5, %v8284_v61, 0.0  ;;  %v8288_v49 = vpop.eup %6323 }
 0x8f2   : > { %6325 = vpow2.f32 %v3004_v0  ;;  %3041 = vadd.xlane.f32.xlu0 %v3040_v57  ;;  %v3037_v30 = vsel %vm1398_vm5, %v8288_v49, 0.0  ;;  %v9720_v57 = vld [vmem:[#allocation15_spill] sm:$0xff] }
 0x8f5   : > { %v2949_v13 = vpop.xlane.xlu1 %2948 }
 0x8f6   : > { %v2977_v48 = vsub.f32 %v8231_v17, %v2949_v13 }
 0x8f8   : > { %v8291_v3 = vpop.eup %6325  ;;  %v3002_v34 = vmul.f32 1.442695, %v2977_v48  ;;  %v2980_v48 = vsub.f32 %v8127_v60, %v8207_v36 }
 0x8f9   : > { %v3046_v44 = vsel %vm1398_vm5, %v8291_v3, 0.0 }
 0x8fa   : > { %6327 = vpow2.f32 %v3002_v34  ;;  %3047 = vadd.xlane.f32.xlu2 %v3046_v44  ;;  %3038 = vadd.xlane.f32.xlu0 %v3037_v30  ;;  %v3008_v44 = vmul.f32 1.442695, %v2980_v48  ;;  %v8318_v30 = vpop.permute.xlu0 %3312 }
 0x8fd   : > { %v2955_v38 = vpop.xlane.xlu1 %2954 }
 0x8fe   : > { %v2979_v54 = vsub.f32 %v8236_v33, %v2955_v38  ;;  %v2982_v33 = vsub.f32 %v8147_v18, %v8213_v59  ;;  %v2983_v38 = vsub.f32 %v8152_v12, %v8245_v24 }
 0x900   : > { %v8298_v40 = vpop.eup %6327  ;;  %v3006_v41 = vmul.f32 1.442695, %v2979_v54  ;;  %v3012_v13 = vmul.f32 1.442695, %v2982_v33  ;;  %v3014_v18 = vmul.f32 1.442695, %v2983_v38 }
 0x901   : > { %v3043_v17 = vsel %vm1398_vm5, %v8298_v40, 0.0 }
 0x902   : > { %6329 = vpow2.f32 %v3006_v41  ;;  %3044 = vadd.xlane.f32.xlu2 %v3043_v17 }
 0x903   : > { %6331 = vpow2.f32 %v3012_v13 }
 0x904   : > { %6333 = vpow2.f32 %v3008_v44 }
 0x908   : > { %v8302_v29 = vpop.eup %6329 }
 0x909   : > { %v3049_v0 = vsel %vm1398_vm5, %v8302_v29, 0.0  ;;  %v8316_v34 = vpop.eup %6331 }
 0x90a   : > { %3050 = vadd.xlane.f32.xlu1 %v3049_v0  ;;  %v8324_v54 = vpop.eup %6333 }
 0x90b   : > { %v3052_v60 = vsel %vm1398_vm5, %v8324_v54, 0.0 }
 0x90e   : > { %3336 = vrot.lane.b32.xlu0 %v7362_v53, %s6622_s24  ;;  %v3058_v53 = vsel %vm1398_vm5, %v8316_v34, 0.0 }
 0x91a   : > { %3167 = vrot.lane.b32.xlu2 %v9720_v57, %s6620_s22  ;;  %v3018_v59 = vpop.xlane.xlu1 %3017 }
 0x91b   : > { %6335 = vrcp.f32 %v3018_v59  ;;  %v9721_v59 = vld [vmem:[#allocation18_spill] sm:$0xff] }
 0x91c   : > { %6337 = vpow2.f32 %v3014_v18 }
 0x921   : > { %v6336_v17 = vpop.eup %6335 }
 0x922   : > { %v8328_v0 = vpop.eup %6337  ;;  %v3080_v33 = vmul.f32 %v6336_v17, %v8242_v47  ;;  %v3320_v47 = vsel %vm1398_vm5, %v8253_v62, 0 }
 0x923   : > { %3192 = vrot.lane.b32.xlu1 %v9710_v56, %s6620_s22  ;;  %v3061_v12 = vsel %vm1398_vm5, %v8328_v0, 0.0 }
 0x924   : > { %v3096_v13 = vpack.c.bf16 %v3080_v33, %v3080_v33 }
 0x938   : > { %3059 = vadd.xlane.f32.xlu0 %v3058_v53  ;;  %v3114_v53 = vunpack.c.l.b16 %v3096_v13  ;;  %v3036_v13 = vpop.xlane.xlu1 %3035 }
 0x93f   : > { %v3024_v41 = vpop.xlane.xlu0 %3023 }
 0x943   : > { %3053 = vadd.xlane.f32.xlu2 %v3052_v60 }
 0x947   : > { %v3021_v36 = vpop.xlane.xlu0 %3020 }
 0x948   : > { %6339 = vrcp.f32 %v3021_v36 }
 0x949   : > { %6341 = vrcp.f32 %v3024_v41 }
 0x94c   : > { %3386 = vrot.lane.b32.xlu0 %v9712_v63, %s6621_s4 }
 0x94d   : > { %3062 = vadd.xlane.f32.xlu1 %v3061_v12 }
 0x94e   : > { %v6340_v24 = vpop.eup %6339 }
 0x94f   : > { %v3081_v48 = vmul.f32 %v6340_v24, %v8269_v52  ;;  %v6342_v60 = vpop.eup %6341 }
 0x950   : > { %v3082_v36 = vmul.f32 %v6342_v60, %v8265_v5 }
 0x951   : > { %v3097_v44 = vpack.c.bf16 %v3081_v48, %v3081_v48  ;;  %v3344_v48 = vsel %vm1398_vm5, %v8273_v46, 0 }
 0x952   : > { %v3098_v62 = vpack.c.bf16 %v3082_v36, %v3082_v36 }
 0x953   : > { %v3115_v38 = vunpack.c.l.b16 %v3097_v44 }
 0x954   : > { %3432 = vrot.lane.b32.xlu0 %v7413_v58, %s6622_s24  ;;  %v3139_v12 = vunpack.c.l.b16 %v3098_v62 }
 0x955   : > { %v3116_v18 = vpack.c.b16 %v3115_v38, %v3114_v53 }
 0x957   : > { %5786 = vmatmul.msk.bf16.vlgmr.msra.gmra.mxu2 %vm1398_vm5, %v3116_v18  ;;  %v3057_v18 = vpop.xlane.xlu1 %3056 }
 0x958   : > { %3329 = vmatpush.bf16.xpose.msra.mxu2 %v3320_v47 }
 0x95b   : > { %3267 = vrot.lane.b32.xlu2 %v9721_v59, %s6620_s22 }
 0x95c   : > { %3456 = vrot.lane.b32.xlu0 %v7368_v7, %s6622_s24 }
 0x95d   : > { %v3027_v52 = vpop.xlane.xlu2 %3026 }
 0x95e   : > { %6343 = vrcp.f32 %v3027_v52 }
 0x95f   : > { %6345 = vrcp.f32 %v8261_v4 }
 0x960   : > { %6347 = vrcp.f32 %v8257_v20 }
 0x963   : > { %3362 = vrot.lane.b32.xlu2 %v9711_v23, %s6621_s4 }
 0x964   : > { %v6344_v17 = vpop.eup %6343  ;;  %3480 = vrot.lane.b32.xlu0 %v7394_v28, %s6622_s24 }
 0x965   : > { %v3083_v41 = vmul.f32 %v6344_v17, %v8277_v50  ;;  %v3042_v44 = vpop.xlane.xlu0 %3041  ;;  %v9722_v17 = vld [vmem:[#allocation14_spill] sm:$0xff] }
 0x966   : > { %3384 = vrot.lane.b32.xlu1 %v9712_v63, %s6622_s24  ;;  %v6346_v63 = vpop.eup %6345  ;;  %6349 = vrcp.f32 %v3042_v44 }
 0x967   : > { %v3099_v33 = vpack.c.bf16 %v3083_v41, %v3083_v41  ;;  %v6348_v53 = vpop.eup %6347  ;;  %v3085_v4 = vmul.f32 %v6346_v63, %v8196_v45 }
 0x968   : > { %v3084_v38 = vmul.f32 %v6348_v53, %v8187_v2 }
 0x969   : > { %v3140_v24 = vunpack.c.l.b16 %v3099_v33  ;;  %v3101_v46 = vpack.c.bf16 %v3085_v4, %v3085_v4 }
 0x96a   : > { %v3100_v52 = vpack.c.bf16 %v3084_v38, %v3084_v38 }
 0x96b   : > { %v3141_v5 = vpack.c.b16 %v3140_v24, %v3139_v12  ;;  %3292 = vrot.lane.b32.xlu2 %v7764_v39, %s6620_s22  ;;  %v3165_v36 = vunpack.c.l.b16 %v3101_v46 }
 0x96c   : > { %v6350_v47 = vpop.eup %6349  ;;  %v3164_v45 = vunpack.c.l.b16 %v3100_v52 }
 0x96d   : > { %v3048_v50 = vpop.xlane.xlu2 %3047  ;;  %5787 = vmatmul.msk.bf16.vlgmr.msrb.gmra.mxu3 %vm1398_vm5, %v3141_v5  ;;  %v3088_v60 = vmul.f32 %v6350_v47, %v8284_v61  ;;  %v3039_v5 = vpop.xlane.xlu0 %3038 }
 0x96e   : > { %3353 = vmatpush.bf16.xpose.msrb.mxu3 %v3344_v48  ;;  %v3166_v24 = vpack.c.b16 %v3165_v36, %v3164_v45 }
 0x96f   : > { %v3104_v41 = vpack.c.bf16 %v3088_v60, %v3088_v60 }
 0x971   : > { %v3214_v44 = vunpack.c.l.b16 %v3104_v41 }
 0x973   : > { %3360 = vrot.lane.b32.xlu2 %v9711_v23, %s6622_s24 }
 0x975   : > { %v3045_v20 = vpop.xlane.xlu2 %3044 }
 0x976   : > { %6351 = vrcp.f32 %v3045_v20 }
 0x977   : > { %6353 = vrcp.f32 %v3048_v50 }
 0x97b   : > { %3410 = vrot.lane.b32.xlu2 %v9722_v17, %s6621_s4 }
 0x97c   : > { %v6352_v62 = vpop.eup %6351 }
 0x97d   : > { %v3089_v23 = vmul.f32 %v6352_v62, %v8298_v40  ;;  %v3051_v33 = vpop.xlane.xlu1 %3050  ;;  %v3168_v2 = vpop.permute.xlu2 %3167 }
 0x97e   : > { %v6354_v12 = vpop.eup %6353  ;;  %6355 = vrcp.f32 %v3051_v33  ;;  %3180 = vmatpush.bf16.msrb.mxu0 %v3168_v2 }
 0x97f   : > { %v3105_v48 = vpack.c.bf16 %v3089_v23, %v3089_v23  ;;  %v3090_v61 = vmul.f32 %v6354_v12, %v8291_v3  ;;  %6357 = vrcp.f32 %v3039_v5 }
 0x980   : > { %6359 = vrcp.f32 %v3036_v13 }
 0x981   : > { %v3215_v50 = vunpack.c.l.b16 %v3105_v48  ;;  %5788 = vmatmul.msk.bf16.vlgmr.msrb.gmra.mxu0 %vm1398_vm5, %v3166_v24  ;;  %v3106_v53 = vpack.c.bf16 %v3090_v61, %v3090_v61  ;;  %6361 = vrcp.f32 %v3057_v18 }
 0x983   : > { %v3216_v63 = vpack.c.b16 %v3215_v50, %v3214_v44  ;;  %3408 = vrot.lane.b32.xlu2 %v9722_v17, %s6622_s24  ;;  %v3239_v47 = vunpack.c.l.b16 %v3106_v53 }
 0x984   : > { %v6356_v40 = vpop.eup %6355 }
 0x985   : > { %v3091_v4 = vmul.f32 %v6356_v40, %v8302_v29  ;;  %5790 = vmatmul.msk.bf16.vlgmr.msrb.gmra.mxu2 %vm1398_vm5, %v3216_v63  ;;  %v6358_v20 = vpop.eup %6357 }
 0x986   : > { %v6360_v3 = vpop.eup %6359  ;;  %v3087_v52 = vmul.f32 %v6358_v20, %v8288_v49 }
 0x987   : > { %v3107_v38 = vpack.c.bf16 %v3091_v4, %v3091_v4  ;;  %v3086_v36 = vmul.f32 %v6360_v3, %v8249_v8  ;;  %v6362_v41 = vpop.eup %6361 }
 0x988   : > { %v3103_v13 = vpack.c.bf16 %v3087_v52, %v3087_v52 }
 0x989   : > { %v3240_v46 = vunpack.c.l.b16 %v3107_v38  ;;  %v3102_v17 = vpack.c.bf16 %v3086_v36, %v3086_v36 }
 0x98a   : > { %v3190_v29 = vunpack.c.l.b16 %v3103_v13 }
 0x98b   : > { %v3241_v60 = vpack.c.b16 %v3240_v46, %v3239_v47  ;;  %3434 = vrot.lane.b32.xlu2 %v7413_v58, %s6621_s4  ;;  %v3189_v62 = vunpack.c.l.b16 %v3102_v17  ;;  %v3337_v58 = vpop.permute.xlu0 %3336 }
 0x98d   : > { %5791 = vmatmul.msk.bf16.vlgmr.msra.gmra.mxu3 %vm1398_vm5, %v3241_v60  ;;  %v3191_v49 = vpack.c.b16 %v3190_v29, %v3189_v62 }
 0x993   : > { %3458 = vrot.lane.b32.xlu2 %v7368_v7, %s6621_s4  ;;  %v3093_v7 = vmul.f32 %v6362_v41, %v8255_v16 }
 0x995   : > { %v3193_v45 = vpop.permute.xlu1 %3192  ;;  %5794 = vmatmul.msk.bf16.vlgmr.msra.gmra.mxu2 %vm1398_vm5, %v8318_v30  ;;  %v3109_v30 = vpack.c.bf16 %v3093_v7, %v3093_v7 }
 0x996   : > { %3205 = vmatpush.bf16.msrb.mxu1 %v3193_v45 }
 0x999   : > { %5789 = vmatmul.msk.bf16.vlgmr.msrb.gmra.mxu1 %vm1398_vm5, %v3191_v49 }
 0x99b   : > { %3482 = vrot.lane.b32.xlu2 %v7394_v28, %s6621_s4  ;;  %v3265_v28 = vunpack.c.l.b16 %v3109_v30 }
 0x99d   : > { %5795 = vmatmul.msk.bf16.vlgmr.msrb.gmra.mxu3 %vm1398_vm5, %v3337_v58 }
 0x9ab   : > { %v3060_v23 = vpop.xlane.xlu0 %3059 }
 0x9b6   : > { %v3054_v8 = vpop.xlane.xlu2 %3053 }
 0x9b7   : > { %6363 = vrcp.f32 %v3054_v8 }
 0x9b8   : > { %6365 = vrcp.f32 %v3060_v23 }
 0x9bd   : > { %v6364_v33 = vpop.eup %6363 }
 0x9be   : > { %v3092_v2 = vmul.f32 %v6364_v33, %v8324_v54  ;;  %v3268_v12 = vpop.permute.xlu2 %3267  ;;  %v6366_v44 = vpop.eup %6365 }
 0x9bf   : > { %3280 = vmatpush.bf16.msra.mxu0 %v3268_v12  ;;  %v3094_v61 = vmul.f32 %v6366_v44, %v8316_v34  ;;  %v3387_v4 = vpop.permute.xlu0 %3386 }
 0x9c0   : > { %v3108_v24 = vpack.c.bf16 %v3092_v2, %v3092_v2  ;;  %v3063_v5 = vpop.xlane.xlu1 %3062  ;;  %v3392_v46 = vsel %vm1398_vm5, %v3387_v4, 0 }
 0x9c1   : > { %6367 = vrcp.f32 %v3063_v5  ;;  %v3110_v54 = vpack.c.bf16 %v3094_v61, %v3094_v61 }
 0x9c2   : > { %v3264_v48 = vunpack.c.l.b16 %v3108_v24 }
 0x9c3   : > { %v3289_v20 = vunpack.c.l.b16 %v3110_v54 }
 0x9c4   : > { %v3266_v18 = vpack.c.b16 %v3265_v28, %v3264_v48 }
 0x9c6   : > { %v3363_v50 = vpop.permute.xlu2 %3362  ;;  %5792 = vmatmul.msk.bf16.vlgmr.msra.gmra.mxu0 %vm1398_vm5, %v3266_v18 }
 0x9c7   : > { %v6368_v16 = vpop.eup %6367  ;;  %v3368_v63 = vsel %vm1398_vm5, %v3363_v50, 0  ;;  %v3433_v29 = vpop.permute.xlu0 %3432 }
 0x9c8   : > { %v3095_v40 = vmul.f32 %v6368_v16, %v8328_v0  ;;  %3377 = vmatpush.bf16.xpose.msrb.mxu0 %v3368_v63 }
 0x9ca   : > { %v3111_v53 = vpack.c.bf16 %v3095_v40, %v3095_v40 }
 0x9cc   : > { %v3290_v38 = vunpack.c.l.b16 %v3111_v53 }
 0x9ce   : > { %v3293_v47 = vpop.permute.xlu2 %3292  ;;  %v3291_v3 = vpack.c.b16 %v3290_v38, %v3289_v20 }
 0x9cf   : > { %3305 = vmatpush.bf16.msra.mxu1 %v3293_v47  ;;  %v3457_v49 = vpop.permute.xlu0 %3456 }
 0x9d2   : > { %5793 = vmatmul.msk.bf16.vlgmr.msra.gmra.mxu1 %vm1398_vm5, %v3291_v3 }
 0x9d3   : > { %3401 = vmatpush.bf16.xpose.msrb.mxu1 %v3392_v46 }
 0x9d6   : > { %v3361_v34 = vpop.permute.xlu2 %3360 }
 0x9d7   : > { %5796 = vmatmul.msk.bf16.vlgmr.msrb.gmra.mxu0 %vm1398_vm5, %v3361_v34  ;;  %v3481_v41 = vpop.permute.xlu0 %3480 }
 0x9d8   : > { %v3385_v60 = vpop.permute.xlu1 %3384 }
 0x9da   : > { %v8411_v30 = vpop.f32.mrf.mxu2 }
 0x9de   : > { %v3411_v52 = vpop.permute.xlu2 %3410 }
 0x9df   : > { %v3416_v0 = vsel %vm1398_vm5, %v3411_v52, 0 }
 0x9e0   : > { %3425 = vmatpush.bf16.xpose.msrb.mxu2 %v3416_v0 }
 0x9e2   : > { %5797 = vmatmul.msk.bf16.vlgmr.msrb.gmra.mxu1 %vm1398_vm5, %v3385_v60  ;;  %v8413_v2 = vpop.f32.mrf.mxu2 }
 0x9e6   : > { %v3409_v36 = vpop.permute.xlu2 %3408 }
 0x9e7   : > { %5798 = vmatmul.msk.bf16.vlgmr.msrb.gmra.mxu2 %vm1398_vm5, %v3409_v36 }
 0x9ee   : > { %v3435_v13 = vpop.permute.xlu2 %3434 }
 0x9ef   : > { %v3440_v17 = vsel %vm1398_vm5, %v3435_v13, 0 }
 0x9f0   : > { %3449 = vmatpush.bf16.xpose.msra.mxu3 %v3440_v17  ;;  %v8421_v28 = vpop.f32.mrf.mxu3 }
 0x9f6   : > { %v3459_v62 = vpop.permute.xlu2 %3458 }
 0x9f7   : > { %v3464_v45 = vsel %vm1398_vm5, %v3459_v62, 0  ;;  %5799 = vmatmul.msk.bf16.vlgmr.msra.gmra.mxu3 %vm1398_vm5, %v3433_v29 }
 0x9f8   : > { %3473 = vmatpush.bf16.xpose.msra.mxu0 %v3464_v45  ;;  %v8427_v18 = vpop.f32.mrf.mxu3 }
 0x9fe   : > { %v3483_v58 = vpop.permute.xlu2 %3482  ;;  %v8415_v12 = vpop.f32.mrf.mxu0 }
 0x9ff   : > { %v3488_v8 = vsel %vm1398_vm5, %v3483_v58, 0  ;;  %5800 = vmatmul.msk.bf16.vlgmr.msra.gmra.mxu0 %vm1398_vm5, %v3457_v49 }
 0xa00   : > { %3497 = vmatpush.bf16.xpose.msra.mxu1 %v3488_v8 }
 0xa06   : > { %v8419_v5 = vpop.f32.mrf.mxu0 }
 0xa07   : > { %5801 = vmatmul.msk.bf16.vlgmr.msra.gmra.mxu1 %vm1398_vm5, %v3481_v41 }
 0xa08   : > { %v8417_v24 = vpop.f32.mrf.mxu2 }
 0xa10   : > { %v8423_v48 = vpop.f32.mrf.mxu2  ;;  %v8433_v63 = vpop.f32.mrf.mxu3 }
 0xa16   : > { %v8405_v7 = vpop.f32.mrf.mxu1 }
 0xa18   : > { %v3331_v50 = vpop.f32.mrf.mxu2  ;;  %v8441_v3 = vpop.f32.mrf.mxu3 }
 0xa1e   : > { %v8407_v23 = vpop.f32.mrf.mxu1 }
 0xa20   : > { %v3333_v53 = vpop.f32.mrf.mxu2  ;;  %v3355_v45 = vpop.f32.mrf.mxu3 }
 0xa21   : > { %v3505_v47 = vmul.f32 0.25, %v3333_v53  ;;  %v3506_v8 = vmul.f32 0.25, %v3355_v45  ;;  %v3504_v53 = vmul.f32 0.25, %v3331_v50 }
 0xa23   : > { %v8444_v52 = vadd.f32 %v3505_v47, %v7506_v22 }
 0xa25   : > { %v3539_v29 = vsel %vm1398_vm5, %v8444_v52, -inf }
 0xa43   : > { %v8425_v44 = vpop.f32.mrf.mxu0 }
 0xa4b   : > { %v8429_v61 = vpop.f32.mrf.mxu0 }
 0xa4f   : > { %v8431_v16 = vpop.f32.mrf.mxu1 }
 0xa54   : > { %v3379_v40 = vpop.f32.mrf.mxu0 }
 0xa55   : > { %v3508_v54 = vmul.f32 0.25, %v3379_v40 }
 0xa57   : > { %v3524_v4 = vadd.f32 %v3508_v54, %v7532_v15  ;;  %v8436_v38 = vpop.f32.mrf.mxu1 }
 0xa59   : > { %v3548_v46 = vsel %vm1398_vm5, %v3524_v4, -inf }
 0xa5a   : > { %3549 = vmax.xlane.f32.xlu2 %v3548_v46  ;;  %v3522_v46 = vadd.f32 %v3506_v8, %v7519_v42 }
 0xa5c   : > { %v3381_v34 = vpop.f32.mrf.mxu0 }
 0xa5d   : > { %v3509_v0 = vmul.f32 0.25, %v3381_v34 }
 0xa5f   : > { %v8447_v60 = vadd.f32 %v3509_v0, %v7532_v15  ;;  %v3403_v36 = vpop.f32.mrf.mxu1 }
 0xa60   : > { %v3510_v13 = vmul.f32 0.25, %v3403_v36  ;;  %v3520_v36 = vadd.f32 %v3504_v53, %v7506_v22 }
 0xa61   : > { %v3551_v17 = vsel %vm1398_vm5, %v8447_v60, -inf }
 0xa62   : > { %3552 = vmax.xlane.f32.xlu0 %v3551_v17  ;;  %3540 = vmax.xlane.f32.xlu2 %v3539_v29  ;;  %v8454_v62 = vadd.f32 %v3510_v13, %v7553_v25  ;;  %v3542_v13 = vsel %vm1398_vm5, %v3522_v46, -inf  ;;  %v3536_v45 = vsel %vm1398_vm5, %v3520_v36, -inf }
 0xa64   : > { %v3554_v15 = vsel %vm1398_vm5, %v8454_v62, -inf }
 0xa67   : > { %v3405_v49 = vpop.f32.mrf.mxu1 }
 0xa68   : > { %v3511_v58 = vmul.f32 0.25, %v3405_v49 }
 0xa6a   : > { %v8459_v41 = vadd.f32 %v3511_v58, %v7553_v25  ;;  %v3427_v40 = vpop.f32.mrf.mxu2  ;;  %3555 = vmax.xlane.f32.xlu0 %v3554_v15  ;;  %v3357_v25 = vpop.f32.mrf.mxu3 }
 0xa6b   : > { %v3512_v54 = vmul.f32 0.25, %v3427_v40  ;;  %v3507_v29 = vmul.f32 0.25, %v3357_v25 }
 0xa6c   : > { %v3557_v47 = vsel %vm1398_vm5, %v8459_v41, -inf }
 0xa6d   : > { %v8465_v34 = vadd.f32 %v3512_v54, %v9709_v19  ;;  %3558 = vmax.xlane.f32.xlu1 %v3557_v47  ;;  %v8476_v58 = vadd.f32 %v3507_v29, %v7519_v42 }
 0xa6f   : > { %v3560_v0 = vsel %vm1398_vm5, %v8465_v34, -inf  ;;  %v3545_v40 = vsel %vm1398_vm5, %v8476_v58, -inf }
 0xa70   : > { %3561 = vmax.xlane.f32.xlu2 %v3560_v0 }
 0xa72   : > { %v3429_v17 = vpop.f32.mrf.mxu2  ;;  %3543 = vmax.xlane.f32.xlu0 %v3542_v13 }
 0xa73   : > { %v3513_v50 = vmul.f32 0.25, %v3429_v17 }
 0xa75   : > { %v8473_v49 = vadd.f32 %v3513_v50, %v9709_v19  ;;  %3537 = vmax.xlane.f32.xlu1 %v3536_v45 }
 0xa77   : > { %v3563_v22 = vsel %vm1398_vm5, %v8473_v49, -inf }
 0xa7a   : > { %3564 = vmax.xlane.f32.xlu0 %v3563_v22  ;;  %v3451_v8 = vpop.f32.mrf.mxu3 }
 0xa7b   : > { %v3514_v15 = vmul.f32 0.25, %v3451_v8 }
 0xa7c   : > { %v3475_v50 = vpop.f32.mrf.mxu0 }
 0xa7d   : > { %v8483_v54 = vadd.f32 %v3514_v15, %v7574_v43  ;;  %3546 = vmax.xlane.f32.xlu1 %v3545_v40  ;;  %v3516_v22 = vmul.f32 0.25, %v3475_v50 }
 0xa7f   : > { %v3566_v19 = vsel %vm1398_vm5, %v8483_v54, -inf  ;;  %v8501_v8 = vadd.f32 %v3516_v22, %v7572_v26 }
 0xa80   : > { %3567 = vmax.xlane.f32.xlu2 %v3566_v19 }
 0xa82   : > { %v3453_v53 = vpop.f32.mrf.mxu3 }
 0xa83   : > { %v3515_v42 = vmul.f32 0.25, %v3453_v53  ;;  %v3572_v53 = vsel %vm1398_vm5, %v8501_v8, -inf }
 0xa84   : > { %v3477_v40 = vpop.f32.mrf.mxu0 }
 0xa85   : > { %v8488_v47 = vadd.f32 %v3515_v42, %v7574_v43  ;;  %v3517_v19 = vmul.f32 0.25, %v3477_v40 }
 0xa87   : > { %v3569_v0 = vsel %vm1398_vm5, %v8488_v47, -inf }
 0xa88   : > { %3570 = vmax.xlane.f32.xlu0 %v3569_v0  ;;  %v8508_v0 = vpop.f32.mrf.mxu1 }
 0xa98   : > { %3758 = vrot.lane.b32.xlu2 %v7475_v9, %s6622_s24 }
 0xacd   : > { %v3550_v25 = vpop.xlane.xlu2 %3549 }
 0xace   : > { %v3588_v13 = vsub.f32 %v3524_v4, %v3550_v25 }
 0xad0   : > { %v3608_v17 = vmul.f32 1.442695, %v3588_v13  ;;  %v8511_v13 = vadd.f32 %v3517_v19, %v7572_v26  ;;  %v3501_v26 = vpop.f32.mrf.mxu1 }
 0xad2   : > { %6369 = vpow2.f32 %v3608_v17  ;;  %v3575_v40 = vsel %vm1398_vm5, %v8511_v13, -inf }
 0xad5   : > { %v8494_v29 = vpop.xlane.xlu0 %3552  ;;  %v3541_v42 = vpop.xlane.xlu2 %3540 }
 0xad6   : > { %v3585_v22 = vsub.f32 %v8444_v52, %v3541_v42 }
 0xad8   : > { %v8496_v45 = vpop.eup %6369  ;;  %v3602_v33 = vmul.f32 1.442695, %v3585_v22 }
 0xad9   : > { %v3644_v43 = vsel %vm1398_vm5, %v8496_v45, 0.0 }
 0xada   : > { %3645 = vadd.xlane.f32.xlu0 %v3644_v43 }
 0xadd   : > { %v3556_v15 = vpop.xlane.xlu0 %3555 }
 0xade   : > { %v3590_v9 = vsub.f32 %v8454_v62, %v3556_v15 }
 0xae0   : > { %v8504_v4 = vpop.xlane.xlu1 %3558  ;;  %v3612_v25 = vmul.f32 1.442695, %v3590_v9 }
 0xae2   : > { %3573 = vmax.xlane.f32.xlu0 %v3572_v53  ;;  %6371 = vpow2.f32 %v3612_v25 }
 0xae3   : > { %v3562_v53 = vpop.xlane.xlu2 %3561 }
 0xae5   : > { %v3544_v17 = vpop.xlane.xlu0 %3543 }
 0xae6   : > { %v3586_v50 = vsub.f32 %v3522_v46, %v3544_v17  ;;  %v3519_v46 = vmul.f32 0.25, %v3501_v26 }
 0xae8   : > { %v3604_v62 = vmul.f32 1.442695, %v3586_v50  ;;  %v3538_v43 = vpop.xlane.xlu1 %3537  ;;  %v8516_v9 = vpop.eup %6371 }
 0xae9   : > { %v3584_v15 = vsub.f32 %v3520_v36, %v3538_v43  ;;  %v3650_v36 = vsel %vm1398_vm5, %v8516_v9, 0.0 }
 0xaea   : > { %6373 = vpow2.f32 %v3604_v62  ;;  %3576 = vmax.xlane.f32.xlu0 %v3575_v40  ;;  %v3592_v62 = vsub.f32 %v8465_v34, %v3562_v53 }
 0xaeb   : > { %v3600_v20 = vmul.f32 1.442695, %v3584_v15 }
 0xaec   : > { %v3616_v26 = vmul.f32 1.442695, %v3592_v62  ;;  %v3591_v62 = vsub.f32 %v8459_v41, %v8504_v4 }
 0xaed   : > { %6375 = vpow2.f32 %v3600_v20 }
 0xaee   : > { %6377 = vpow2.f32 %v3602_v33  ;;  %v8530_v33 = vadd.f32 %v3519_v46, %v7592_v27 }
 0xaf0   : > { %v8518_v19 = vpop.eup %6373  ;;  %v3547_v52 = vpop.xlane.xlu1 %3546  ;;  %v3581_v43 = vsel %vm1398_vm5, %v8530_v33, -inf }
 0xaf1   : > { %v3587_v42 = vsub.f32 %v8476_v58, %v3547_v52  ;;  %v3638_v25 = vsel %vm1398_vm5, %v8518_v19, 0.0  ;;  %v3565_v52 = vpop.xlane.xlu0 %3564 }
 0xaf2   : > { %3651 = vadd.xlane.f32.xlu0 %v3650_v36  ;;  %3639 = vadd.xlane.f32.xlu2 %v3638_v25 }
 0xaf3   : > { %v8525_v17 = vpop.eup %6375  ;;  %v3568_v20 = vpop.xlane.xlu2 %3567  ;;  %v3606_v50 = vmul.f32 1.442695, %v3587_v42  ;;  %v3593_v42 = vsub.f32 %v8473_v49, %v3565_v52  ;;  %v3518_v52 = vmul.f32 0.25, %v8508_v0 }
 0xaf4   : > { %v3632_v22 = vsel %vm1398_vm5, %v8525_v17, 0.0  ;;  %v8532_v58 = vpop.eup %6377 }
 0xaf5   : > { %3633 = vadd.xlane.f32.xlu1 %v3632_v22  ;;  %6379 = vpow2.f32 %v3606_v50  ;;  %v3635_v15 = vsel %vm1398_vm5, %v8532_v58, 0.0  ;;  %v3618_v53 = vmul.f32 1.442695, %v3593_v42  ;;  %v3589_v22 = vsub.f32 %v8447_v60, %v8494_v29 }
 0xaf6   : > { %6381 = vpow2.f32 %v3616_v26  ;;  %v8573_v41 = vadd.f32 %v3518_v52, %v7592_v27 }
 0xaf7   : > { %6383 = vpow2.f32 %v3618_v53 }
 0xaf8   : > { %v3578_v0 = vsel %vm1398_vm5, %v8573_v41, -inf }
 0xafa   : > { %3582 = vmax.xlane.f32.xlu0 %v3581_v43  ;;  %3636 = vadd.xlane.f32.xlu2 %v3635_v15  ;;  %v3610_v43 = vmul.f32 1.442695, %v3589_v22  ;;  %v3614_v15 = vmul.f32 1.442695, %v3591_v62 }
 0xafb   : > { %v3759_v40 = vpop.permute.xlu2 %3758  ;;  %v8539_v46 = vpop.eup %6379 }
 0xafc   : > { %3771 = vmatpush.bf16.msrb.mxu3 %v3759_v40  ;;  %v3641_v34 = vsel %vm1398_vm5, %v8539_v46, 0.0  ;;  %v8544_v36 = vpop.eup %6381  ;;  %6385 = vpow2.f32 %v3610_v43  ;;  %v3571_v29 = vpop.xlane.xlu0 %3570 }
 0xafd   : > { %v3656_v25 = vsel %vm1398_vm5, %v8544_v36, 0.0  ;;  %v8548_v50 = vpop.eup %6383  ;;  %6387 = vpow2.f32 %v3614_v15 }
 0xafe   : > { %v3659_v49 = vsel %vm1398_vm5, %v8548_v50, 0.0 }
 0xb02   : > { %3642 = vadd.xlane.f32.xlu0 %v3641_v34  ;;  %v8563_v40 = vpop.eup %6385 }
 0xb03   : > { %v3647_v60 = vsel %vm1398_vm5, %v8563_v40, 0.0 }
 0xb0a   : > { %3657 = vadd.xlane.f32.xlu0 %v3656_v25 }
 0xb0e   : > { %3733 = vrot.lane.b32.xlu1 %v7448_v32, %s6622_s24  ;;  %v3594_v32 = vsub.f32 %v8483_v54, %v3568_v20  ;;  %v3595_v54 = vsub.f32 %v8488_v47, %v3571_v29 }
 0xb10   : > { %v3620_v26 = vmul.f32 1.442695, %v3594_v32  ;;  %v3622_v20 = vmul.f32 1.442695, %v3595_v54 }
 0xb12   : > { %3783 = vrot.lane.b32.xlu2 %v9720_v57, %s6622_s24  ;;  %3660 = vadd.xlane.f32.xlu0 %v3659_v49  ;;  %v8565_v57 = vpop.eup %6387  ;;  %6389 = vpow2.f32 %v3620_v26 }
 0xb13   : > { %6391 = vpow2.f32 %v3622_v20 }
 0xb18   : > { %v8576_v4 = vpop.eup %6389 }
 0xb19   : > { %v3662_v42 = vsel %vm1398_vm5, %v8576_v4, 0.0  ;;  %v8582_v34 = vpop.eup %6391 }
 0xb1a   : > { %v3665_v53 = vsel %vm1398_vm5, %v8582_v34, 0.0 }
 0xb26   : > { %3833 = vrot.lane.b32.xlu0 %v7715_v6, %s6622_s24  ;;  %v3653_v6 = vsel %vm1398_vm5, %v8565_v57, 0.0 }
 0xb38   : > { %3648 = vadd.xlane.f32.xlu1 %v3647_v60 }
 0xb3b   : > { %3654 = vadd.xlane.f32.xlu2 %v3653_v6 }
 0xb40   : > { %3579 = vmax.xlane.f32.xlu1 %v3578_v0 }
 0xb43   : > { %3663 = vadd.xlane.f32.xlu2 %v3662_v42 }
 0xb4d   : > { %v8584_v27 = vpop.xlane.xlu0 %3645 }
 0xb50   : > { %3666 = vadd.xlane.f32.xlu0 %v3665_v53 }
 0xb55   : > { %v3574_v47 = vpop.xlane.xlu0 %3573 }
 0xb56   : > { %v3596_v25 = vsub.f32 %v8501_v8, %v3574_v47 }
 0xb58   : > { %v3624_v49 = vmul.f32 1.442695, %v3596_v25 }
 0xb59   : > { %3808 = vrot.lane.b32.xlu1 %v9710_v56, %s6622_s24 }
 0xb5a   : > { %6393 = vpow2.f32 %v3624_v49 }
 0xb5d   : > { %v3577_v22 = vpop.xlane.xlu0 %3576 }
 0xb5e   : > { %v3597_v47 = vsub.f32 %v8511_v13, %v3577_v22 }
 0xb60   : > { %v8591_v62 = vpop.eup %6393 }
 0xb61   : > { %3858 = vrot.lane.b32.xlu1 %v7727_v14, %s6622_s24  ;;  %v3668_v43 = vsel %vm1398_vm5, %v8591_v62, 0.0 }
 0xb62   : > { %3669 = vadd.xlane.f32.xlu2 %v3668_v43 }
 0xb65   : > { %v3640_v15 = vpop.xlane.xlu2 %3639  ;;  %v8597_v32 = vpop.xlane.xlu0 %3651 }
 0xb68   : > { %v3634_v26 = vpop.xlane.xlu1 %3633 }
 0xb6d   : > { %v3637_v8 = vpop.xlane.xlu2 %3636  ;;  %v3583_v52 = vpop.xlane.xlu0 %3582 }
 0xb6e   : > { %6395 = vrcp.f32 %v3637_v8  ;;  %v3599_v56 = vsub.f32 %v8530_v33, %v3583_v52 }
 0xb6f   : > { %6397 = vrcp.f32 %v3634_v26 }
 0xb70   : > { %6399 = vrcp.f32 %v3640_v15  ;;  %v3630_v60 = vmul.f32 1.442695, %v3599_v56  ;;  %v3626_v15 = vmul.f32 1.442695, %v3597_v47 }
 0xb72   : > { %6401 = vpow2.f32 %v3630_v60 }
 0xb74   : > { %v6396_v6 = vpop.eup %6395 }
 0xb75   : > { %v6398_v29 = vpop.eup %6397  ;;  %v3784_v14 = vpop.permute.xlu2 %3783  ;;  %v3697_v20 = vmul.f32 %v6396_v6, %v8532_v58 }
 0xb76   : > { %v3643_v54 = vpop.xlane.xlu0 %3642  ;;  %v6400_v0 = vpop.eup %6399  ;;  %3796 = vmatpush.bf16.msrb.mxu0 %v3784_v14  ;;  %v3696_v53 = vmul.f32 %v6398_v29, %v8525_v17 }
 0xb77   : > { %6403 = vrcp.f32 %v3643_v54  ;;  %v3698_v33 = vmul.f32 %v6400_v0, %v8518_v19  ;;  %v3713_v49 = vpack.c.bf16 %v3697_v20, %v3697_v20 }
 0xb78   : > { %v8601_v42 = vpop.eup %6401  ;;  %v3712_v58 = vpack.c.bf16 %v3696_v53, %v3696_v53  ;;  %6405 = vpow2.f32 %v3626_v15 }
 0xb79   : > { %v3677_v25 = vsel %vm1398_vm5, %v8601_v42, 0.0  ;;  %v3714_v26 = vpack.c.bf16 %v3698_v33, %v3698_v33  ;;  %v3731_v17 = vunpack.c.l.b16 %v3713_v49  ;;  %v6055_v33 = vpack.i.bf16 %v8413_v2, %v8411_v30 }
 0xb7a   : > { %3883 = vrot.lane.b32.xlu2 %v9721_v59, %s6622_s24  ;;  %3678 = vadd.xlane.f32.xlu0 %v3677_v25  ;;  %v3730_v13 = vunpack.c.l.b16 %v3712_v58  ;;  %v6080_v30 = vpack.i.bf16 %v8110_v1, %v8108_v35 }
 0xb7b   : > { %v3755_v19 = vunpack.c.l.b16 %v3714_v26 }
 0xb7c   : > { %v3732_v6 = vpack.c.b16 %v3731_v17, %v3730_v13 }
 0xb7d   : > { %v6404_v43 = vpop.eup %6403 }
 0xb7e   : > { %v3699_v8 = vmul.f32 %v6404_v43, %v8539_v46  ;;  %v3658_v52 = vpop.xlane.xlu0 %3657  ;;  %v8613_v14 = vpop.eup %6405 }
 0xb7f   : > { %v3671_v46 = vsel %vm1398_vm5, %v8613_v14, 0.0 }
 0xb80   : > { %v3715_v56 = vpack.c.bf16 %v3699_v8, %v3699_v8  ;;  %v3734_v22 = vpop.permute.xlu1 %3733 }
 0xb81   : > { %3746 = vmatpush.bf16.msra.mxu2 %v3734_v22 }
 0xb82   : > { %v3756_v60 = vunpack.c.l.b16 %v3715_v56 }
 0xb84   : > { %v3757_v29 = vpack.c.b16 %v3756_v60, %v3755_v19  ;;  %5802 = vmatmul.msk.bf16.vlgmr.msra.gmra.mxu2 %vm1398_vm5, %v3732_v6 }
 0xb86   : > { %5803 = vmatmul.msk.bf16.vlgmr.msrb.gmra.mxu3 %vm1398_vm5, %v3757_v29  ;;  %v3661_v59 = vpop.xlane.xlu0 %3660 }
 0xb87   : > { %6407 = vrcp.f32 %v3661_v59 }
 0xb88   : > { %6409 = vrcp.f32 %v3658_v52 }
 0xb89   : > { %6411 = vrcp.f32 %v8584_v27 }
 0xb8b   : > { %3672 = vadd.xlane.f32.xlu1 %v3671_v46 }
 0xb8d   : > { %v6408_v54 = vpop.eup %6407 }
 0xb8e   : > { %v6410_v0 = vpop.eup %6409  ;;  %v3705_v20 = vmul.f32 %v6408_v54, %v8548_v50  ;;  %3908 = vrot.lane.b32.xlu0 %v7764_v39, %s6622_s24  ;;  %v6070_v50 = vpack.i.bf16 %v8427_v18, %v8421_v28  ;;  %v6050_v39 = vpack.i.bf16 %v8168_v55, %v8160_v21 }
 0xb8f   : > { %v3704_v53 = vmul.f32 %v6410_v0, %v8544_v36  ;;  %v6412_v36 = vpop.eup %6411 }
 0xb90   : > { %v3721_v47 = vpack.c.bf16 %v3705_v20, %v3705_v20  ;;  %v3700_v28 = vmul.f32 %v6412_v36, %v8496_v45 }
 0xb91   : > { %v3720_v25 = vpack.c.bf16 %v3704_v53, %v3704_v53 }
 0xb92   : > { %v3831_v49 = vunpack.c.l.b16 %v3721_v47  ;;  %v3716_v26 = vpack.c.bf16 %v3700_v28, %v3700_v28 }
 0xb93   : > { %v3830_v43 = vunpack.c.l.b16 %v3720_v25 }
 0xb94   : > { %v3780_v17 = vunpack.c.l.b16 %v3716_v26 }
 0xb95   : > { %v3832_v15 = vpack.c.b16 %v3831_v49, %v3830_v43 }
 0xb96   : > { %6056 = vrot.lane.b32.xlu0 %v6055_v33, %s6619_s27 }
 0xb98   : > { %v3834_v58 = vpop.permute.xlu0 %3833 }
 0xb99   : > { %3846 = vmatpush.bf16.msrb.mxu2 %v3834_v58 }
 0xb9c   : > { %5806 = vmatmul.msk.bf16.vlgmr.msrb.gmra.mxu2 %vm1398_vm5, %v3832_v15 }
 0xb9e   : > { %6071 = vrot.lane.b32.xlu0 %v6070_v50, %s6619_s27  ;;  %v6065_v50 = vpack.i.bf16 %v8176_v11, %v8174_v37  ;;  %v6145_v37 = vpack.i.bf16 %v8429_v61, %v8425_v44 }
 0xba4   : > { %6051 = vrot.lane.b32.xlu1 %v6050_v39, %s6621_s4  ;;  %v6115_v39 = vpack.i.bf16 %v8423_v48, %v8417_v24 }
 0xba6   : > { %6081 = vrot.lane.b32.xlu0 %v6080_v30, %s6621_s4  ;;  %v6130_v30 = vpack.i.bf16 %v8441_v3, %v8433_v63 }
 0xbab   : > { %v3649_v2 = vpop.xlane.xlu1 %3648 }
 0xbac   : > { %6413 = vrcp.f32 %v3649_v2 }
 0xbae   : > { %v3655_v21 = vpop.xlane.xlu2 %3654 }
 0xbaf   : > { %6415 = vrcp.f32 %v3655_v21 }
 0xbb2   : > { %v6414_v18 = vpop.eup %6413 }
 0xbb3   : > { %v3701_v8 = vmul.f32 %v6414_v18, %v8563_v40  ;;  %v3580_v52 = vpop.xlane.xlu1 %3579 }
 0xbb4   : > { %v3598_v55 = vsub.f32 %v8573_v41, %v3580_v52 }
 0xbb5   : > { %v3717_v35 = vpack.c.bf16 %v3701_v8, %v3701_v8  ;;  %v6416_v45 = vpop.eup %6415 }
 0xbb6   : > { %v3628_v1 = vmul.f32 1.442695, %v3598_v55  ;;  %v3664_v22 = vpop.xlane.xlu2 %3663  ;;  %v3703_v41 = vmul.f32 %v6416_v45, %v8565_v57  ;;  %v9726_v55 = vld [vmem:[#allocation35_spill] sm:$0xff] }
 0xbb7   : > { %v3781_v56 = vunpack.c.l.b16 %v3717_v35  ;;  %v6110_v35 = vpack.i.bf16 %v9726_v55, %v8170_v31 }
 0xbb8   : > { %6417 = vpow2.f32 %v3628_v1  ;;  %v3719_v29 = vpack.c.bf16 %v3703_v41, %v3703_v41  ;;  %v9729_v41 = vld [vmem:[#allocation17_spill] sm:$0xff] }
 0xbb9   : > { %v3782_v27 = vpack.c.b16 %v3781_v56, %v3780_v17  ;;  %6419 = vrcp.f32 %v8597_v32 }
 0xbba   : > { %6421 = vrcp.f32 %v3664_v22  ;;  %v3806_v46 = vunpack.c.l.b16 %v3719_v29 }
 0xbbb   : > { %5804 = vmatmul.msk.bf16.vlgmr.msrb.gmra.mxu0 %vm1398_vm5, %v3782_v27  ;;  %v9727_v27 = vld [vmem:[#allocation36_spill] sm:$0xff] }
 0xbbe   : > { %v8640_v13 = vpop.eup %6417 }
 0xbbf   : > { %v3674_v40 = vsel %vm1398_vm5, %v8640_v13, 0.0  ;;  %v6420_v19 = vpop.eup %6419 }
 0xbc0   : > { %3675 = vadd.xlane.f32.xlu2 %v3674_v40  ;;  %v3702_v60 = vmul.f32 %v6420_v19, %v8516_v9  ;;  %v6422_v59 = vpop.eup %6421 }
 0xbc1   : > { %v3706_v20 = vmul.f32 %v6422_v59, %v8576_v4  ;;  %v5908_v59 = vld [vmem:[%s6809_s10 + $0x18] sm:$0xff] }
 0xbc2   : > { %v3718_v32 = vpack.c.bf16 %v3702_v60, %v3702_v60  ;;  %v9730_v60 = vld [vmem:[#allocation16_spill] sm:$0xff]  ;;  %4242 = vmatpush.bf16.msra.mxu2 %v5908_v59  ;;  %v9739_v59 = vld [vmem:[#allocation23_spill] sm:$0xff] }
 0xbc3   : > { %v3667_v6 = vpop.xlane.xlu0 %3666  ;;  %v3722_v57 = vpack.c.bf16 %v3706_v20, %v3706_v20 }
 0xbc4   : > { %6423 = vrcp.f32 %v3667_v6  ;;  %v3805_v0 = vunpack.c.l.b16 %v3718_v32  ;;  %v6140_v6 = vpack.i.bf16 %v9730_v60, %v9729_v41 }
 0xbc5   : > { %v3855_v49 = vunpack.c.l.b16 %v3722_v57 }
 0xbc6   : > { %v3807_v33 = vpack.c.b16 %v3806_v46, %v3805_v0  ;;  %v5907_v46 = vld [vmem:[%s6809_s10 + $0x10] sm:$0xff] }
 0xbc7   : > { %4243 = vmatpush.bf16.msra.mxu2 %v5907_v46 }
 0xbca   : > { %v6424_v54 = vpop.eup %6423 }
 0xbcb   : > { %v3707_v53 = vmul.f32 %v6424_v54, %v8582_v34  ;;  %v3809_v47 = vpop.permute.xlu1 %3808  ;;  %v9723_v34 = vpack.i.bf16 %v8407_v23, %v8405_v7  ;;  %v9724_v23 = vpack.i.bf16 %v8436_v38, %v8431_v16  ;;  %v9732_v54 = vld [vmem:[#allocation12_spill] sm:$0xff] }
 0xbcc   : > { %3821 = vmatpush.bf16.msrb.mxu1 %v3809_v47 }
 0xbcd   : > { %v3723_v25 = vpack.c.bf16 %v3707_v53, %v3707_v53  ;;  %v5906_v53 = vld [vmem:[%s6809_s10 + $0x8] sm:$0xff] }
 0xbce   : > { %4244 = vmatpush.bf16.msra.mxu2 %v5906_v53 }
 0xbcf   : > { %5805 = vmatmul.msk.bf16.vlgmr.msrb.gmra.mxu1 %vm1398_vm5, %v3807_v33  ;;  %v3856_v9 = vunpack.c.l.b16 %v3723_v25 }
 0xbd1   : > { %v3857_v58 = vpack.c.b16 %v3856_v9, %v3855_v49 }
 0xbd3   : > { %v3859_v43 = vpop.permute.xlu1 %3858 }
 0xbd4   : > { %3871 = vmatpush.bf16.msra.mxu3 %v3859_v43 }
 0xbd5   : > { %v3670_v15 = vpop.xlane.xlu2 %3669 }
 0xbd6   : > { %6425 = vrcp.f32 %v3670_v15  ;;  %v5905_v15 = vld [vmem:[%s6809_s10] sm:$0xff] }
 0xbd7   : > { %5807 = vmatmul.msk.bf16.vlgmr.msra.gmra.mxu3 %vm1398_vm5, %v3857_v58  ;;  %4245 = vmatpush.bf16.msra.mxu2 %v5905_v15 }
 0xbd8   : > { %6066 = vrot.lane.b32.xlu2 %v6065_v50, %s6621_s4 }
 0xbdc   : > { %v6426_v7 = vpop.eup %6425 }
 0xbdd   : > { %v3884_v4 = vpop.permute.xlu2 %3883  ;;  %v3708_v48 = vmul.f32 %v6426_v7, %v8591_v62  ;;  %v6085_v62 = vpack.i.bf16 %v8419_v5, %v8415_v12  ;;  %v9728_v12 = vld [vmem:[#allocation37_spill] sm:$0xff] }
 0xbde   : > { %3896 = vmatpush.bf16.msra.mxu0 %v3884_v4  ;;  %v6125_v5 = vpack.i.bf16 %v9728_v12, %v9727_v27 }
 0xbdf   : > { %v3724_v3 = vpack.c.bf16 %v3708_v48, %v3708_v48 }
 0xbe0   : > { %6101 = vrot.lane.b32.xlu2 %v9723_v34, %s6619_s27 }
 0xbe1   : > { %v3880_v28 = vunpack.c.l.b16 %v3724_v3 }
 0xbe8   : > { %6116 = vrot.lane.b32.xlu2 %v6115_v39, %s6619_s27 }
 0xbed   : > { %v3679_v11 = vpop.xlane.xlu0 %3678 }
 0xbf0   : > { %6131 = vrot.lane.b32.xlu2 %v6130_v30, %s6619_s27  ;;  %v9734_v30 = vld [vmem:[#allocation21_spill] sm:$0xff] }
 0xbf8   : > { %6146 = vrot.lane.b32.xlu2 %v6145_v37, %s6619_s27 }
 0xbfe   : > { %v3673_v2 = vpop.xlane.xlu1 %3672 }
 0xbff   : > { %6427 = vrcp.f32 %v3673_v2 }
 0xc00   : > { %6161 = vrot.lane.b32.xlu2 %v9724_v23, %s6619_s27  ;;  %v3909_v24 = vpop.permute.xlu0 %3908  ;;  %6429 = vrcp.f32 %v3679_v11  ;;  %v9735_v11 = vld [vmem:[#allocation19_spill] sm:$0xff] }
 0xc01   : > { %3921 = vmatpush.bf16.msra.mxu1 %v3909_v24 }
 0xc05   : > { %v6428_v63 = vpop.eup %6427 }
 0xc06   : > { %v3709_v44 = vmul.f32 %v6428_v63, %v8613_v14  ;;  %v9725_v14 = vpack.i.bf16 %v8104_v10, %v8102_v51  ;;  %v6430_v17 = vpop.eup %6429 }
 0xc07   : > { %v3748_v61 = vpop.f32.mrf.mxu2  ;;  %v3711_v56 = vmul.f32 %v6430_v17, %v8601_v42 }
 0xc08   : > { %v3725_v36 = vpack.c.bf16 %v3709_v44, %v3709_v44  ;;  %v6057_v39 = vpop.permute.xlu0 %6056 }
 0xc09   : > { %v3773_v26 = vpop.f32.mrf.mxu3  ;;  %v3727_v51 = vpack.c.bf16 %v3711_v56, %v3711_v56  ;;  %v6059_v7 = vunpack.i.h.bf16 %v6057_v39  ;;  %v6058_v23 = vunpack.i.l.bf16 %v6057_v39 }
 0xc0a   : > { %v3881_v18 = vunpack.c.l.b16 %v3725_v36 }
 0xc0b   : > { %v3906_v40 = vunpack.c.l.b16 %v3727_v51 }
 0xc0c   : > { %v3882_v8 = vpack.c.b16 %v3881_v18, %v3880_v28 }
 0xc0e   : > { %5808 = vmatmul.msk.bf16.vlgmr.msra.gmra.mxu0 %vm1398_vm5, %v3882_v8 }
 0xc0f   : > { %v3750_v52 = vpop.f32.mrf.mxu2 }
 0xc10   : > { %v6060_v21 = vpack.i.bf16 %v3750_v52, %v3748_v61 }
 0xc11   : > { %v3775_v16 = vpop.f32.mrf.mxu3 }
 0xc12   : > { %6061 = vrot.lane.b32.xlu1 %v6060_v21, %s6617_s16  ;;  %v6075_v38 = vpack.i.bf16 %v3775_v16, %v3773_v26  ;;  %v6072_v16 = vpop.permute.xlu0 %6071 }
 0xc13   : > { %v6074_v17 = vunpack.i.h.bf16 %v6072_v16  ;;  %v6073_v56 = vunpack.i.l.bf16 %v6072_v16 }
 0xc16   : > { %v6052_v50 = vpop.permute.xlu1 %6051 }
 0xc17   : > { %v6054_v4 = vunpack.i.h.bf16 %v6052_v50  ;;  %v6053_v34 = vunpack.i.l.bf16 %v6052_v50  ;;  %v9741_v50 = vld [vmem:[#allocation24_spill] sm:$0xff] }
 0xc19   : > { %v4121_v37 = vsel %vm1398_vm5, %v9734_v30, %v6054_v4  ;;  %v4120_v2 = vsel %vm1398_vm5, %v9735_v11, %v6053_v34 }
 0xc1a   : > { %6076 = vrot.lane.b32.xlu1 %v6075_v38, %s6617_s16  ;;  %v4137_v3 = vsel %vm4136_vm6, %v4120_v2, %v6058_v23  ;;  %v4138_v44 = vsel %vm4136_vm6, %v4121_v37, %v6059_v7  ;;  %v9736_v38 = vld [vmem:[#allocation22_spill] sm:$0xff] }
 0xc1f   : > { %v3848_v47 = vpop.f32.mrf.mxu2 }
 0xc22   : > { %6086 = vrot.lane.b32.xlu1 %v6085_v62, %s6619_s27 }
 0xc27   : > { %v3850_v57 = vpop.f32.mrf.mxu2 }
 0xc28   : > { %v6120_v49 = vpack.i.bf16 %v3850_v57, %v3848_v47 }
 0xc2a   : > { %6096 = vrot.lane.b32.xlu1 %v9725_v14, %s6621_s4  ;;  %v9737_v14 = vld [vmem:[#allocation20_spill] sm:$0xff] }
 0xc32   : > { %6111 = vrot.lane.b32.xlu1 %v6110_v35, %s6621_s4 }
 0xc33   : > { %v3676_v1 = vpop.xlane.xlu2 %3675 }
 0xc34   : > { %6431 = vrcp.f32 %v3676_v1 }
 0xc38   : > { %v3798_v45 = vpop.f32.mrf.mxu0 }
 0xc3a   : > { %v6432_v22 = vpop.eup %6431  ;;  %6126 = vrot.lane.b32.xlu1 %v6125_v5, %s6621_s4 }
 0xc3b   : > { %v3710_v10 = vmul.f32 %v6432_v22, %v8640_v13  ;;  %v9731_v13 = vld [vmem:[#allocation13_spill] sm:$0xff]  ;;  %v6067_v18 = vpop.permute.xlu2 %6066 }
 0xc3c   : > { %v9733_v0 = vpack.i.bf16 %v9731_v13, %v9732_v54  ;;  %v6069_v8 = vunpack.i.h.bf16 %v6067_v18  ;;  %v6068_v52 = vunpack.i.l.bf16 %v6067_v18 }
 0xc3d   : > { %v3726_v31 = vpack.c.bf16 %v3710_v10, %v3710_v10 }
 0xc3e   : > { %v4123_v62 = vsel %vm1398_vm5, %v9736_v38, %v6069_v8  ;;  %v4122_v55 = vsel %vm1398_vm5, %v9737_v14, %v6068_v52  ;;  %v9743_v52 = vld [vmem:[#allocation27_spill] sm:$0xff] }
 0xc3f   : > { %v3905_v19 = vunpack.c.l.b16 %v3726_v31  ;;  %v4139_v12 = vsel %vm4136_vm6, %v4122_v55, %v6073_v56  ;;  %v4140_v5 = vsel %vm4136_vm6, %v4123_v62, %v6074_v17  ;;  %v6082_v31 = vpop.permute.xlu0 %6081 }
 0xc40   : > { %v3800_v42 = vpop.f32.mrf.mxu0  ;;  %v6083_v41 = vunpack.i.l.bf16 %v6082_v31 }
 0xc41   : > { %v3907_v29 = vpack.c.b16 %v3906_v40, %v3905_v19  ;;  %v6090_v32 = vpack.i.bf16 %v3800_v42, %v3798_v45  ;;  %v6084_v19 = vunpack.i.h.bf16 %v6082_v31  ;;  %v9745_v31 = vld [vmem:[#allocation29_spill] sm:$0xff] }
 0xc42   : > { %6141 = vrot.lane.b32.xlu1 %v6140_v6, %s6621_s4  ;;  %v4124_v46 = vsel %vm1398_vm5, %v9739_v59, %v6083_v41 }
 0xc43   : > { %6091 = vrot.lane.b32.xlu0 %v6090_v32, %s6617_s16  ;;  %5809 = vmatmul.msk.bf16.vlgmr.msra.gmra.mxu1 %vm1398_vm5, %v3907_v29  ;;  %v9738_v29 = vld [vmem:[#allocation25_spill] sm:$0xff] }
 0xc44   : > { %v4125_v32 = vsel %vm1398_vm5, %v9738_v29, %v6084_v19 }
 0xc4a   : > { %6156 = vrot.lane.b32.xlu1 %v9733_v0, %s6621_s4 }
 0xc4c   : > { %v3823_v20 = vpop.f32.mrf.mxu1 }
 0xc54   : > { %v3825_v33 = vpop.f32.mrf.mxu1 }
 0xc55   : > { %v6105_v25 = vpack.i.bf16 %v3825_v33, %v3823_v20 }
 0xc57   : > { %6106 = vrot.lane.b32.xlu0 %v6105_v25, %s6617_s16 }
 0xc5a   : > { %v3873_v9 = vpop.f32.mrf.mxu3 }
 0xc5f   : > { %6121 = vrot.lane.b32.xlu0 %v6120_v49, %s6617_s16 }
 0xc62   : > { %v3875_v43 = vpop.f32.mrf.mxu3 }
 0xc63   : > { %v6135_v58 = vpack.i.bf16 %v3875_v43, %v3873_v9  ;;  %v6102_v43 = vpop.permute.xlu2 %6101 }
 0xc64   : > { %v6104_v39 = vunpack.i.h.bf16 %v6102_v43  ;;  %v6103_v30 = vunpack.i.l.bf16 %v6102_v43 }
 0xc67   : > { %6136 = vrot.lane.b32.xlu0 %v6135_v58, %s6617_s16  ;;  %v9740_v58 = vld [vmem:[#allocation26_spill] sm:$0xff] }
 0xc6b   : > { %v6117_v18 = vpop.permute.xlu2 %6116 }
 0xc6c   : > { %v6119_v62 = vunpack.i.h.bf16 %v6117_v18  ;;  %v6118_v14 = vunpack.i.l.bf16 %v6117_v18 }
 0xc84   : > { %v6062_v24 = vpop.permute.xlu1 %6061 }
 0xc85   : > { %v6064_v48 = vunpack.i.h.bf16 %v6062_v24  ;;  %v6063_v63 = vunpack.i.l.bf16 %v6062_v24 }
 0xc87   : > { %v4154_v61 = vsel %vm4153_vm7, %v4137_v3, %v6063_v63  ;;  %v4155_v36 = vsel %vm4153_vm7, %v4138_v44, %v6064_v48 }
 0xc88   : > { %v4170_v28 = vpack.c.bf16 %v4155_v36, %v4154_v61 }
 0xc8a   : > { %5826 = vmatmul.msk.bf16.vlgmr.msra.gmra.mxu2 %vm1236_vm0, %v4170_v28 }
 0xc8b   : > { %v3898_v26 = vpop.f32.mrf.mxu0 }
 0xc8c   : > { %v6077_v21 = vpop.permute.xlu1 %6076 }
 0xc8d   : > { %v6079_v35 = vunpack.i.h.bf16 %v6077_v21  ;;  %v6078_v1 = vunpack.i.l.bf16 %v6077_v21 }
 0xc8f   : > { %v4156_v22 = vsel %vm4153_vm7, %v4139_v12, %v6078_v1  ;;  %v4157_v51 = vsel %vm4153_vm7, %v4140_v5, %v6079_v35 }
 0xc90   : > { %v4171_v10 = vpack.c.bf16 %v4157_v51, %v4156_v22  ;;  %v6132_v22 = vpop.permute.xlu2 %6131  ;;  %v9744_v51 = vld [vmem:[#allocation30_spill] sm:$0xff] }
 0xc93   : > { %v3900_v27 = vpop.f32.mrf.mxu0 }
 0xc94   : > { %v6150_v45 = vpack.i.bf16 %v3900_v27, %v3898_v26  ;;  %v6087_v40 = vpop.permute.xlu1 %6086  ;;  %v9742_v26 = vld [vmem:[#allocation28_spill] sm:$0xff] }
 0xc95   : > { %v6089_v60 = vunpack.i.h.bf16 %v6087_v40  ;;  %v6088_v6 = vunpack.i.l.bf16 %v6087_v40 }
 0xc96   : > { %6151 = vrot.lane.b32.xlu0 %v6150_v45, %s6617_s16 }
 0xc97   : > { %v4141_v0 = vsel %vm4136_vm6, %v4124_v46, %v6088_v6  ;;  %v4142_v20 = vsel %vm4136_vm6, %v4125_v32, %v6089_v60  ;;  %v6134_v60 = vunpack.i.h.bf16 %v6132_v22  ;;  %v6133_v6 = vunpack.i.l.bf16 %v6132_v22 }
 0xc9a   : > { %5827 = vmatmul.msk.bf16.gmra.mxu2 %vm1236_vm0, %v4171_v10 }
 0xc9c   : > { %v6097_v57 = vpop.permute.xlu1 %6096 }
 0xc9d   : > { %v6099_v9 = vunpack.i.h.bf16 %v6097_v57  ;;  %v6098_v49 = vunpack.i.l.bf16 %v6097_v57 }
 0xc9f   : > { %v4127_v15 = vsel %vm1398_vm5, %v9740_v58, %v6099_v9  ;;  %v4126_v4 = vsel %vm1398_vm5, %v9741_v50, %v6098_v49 }
 0xca0   : > { %v4143_v23 = vsel %vm4136_vm6, %v4126_v4, %v6103_v30  ;;  %v4144_v24 = vsel %vm4136_vm6, %v4127_v15, %v6104_v39  ;;  %v8773_v4 = vld [vmem:[%s9748_s0] ss:$0 sm:$0xff] }
 0xca4   : > { %v6112_v44 = vpop.permute.xlu1 %6111 }
 0xca5   : > { %v6114_v61 = vunpack.i.h.bf16 %v6112_v44  ;;  %v6113_v36 = vunpack.i.l.bf16 %v6112_v44 }
 0xca7   : > { %v4129_v8 = vsel %vm1398_vm5, %v9742_v26, %v6114_v61  ;;  %v4128_v21 = vsel %vm1398_vm5, %v9743_v52, %v6113_v36 }
 0xca8   : > { %v4145_v55 = vsel %vm4136_vm6, %v4128_v21, %v6118_v14  ;;  %v4146_v35 = vsel %vm4136_vm6, %v4129_v8, %v6119_v62  ;;  %v6534_v21 = vld [vmem:[#allocation2 + $0x18] sm:$0xff] }
 0xcac   : > { %v6127_v27 = vpop.permute.xlu1 %6126 }
 0xcad   : > { %v6129_v12 = vunpack.i.h.bf16 %v6127_v27  ;;  %v6128_v5 = vunpack.i.l.bf16 %v6127_v27 }
 0xcaf   : > { %v4131_v10 = vsel %vm1398_vm5, %v9744_v51, %v6129_v12  ;;  %v4130_v40 = vsel %vm1398_vm5, %v9745_v31, %v6128_v5 }
 0xcb0   : > { %v4148_v29 = vsel %vm4136_vm6, %v4131_v10, %v6134_v60 }
 0xcb5   : > { %v6092_v42 = vpop.permute.xlu0 %6091 }
 0xcb6   : > { %v6094_v13 = vunpack.i.h.bf16 %v6092_v42  ;;  %v6093_v54 = vunpack.i.l.bf16 %v6092_v42  ;;  %v4147_v42 = vsel %vm4136_vm6, %v4130_v40, %v6133_v6 }
 0xcb8   : > { %v4158_v53 = vsel %vm4153_vm7, %v4141_v0, %v6093_v54  ;;  %v4159_v47 = vsel %vm4153_vm7, %v4142_v20, %v6094_v13  ;;  %v6142_v13 = vpop.permute.xlu1 %6141  ;;  %v6147_v20 = vpop.permute.xlu2 %6146 }
 0xcb9   : > { %v4172_v33 = vpack.c.bf16 %v4159_v47, %v4158_v53  ;;  %v6144_v54 = vunpack.i.h.bf16 %v6142_v13  ;;  %v6143_v0 = vunpack.i.l.bf16 %v6142_v13  ;;  %v9746_v53 = vld [vmem:[#allocation32_spill] sm:$0xff]  ;;  %v6149_v57 = vunpack.i.h.bf16 %v6147_v20  ;;  %v6536_v13 = vld [vmem:[#allocation2 + $0x28] sm:$0xff] }
 0xcba   : > { %v6148_v9 = vunpack.i.l.bf16 %v6147_v20 }
 0xcbb   : > { %5828 = vmatmul.msk.bf16.gmra.mxu2 %vm1236_vm0, %v4172_v33  ;;  %v4133_v47 = vsel %vm1398_vm5, %v9746_v53, %v6144_v54  ;;  %v9747_v33 = vld [vmem:[#allocation31_spill] sm:$0xff] }
 0xcbc   : > { %v4150_v50 = vsel %vm4136_vm6, %v4133_v47, %v6149_v57  ;;  %v6537_v47 = vld [vmem:[#allocation2 + $0x30] sm:$0xff]  ;;  %v6623_v57 = vmov 64.0  }
 0xcbd   : > { %6433 = vrcp.f32 %v6623_v57 }
 0xcc0   : > { %v3923_v25 = vpop.f32.mrf.mxu1  ;;  %v6157_v62 = vpop.permute.xlu1 %6156 }
 0xcc1   : > { %v6159_v14 = vunpack.i.h.bf16 %v6157_v62 }
 0xcc8   : > { %v3925_v34 = vpop.f32.mrf.mxu1 }
 0xcc9   : > { %v6165_v37 = vpack.i.bf16 %v3925_v34, %v3923_v25  ;;  %v6107_v11 = vpop.permute.xlu0 %6106  ;;  %v4132_v25 = vsel %vm1398_vm5, %v9747_v33, %v6143_v0 }
 0xcca   : > { %v6109_v2 = vunpack.i.h.bf16 %v6107_v11  ;;  %v6108_v7 = vunpack.i.l.bf16 %v6107_v11  ;;  %v4149_v15 = vsel %vm4136_vm6, %v4132_v25, %v6148_v9  ;;  %v6434_v9 = vpop.eup %6433 }
 0xccb   : > { %6166 = vrot.lane.b32.xlu0 %v6165_v37, %s6617_s16  ;;  %vm4358_vm8 = vweird.f32 %v6434_v9  ;;  %s9751_s16 = sld [smem:[#allocation10_spill]] }
 0xccc   : > { %v4161_v48 = vsel %vm4153_vm7, %v4144_v24, %v6109_v2  ;;  %v4160_v63 = vsel %vm4153_vm7, %v4143_v23, %v6108_v7  ;;  %v6531_v2 = vld [vmem:[#allocation2] sm:$0xff] }
 0xccd   : > { %v4173_v3 = vpack.c.bf16 %v4161_v48, %v4160_v63  ;;  %v6532_v63 = vld [vmem:[#allocation2 + $0x8] sm:$0xff] }
 0xccf   : > { %5829 = vmatmul.msk.bf16.gmra.mxu2 %vm1236_vm0, %v4173_v3 }
 0xcd1   : > { %v6122_v28 = vpop.permute.xlu0 %6121 }
 0xcd2   : > { %v6124_v16 = vunpack.i.h.bf16 %v6122_v28  ;;  %v6123_v38 = vunpack.i.l.bf16 %v6122_v28  ;;  %v6533_v28 = vld [vmem:[#allocation2 + $0x10] sm:$0xff] }
 0xcd4   : > { %v4163_v1 = vsel %vm4153_vm7, %v4146_v35, %v6124_v16  ;;  %v4162_v17 = vsel %vm4153_vm7, %v4145_v55, %v6123_v38  ;;  %v6158_v55 = vunpack.i.l.bf16 %v6157_v62  ;;  %v6162_v35 = vpop.permute.xlu2 %6161  ;;  %v6539_v62 = vld [vmem:[#allocation2 + $0x40] sm:$0xff] }
 0xcd5   : > { %v4174_v56 = vpack.c.bf16 %v4163_v1, %v4162_v17  ;;  %v9749_v1 = vld [vmem:[#allocation34_spill] sm:$0xff]  ;;  %v6164_v12 = vunpack.i.h.bf16 %v6162_v35  ;;  %v6163_v5 = vunpack.i.l.bf16 %v6162_v35 }
 0xcd6   : > { %v4135_v17 = vsel %vm1398_vm5, %v9749_v1, %v6159_v14 }
 0xcd7   : > { %v4152_v40 = vsel %vm4136_vm6, %v4135_v17, %v6164_v12  ;;  %v6540_v12 = vld [vmem:[#allocation2 + $0x48] sm:$0xff] }
 0xcd9   : > { %v6137_v45 = vpop.permute.xlu0 %6136 }
 0xcda   : > { %v6139_v19 = vunpack.i.h.bf16 %v6137_v45  ;;  %v6138_v41 = vunpack.i.l.bf16 %v6137_v45 }
 0xcdc   : > { %v4165_v32 = vsel %vm4153_vm7, %v4148_v29, %v6139_v19  ;;  %v4164_v59 = vsel %vm4153_vm7, %v4147_v42, %v6138_v41  ;;  %v6535_v42 = vld [vmem:[#allocation2 + $0x20] sm:$0xff] }
 0xcdd   : > { %v4175_v46 = vpack.c.bf16 %v4165_v32, %v4164_v59 }
 0xcdf   : > { %5830 = vmatmul.msk.bf16.gmra.mxu2 %vm1236_vm0, %v4174_v56  ;;  %v9750_v56 = vld [vmem:[#allocation33_spill] sm:$0xff] }
 0xce0   : > { %v4134_v27 = vsel %vm1398_vm5, %v9750_v56, %v6158_v55 }
 0xce1   : > { %v4151_v31 = vsel %vm4136_vm6, %v4134_v27, %v6163_v5 }
 0xcef   : > { %5831 = vmatmul.msk.bf16.gmra.mxu2 %vm1236_vm0, %v4175_v46 }
 0xd08   : > { %v6152_v49 = vpop.permute.xlu0 %6151 }
 0xd09   : > { %v6154_v43 = vunpack.i.h.bf16 %v6152_v49  ;;  %v6153_v58 = vunpack.i.l.bf16 %v6152_v49  ;;  %v4354_v49 = vmul.f32 64.0, %v6434_v9 }
 0xd0b   : > { %v4167_v34 = vsel %vm4153_vm7, %v4150_v50, %v6154_v43  ;;  %v4166_v39 = vsel %vm4153_vm7, %v4149_v15, %v6153_v58  ;;  %v4355_v43 = vsub.f32 1.0, %v4354_v49 }
 0xd0c   : > { %v4176_v30 = vpack.c.bf16 %v4167_v34, %v4166_v39 }
 0xd0d   : > { %v4247_v37 = vpop.f32.mrf.mxu2  ;;  %v4356_v58 = vmul.f32 %v6434_v9, %v4355_v43  ;;  %v6543_v43 = vld [vmem:[#allocation2 + $0x60] sm:$0xff] }
 0xd0e   : > { %v4248_v11 = vadd.f32 %v8773_v4, %v4247_v37  ;;  %5832 = vmatmul.msk.bf16.gmra.mxu2 %vm1236_vm0, %v4176_v30 }
 0xd0f   : > { %v4357_v15 = vadd.f32 %v6434_v9, %v4356_v58 }
 0xd10   : > { %v8779_v7 = vadd.f32 %v6531_v2, %v4248_v11 }
 0xd11   : > { %v8822_v34 = vsel %vm4358_vm8, %v6434_v9, %v4357_v15 }
 0xd12   : > { %v4305_v23 = vsel %vm1236_vm0, %v8779_v7, 0.0 }
 0xd13   : > { %4306 = vadd.xlane.f32.xlu1 %v4305_v23 }
 0xd15   : > { %v4249_v24 = vpop.f32.mrf.mxu2 }
 0xd16   : > { %v4250_v48 = vadd.f32 %v8773_v4, %v4249_v24 }
 0xd18   : > { %v8784_v3 = vadd.f32 %v6532_v63, %v4250_v48 }
 0xd1a   : > { %v4308_v44 = vsel %vm1236_vm0, %v8784_v3, 0.0 }
 0xd1b   : > { %4309 = vadd.xlane.f32.xlu2 %v4308_v44  ;;  %v6538_v44 = vld [vmem:[#allocation2 + $0x38] sm:$0xff] }
 0xd1d   : > { %v4252_v61 = vpop.f32.mrf.mxu2 }
 0xd1e   : > { %v4253_v36 = vadd.f32 %v8773_v4, %v4252_v61 }
 0xd20   : > { %v8789_v18 = vadd.f32 %v6533_v28, %v4253_v36 }
 0xd22   : > { %v4311_v26 = vsel %vm1236_vm0, %v8789_v18, 0.0 }
 0xd23   : > { %4312 = vadd.xlane.f32.xlu0 %v4311_v26 }
 0xd25   : > { %v4254_v8 = vpop.f32.mrf.mxu2 }
 0xd26   : > { %v4255_v52 = vadd.f32 %v8773_v4, %v4254_v8 }
 0xd28   : > { %v8794_v16 = vadd.f32 %v6534_v21, %v4255_v52 }
 0xd2a   : > { %v4314_v38 = vsel %vm1236_vm0, %v8794_v16, 0.0 }
 0xd2b   : > { %4315 = vadd.xlane.f32.xlu1 %v4314_v38 }
 0xd3d   : > { %v6167_v45 = vpop.permute.xlu0 %6166 }
 0xd3e   : > { %v6169_v22 = vunpack.i.h.bf16 %v6167_v45  ;;  %v6168_v51 = vunpack.i.l.bf16 %v6167_v45  ;;  %v4257_v10 = vpop.f32.mrf.mxu2 }
 0xd3f   : > { %v4258_v19 = vadd.f32 %v8773_v4, %v4257_v10 }
 0xd40   : > { %v4169_v41 = vsel %vm4153_vm7, %v4152_v40, %v6169_v22  ;;  %v4168_v60 = vsel %vm4153_vm7, %v4151_v31, %v6168_v51  ;;  %v6541_v40 = vld [vmem:[#allocation2 + $0x50] sm:$0xff] }
 0xd41   : > { %v4177_v6 = vpack.c.bf16 %v4169_v41, %v4168_v60  ;;  %v8807_v29 = vadd.f32 %v6535_v42, %v4258_v19 }
 0xd43   : > { %5833 = vmatmul.msk.bf16.gmra.mxu2 %vm1236_vm0, %v4177_v6  ;;  %v4317_v32 = vsel %vm1236_vm0, %v8807_v29, 0.0 }
 0xd44   : > { %4318 = vadd.xlane.f32.xlu2 %v4317_v32 }
 0xd46   : > { %v4259_v59 = vpop.f32.mrf.mxu2 }
 0xd47   : > { %v4260_v46 = vadd.f32 %v8773_v4, %v4259_v59 }
 0xd49   : > { %v8813_v54 = vadd.f32 %v6536_v13, %v4260_v46 }
 0xd4b   : > { %v4320_v0 = vsel %vm1236_vm0, %v8813_v54, 0.0 }
 0xd4c   : > { %4321 = vadd.xlane.f32.xlu0 %v4320_v0 }
 0xd52   : > { %v4262_v20 = vpop.f32.mrf.mxu2 }
 0xd53   : > { %v4263_v53 = vadd.f32 %v8773_v4, %v4262_v20  ;;  %v6542_v20 = vld [vmem:[#allocation2 + $0x58] sm:$0xff] }
 0xd55   : > { %v8818_v33 = vadd.f32 %v6537_v47, %v4263_v53 }
 0xd57   : > { %v4323_v25 = vsel %vm1236_vm0, %v8818_v33, 0.0 }
 0xd58   : > { %4324 = vadd.xlane.f32.xlu0 %v4323_v25 }
 0xd5a   : > { %v4264_v50 = vpop.f32.mrf.mxu2 }
 0xd5b   : > { %v4265_v2 = vadd.f32 %v8773_v4, %v4264_v50 }
 0xd5d   : > { %v8833_v61 = vadd.f32 %v6538_v44, %v4265_v2 }
 0xd5f   : > { %v4326_v8 = vsel %vm1236_vm0, %v8833_v61, 0.0 }
 0xd62   : > { %v4267_v24 = vpop.f32.mrf.mxu2 }
 0xd63   : > { %v4268_v28 = vadd.f32 %v8773_v4, %v4267_v24  ;;  %v6544_v24 = vld [vmem:[#allocation2 + $0x68] sm:$0xff] }
 0xd65   : > { %v8845_v14 = vadd.f32 %v6539_v62, %v4268_v28 }
 0xd67   : > { %v4329_v17 = vsel %vm1236_vm0, %v8845_v14, 0.0 }
 0xd6a   : > { %v4269_v38 = vpop.f32.mrf.mxu2 }
 0xd6b   : > { %v4270_v35 = vadd.f32 %v8773_v4, %v4269_v38 }
 0xd6d   : > { %v8857_v5 = vadd.f32 %v6540_v12, %v4270_v35  ;;  %v5909_v35 = vld [vmem:[%s9751_s16] sm:$0xff] }
 0xd6f   : > { %v4332_v10 = vsel %vm1236_vm0, %v8857_v5, 0.0 }
 0xd72   : > { %v4272_v45 = vpop.f32.mrf.mxu2 }
 0xd73   : > { %v4273_v51 = vadd.f32 %v8773_v4, %v4272_v45 }
 0xd75   : > { %v8868_v19 = vadd.f32 %v6541_v40, %v4273_v51 }
 0xd7a   : > { %v4274_v42 = vpop.f32.mrf.mxu2 }
 0xd7b   : > { %v4275_v59 = vadd.f32 %v8773_v4, %v4274_v42 }
 0xd7d   : > { %v8881_v53 = vadd.f32 %v6542_v20, %v4275_v59 }
 0xd7f   : > { %v4338_v49 = vsel %vm1236_vm0, %v8881_v53, 0.0 }
 0xd86   : > { %v4307_v39 = vpop.xlane.xlu1 %4306 }
 0xd87   : > { %v4360_v30 = vmul.f32 %v8822_v34, %v4307_v39 }
 0xd89   : > { %v8826_v37 = vsub.f32 %v8779_v7, %v4360_v30 }
 0xd8b   : > { %v4392_v11 = vmul.f32 %v8826_v37, %v8826_v37 }
 0xd8d   : > { %v4408_v23 = vsel %vm1236_vm0, %v4392_v11, 0.0 }
 0xd8e   : > { %v4310_v48 = vpop.xlane.xlu2 %4309  ;;  %4409 = vadd.xlane.f32.xlu1 %v4408_v23 }
 0xd8f   : > { %v4361_v63 = vmul.f32 %v8822_v34, %v4310_v48 }
 0xd91   : > { %v8836_v36 = vsub.f32 %v8784_v3, %v4361_v63 }
 0xd93   : > { %v4393_v7 = vmul.f32 %v8836_v36, %v8836_v36 }
 0xd95   : > { %v4411_v26 = vsel %vm1236_vm0, %v4393_v7, 0.0  ;;  %v6545_v7 = vld [vmem:[#allocation2 + $0x70] sm:$0xff] }
 0xd96   : > { %v4313_v52 = vpop.xlane.xlu0 %4312  ;;  %4412 = vadd.xlane.f32.xlu2 %v4411_v26  ;;  %4327 = vadd.xlane.f32.xlu1 %v4326_v8  ;;  %v5912_v8 = vld [vmem:[%s9751_s16 + $0x18] sm:$0xff] }
 0xd97   : > { %v4362_v21 = vmul.f32 %v8822_v34, %v4313_v52  ;;  %4774 = vmatpush.bf16.msrb.mxu3 %v5912_v8  ;;  %v5911_v52 = vld [vmem:[%s9751_s16 + $0x10] sm:$0xff] }
 0xd99   : > { %v8848_v3 = vsub.f32 %v8789_v18, %v4362_v21  ;;  %v5910_v21 = vld [vmem:[%s9751_s16 + $0x8] sm:$0xff] }
 0xd9b   : > { %v4394_v55 = vmul.f32 %v8848_v3, %v8848_v3  ;;  %4775 = vmatpush.bf16.msrb.mxu3 %v5911_v52 }
 0xd9d   : > { %v4414_v1 = vsel %vm1236_vm0, %v4394_v55, 0.0 }
 0xd9e   : > { %4415 = vadd.xlane.f32.xlu2 %v4414_v1  ;;  %4330 = vadd.xlane.f32.xlu1 %v4329_v17  ;;  %v4316_v56 = vpop.xlane.xlu1 %4315 }
 0xd9f   : > { %v4363_v27 = vmul.f32 %v8822_v34, %v4316_v56  ;;  %4776 = vmatpush.bf16.msrb.mxu3 %v5910_v21 }
 0xda1   : > { %v8860_v18 = vsub.f32 %v8794_v16, %v4363_v27  ;;  %v4335_v16 = vsel %vm1236_vm0, %v8868_v19, 0.0 }
 0xda3   : > { %v4395_v22 = vmul.f32 %v8860_v18, %v8860_v18  ;;  %4777 = vmatpush.bf16.msrb.mxu3 %v5909_v35 }
 0xda5   : > { %v4417_v31 = vsel %vm1236_vm0, %v4395_v22, 0.0 }
 0xda6   : > { %4333 = vadd.xlane.f32.xlu2 %v4332_v10  ;;  %4418 = vadd.xlane.f32.xlu0 %v4417_v31 }
 0xdae   : > { %4336 = vadd.xlane.f32.xlu2 %v4335_v16 }
 0xdb7   : > { %v4319_v41 = vpop.xlane.xlu2 %4318 }
 0xdb8   : > { %v4364_v60 = vmul.f32 %v8822_v34, %v4319_v41 }
 0xdba   : > { %v8874_v6 = vsub.f32 %v8807_v29, %v4364_v60  ;;  %v4277_v29 = vpop.f32.mrf.mxu2 }
 0xdbb   : > { %v4278_v57 = vadd.f32 %v8773_v4, %v4277_v29 }
 0xdbc   : > { %v4396_v32 = vmul.f32 %v8874_v6, %v8874_v6 }
 0xdbd   : > { %v8892_v58 = vadd.f32 %v6543_v43, %v4278_v57 }
 0xdbe   : > { %v4420_v46 = vsel %vm1236_vm0, %v4396_v32, 0.0 }
 0xdbf   : > { %v4322_v13 = vpop.xlane.xlu0 %4321  ;;  %4421 = vadd.xlane.f32.xlu0 %v4420_v46  ;;  %v4341_v39 = vsel %vm1236_vm0, %v8892_v58, 0.0 }
 0xdc0   : > { %v4365_v0 = vmul.f32 %v8822_v34, %v4322_v13 }
 0xdc2   : > { %v8884_v47 = vsub.f32 %v8813_v54, %v4365_v0  ;;  %v4279_v30 = vpop.f32.mrf.mxu2 }
 0xdc3   : > { %v4280_v2 = vadd.f32 %v8773_v4, %v4279_v30 }
 0xdc4   : > { %v4397_v25 = vmul.f32 %v8884_v47, %v8884_v47 }
 0xdc5   : > { %v8904_v48 = vadd.f32 %v6544_v24, %v4280_v2 }
 0xdc6   : > { %v4423_v9 = vsel %vm1236_vm0, %v4397_v25, 0.0 }
 0xdc7   : > { %4424 = vadd.xlane.f32.xlu1 %v4423_v9  ;;  %4339 = vadd.xlane.f32.xlu0 %v4338_v49  ;;  %v4344_v44 = vsel %vm1236_vm0, %v8904_v48, 0.0 }
 0xdcb   : > { %v4325_v15 = vpop.xlane.xlu0 %4324 }
 0xdcc   : > { %v4366_v54 = vmul.f32 %v8822_v34, %v4325_v15 }
 0xdce   : > { %v8896_v50 = vsub.f32 %v8818_v33, %v4366_v54  ;;  %v4282_v33 = vpop.f32.mrf.mxu2 }
 0xdcf   : > { %4342 = vadd.xlane.f32.xlu0 %v4341_v39  ;;  %v4283_v63 = vadd.f32 %v8773_v4, %v4282_v33 }
 0xdd0   : > { %v4398_v11 = vmul.f32 %v8896_v50, %v8896_v50 }
 0xdd1   : > { %v8909_v28 = vadd.f32 %v6545_v7, %v4283_v63 }
 0xdd2   : > { %v4426_v23 = vsel %vm1236_vm0, %v4398_v11, 0.0 }
 0xdd3   : > { %4427 = vadd.xlane.f32.xlu1 %v4426_v23  ;;  %v4347_v26 = vsel %vm1236_vm0, %v8909_v28, 0.0  ;;  %v6546_v23 = vld [vmem:[#allocation2 + $0x78] sm:$0xff] }
 0xdd6   : > { %v4284_v0 = vpop.f32.mrf.mxu2 }
 0xdd7   : > { %v4285_v9 = vadd.f32 %v8773_v4, %v4284_v0  ;;  %v8944_v4 = vld [vmem:[%s9752_s18] ss:$0 sm:$0xff] }
 0xdd9   : > { %v8937_v24 = vadd.f32 %v6546_v23, %v4285_v9 }
 0xddb   : > { %4345 = vadd.xlane.f32.xlu1 %v4344_v44 }
 0xde3   : > { %4348 = vadd.xlane.f32.xlu1 %v4347_v26 }
 0xe01   : > { %v4410_v38 = vpop.xlane.xlu1 %4409 }
 0xe02   : > { %v4456_v62 = vmul.f32 %v4410_v38, %v8822_v34  ;;  %v8957_v38 = vld [vmem:[%s686_s19] ss:$0 sm:$0xff] }
 0xe04   : > { %v4472_v55 = vadd.f32 1e-12, %v4456_v62 }
 0xe06   : > { %6435 = vrsqrt.f32 %v4472_v55  ;;  %vm4494_vm10 = vweird.f32 %v4472_v55 }
 0xe09   : > { %v4413_v1 = vpop.xlane.xlu2 %4412  ;;  %v4328_v17 = vpop.xlane.xlu1 %4327 }
 0xe0a   : > { %v4457_v56 = vmul.f32 %v4413_v1, %v8822_v34  ;;  %v4367_v27 = vmul.f32 %v8822_v34, %v4328_v17 }
 0xe0c   : > { %v6436_v12 = vpop.eup %6435  ;;  %v4473_v45 = vadd.f32 1e-12, %v4457_v56  ;;  %v8921_v22 = vsub.f32 %v8833_v61, %v4367_v27 }
 0xe0d   : > { %v4489_v51 = vmul.f32 %v6436_v12, %v4472_v55  ;;  %vm4495_vm9 = vweird.f32 %v6436_v12  ;;  %v4350_v55 = vsel %vm1236_vm0, %v8937_v24, 0.0 }
 0xe0e   : > { %6437 = vrsqrt.f32 %v4473_v45  ;;  %v4399_v10 = vmul.f32 %v8921_v22, %v8921_v22  ;;  %vm4496_vm11 = vmor %vm4494_vm10, %vm4495_vm9  ;;  %vm4504_vm13 = vweird.f32 %v4473_v45 }
 0xe0f   : > { %v4490_v31 = vmul.f32 %v6436_v12, %v4489_v51 }
 0xe10   : > { %v4429_v40 = vsel %vm1236_vm0, %v4399_v10, 0.0 }
 0xe11   : > { %v4491_v16 = vmul.f32 0.5, %v4490_v31  ;;  %v4416_v41 = vpop.xlane.xlu2 %4415  ;;  %4430 = vadd.xlane.f32.xlu2 %v4429_v40  ;;  %v4331_v60 = vpop.xlane.xlu1 %4330 }
 0xe12   : > { %v4458_v42 = vmul.f32 %v4416_v41, %v8822_v34  ;;  %v4368_v32 = vmul.f32 %v8822_v34, %v4331_v60 }
 0xe13   : > { %v4492_v59 = vsub.f32 1.5, %v4491_v16 }
 0xe14   : > { %v6438_v46 = vpop.eup %6437  ;;  %v4474_v61 = vadd.f32 1e-12, %v4458_v42  ;;  %v8929_v13 = vsub.f32 %v8845_v14, %v4368_v32 }
 0xe15   : > { %v4493_v20 = vmul.f32 %v6436_v12, %v4492_v59  ;;  %v4499_v29 = vmul.f32 %v6438_v46, %v4473_v45  ;;  %vm4505_vm12 = vweird.f32 %v6438_v46 }
 0xe16   : > { %6439 = vrsqrt.f32 %v4474_v61  ;;  %v4400_v25 = vmul.f32 %v8929_v13, %v8929_v13  ;;  %vm4506_vm14 = vmor %vm4504_vm13, %vm4505_vm12  ;;  %vm4514_vm1 = vweird.f32 %v4474_v61 }
 0xe17   : > { %v4500_v57 = vmul.f32 %v6438_v46, %v4499_v29  ;;  %v4497_v43 = vsel %vm4496_vm11, %v6436_v12, %v4493_v20 }
 0xe18   : > { %v4432_v49 = vsel %vm1236_vm0, %v4400_v25, 0.0  ;;  %v4648_v33 = vmul.f32 %v4497_v43, %v8826_v37 }
 0xe19   : > { %v4501_v15 = vmul.f32 0.5, %v4500_v57  ;;  %v4334_v14 = vpop.xlane.xlu2 %4333  ;;  %v4419_v54 = vpop.xlane.xlu0 %4418  ;;  %4433 = vadd.xlane.f32.xlu2 %v4432_v49 }
 0xe1a   : > { %v4369_v39 = vmul.f32 %v8822_v34, %v4334_v14  ;;  %v4459_v30 = vmul.f32 %v4419_v54, %v8822_v34  ;;  %v4667_v37 = vmul.f32 %v8944_v4, %v4648_v33 }
 0xe1b   : > { %v4502_v11 = vsub.f32 1.5, %v4501_v15 }
 0xe1c   : > { %v6440_v2 = vpop.eup %6439  ;;  %v8948_v63 = vsub.f32 %v8857_v5, %v4369_v39  ;;  %v4475_v44 = vadd.f32 1e-12, %v4459_v30  ;;  %v8967_v45 = vadd.f32 %v8957_v38, %v4667_v37 }
 0xe1d   : > { %v4503_v7 = vmul.f32 %v6438_v46, %v4502_v11  ;;  %v4509_v26 = vmul.f32 %v6440_v2, %v4474_v61  ;;  %vm4515_vm15 = vweird.f32 %v6440_v2 }
 0xe1e   : > { %6441 = vrsqrt.f32 %v4475_v44  ;;  %v4401_v8 = vmul.f32 %v8948_v63, %v8948_v63  ;;  %vm4516_vm2 = vmor %vm4514_vm1, %vm4515_vm15  ;;  %vm4524_vm4 = vweird.f32 %v4475_v44 }
 0xe1f   : > { %v4507_v52 = vsel %vm4506_vm14, %v6438_v46, %v4503_v7  ;;  %v4510_v21 = vmul.f32 %v6440_v2, %v4509_v26 }
 0xe20   : > { %v4649_v5 = vmul.f32 %v4507_v52, %v8836_v36  ;;  %v4435_v62 = vsel %vm1236_vm0, %v4401_v8, 0.0 }
 0xe21   : > { %v4511_v35 = vmul.f32 0.5, %v4510_v21  ;;  %v4337_v1 = vpop.xlane.xlu2 %4336  ;;  %4436 = vadd.xlane.f32.xlu0 %v4435_v62  ;;  %4351 = vadd.xlane.f32.xlu2 %v4350_v55 }
 0xe22   : > { %v4668_v17 = vmul.f32 %v8944_v4, %v4649_v5  ;;  %v4370_v56 = vmul.f32 %v8822_v34, %v4337_v1 }
 0xe23   : > { %v4512_v27 = vsub.f32 1.5, %v4511_v35 }
 0xe24   : > { %v6442_v12 = vpop.eup %6441  ;;  %v8970_v36 = vadd.f32 %v8957_v38, %v4668_v17  ;;  %v8973_v51 = vsub.f32 %v8868_v19, %v4370_v56 }
 0xe25   : > { %v4513_v10 = vmul.f32 %v6440_v2, %v4512_v27  ;;  %v4519_v31 = vmul.f32 %v6442_v12, %v4475_v44  ;;  %vm4525_vm3 = vweird.f32 %v6442_v12 }
 0xe26   : > { %v4702_v40 = vpack.c.bf16 %v8970_v36, %v8967_v45  ;;  %v4402_v16 = vmul.f32 %v8973_v51, %v8973_v51  ;;  %vm4526_vm5 = vmor %vm4524_vm4, %vm4525_vm3 }
 0xe27   : > { %v4520_v41 = vmul.f32 %v6442_v12, %v4519_v31  ;;  %v4517_v42 = vsel %vm4516_vm2, %v6440_v2, %v4513_v10 }
 0xe28   : > { %5850 = vmatmul.msk.bf16.vlgmr.msrb.gmra.mxu3 %vm1236_vm0, %v4702_v40  ;;  %v4438_v60 = vsel %vm1236_vm0, %v4402_v16, 0.0  ;;  %v4650_v59 = vmul.f32 %v4517_v42, %v8848_v3 }
 0xe29   : > { %v4521_v32 = vmul.f32 0.5, %v4520_v41  ;;  %4439 = vadd.xlane.f32.xlu0 %v4438_v60 }
 0xe2a   : > { %v4669_v61 = vmul.f32 %v8944_v4, %v4650_v59 }
 0xe2b   : > { %v4522_v19 = vsub.f32 1.5, %v4521_v32 }
 0xe2c   : > { %v8987_v9 = vadd.f32 %v8957_v38, %v4669_v61 }
 0xe2d   : > { %v4523_v46 = vmul.f32 %v6442_v12, %v4522_v19 }
 0xe2f   : > { %v4527_v0 = vsel %vm4526_vm5, %v6442_v12, %v4523_v46 }
 0xe30   : > { %v4651_v20 = vmul.f32 %v4527_v0, %v8860_v18 }
 0xe32   : > { %v4422_v29 = vpop.xlane.xlu0 %4421  ;;  %v4670_v25 = vmul.f32 %v8944_v4, %v4651_v20 }
 0xe33   : > { %v4460_v57 = vmul.f32 %v4422_v29, %v8822_v34 }
 0xe34   : > { %v8990_v49 = vadd.f32 %v8957_v38, %v4670_v25 }
 0xe35   : > { %v4476_v3 = vadd.f32 1e-12, %v4460_v57 }
 0xe36   : > { %v4703_v43 = vpack.c.bf16 %v8990_v49, %v8987_v9 }
 0xe37   : > { %6443 = vrsqrt.f32 %v4476_v3  ;;  %vm4534_vm7 = vweird.f32 %v4476_v3 }
 0xe38   : > { %5851 = vmatmul.msk.bf16.gmra.mxu3 %vm1236_vm0, %v4703_v43 }
 0xe3a   : > { %v4340_v18 = vpop.xlane.xlu0 %4339  ;;  %v4425_v15 = vpop.xlane.xlu1 %4424 }
 0xe3b   : > { %v4371_v14 = vmul.f32 %v8822_v34, %v4340_v18  ;;  %v4461_v54 = vmul.f32 %v4425_v15, %v8822_v34 }
 0xe3d   : > { %v6444_v39 = vpop.eup %6443  ;;  %v8998_v30 = vsub.f32 %v8881_v53, %v4371_v14  ;;  %v4477_v11 = vadd.f32 1e-12, %v4461_v54 }
 0xe3e   : > { %v4529_v2 = vmul.f32 %v6444_v39, %v4476_v3  ;;  %vm4535_vm6 = vweird.f32 %v6444_v39 }
 0xe3f   : > { %6445 = vrsqrt.f32 %v4477_v11  ;;  %v4403_v23 = vmul.f32 %v8998_v30, %v8998_v30  ;;  %vm4536_vm8 = vmor %vm4534_vm7, %vm4535_vm6  ;;  %vm4544_vm10 = vweird.f32 %v4477_v11 }
 0xe40   : > { %v4530_v33 = vmul.f32 %v6444_v39, %v4529_v2 }
 0xe41   : > { %v4441_v44 = vsel %vm1236_vm0, %v4403_v23, 0.0 }
 0xe42   : > { %v4531_v7 = vmul.f32 0.5, %v4530_v33  ;;  %4442 = vadd.xlane.f32.xlu1 %v4441_v44  ;;  %v4343_v26 = vpop.xlane.xlu0 %4342  ;;  %v5920_v33 = vld [vmem:[%s6826_s21 + $0x38] sm:$0xff] }
 0xe43   : > { %v4372_v8 = vmul.f32 %v8822_v34, %v4343_v26  ;;  %5039 = vmatpush.bf16.msrb.mxu0 %v5920_v33 }
 0xe44   : > { %v4532_v52 = vsub.f32 1.5, %v4531_v7 }
 0xe45   : > { %v6446_v21 = vpop.eup %6445  ;;  %v9005_v37 = vsub.f32 %v8892_v58, %v4372_v8  ;;  %v5919_v8 = vld [vmem:[%s6826_s21 + $0x30] sm:$0xff] }
 0xe46   : > { %v4533_v53 = vmul.f32 %v6444_v39, %v4532_v52  ;;  %v4539_v5 = vmul.f32 %v6446_v21, %v4477_v11  ;;  %v4428_v62 = vpop.xlane.xlu1 %4427  ;;  %vm4545_vm9 = vweird.f32 %v6446_v21 }
 0xe47   : > { %v4404_v55 = vmul.f32 %v9005_v37, %v9005_v37  ;;  %vm4546_vm11 = vmor %vm4544_vm10, %vm4545_vm9  ;;  %v4462_v29 = vmul.f32 %v4428_v62, %v8822_v34  ;;  %5040 = vmatpush.bf16.msrb.mxu0 %v5919_v8 }
 0xe48   : > { %v4540_v35 = vmul.f32 %v6446_v21, %v4539_v5  ;;  %v4537_v17 = vsel %vm4536_vm8, %v6444_v39, %v4533_v53 }
 0xe49   : > { %v4444_v1 = vsel %vm1236_vm0, %v4404_v55, 0.0  ;;  %v4652_v58 = vmul.f32 %v4537_v17, %v8874_v6  ;;  %v4478_v25 = vadd.f32 1e-12, %v4462_v29 }
 0xe4a   : > { %v4541_v56 = vmul.f32 0.5, %v4540_v35  ;;  %4445 = vadd.xlane.f32.xlu2 %v4444_v1 }
 0xe4b   : > { %v4671_v60 = vmul.f32 %v8944_v4, %v4652_v58  ;;  %6447 = vrsqrt.f32 %v4478_v25  ;;  %vm4554_vm13 = vweird.f32 %v4478_v25  ;;  %v5918_v58 = vld [vmem:[%s6826_s21 + $0x28] sm:$0xff] }
 0xe4c   : > { %v4542_v27 = vsub.f32 1.5, %v4541_v56  ;;  %5041 = vmatpush.bf16.msrb.mxu0 %v5918_v58 }
 0xe4d   : > { %v9022_v19 = vadd.f32 %v8957_v38, %v4671_v60 }
 0xe4e   : > { %v4543_v12 = vmul.f32 %v6446_v21, %v4542_v27  ;;  %v4346_v10 = vpop.xlane.xlu1 %4345 }
 0xe4f   : > { %v4373_v31 = vmul.f32 %v8822_v34, %v4346_v10 }
 0xe50   : > { %v4547_v40 = vsel %vm4546_vm11, %v6446_v21, %v4543_v12 }
 0xe51   : > { %v4653_v16 = vmul.f32 %v4547_v40, %v8884_v47  ;;  %v9014_v41 = vsub.f32 %v8904_v48, %v4373_v31  ;;  %v6448_v57 = vpop.eup %6447 }
 0xe52   : > { %v4549_v3 = vmul.f32 %v6448_v57, %v4478_v25  ;;  %vm4555_vm12 = vweird.f32 %v6448_v57 }
 0xe53   : > { %v4405_v42 = vmul.f32 %v9014_v41, %v9014_v41  ;;  %v4672_v32 = vmul.f32 %v8944_v4, %v4653_v16  ;;  %vm4556_vm14 = vmor %vm4554_vm13, %vm4555_vm12 }
 0xe54   : > { %v4550_v43 = vmul.f32 %v6448_v57, %v4549_v3 }
 0xe55   : > { %v4447_v6 = vsel %vm1236_vm0, %v4405_v42, 0.0  ;;  %v9025_v59 = vadd.f32 %v8957_v38, %v4672_v32  ;;  %v5917_v42 = vld [vmem:[%s6826_s21 + $0x20] sm:$0xff] }
 0xe56   : > { %4448 = vadd.xlane.f32.xlu0 %v4447_v6  ;;  %v4349_v47 = vpop.xlane.xlu1 %4348  ;;  %v4551_v14 = vmul.f32 0.5, %v4550_v43  ;;  %5042 = vmatpush.bf16.msrb.mxu0 %v5917_v42 }
 0xe57   : > { %v4374_v48 = vmul.f32 %v8822_v34, %v4349_v47  ;;  %v4704_v46 = vpack.c.bf16 %v9025_v59, %v9022_v19 }
 0xe58   : > { %v4552_v54 = vsub.f32 1.5, %v4551_v14 }
 0xe59   : > { %v9031_v0 = vsub.f32 %v8909_v28, %v4374_v48  ;;  %5852 = vmatmul.msk.bf16.gmra.mxu3 %vm1236_vm0, %v4704_v46 }
 0xe5a   : > { %v4553_v44 = vmul.f32 %v6448_v57, %v4552_v54 }
 0xe5b   : > { %v4406_v20 = vmul.f32 %v9031_v0, %v9031_v0 }
 0xe5c   : > { %v4557_v52 = vsel %vm4556_vm14, %v6448_v57, %v4553_v44 }
 0xe5d   : > { %v4450_v61 = vsel %vm1236_vm0, %v4406_v20, 0.0  ;;  %v4654_v17 = vmul.f32 %v4557_v52, %v8896_v50 }
 0xe5e   : > { %4451 = vadd.xlane.f32.xlu1 %v4450_v61 }
 0xe84   : > { %v4431_v18 = vpop.xlane.xlu2 %4430 }
 0xe85   : > { %v4463_v28 = vmul.f32 %v4431_v18, %v8822_v34  ;;  %v5915_v18 = vld [vmem:[%s6826_s21 + $0x10] sm:$0xff] }
 0xe87   : > { %v4479_v15 = vadd.f32 1e-12, %v4463_v28 }
 0xe89   : > { %6449 = vrsqrt.f32 %v4479_v15  ;;  %vm4564_vm1 = vweird.f32 %v4479_v15 }
 0xe8c   : > { %v4434_v39 = vpop.xlane.xlu2 %4433 }
 0xe8d   : > { %v4464_v11 = vmul.f32 %v4434_v39, %v8822_v34 }
 0xe8f   : > { %v6450_v2 = vpop.eup %6449  ;;  %v4480_v23 = vadd.f32 1e-12, %v4464_v11  ;;  %v5914_v11 = vld [vmem:[%s6826_s21 + $0x8] sm:$0xff] }
 0xe90   : > { %v4559_v7 = vmul.f32 %v6450_v2, %v4479_v15  ;;  %vm4565_vm15 = vweird.f32 %v6450_v2 }
 0xe91   : > { %6451 = vrsqrt.f32 %v4480_v23  ;;  %vm4566_vm2 = vmor %vm4564_vm1, %vm4565_vm15  ;;  %vm4574_vm4 = vweird.f32 %v4480_v23 }
 0xe92   : > { %v4560_v26 = vmul.f32 %v6450_v2, %v4559_v7 }
 0xe94   : > { %v4561_v21 = vmul.f32 0.5, %v4560_v26  ;;  %v4437_v53 = vpop.xlane.xlu0 %4436  ;;  %v4352_v5 = vpop.xlane.xlu2 %4351 }
 0xe95   : > { %v4465_v62 = vmul.f32 %v4437_v53, %v8822_v34  ;;  %v4375_v55 = vmul.f32 %v8822_v34, %v4352_v5 }
 0xe96   : > { %v4562_v35 = vsub.f32 1.5, %v4561_v21 }
 0xe97   : > { %v6452_v1 = vpop.eup %6451  ;;  %v4481_v56 = vadd.f32 1e-12, %v4465_v62  ;;  %v9046_v27 = vsub.f32 %v8937_v24, %v4375_v55  ;;  %v4673_v24 = vmul.f32 %v8944_v4, %v4654_v17 }
 0xe98   : > { %v4563_v12 = vmul.f32 %v6450_v2, %v4562_v35  ;;  %v4569_v10 = vmul.f32 %v6452_v1, %v4480_v23  ;;  %vm4575_vm3 = vweird.f32 %v6452_v1  ;;  %v9078_v23 = vld [vmem:[%s689_s5] ss:$0 sm:$0xff] }
 0xe99   : > { %6453 = vrsqrt.f32 %v4481_v56  ;;  %v4407_v31 = vmul.f32 %v9046_v27, %v9046_v27  ;;  %v9057_v20 = vadd.f32 %v8957_v38, %v4673_v24  ;;  %vm4576_vm5 = vmor %vm4574_vm4, %vm4575_vm3  ;;  %vm4584_vm7 = vweird.f32 %v4481_v56 }
 0xe9a   : > { %v4567_v40 = vsel %vm4566_vm2, %v6450_v2, %v4563_v12  ;;  %v4570_v16 = vmul.f32 %v6452_v1, %v4569_v10 }
 0xe9b   : > { %v4655_v50 = vmul.f32 %v4567_v40, %v8921_v22  ;;  %v4453_v60 = vsel %vm1236_vm0, %v4407_v31, 0.0  ;;  %v5916_v22 = vld [vmem:[%s6826_s21 + $0x18] sm:$0xff] }
 0xe9c   : > { %v4571_v32 = vmul.f32 0.5, %v4570_v16  ;;  %4454 = vadd.xlane.f32.xlu2 %v4453_v60  ;;  %v4440_v6 = vpop.xlane.xlu0 %4439  ;;  %5043 = vmatpush.bf16.msrb.mxu0 %v5916_v22 }
 0xe9d   : > { %v4674_v47 = vmul.f32 %v8944_v4, %v4655_v50  ;;  %v4466_v57 = vmul.f32 %v4440_v6, %v8822_v34 }
 0xe9e   : > { %v4572_v48 = vsub.f32 1.5, %v4571_v32 }
 0xe9f   : > { %v6454_v46 = vpop.eup %6453  ;;  %v9060_v61 = vadd.f32 %v8957_v38, %v4674_v47  ;;  %v9068_v14 = vadd.f32 1e-12, %v4466_v57 }
 0xea0   : > { %v4573_v29 = vmul.f32 %v6452_v1, %v4572_v48  ;;  %v4579_v25 = vmul.f32 %v6454_v46, %v4481_v56  ;;  %5044 = vmatpush.bf16.msrb.mxu0 %v5915_v18  ;;  %vm4585_vm6 = vweird.f32 %v6454_v46 }
 0xea1   : > { %v4705_v3 = vpack.c.bf16 %v9060_v61, %v9057_v20  ;;  %6455 = vrsqrt.f32 %v9068_v14  ;;  %vm4586_vm8 = vmor %vm4584_vm7, %vm4585_vm6  ;;  %vm4594_vm10 = vweird.f32 %v9068_v14 }
 0xea2   : > { %v4580_v43 = vmul.f32 %v6454_v46, %v4579_v25  ;;  %v4577_v28 = vsel %vm4576_vm5, %v6452_v1, %v4573_v29 }
 0xea3   : > { %5853 = vmatmul.msk.bf16.gmra.mxu3 %vm1236_vm0, %v4705_v3  ;;  %v4656_v39 = vmul.f32 %v4577_v28, %v8929_v13  ;;  %v5913_v13 = vld [vmem:[%s6826_s21] sm:$0xff] }
 0xea4   : > { %v4581_v15 = vmul.f32 0.5, %v4580_v43  ;;  %5045 = vmatpush.bf16.msrb.mxu0 %v5914_v11 }
 0xea5   : > { %v4675_v26 = vmul.f32 %v8944_v4, %v4656_v39 }
 0xea6   : > { %v4582_v54 = vsub.f32 1.5, %v4581_v15 }
 0xea7   : > { %v6456_v21 = vpop.eup %6455  ;;  %v9090_v5 = vadd.f32 %v8957_v38, %v4675_v26 }
 0xea8   : > { %v4583_v2 = vmul.f32 %v6454_v46, %v4582_v54  ;;  %5046 = vmatpush.bf16.msrb.mxu0 %v5913_v13  ;;  %v4589_v55 = vmul.f32 %v6456_v21, %v9068_v14  ;;  %vm4595_vm9 = vweird.f32 %v6456_v21 }
 0xea9   : > { %vm4596_vm11 = vmor %vm4594_vm10, %vm4595_vm9 }
 0xeaa   : > { %v4587_v33 = vsel %vm4586_vm8, %v6454_v46, %v4583_v2  ;;  %v4590_v12 = vmul.f32 %v6456_v21, %v4589_v55 }
 0xeab   : > { %v4657_v44 = vmul.f32 %v4587_v33, %v8948_v63  ;;  %v4779_v7 = vpop.f32.mrf.mxu3 }
 0xeac   : > { %v9084_v8 = vadd.f32 %v9078_v23, %v4779_v7  ;;  %v4591_v24 = vmul.f32 0.5, %v4590_v12 }
 0xead   : > { %v4676_v52 = vmul.f32 %v8944_v4, %v4657_v44 }
 0xeae   : > { %v4819_v53 = vmul.f32 %v9084_v8, %v9084_v8  ;;  %v4592_v48 = vsub.f32 1.5, %v4591_v24 }
 0xeaf   : > { %v9093_v62 = vadd.f32 %v8957_v38, %v4676_v52 }
 0xeb0   : > { %v4835_v63 = vmul.f32 %v4819_v53, %v9084_v8  ;;  %v4593_v28 = vmul.f32 %v6456_v21, %v4592_v48 }
 0xeb1   : > { %v4706_v35 = vpack.c.bf16 %v9093_v62, %v9090_v5 }
 0xeb2   : > { %v4851_v1 = vmul.f32 0.044715, %v4835_v63  ;;  %v4597_v7 = vsel %vm4596_vm11, %v6456_v21, %v4593_v28 }
 0xeb3   : > { %v4781_v17 = vpop.f32.mrf.mxu3  ;;  %5854 = vmatmul.msk.bf16.gmra.mxu3 %vm1236_vm0, %v4706_v35 }
 0xeb4   : > { %v4867_v56 = vadd.f32 %v4851_v1, %v9084_v8  ;;  %v4782_v58 = vadd.f32 %v9078_v23, %v4781_v17  ;;  %v4658_v17 = vmul.f32 %v4597_v7, %v8973_v51 }
 0xeb5   : > { %v4443_v10 = vpop.xlane.xlu1 %4442 }
 0xeb6   : > { %v4883_v31 = vmul.f32 0.7978846, %v4867_v56  ;;  %v4820_v40 = vmul.f32 %v4782_v58, %v4782_v58  ;;  %v4467_v16 = vmul.f32 %v4443_v10, %v8822_v34  ;;  %v4677_v48 = vmul.f32 %v8944_v4, %v4658_v17 }
 0xeb8   : > { %v4836_v50 = vmul.f32 %v4820_v40, %v4782_v58  ;;  %v4483_v60 = vadd.f32 1e-12, %v4467_v16  ;;  %6457 = vtanh.f32 %v4883_v31 }
 0xeba   : > { %v4852_v42 = vmul.f32 0.044715, %v4836_v50  ;;  %6459 = vrsqrt.f32 %v4483_v60  ;;  %vm4604_vm13 = vweird.f32 %v4483_v60 }
 0xebb   : > { %v4784_v32 = vpop.f32.mrf.mxu3 }
 0xebc   : > { %v4868_v6 = vadd.f32 %v4852_v42, %v4782_v58  ;;  %v9104_v47 = vadd.f32 %v9078_v23, %v4784_v32 }
 0xebd   : > { %v4446_v46 = vpop.xlane.xlu2 %4445 }
 0xebe   : > { %v4884_v22 = vmul.f32 0.7978846, %v4868_v6  ;;  %v4821_v29 = vmul.f32 %v9104_v47, %v9104_v47  ;;  %v4468_v25 = vmul.f32 %v4446_v46, %v8822_v34  ;;  %v6458_v57 = vpop.eup %6457 }
 0xebf   : > { %v4915_v54 = vadd.f32 1.0, %v6458_v57 }
 0xec0   : > { %v6460_v3 = vpop.eup %6459  ;;  %6461 = vtanh.f32 %v4884_v22  ;;  %v4837_v43 = vmul.f32 %v4821_v29, %v9104_v47  ;;  %v9110_v18 = vadd.f32 1e-12, %v4468_v25  ;;  %v9124_v29 = vadd.f32 %v8957_v38, %v4677_v48 }
 0xec1   : > { %v4599_v15 = vmul.f32 %v6460_v3, %v4483_v60  ;;  %v4931_v52 = vmul.f32 0.5, %v4915_v54  ;;  %vm4605_vm12 = vweird.f32 %v6460_v3 }
 0xec2   : > { %v4853_v39 = vmul.f32 0.044715, %v4837_v43  ;;  %6463 = vrsqrt.f32 %v9110_v18  ;;  %vm4606_vm14 = vmor %vm4604_vm13, %vm4605_vm12  ;;  %vm4614_vm1 = vweird.f32 %v9110_v18 }
 0xec3   : > { %v4600_v11 = vmul.f32 %v6460_v3, %v4599_v15  ;;  %v4786_v2 = vpop.f32.mrf.mxu3  ;;  %v4947_v21 = vmul.f32 %v4931_v52, %v9084_v8 }
 0xec4   : > { %v4869_v33 = vadd.f32 %v4853_v39, %v9104_v47  ;;  %v4787_v44 = vadd.f32 %v9078_v23, %v4786_v2 }
 0xec5   : > { %v4601_v26 = vmul.f32 0.5, %v4600_v11 }
 0xec6   : > { %v6462_v13 = vpop.eup %6461  ;;  %v4822_v53 = vmul.f32 %v4787_v44, %v4787_v44  ;;  %v4885_v35 = vmul.f32 0.7978846, %v4869_v33 }
 0xec7   : > { %v4916_v63 = vadd.f32 1.0, %v6462_v13  ;;  %v4602_v55 = vsub.f32 1.5, %v4601_v26 }
 0xec8   : > { %v6464_v1 = vpop.eup %6463  ;;  %v4838_v14 = vmul.f32 %v4822_v53, %v4787_v44  ;;  %6465 = vtanh.f32 %v4885_v35 }
 0xec9   : > { %v4932_v56 = vmul.f32 0.5, %v4916_v63  ;;  %v4603_v12 = vmul.f32 %v6460_v3, %v4602_v55  ;;  %v4609_v10 = vmul.f32 %v6464_v1, %v9110_v18  ;;  %v4449_v31 = vpop.xlane.xlu0 %4448  ;;  %vm4615_vm15 = vweird.f32 %v6464_v1 }
 0xeca   : > { %v4854_v40 = vmul.f32 0.044715, %v4838_v14  ;;  %v4469_v16 = vmul.f32 %v4449_v31, %v8822_v34  ;;  %vm4616_vm2 = vmor %vm4614_vm1, %vm4615_vm15 }
 0xecb   : > { %v4948_v50 = vmul.f32 %v4932_v56, %v4782_v58  ;;  %v4607_v24 = vsel %vm4606_vm14, %v6460_v3, %v4603_v12  ;;  %v4610_v42 = vmul.f32 %v6464_v1, %v4609_v10 }
 0xecc   : > { %v4659_v32 = vmul.f32 %v4607_v24, %v8998_v30  ;;  %v4870_v51 = vadd.f32 %v4854_v40, %v4787_v44  ;;  %v4485_v6 = vadd.f32 1e-12, %v4469_v16 }
 0xecd   : > { %v4963_v60 = vpack.c.bf16 %v4948_v50, %v4947_v21  ;;  %v4611_v46 = vmul.f32 0.5, %v4610_v42 }
 0xece   : > { %v4886_v22 = vmul.f32 0.7978846, %v4870_v51  ;;  %6467 = vrsqrt.f32 %v4485_v6  ;;  %v4678_v8 = vmul.f32 %v8944_v4, %v4659_v32  ;;  %v6466_v25 = vpop.eup %6465  ;;  %vm4624_vm4 = vweird.f32 %v4485_v6 }
 0xecf   : > { %5047 = vmatmul.bf16.vlgmr.msrb.gmra.mxu0 %v4963_v60  ;;  %v4612_v30 = vsub.f32 1.5, %v4611_v46  ;;  %v4917_v43 = vadd.f32 1.0, %v6466_v25 }
 0xed0   : > { %6469 = vtanh.f32 %v4886_v22  ;;  %v9127_v58 = vadd.f32 %v8957_v38, %v4678_v8 }
 0xed1   : > { %v4613_v28 = vmul.f32 %v6464_v1, %v4612_v30  ;;  %v4933_v2 = vmul.f32 0.5, %v4917_v43  ;;  %v4452_v22 = vpop.xlane.xlu1 %4451 }
 0xed2   : > { %v4707_v57 = vpack.c.bf16 %v9127_v58, %v9124_v29  ;;  %v4470_v30 = vmul.f32 %v4452_v22, %v8822_v34 }
 0xed3   : > { %v4617_v33 = vsel %vm4616_vm2, %v6464_v1, %v4613_v28  ;;  %v4949_v55 = vmul.f32 %v4933_v2, %v9104_v47 }
 0xed4   : > { %v6468_v3 = vpop.eup %6467  ;;  %5855 = vmatmul.msk.bf16.gmra.mxu3 %vm1236_vm0, %v4707_v57  ;;  %v4660_v53 = vmul.f32 %v4617_v33, %v9005_v37  ;;  %v4486_v28 = vadd.f32 1e-12, %v4470_v30 }
 0xed5   : > { %v4619_v15 = vmul.f32 %v6468_v3, %v4485_v6  ;;  %vm4625_vm3 = vweird.f32 %v6468_v3 }
 0xed6   : > { %v6470_v54 = vpop.eup %6469  ;;  %vm4626_vm5 = vmor %vm4624_vm4, %vm4625_vm3  ;;  %v4679_v12 = vmul.f32 %v8944_v4, %v4660_v53  ;;  %vm4634_vm7 = vweird.f32 %v4486_v28 }
 0xed7   : > { %v4620_v39 = vmul.f32 %v6468_v3, %v4619_v15  ;;  %v4918_v11 = vadd.f32 1.0, %v6470_v54 }
 0xed8   : > { %v9140_v47 = vadd.f32 %v8957_v38, %v4679_v12 }
 0xed9   : > { %v4621_v7 = vmul.f32 0.5, %v4620_v39  ;;  %v4934_v26 = vmul.f32 0.5, %v4918_v11 }
 0xedb   : > { %v4622_v13 = vsub.f32 1.5, %v4621_v7  ;;  %v4950_v52 = vmul.f32 %v4934_v26, %v4787_v44 }
 0xedc   : > { %v4789_v63 = vpop.f32.mrf.mxu3 }
 0xedd   : > { %v4623_v35 = vmul.f32 %v6468_v3, %v4622_v13  ;;  %v4790_v17 = vadd.f32 %v9078_v23, %v4789_v63  ;;  %v4964_v18 = vpack.c.bf16 %v4950_v52, %v4949_v55 }
 0xedf   : > { %v4627_v14 = vsel %vm4626_vm5, %v6468_v3, %v4623_v35  ;;  %v4823_v56 = vmul.f32 %v4790_v17, %v4790_v17  ;;  %5052 = vmatmul.bf16.gmra.mxu0 %v4964_v18 }
 0xee0   : > { %v4661_v1 = vmul.f32 %v4627_v14, %v9014_v41 }
 0xee1   : > { %v4839_v10 = vmul.f32 %v4823_v56, %v4790_v17 }
 0xee2   : > { %v4680_v44 = vmul.f32 %v8944_v4, %v4661_v1 }
 0xee3   : > { %v4855_v37 = vmul.f32 0.044715, %v4839_v10 }
 0xee4   : > { %v4791_v31 = vpop.f32.mrf.mxu3  ;;  %v9143_v21 = vadd.f32 %v8957_v38, %v4680_v44 }
 0xee5   : > { %v4871_v40 = vadd.f32 %v4855_v37, %v4790_v17  ;;  %v4792_v16 = vadd.f32 %v9078_v23, %v4791_v31 }
 0xee6   : > { %v4708_v41 = vpack.c.bf16 %v9143_v21, %v9140_v47 }
 0xee7   : > { %v4887_v50 = vmul.f32 0.7978846, %v4871_v40  ;;  %v4824_v24 = vmul.f32 %v4792_v16, %v4792_v16 }
 0xee8   : > { %5856 = vmatmul.msk.bf16.gmra.mxu3 %vm1236_vm0, %v4708_v41 }
 0xee9   : > { %v4840_v42 = vmul.f32 %v4824_v24, %v4792_v16  ;;  %6471 = vtanh.f32 %v4887_v50 }
 0xeeb   : > { %v4856_v32 = vmul.f32 0.044715, %v4840_v42 }
 0xeed   : > { %v4872_v51 = vadd.f32 %v4856_v32, %v4792_v16 }
 0xeef   : > { %v4888_v6 = vmul.f32 0.7978846, %v4872_v51  ;;  %v6472_v48 = vpop.eup %6471 }
 0xef0   : > { %v4919_v60 = vadd.f32 1.0, %v6472_v48 }
 0xef1   : > { %6473 = vtanh.f32 %v4888_v6 }
 0xef2   : > { %v4935_v25 = vmul.f32 0.5, %v4919_v60  ;;  %6475 = vrsqrt.f32 %v4486_v28 }
 0xef4   : > { %v4951_v3 = vmul.f32 %v4935_v25, %v4790_v17 }
 0xef7   : > { %v6474_v46 = vpop.eup %6473 }
 0xef8   : > { %v4920_v8 = vadd.f32 1.0, %v6474_v46  ;;  %v6476_v54 = vpop.eup %6475 }
 0xef9   : > { %v4629_v39 = vmul.f32 %v6476_v54, %v4486_v28  ;;  %vm4635_vm6 = vweird.f32 %v6476_v54 }
 0xefa   : > { %v4936_v57 = vmul.f32 0.5, %v4920_v8  ;;  %vm4636_vm8 = vmor %vm4634_vm7, %vm4635_vm6 }
 0xefb   : > { %v4630_v11 = vmul.f32 %v6476_v54, %v4629_v39 }
 0xefc   : > { %v4952_v43 = vmul.f32 %v4936_v57, %v4792_v16 }
 0xefd   : > { %v4631_v26 = vmul.f32 0.5, %v4630_v11 }
 0xefe   : > { %v4965_v15 = vpack.c.bf16 %v4952_v43, %v4951_v3 }
 0xeff   : > { %v4632_v13 = vsub.f32 1.5, %v4631_v26 }
 0xf00   : > { %5057 = vmatmul.bf16.gmra.mxu0 %v4965_v15 }
 0xf01   : > { %v4633_v53 = vmul.f32 %v6476_v54, %v4632_v13 }
 0xf03   : > { %v4637_v35 = vsel %vm4636_vm8, %v6476_v54, %v4633_v53 }
 0xf04   : > { %v4662_v14 = vmul.f32 %v4637_v35, %v9031_v0 }
 0xf06   : > { %v4681_v44 = vmul.f32 %v8944_v4, %v4662_v14 }
 0xf08   : > { %v9157_v16 = vadd.f32 %v8957_v38, %v4681_v44 }
 0xf0f   : > { %v4455_v2 = vpop.xlane.xlu2 %4454 }
 0xf10   : > { %v4471_v33 = vmul.f32 %v4455_v2, %v8822_v34 }
 0xf12   : > { %v4487_v7 = vadd.f32 1e-12, %v4471_v33 }
 0xf14   : > { %6477 = vrsqrt.f32 %v4487_v7  ;;  %vm4644_vm10 = vweird.f32 %v4487_v7 }
 0xf1a   : > { %v6478_v52 = vpop.eup %6477 }
 0xf1b   : > { %v4639_v63 = vmul.f32 %v6478_v52, %v4487_v7  ;;  %vm4645_vm9 = vweird.f32 %v6478_v52 }
 0xf1c   : > { %vm4646_vm11 = vmor %vm4644_vm10, %vm4645_vm9 }
 0xf1d   : > { %v4640_v55 = vmul.f32 %v6478_v52, %v4639_v63 }
 0xf1f   : > { %v4641_v17 = vmul.f32 0.5, %v4640_v55 }
 0xf21   : > { %v4642_v18 = vsub.f32 1.5, %v4641_v17  ;;  %v9173_v17 = vld [vmem:[%s697_s23] ss:$0 sm:$0xff] }
 0xf23   : > { %v4643_v56 = vmul.f32 %v6478_v52, %v4642_v18 }
 0xf25   : > { %v4647_v1 = vsel %vm4646_vm11, %v6478_v52, %v4643_v56 }
 0xf26   : > { %v4663_v12 = vmul.f32 %v4647_v1, %v9046_v27  ;;  %v4794_v10 = vpop.f32.mrf.mxu3 }
 0xf27   : > { %v4795_v37 = vadd.f32 %v9078_v23, %v4794_v10 }
 0xf28   : > { %v4682_v31 = vmul.f32 %v8944_v4, %v4663_v12 }
 0xf29   : > { %v4825_v40 = vmul.f32 %v4795_v37, %v4795_v37 }
 0xf2a   : > { %v9160_v41 = vadd.f32 %v8957_v38, %v4682_v31 }
 0xf2b   : > { %v4841_v0 = vmul.f32 %v4825_v40, %v4795_v37 }
 0xf2c   : > { %v4709_v50 = vpack.c.bf16 %v9160_v41, %v9157_v16 }
 0xf2d   : > { %v4857_v24 = vmul.f32 0.044715, %v4841_v0 }
 0xf2e   : > { %v4796_v27 = vpop.f32.mrf.mxu3  ;;  %5857 = vmatmul.msk.bf16.gmra.mxu3 %vm1236_vm0, %v4709_v50 }
 0xf2f   : > { %v4873_v42 = vadd.f32 %v4857_v24, %v4795_v37  ;;  %v4797_v32 = vadd.f32 %v9078_v23, %v4796_v27 }
 0xf31   : > { %v4889_v51 = vmul.f32 0.7978846, %v4873_v42  ;;  %v4826_v4 = vmul.f32 %v4797_v32, %v4797_v32 }
 0xf33   : > { %v4842_v6 = vmul.f32 %v4826_v4, %v4797_v32  ;;  %6479 = vtanh.f32 %v4889_v51 }
 0xf35   : > { %v4858_v48 = vmul.f32 0.044715, %v4842_v6 }
 0xf36   : > { %v4799_v60 = vpop.f32.mrf.mxu3 }
 0xf37   : > { %v4874_v46 = vadd.f32 %v4858_v48, %v4797_v32  ;;  %v4800_v38 = vadd.f32 %v9078_v23, %v4799_v60 }
 0xf39   : > { %v4890_v22 = vmul.f32 0.7978846, %v4874_v46  ;;  %v4827_v8 = vmul.f32 %v4800_v38, %v4800_v38  ;;  %v6480_v25 = vpop.eup %6479 }
 0xf3a   : > { %v4921_v43 = vadd.f32 1.0, %v6480_v25 }
 0xf3b   : > { %6481 = vtanh.f32 %v4890_v22  ;;  %v4843_v30 = vmul.f32 %v4827_v8, %v4800_v38 }
 0xf3c   : > { %v4937_v33 = vmul.f32 0.5, %v4921_v43 }
 0xf3d   : > { %v4859_v57 = vmul.f32 0.044715, %v4843_v30 }
 0xf3e   : > { %v4801_v3 = vpop.f32.mrf.mxu3  ;;  %v4953_v52 = vmul.f32 %v4937_v33, %v4795_v37 }
 0xf3f   : > { %v4875_v28 = vadd.f32 %v4859_v57, %v4800_v38  ;;  %v4802_v15 = vadd.f32 %v9078_v23, %v4801_v3 }
 0xf41   : > { %v6482_v54 = vpop.eup %6481  ;;  %v4891_v39 = vmul.f32 0.7978846, %v4875_v28  ;;  %v4828_v11 = vmul.f32 %v4802_v15, %v4802_v15 }
 0xf42   : > { %v4922_v2 = vadd.f32 1.0, %v6482_v54 }
 0xf43   : > { %v4844_v7 = vmul.f32 %v4828_v11, %v4802_v15  ;;  %6483 = vtanh.f32 %v4891_v39 }
 0xf44   : > { %v4938_v26 = vmul.f32 0.5, %v4922_v2 }
 0xf45   : > { %v4860_v13 = vmul.f32 0.044715, %v4844_v7 }
 0xf46   : > { %v4954_v53 = vmul.f32 %v4938_v26, %v4797_v32 }
 0xf47   : > { %v4876_v63 = vadd.f32 %v4860_v13, %v4802_v15 }
 0xf48   : > { %v4966_v55 = vpack.c.bf16 %v4954_v53, %v4953_v52 }
 0xf49   : > { %v4892_v35 = vmul.f32 0.7978846, %v4876_v63  ;;  %v6484_v18 = vpop.eup %6483 }
 0xf4a   : > { %5062 = vmatmul.bf16.gmra.mxu0 %v4966_v55  ;;  %v4923_v1 = vadd.f32 1.0, %v6484_v18 }
 0xf4b   : > { %6485 = vtanh.f32 %v4892_v35 }
 0xf4c   : > { %v5048_v14 = vpop.f32.mrf.mxu0  ;;  %v4939_v31 = vmul.f32 0.5, %v4923_v1 }
 0xf4d   : > { %v5049_v56 = vadd.f32 %v9173_v17, %v5048_v14 }
 0xf4e   : > { %v4955_v24 = vmul.f32 %v4939_v31, %v4800_v38 }
 0xf4f   : > { %v9177_v12 = vadd.f32 %v5049_v56, %v8967_v45 }
 0xf51   : > { %v6486_v10 = vpop.eup %6485  ;;  %v5106_v44 = vsel %vm1236_vm0, %v9177_v12, 0.0 }
 0xf52   : > { %5107 = vadd.xlane.f32.xlu0 %v5106_v44  ;;  %v4924_v37 = vadd.f32 1.0, %v6486_v10 }
 0xf54   : > { %v5050_v40 = vpop.f32.mrf.mxu0  ;;  %v4940_v0 = vmul.f32 0.5, %v4924_v37 }
 0xf55   : > { %v5051_v50 = vadd.f32 %v9173_v17, %v5050_v40 }
 0xf56   : > { %v4956_v27 = vmul.f32 %v4940_v0, %v4802_v15 }
 0xf57   : > { %v9183_v42 = vadd.f32 %v5051_v50, %v8970_v36  ;;  %v4804_v32 = vpop.f32.mrf.mxu3 }
 0xf58   : > { %v4805_v45 = vadd.f32 %v9078_v23, %v4804_v32  ;;  %v4967_v51 = vpack.c.bf16 %v4956_v27, %v4955_v24 }
 0xf59   : > { %v5109_v4 = vsel %vm1236_vm0, %v9183_v42, 0.0 }
 0xf5a   : > { %v4829_v6 = vmul.f32 %v4805_v45, %v4805_v45  ;;  %5067 = vmatmul.bf16.gmra.mxu0 %v4967_v51  ;;  %5110 = vadd.xlane.f32.xlu1 %v5109_v4 }
 0xf5c   : > { %v4845_v48 = vmul.f32 %v4829_v6, %v4805_v45  ;;  %v5053_v60 = vpop.f32.mrf.mxu0 }
 0xf5d   : > { %v5054_v22 = vadd.f32 %v9173_v17, %v5053_v60 }
 0xf5e   : > { %v4861_v46 = vmul.f32 0.044715, %v4845_v48 }
 0xf5f   : > { %v4806_v38 = vpop.f32.mrf.mxu3  ;;  %v9190_v36 = vadd.f32 %v5054_v22, %v8987_v9 }
 0xf60   : > { %v4877_v8 = vadd.f32 %v4861_v46, %v4805_v45  ;;  %v4807_v25 = vadd.f32 %v9078_v23, %v4806_v38 }
 0xf61   : > { %v5112_v3 = vsel %vm1236_vm0, %v9190_v36, 0.0 }
 0xf62   : > { %v4893_v30 = vmul.f32 0.7978846, %v4877_v8  ;;  %v4830_v57 = vmul.f32 %v4807_v25, %v4807_v25  ;;  %5113 = vadd.xlane.f32.xlu2 %v5112_v3 }
 0xf64   : > { %v4846_v43 = vmul.f32 %v4830_v57, %v4807_v25  ;;  %v5055_v28 = vpop.f32.mrf.mxu0  ;;  %6487 = vtanh.f32 %v4893_v30 }
 0xf65   : > { %v5056_v54 = vadd.f32 %v9173_v17, %v5055_v28 }
 0xf66   : > { %v4862_v15 = vmul.f32 0.044715, %v4846_v43 }
 0xf67   : > { %v9197_v11 = vadd.f32 %v5056_v54, %v8990_v49 }
 0xf68   : > { %v4878_v39 = vadd.f32 %v4862_v15, %v4807_v25 }
 0xf69   : > { %v5115_v2 = vsel %vm1236_vm0, %v9197_v11, 0.0 }
 0xf6a   : > { %v4894_v9 = vmul.f32 0.7978846, %v4878_v39  ;;  %5116 = vadd.xlane.f32.xlu0 %v5115_v2  ;;  %v6488_v7 = vpop.eup %6487 }
 0xf6b   : > { %v4809_v33 = vpop.f32.mrf.mxu3  ;;  %v4925_v52 = vadd.f32 1.0, %v6488_v7 }
 0xf6c   : > { %6489 = vtanh.f32 %v4894_v9  ;;  %v4810_v26 = vadd.f32 %v9078_v23, %v4809_v33 }
 0xf6d   : > { %v4941_v14 = vmul.f32 0.5, %v4925_v52 }
 0xf6e   : > { %v4831_v13 = vmul.f32 %v4810_v26, %v4810_v26 }
 0xf6f   : > { %v4957_v37 = vmul.f32 %v4941_v14, %v4805_v45 }
 0xf70   : > { %v4847_v53 = vmul.f32 %v4831_v13, %v4810_v26 }
 0xf72   : > { %v6490_v63 = vpop.eup %6489  ;;  %v4863_v55 = vmul.f32 0.044715, %v4847_v53 }
 0xf73   : > { %v4811_v35 = vpop.f32.mrf.mxu3  ;;  %v4926_v18 = vadd.f32 1.0, %v6490_v63 }
 0xf74   : > { %v4879_v49 = vadd.f32 %v4863_v55, %v4810_v26  ;;  %v4812_v56 = vadd.f32 %v9078_v23, %v4811_v35 }
 0xf75   : > { %v4942_v1 = vmul.f32 0.5, %v4926_v18 }
 0xf76   : > { %v4895_v10 = vmul.f32 0.7978846, %v4879_v49  ;;  %v4832_v44 = vmul.f32 %v4812_v56, %v4812_v56 }
 0xf77   : > { %v4958_v31 = vmul.f32 %v4942_v1, %v4807_v25 }
 0xf78   : > { %v4848_v40 = vmul.f32 %v4832_v44, %v4812_v56  ;;  %6491 = vtanh.f32 %v4895_v10 }
 0xf79   : > { %v4968_v0 = vpack.c.bf16 %v4958_v31, %v4957_v37 }
 0xf7a   : > { %v4864_v50 = vmul.f32 0.044715, %v4848_v40 }
 0xf7b   : > { %5072 = vmatmul.bf16.gmra.mxu0 %v4968_v0 }
 0xf7c   : > { %v4880_v24 = vadd.f32 %v4864_v50, %v4812_v56 }
 0xf7d   : > { %v5058_v27 = vpop.f32.mrf.mxu0 }
 0xf7e   : > { %v4896_v32 = vmul.f32 0.7978846, %v4880_v24  ;;  %v5059_v51 = vadd.f32 %v9173_v17, %v5058_v27  ;;  %v6492_v4 = vpop.eup %6491 }
 0xf7f   : > { %v4927_v45 = vadd.f32 1.0, %v6492_v4 }
 0xf80   : > { %6493 = vtanh.f32 %v4896_v32  ;;  %v9205_v6 = vadd.f32 %v5059_v51, %v9022_v19 }
 0xf81   : > { %v4943_v8 = vmul.f32 0.5, %v4927_v45 }
 0xf82   : > { %v5118_v48 = vsel %vm1236_vm0, %v9205_v6, 0.0 }
 0xf83   : > { %5119 = vadd.xlane.f32.xlu1 %v5118_v48  ;;  %v4959_v19 = vmul.f32 %v4943_v8, %v4810_v26 }
 0xf85   : > { %v5060_v60 = vpop.f32.mrf.mxu0 }
 0xf86   : > { %v6494_v46 = vpop.eup %6493  ;;  %v5061_v22 = vadd.f32 %v9173_v17, %v5060_v60 }
 0xf87   : > { %v4928_v38 = vadd.f32 1.0, %v6494_v46 }
 0xf88   : > { %v9211_v25 = vadd.f32 %v5061_v22, %v9025_v59 }
 0xf89   : > { %v4944_v30 = vmul.f32 0.5, %v4928_v38 }
 0xf8a   : > { %v5121_v57 = vsel %vm1236_vm0, %v9211_v25, 0.0 }
 0xf8b   : > { %5122 = vadd.xlane.f32.xlu2 %v5121_v57  ;;  %v4960_v3 = vmul.f32 %v4944_v30, %v4812_v56 }
 0xf8d   : > { %v4969_v43 = vpack.c.bf16 %v4960_v3, %v4959_v19 }
 0xf8f   : > { %5077 = vmatmul.bf16.gmra.mxu0 %v4969_v43 }
 0xfb1   : > { %v4814_v28 = vpop.f32.mrf.mxu3 }
 0xfb2   : > { %v4815_v15 = vadd.f32 %v9078_v23, %v4814_v28 }
 0xfb4   : > { %v4833_v54 = vmul.f32 %v4815_v15, %v4815_v15 }
 0xfb6   : > { %v4849_v39 = vmul.f32 %v4833_v54, %v4815_v15 }
 0xfb8   : > { %v4865_v9 = vmul.f32 0.044715, %v4849_v39 }
 0xfb9   : > { %v4816_v2 = vpop.f32.mrf.mxu3 }
 0xfba   : > { %v4881_v33 = vadd.f32 %v4865_v9, %v4815_v15  ;;  %v4817_v59 = vadd.f32 %v9078_v23, %v4816_v2 }
 0xfbc   : > { %v4897_v7 = vmul.f32 0.7978846, %v4881_v33  ;;  %v4834_v13 = vmul.f32 %v4817_v59, %v4817_v59 }
 0xfbe   : > { %v4850_v52 = vmul.f32 %v4834_v13, %v4817_v59  ;;  %6495 = vtanh.f32 %v4897_v7 }
 0xfc0   : > { %v4866_v53 = vmul.f32 0.044715, %v4850_v52 }
 0xfc2   : > { %v4882_v63 = vadd.f32 %v4866_v53, %v4817_v59 }
 0xfc4   : > { %v4898_v26 = vmul.f32 0.7978846, %v4882_v63  ;;  %v6496_v55 = vpop.eup %6495 }
 0xfc5   : > { %v4929_v14 = vadd.f32 1.0, %v6496_v55  ;;  %v5108_v28 = vpop.xlane.xlu0 %5107 }
 0xfc6   : > { %6497 = vtanh.f32 %v4898_v26  ;;  %v5154_v54 = vmul.f32 %v5108_v28, %v8822_v34 }
 0xfc7   : > { %v5063_v35 = vpop.f32.mrf.mxu0  ;;  %v4945_v10 = vmul.f32 0.5, %v4929_v14 }
 0xfc8   : > { %v5064_v18 = vadd.f32 %v9173_v17, %v5063_v35  ;;  %v9259_v9 = vsub.f32 %v9177_v12, %v5154_v54 }
 0xfc9   : > { %v4961_v40 = vmul.f32 %v4945_v10, %v4815_v15 }
 0xfca   : > { %v5094_v49 = vadd.f32 %v5064_v18, %v9057_v20 }
 0xfcc   : > { %v6498_v56 = vpop.eup %6497  ;;  %v5124_v1 = vsel %vm1236_vm0, %v5094_v49, 0.0 }
 0xfcd   : > { %5125 = vadd.xlane.f32.xlu0 %v5124_v1  ;;  %v4930_v23 = vadd.f32 1.0, %v6498_v56  ;;  %v5111_v55 = vpop.xlane.xlu1 %5110 }
 0xfce   : > { %v5155_v14 = vmul.f32 %v5111_v55, %v8822_v34 }
 0xfcf   : > { %v5065_v44 = vpop.f32.mrf.mxu0  ;;  %v4946_v37 = vmul.f32 0.5, %v4930_v23 }
 0xfd0   : > { %v5066_v31 = vadd.f32 %v9173_v17, %v5065_v44 }
 0xfd1   : > { %v4962_v0 = vmul.f32 %v4946_v37, %v4817_v59  ;;  %v5186_v59 = vmul.f32 %v9259_v9, %v9259_v9 }
 0xfd2   : > { %v9222_v50 = vadd.f32 %v5066_v31, %v9060_v61 }
 0xfd3   : > { %v4970_v24 = vpack.c.bf16 %v4962_v0, %v4961_v40  ;;  %v5202_v13 = vsel %vm1236_vm0, %v5186_v59, 0.0 }
 0xfd4   : > { %v5127_v27 = vsel %vm1236_vm0, %v9222_v50, 0.0 }
 0xfd5   : > { %5128 = vadd.xlane.f32.xlu1 %v5127_v27  ;;  %5082 = vmatmul.bf16.gmra.mxu0 %v4970_v24  ;;  %v5114_v23 = vpop.xlane.xlu2 %5113 }
 0xfd6   : > { %v5156_v40 = vmul.f32 %v5114_v23, %v8822_v34 }
 0xfd7   : > { %v5068_v20 = vpop.f32.mrf.mxu0 }
 0xfd8   : > { %v5069_v32 = vadd.f32 %v9173_v17, %v5068_v20 }
 0xfda   : > { %v9228_v51 = vadd.f32 %v5069_v32, %v9090_v5  ;;  %v9303_v32 = vsub.f32 %v9190_v36, %v5156_v40 }
 0xfdc   : > { %v5130_v4 = vsel %vm1236_vm0, %v9228_v51, 0.0  ;;  %v5188_v36 = vmul.f32 %v9303_v32, %v9303_v32 }
 0xfdd   : > { %5131 = vadd.xlane.f32.xlu2 %v5130_v4  ;;  %v5117_v2 = vpop.xlane.xlu0 %5116 }
 0xfde   : > { %v5157_v33 = vmul.f32 %v5117_v2, %v8822_v34 }
 0xfdf   : > { %v5070_v48 = vpop.f32.mrf.mxu0 }
 0xfe0   : > { %v5071_v61 = vadd.f32 %v9173_v17, %v5070_v48  ;;  %v9267_v7 = vsub.f32 %v9197_v11, %v5157_v33 }
 0xfe2   : > { %v5097_v45 = vadd.f32 %v5071_v61, %v9093_v62 }
 0xfe4   : > { %v5133_v60 = vsel %vm1236_vm0, %v5097_v45, 0.0 }
 0xfe5   : > { %5134 = vadd.xlane.f32.xlu0 %v5133_v60 }
 0xff6   : > { %v5120_v44 = vpop.xlane.xlu1 %5119 }
 0xff7   : > { %v5158_v24 = vmul.f32 %v5120_v44, %v8822_v34 }
 0xff8   : > { %v5073_v46 = vpop.f32.mrf.mxu0 }
 0xff9   : > { %v5074_v22 = vadd.f32 %v9173_v17, %v5073_v46 }
 0xffb   : > { %v9237_v38 = vadd.f32 %v5074_v22, %v9124_v29 }
 0xffd   : > { %v5136_v5 = vsel %vm1236_vm0, %v9237_v38, 0.0 }
 0xffe   : > { %5137 = vadd.xlane.f32.xlu1 %v5136_v5  ;;  %v5123_v61 = vpop.xlane.xlu2 %5122  ;;  %v5208_v5 = vsel %vm1236_vm0, %v5188_v36, 0.0 }
 0xfff   : > { %v5159_v60 = vmul.f32 %v5123_v61, %v8822_v34  ;;  %v9374_v61 = vld [vmem:[%s700_s3] ss:$0 sm:$0xff] }
0x1000   : > { %v5075_v8 = vpop.f32.mrf.mxu0 }
0x1001   : > { %v5076_v30 = vadd.f32 %v9173_v17, %v5075_v8 }
0x1003   : > { %v9243_v57 = vadd.f32 %v5076_v30, %v9127_v58 }
0x1005   : > { %v5139_v62 = vsel %vm1236_vm0, %v9243_v57, 0.0 }
0x1006   : > { %5140 = vadd.xlane.f32.xlu2 %v5139_v62 }
0x100c   : > { %v5078_v19 = vpop.f32.mrf.mxu0 }
0x100d   : > { %v5079_v3 = vadd.f32 %v9173_v17, %v5078_v19 }
0x100f   : > { %v9249_v29 = vadd.f32 %v5079_v3, %v9140_v47 }
0x1011   : > { %v5142_v43 = vsel %vm1236_vm0, %v9249_v29, 0.0 }
0x1012   : > { %5143 = vadd.xlane.f32.xlu0 %v5142_v43 }
0x1014   : > { %v5080_v15 = vpop.f32.mrf.mxu0 }
0x1015   : > { %v5081_v58 = vadd.f32 %v9173_v17, %v5080_v15 }
0x1017   : > { %v9256_v39 = vadd.f32 %v5081_v58, %v9143_v21  ;;  %v5189_v21 = vmul.f32 %v9267_v7, %v9267_v7 }
0x1019   : > { %v5145_v47 = vsel %vm1236_vm0, %v9256_v39, 0.0  ;;  %v5211_v12 = vsel %vm1236_vm0, %v5189_v21, 0.0 }
0x101a   : > { %5146 = vadd.xlane.f32.xlu1 %v5145_v47 }
0x1022   : > { %5203 = vadd.xlane.f32.xlu1 %v5202_v13 }
0x102a   : > { %5212 = vadd.xlane.f32.xlu1 %v5211_v12 }
0x1040   : > { %v5126_v52 = vpop.xlane.xlu0 %5125 }
0x1041   : > { %v5160_v53 = vmul.f32 %v5126_v52, %v8822_v34 }
0x1043   : > { %v9274_v63 = vsub.f32 %v5094_v49, %v5160_v53  ;;  %v9287_v49 = vsub.f32 %v9183_v42, %v5155_v14 }
0x1045   : > { %v5192_v26 = vmul.f32 %v9274_v63, %v9274_v63  ;;  %v5187_v27 = vmul.f32 %v9287_v49, %v9287_v49 }
0x1047   : > { %v5220_v11 = vsel %vm1236_vm0, %v5192_v26, 0.0 }
0x1048   : > { %5221 = vadd.xlane.f32.xlu1 %v5220_v11 }
0x1050   : > { %v5132_v30 = vpop.xlane.xlu2 %5131 }
0x1051   : > { %v5162_v19 = vmul.f32 %v5132_v30, %v8822_v34 }
0x1052   : > { %v5083_v35 = vpop.f32.mrf.mxu0 }
0x1053   : > { %v5084_v18 = vadd.f32 %v9173_v17, %v5083_v35 }
0x1055   : > { %v9282_v56 = vadd.f32 %v5084_v18, %v9157_v16 }
0x1057   : > { %v5148_v1 = vsel %vm1236_vm0, %v9282_v56, 0.0 }
0x1058   : > { %v5135_v10 = vpop.xlane.xlu0 %5134  ;;  %5149 = vadd.xlane.f32.xlu2 %v5148_v1 }
0x1059   : > { %v5163_v37 = vmul.f32 %v5135_v10, %v8822_v34 }
0x105a   : > { %v5085_v31 = vpop.f32.mrf.mxu0 }
0x105b   : > { %v9291_v0 = vsub.f32 %v5097_v45, %v5163_v37  ;;  %v5086_v16 = vadd.f32 %v9173_v17, %v5085_v31  ;;  %v9309_v17 = vsub.f32 %v9205_v6, %v5158_v24  ;;  %v5129_v45 = vpop.xlane.xlu1 %5128  ;;  %v9319_v6 = vsub.f32 %v9211_v25, %v5159_v60  ;;  %v9381_v60 = vld [vmem:[%s703_s29] ss:$0 sm:$0xff]  ;;  %s9753_s29 = sld [smem:[#allocation44_spill]] (!%p5890_p8) }
0x105c   : > { %v5161_v46 = vmul.f32 %v5129_v45, %v8822_v34  ;;  %v9332_v25 = vsub.f32 %v9228_v51, %v5162_v19 }
0x105d   : > { %v9298_v42 = vadd.f32 %v5086_v16, %v9160_v41  ;;  %v5195_v20 = vmul.f32 %v9291_v0, %v9291_v0  ;;  %v5205_v41 = vsel %vm1236_vm0, %v5187_v27, 0.0  ;;  %v5190_v22 = vmul.f32 %v9309_v17, %v9309_v17 }
0x105e   : > { %v9323_v8 = vsub.f32 %v9222_v50, %v5161_v46  ;;  %v5191_v3 = vmul.f32 %v9319_v6, %v9319_v6  ;;  %v5194_v58 = vmul.f32 %v9332_v25, %v9332_v25 }
0x105f   : > { %v5229_v4 = vsel %vm1236_vm0, %v5195_v20, 0.0  ;;  %v5151_v48 = vsel %vm1236_vm0, %v9298_v42, 0.0  ;;  %v5214_v62 = vsel %vm1236_vm0, %v5190_v22, 0.0 }
0x1060   : > { %5230 = vadd.xlane.f32.xlu1 %v5229_v4  ;;  %5152 = vadd.xlane.f32.xlu0 %v5151_v48  ;;  %v5193_v43 = vmul.f32 %v9323_v8, %v9323_v8  ;;  %v5217_v28 = vsel %vm1236_vm0, %v5191_v3, 0.0  ;;  %v5226_v51 = vsel %vm1236_vm0, %v5194_v58, 0.0 }
0x1061   : > { %5206 = vadd.xlane.f32.xlu2 %v5205_v41 }
0x1062   : > { %v5223_v50 = vsel %vm1236_vm0, %v5193_v43, 0.0 }
0x1068   : > { %5209 = vadd.xlane.f32.xlu0 %v5208_v5 }
0x1069   : > { %5215 = vadd.xlane.f32.xlu2 %v5214_v62 }
0x1070   : > { %5218 = vadd.xlane.f32.xlu0 %v5217_v28 }
0x1071   : > { %5224 = vadd.xlane.f32.xlu2 %v5223_v50  ;;  %v5138_v15 = vpop.xlane.xlu1 %5137 }
0x1072   : > { %v5164_v54 = vmul.f32 %v5138_v15, %v8822_v34 }
0x1074   : > { %v9340_v47 = vsub.f32 %v9237_v38, %v5164_v54 }
0x1076   : > { %v5196_v2 = vmul.f32 %v9340_v47, %v9340_v47 }
0x1078   : > { %5227 = vadd.xlane.f32.xlu0 %v5226_v51  ;;  %v5232_v33 = vsel %vm1236_vm0, %v5196_v2, 0.0 }
0x1079   : > { %v5141_v59 = vpop.xlane.xlu2 %5140  ;;  %5233 = vadd.xlane.f32.xlu2 %v5232_v33 }
0x107a   : > { %v5165_v13 = vmul.f32 %v5141_v59, %v8822_v34 }
0x107c   : > { %v9348_v21 = vsub.f32 %v9243_v57, %v5165_v13 }
0x107e   : > { %v5197_v12 = vmul.f32 %v9348_v21, %v9348_v21 }
0x1080   : > { %v5235_v38 = vsel %vm1236_vm0, %v5197_v12, 0.0 }
0x1081   : > { %5236 = vadd.xlane.f32.xlu0 %v5235_v38 }
0x1085   : > { %v5144_v52 = vpop.xlane.xlu0 %5143 }
0x1086   : > { %v5166_v53 = vmul.f32 %v5144_v52, %v8822_v34 }
0x1088   : > { %v9355_v26 = vsub.f32 %v9249_v29, %v5166_v53 }
0x108a   : > { %v5198_v11 = vmul.f32 %v9355_v26, %v9355_v26 }
0x108c   : > { %v5238_v55 = vsel %vm1236_vm0, %v5198_v11, 0.0 }
0x108d   : > { %5239 = vadd.xlane.f32.xlu1 %v5238_v55  ;;  %v5147_v57 = vpop.xlane.xlu1 %5146 }
0x108e   : > { %v5167_v35 = vmul.f32 %v5147_v57, %v8822_v34 }
0x1090   : > { %v9362_v18 = vsub.f32 %v9256_v39, %v5167_v35 }
0x1092   : > { %v5199_v14 = vmul.f32 %v9362_v18, %v9362_v18 }
0x1094   : > { %v5241_v1 = vsel %vm1236_vm0, %v5199_v14, 0.0 }
0x1095   : > { %5242 = vadd.xlane.f32.xlu2 %v5241_v1  ;;  %v5204_v29 = vpop.xlane.xlu1 %5203 }
0x1096   : > { %v5250_v23 = vmul.f32 %v5204_v29, %v8822_v34 }
0x1098   : > { %v5266_v10 = vadd.f32 1e-12, %v5250_v23 }
0x109a   : > { %6499 = vrsqrt.f32 %v5266_v10  ;;  %vm5288_vm13 = vweird.f32 %v5266_v10 }
0x109d   : > { %v5213_v44 = vpop.xlane.xlu1 %5212 }
0x109e   : > { %v5253_v37 = vmul.f32 %v5213_v44, %v8822_v34 }
0x10a0   : > { %v6500_v31 = vpop.eup %6499  ;;  %v5269_v40 = vadd.f32 1e-12, %v5253_v37 }
0x10a1   : > { %v5283_v39 = vmul.f32 %v6500_v31, %v5266_v10  ;;  %vm5289_vm12 = vweird.f32 %v6500_v31 }
0x10a2   : > { %6501 = vrsqrt.f32 %v5269_v40  ;;  %vm5290_vm14 = vmor %vm5288_vm13, %vm5289_vm12  ;;  %vm5318_vm1 = vweird.f32 %v5269_v40 }
0x10a3   : > { %v5284_v16 = vmul.f32 %v6500_v31, %v5283_v39 }
0x10a5   : > { %v5285_v24 = vmul.f32 0.5, %v5284_v16 }
0x10a7   : > { %v5286_v27 = vsub.f32 1.5, %v5285_v24 }
0x10a8   : > { %v6502_v20 = vpop.eup %6501 }
0x10a9   : > { %v5287_v4 = vmul.f32 %v6500_v31, %v5286_v27  ;;  %v5313_v48 = vmul.f32 %v6502_v20, %v5269_v40  ;;  %vm5319_vm15 = vweird.f32 %v6502_v20 }
0x10aa   : > { %vm5320_vm2 = vmor %vm5318_vm1, %vm5319_vm15 }
0x10ab   : > { %v5291_v41 = vsel %vm5290_vm14, %v6500_v31, %v5287_v4  ;;  %v5314_v45 = vmul.f32 %v6502_v20, %v5313_v48 }
0x10ac   : > { %v5442_v36 = vmul.f32 %v5291_v41, %v9259_v9 }
0x10ad   : > { %v5315_v46 = vmul.f32 0.5, %v5314_v45 }
0x10ae   : > { %v5461_v22 = vmul.f32 %v9374_v61, %v5442_v36 }
0x10af   : > { %v5316_v5 = vsub.f32 1.5, %v5315_v46 }
0x10b0   : > { %v9386_v30 = vadd.f32 %v9381_v60, %v5461_v22 }
0x10b1   : > { %v5317_v62 = vmul.f32 %v6502_v20, %v5316_v5 }
0x10b2   : > { %5496 = vst.msk [vmem:[#allocation2] sm:$0xff] %vm1236_vm0, %v9386_v30 }
0x10b3   : > { %v5321_v19 = vsel %vm5320_vm2, %v6502_v20, %v5317_v62 }
0x10b4   : > { %v5445_v3 = vmul.f32 %v5321_v19, %v9267_v7 }
0x10b6   : > { %v5464_v43 = vmul.f32 %v9374_v61, %v5445_v3 }
0x10b8   : > { %v9393_v9 = vadd.f32 %v9381_v60, %v5464_v43 }
0x10ba   : > { %5499 = vst.msk [vmem:[#allocation2 + $0x18] sm:$0xff] %vm1236_vm0, %v9393_v9 }
0x10bb   : > { %v5222_v28 = vpop.xlane.xlu1 %5221 }
0x10bc   : > { %v5256_v50 = vmul.f32 %v5222_v28, %v8822_v34 }
0x10be   : > { %v5272_v15 = vadd.f32 1e-12, %v5256_v50 }
0x10c0   : > { %6503 = vrsqrt.f32 %v5272_v15  ;;  %vm5348_vm4 = vweird.f32 %v5272_v15 }
0x10c6   : > { %v6504_v54 = vpop.eup %6503 }
0x10c7   : > { %v5343_v58 = vmul.f32 %v6504_v54, %v5272_v15  ;;  %vm5349_vm3 = vweird.f32 %v6504_v54 }
0x10c8   : > { %vm5350_vm5 = vmor %vm5348_vm4, %vm5349_vm3 }
0x10c9   : > { %v5344_v2 = vmul.f32 %v6504_v54, %v5343_v58 }
0x10cb   : > { %v5345_v51 = vmul.f32 0.5, %v5344_v2  ;;  %v5150_v33 = vpop.xlane.xlu2 %5149 }
0x10cc   : > { %v5168_v7 = vmul.f32 %v5150_v33, %v8822_v34 }
0x10cd   : > { %v5346_v59 = vsub.f32 1.5, %v5345_v51 }
0x10ce   : > { %v9400_v13 = vsub.f32 %v9282_v56, %v5168_v7 }
0x10cf   : > { %v5347_v12 = vmul.f32 %v6504_v54, %v5346_v59 }
0x10d0   : > { %v5200_v38 = vmul.f32 %v9400_v13, %v9400_v13 }
0x10d1   : > { %v5351_v52 = vsel %vm5350_vm5, %v6504_v54, %v5347_v12 }
0x10d2   : > { %v5448_v53 = vmul.f32 %v5351_v52, %v9274_v63  ;;  %v5244_v11 = vsel %vm1236_vm0, %v5200_v38, 0.0 }
0x10d3   : > { %v5153_v55 = vpop.xlane.xlu0 %5152  ;;  %5245 = vadd.xlane.f32.xlu0 %v5244_v11  ;;  %v5231_v57 = vpop.xlane.xlu1 %5230 }
0x10d4   : > { %v5467_v35 = vmul.f32 %v9374_v61, %v5448_v53  ;;  %v5169_v14 = vmul.f32 %v5153_v55, %v8822_v34  ;;  %v5207_v56 = vpop.xlane.xlu2 %5206  ;;  %v5259_v1 = vmul.f32 %v5231_v57, %v8822_v34 }
0x10d5   : > { %v5251_v29 = vmul.f32 %v5207_v56, %v8822_v34 }
0x10d6   : > { %v9411_v23 = vadd.f32 %v9381_v60, %v5467_v35  ;;  %v9414_v10 = vsub.f32 %v9298_v42, %v5169_v14  ;;  %v5275_v63 = vadd.f32 1e-12, %v5259_v1 }
0x10d7   : > { %v5267_v44 = vadd.f32 1e-12, %v5251_v29 }
0x10d8   : > { %5502 = vst.msk [vmem:[#allocation2 + $0x30] sm:$0xff] %vm1236_vm0, %v9411_v23  ;;  %6505 = vrsqrt.f32 %v5275_v63  ;;  %v5201_v37 = vmul.f32 %v9414_v10, %v9414_v10  ;;  %vm5378_vm8 = vweird.f32 %v5275_v63 }
0x10d9   : > { %6507 = vrsqrt.f32 %v5267_v44  ;;  %vm5298_vm9 = vweird.f32 %v5267_v44 }
0x10da   : > { %v5247_v31 = vsel %vm1236_vm0, %v5201_v37, 0.0 }
0x10db   : > { %5248 = vadd.xlane.f32.xlu1 %v5247_v31  ;;  %v5210_v40 = vpop.xlane.xlu0 %5209 }
0x10dc   : > { %v5252_v39 = vmul.f32 %v5210_v40, %v8822_v34  ;;  %v5216_v16 = vpop.xlane.xlu2 %5215 }
0x10dd   : > { %v5254_v42 = vmul.f32 %v5216_v16, %v8822_v34 }
0x10de   : > { %v6506_v24 = vpop.eup %6505  ;;  %v5268_v27 = vadd.f32 1e-12, %v5252_v39 }
0x10df   : > { %v6508_v20 = vpop.eup %6507  ;;  %v5373_v4 = vmul.f32 %v6506_v24, %v5275_v63  ;;  %v9423_v48 = vadd.f32 1e-12, %v5254_v42  ;;  %vm5379_vm6 = vweird.f32 %v6506_v24 }
0x10e0   : > { %v5293_v41 = vmul.f32 %v6508_v20, %v5267_v44  ;;  %6509 = vrsqrt.f32 %v5268_v27  ;;  %vm5299_vm7 = vweird.f32 %v6508_v20  ;;  %vm5380_vm10 = vmor %vm5378_vm8, %vm5379_vm6  ;;  %vm5308_vm14 = vweird.f32 %v5268_v27 }
0x10e1   : > { %v5374_v45 = vmul.f32 %v6506_v24, %v5373_v4  ;;  %6511 = vrsqrt.f32 %v9423_v48  ;;  %vm5300_vm11 = vmor %vm5298_vm9, %vm5299_vm7  ;;  %vm5328_vm1 = vweird.f32 %v9423_v48 }
0x10e2   : > { %v5294_v36 = vmul.f32 %v6508_v20, %v5293_v41 }
0x10e3   : > { %v5375_v46 = vmul.f32 0.5, %v5374_v45  ;;  %v5219_v22 = vpop.xlane.xlu0 %5218 }
0x10e4   : > { %v5295_v5 = vmul.f32 0.5, %v5294_v36  ;;  %v5255_v62 = vmul.f32 %v5219_v22, %v8822_v34  ;;  %v5225_v19 = vpop.xlane.xlu2 %5224 }
0x10e5   : > { %v5376_v3 = vsub.f32 1.5, %v5375_v46  ;;  %v5257_v43 = vmul.f32 %v5225_v19, %v8822_v34 }
0x10e6   : > { %v6510_v28 = vpop.eup %6509  ;;  %v5296_v50 = vsub.f32 1.5, %v5295_v5  ;;  %v9428_v15 = vadd.f32 1e-12, %v5255_v62 }
0x10e7   : > { %v6512_v54 = vpop.eup %6511  ;;  %v5377_v58 = vmul.f32 %v6506_v24, %v5376_v3  ;;  %v5303_v2 = vmul.f32 %v6510_v28, %v5268_v27  ;;  %v9430_v51 = vadd.f32 1e-12, %v5257_v43  ;;  %vm5309_vm12 = vweird.f32 %v6510_v28 }
0x10e8   : > { %v5297_v33 = vmul.f32 %v6508_v20, %v5296_v50  ;;  %v5323_v7 = vmul.f32 %v6512_v54, %v9423_v48  ;;  %6513 = vrsqrt.f32 %v9428_v15  ;;  %vm5329_vm13 = vweird.f32 %v6512_v54  ;;  %vm5310_vm15 = vmor %vm5308_vm14, %vm5309_vm12 }
0x10e9   : > { %v5381_v59 = vsel %vm5380_vm10, %v6506_v24, %v5377_v58  ;;  %v5304_v12 = vmul.f32 %v6510_v28, %v5303_v2  ;;  %6515 = vrsqrt.f32 %v9430_v51  ;;  %vm5330_vm2 = vmor %vm5328_vm1, %vm5329_vm13  ;;  %vm5338_vm5 = vweird.f32 %v9428_v15 }
0x10ea   : > { %v5301_v38 = vsel %vm5300_vm11, %v6508_v20, %v5297_v33  ;;  %v5451_v52 = vmul.f32 %v5381_v59, %v9291_v0  ;;  %v5324_v53 = vmul.f32 %v6512_v54, %v5323_v7  ;;  %vm5358_vm7 = vweird.f32 %v9430_v51 }
0x10eb   : > { %v5443_v11 = vmul.f32 %v5301_v38, %v9287_v49  ;;  %v5305_v55 = vmul.f32 0.5, %v5304_v12  ;;  %v5228_v57 = vpop.xlane.xlu0 %5227 }
0x10ec   : > { %v5470_v35 = vmul.f32 %v9374_v61, %v5451_v52  ;;  %v5325_v14 = vmul.f32 0.5, %v5324_v53  ;;  %v5258_v56 = vmul.f32 %v5228_v57, %v8822_v34  ;;  %v5234_v1 = vpop.xlane.xlu2 %5233 }
0x10ed   : > { %v5462_v29 = vmul.f32 %v9374_v61, %v5443_v11  ;;  %v5306_v63 = vsub.f32 1.5, %v5305_v55  ;;  %v5260_v44 = vmul.f32 %v5234_v1, %v8822_v34 }
0x10ee   : > { %v6514_v37 = vpop.eup %6513  ;;  %v9442_v0 = vadd.f32 %v9381_v60, %v5470_v35  ;;  %v5326_v31 = vsub.f32 1.5, %v5325_v14  ;;  %v9444_v49 = vadd.f32 1e-12, %v5258_v56 }
0x10ef   : > { %v6516_v40 = vpop.eup %6515  ;;  %v9447_v39 = vadd.f32 %v9381_v60, %v5462_v29  ;;  %v5307_v16 = vmul.f32 %v6510_v28, %v5306_v63  ;;  %v5333_v42 = vmul.f32 %v6514_v37, %v9428_v15  ;;  %v5276_v41 = vadd.f32 1e-12, %v5260_v44 }
0x10f0   : > { %5505 = vst.msk [vmem:[#allocation2 + $0x48] sm:$0xff] %vm1236_vm0, %v9442_v0  ;;  %v5327_v24 = vmul.f32 %v6512_v54, %v5326_v31  ;;  %v5353_v20 = vmul.f32 %v6516_v40, %v9430_v51  ;;  %6517 = vrsqrt.f32 %v9444_v49  ;;  %vm5339_vm3 = vweird.f32 %v6514_v37 }
0x10f1   : > { %5497 = vst.msk [vmem:[#allocation2 + $0x8] sm:$0xff] %vm1236_vm0, %v9447_v39  ;;  %v5311_v4 = vsel %vm5310_vm15, %v6510_v28, %v5307_v16  ;;  %v5334_v27 = vmul.f32 %v6514_v37, %v5333_v42  ;;  %6519 = vrsqrt.f32 %v5276_v41  ;;  %vm5359_vm4 = vweird.f32 %v6516_v40  ;;  %vm5340_vm6 = vmor %vm5338_vm5, %vm5339_vm3 }
0x10f2   : > { %v5444_v45 = vmul.f32 %v5311_v4, %v9303_v32  ;;  %v5331_v36 = vsel %vm5330_vm2, %v6512_v54, %v5327_v24  ;;  %v5354_v46 = vmul.f32 %v6516_v40, %v5353_v20  ;;  %vm5360_vm8 = vmor %vm5358_vm7, %vm5359_vm4  ;;  %vm5368_vm10 = vweird.f32 %v9444_v49 }
0x10f3   : > { %v5446_v22 = vmul.f32 %v5331_v36, %v9309_v17  ;;  %v5335_v5 = vmul.f32 0.5, %v5334_v27  ;;  %vm5388_vm13 = vweird.f32 %v5276_v41 }
0x10f4   : > { %v5463_v48 = vmul.f32 %v9374_v61, %v5444_v45  ;;  %v5355_v62 = vmul.f32 0.5, %v5354_v46  ;;  %v5237_v19 = vpop.xlane.xlu0 %5236 }
0x10f5   : > { %v5465_v3 = vmul.f32 %v9374_v61, %v5446_v22  ;;  %v5336_v43 = vsub.f32 1.5, %v5335_v5  ;;  %v5261_v28 = vmul.f32 %v5237_v19, %v8822_v34 }
0x10f6   : > { %v6518_v50 = vpop.eup %6517  ;;  %v9464_v58 = vadd.f32 %v9381_v60, %v5463_v48  ;;  %v5356_v32 = vsub.f32 1.5, %v5355_v62 }
0x10f7   : > { %v9467_v17 = vadd.f32 %v9381_v60, %v5465_v3  ;;  %v5337_v54 = vmul.f32 %v6514_v37, %v5336_v43  ;;  %v5363_v2 = vmul.f32 %v6518_v50, %v9444_v49  ;;  %v5277_v7 = vadd.f32 1e-12, %v5261_v28  ;;  %v6520_v59 = vpop.eup %6519 }
0x10f8   : > { %5498 = vst.msk [vmem:[#allocation2 + $0x10] sm:$0xff] %vm1236_vm0, %v9464_v58  ;;  %v5357_v33 = vmul.f32 %v6516_v40, %v5356_v32  ;;  %v5383_v53 = vmul.f32 %v6520_v59, %v5276_v41  ;;  %vm5369_vm9 = vweird.f32 %v6518_v50  ;;  %vm5389_vm12 = vweird.f32 %v6520_v59 }
0x10f9   : > { %5500 = vst.msk [vmem:[#allocation2 + $0x20] sm:$0xff] %vm1236_vm0, %v9467_v17  ;;  %v5341_v12 = vsel %vm5340_vm6, %v6514_v37, %v5337_v54  ;;  %v5364_v38 = vmul.f32 %v6518_v50, %v5363_v2  ;;  %6521 = vrsqrt.f32 %v5277_v7  ;;  %vm5370_vm11 = vmor %vm5368_vm10, %vm5369_vm9  ;;  %vm5398_vm1 = vweird.f32 %v5277_v7 }
0x10fa   : > { %v5447_v52 = vmul.f32 %v5341_v12, %v9319_v6  ;;  %v5361_v15 = vsel %vm5360_vm8, %v6516_v40, %v5357_v33  ;;  %v5384_v35 = vmul.f32 %v6520_v59, %v5383_v53  ;;  %vm5390_vm14 = vmor %vm5388_vm13, %vm5389_vm12 }
0x10fb   : > { %v5449_v11 = vmul.f32 %v5361_v15, %v9323_v8  ;;  %v5365_v55 = vmul.f32 0.5, %v5364_v38 }
0x10fc   : > { %v5466_v57 = vmul.f32 %v9374_v61, %v5447_v52  ;;  %v5385_v1 = vmul.f32 0.5, %v5384_v35 }
0x10fd   : > { %v5468_v51 = vmul.f32 %v9374_v61, %v5449_v11  ;;  %v5366_v14 = vsub.f32 1.5, %v5365_v55 }
0x10fe   : > { %v9481_v56 = vadd.f32 %v9381_v60, %v5466_v57  ;;  %v5386_v8 = vsub.f32 1.5, %v5385_v1 }
0x10ff   : > { %v9484_v29 = vadd.f32 %v9381_v60, %v5468_v51  ;;  %v5367_v6 = vmul.f32 %v6518_v50, %v5366_v14  ;;  %v6522_v44 = vpop.eup %6521 }
0x1100   : > { %5501 = vst.msk [vmem:[#allocation2 + $0x28] sm:$0xff] %vm1236_vm0, %v9481_v56  ;;  %v5240_v63 = vpop.xlane.xlu1 %5239  ;;  %v5387_v16 = vmul.f32 %v6520_v59, %v5386_v8  ;;  %v5393_v42 = vmul.f32 %v6522_v44, %v5277_v7  ;;  %vm5399_vm15 = vweird.f32 %v6522_v44 }
0x1101   : > { %5503 = vst.msk [vmem:[#allocation2 + $0x38] sm:$0xff] %vm1236_vm0, %v9484_v29  ;;  %v5371_v37 = vsel %vm5370_vm11, %v6518_v50, %v5367_v6  ;;  %v5262_v31 = vmul.f32 %v5240_v63, %v8822_v34  ;;  %vm5400_vm2 = vmor %vm5398_vm1, %vm5399_vm15 }
0x1102   : > { %v5450_v40 = vmul.f32 %v5371_v37, %v9332_v25  ;;  %v5391_v20 = vsel %vm5390_vm14, %v6520_v59, %v5387_v16  ;;  %v5394_v4 = vmul.f32 %v6522_v44, %v5393_v42 }
0x1103   : > { %v5278_v49 = vadd.f32 1e-12, %v5262_v31  ;;  %v5452_v27 = vmul.f32 %v5391_v20, %v9340_v47 }
0x1104   : > { %v5469_v24 = vmul.f32 %v9374_v61, %v5450_v40  ;;  %v5395_v36 = vmul.f32 0.5, %v5394_v4 }
0x1105   : > { %6523 = vrsqrt.f32 %v5278_v49  ;;  %v5471_v46 = vmul.f32 %v9374_v61, %v5452_v27  ;;  %vm5408_vm4 = vweird.f32 %v5278_v49 }
0x1106   : > { %v9496_v45 = vadd.f32 %v9381_v60, %v5469_v24  ;;  %v5396_v25 = vsub.f32 1.5, %v5395_v36 }
0x1107   : > { %v9502_v22 = vadd.f32 %v9381_v60, %v5471_v46 }
0x1108   : > { %5504 = vst.msk [vmem:[#allocation2 + $0x40] sm:$0xff] %vm1236_vm0, %v9496_v45  ;;  %v5243_v41 = vpop.xlane.xlu2 %5242  ;;  %v5397_v48 = vmul.f32 %v6522_v44, %v5396_v25 }
0x1109   : > { %v5263_v5 = vmul.f32 %v5243_v41, %v8822_v34  ;;  %5506 = vst.msk [vmem:[#allocation2 + $0x50] sm:$0xff] %vm1236_vm0, %v9502_v22 }
0x110a   : > { %v5401_v19 = vsel %vm5400_vm2, %v6522_v44, %v5397_v48 }
0x110b   : > { %v6524_v47 = vpop.eup %6523  ;;  %v5279_v62 = vadd.f32 1e-12, %v5263_v5  ;;  %v5453_v43 = vmul.f32 %v5401_v19, %v9348_v21 }
0x110c   : > { %v5403_v3 = vmul.f32 %v6524_v47, %v5278_v49  ;;  %vm5409_vm3 = vweird.f32 %v6524_v47 }
0x110d   : > { %6525 = vrsqrt.f32 %v5279_v62  ;;  %v5472_v50 = vmul.f32 %v9374_v61, %v5453_v43  ;;  %vm5410_vm5 = vmor %vm5408_vm4, %vm5409_vm3  ;;  %vm5418_vm7 = vweird.f32 %v5279_v62 }
0x110e   : > { %v5404_v28 = vmul.f32 %v6524_v47, %v5403_v3 }
0x110f   : > { %v9510_v54 = vadd.f32 %v9381_v60, %v5472_v50 }
0x1110   : > { %v5405_v32 = vmul.f32 0.5, %v5404_v28 }
0x1111   : > { %5507 = vst.msk [vmem:[#allocation2 + $0x58] sm:$0xff] %vm1236_vm0, %v9510_v54 }
0x1112   : > { %v5406_v2 = vsub.f32 1.5, %v5405_v32 }
0x1113   : > { %v6526_v33 = vpop.eup %6525 }
0x1114   : > { %v5407_v7 = vmul.f32 %v6524_v47, %v5406_v2  ;;  %v5413_v59 = vmul.f32 %v6526_v33, %v5279_v62  ;;  %vm5419_vm6 = vweird.f32 %v6526_v33 }
0x1115   : > { %vm5420_vm8 = vmor %vm5418_vm7, %vm5419_vm6 }
0x1116   : > { %v5411_v12 = vsel %vm5410_vm5, %v6524_v47, %v5407_v7  ;;  %v5414_v21 = vmul.f32 %v6526_v33, %v5413_v59 }
0x1117   : > { %v5454_v38 = vmul.f32 %v5411_v12, %v9355_v26 }
0x1118   : > { %v5415_v52 = vmul.f32 0.5, %v5414_v21 }
0x1119   : > { %v5473_v15 = vmul.f32 %v9374_v61, %v5454_v38 }
0x111a   : > { %v5416_v53 = vsub.f32 1.5, %v5415_v52 }
0x111b   : > { %v5492_v11 = vadd.f32 %v9381_v60, %v5473_v15 }
0x111c   : > { %v5417_v55 = vmul.f32 %v6526_v33, %v5416_v53 }
0x111d   : > { %5508 = vst.msk [vmem:[#allocation2 + $0x60] sm:$0xff] %vm1236_vm0, %v5492_v11 }
0x111e   : > { %v5421_v57 = vsel %vm5420_vm8, %v6526_v33, %v5417_v55 }
0x111f   : > { %v5455_v35 = vmul.f32 %v5421_v57, %v9362_v18 }
0x1121   : > { %v5474_v51 = vmul.f32 %v9374_v61, %v5455_v35 }
0x1123   : > { %v5493_v14 = vadd.f32 %v9381_v60, %v5474_v51 }
0x1125   : > { %5509 = vst.msk [vmem:[#allocation2 + $0x68] sm:$0xff] %vm1236_vm0, %v5493_v14 }
0x1146   : > { %v5246_v26 = vpop.xlane.xlu0 %5245 }
0x1147   : > { %v5264_v1 = vmul.f32 %v5246_v26, %v8822_v34 }
0x1149   : > { %v5280_v6 = vadd.f32 1e-12, %v5264_v1 }
0x114b   : > { %6527 = vrsqrt.f32 %v5280_v6  ;;  %vm5428_vm10 = vweird.f32 %v5280_v6 }
0x114e   : > { %v5249_v8 = vpop.xlane.xlu1 %5248 }
0x114f   : > { %v5265_v63 = vmul.f32 %v5249_v8, %v8822_v34 }
0x1151   : > { %v6528_v44 = vpop.eup %6527  ;;  %v5281_v37 = vadd.f32 1e-12, %v5265_v63 }
0x1152   : > { %v5423_v31 = vmul.f32 %v6528_v44, %v5280_v6  ;;  %vm5429_vm9 = vweird.f32 %v6528_v44 }
0x1153   : > { %6529 = vrsqrt.f32 %v5281_v37  ;;  %vm5430_vm11 = vmor %vm5428_vm10, %vm5429_vm9  ;;  %vm5438_vm13 = vweird.f32 %v5281_v37 }
0x1154   : > { %v5424_v40 = vmul.f32 %v6528_v44, %v5423_v31 }
0x1156   : > { %v5425_v18 = vmul.f32 0.5, %v5424_v40 }
0x1158   : > { %v5426_v16 = vsub.f32 1.5, %v5425_v18 }
0x1159   : > { %v6530_v42 = vpop.eup %6529 }
0x115a   : > { %v5427_v49 = vmul.f32 %v6528_v44, %v5426_v16  ;;  %v5433_v24 = vmul.f32 %v6530_v42, %v5281_v37  ;;  %vm5439_vm12 = vweird.f32 %v6530_v42 }
0x115b   : > { %vm5440_vm14 = vmor %vm5438_vm13, %vm5439_vm12 }
0x115c   : > { %v5431_v20 = vsel %vm5430_vm11, %v6528_v44, %v5427_v49  ;;  %v5434_v4 = vmul.f32 %v6530_v42, %v5433_v24 }
0x115d   : > { %v5456_v27 = vmul.f32 %v5431_v20, %v9400_v13 }
0x115e   : > { %v5435_v36 = vmul.f32 0.5, %v5434_v4 }
0x115f   : > { %v5475_v34 = vmul.f32 %v9374_v61, %v5456_v27 }
0x1160   : > { %v5436_v46 = vsub.f32 1.5, %v5435_v36 }
0x1161   : > { %v5494_v25 = vadd.f32 %v9381_v60, %v5475_v34 }
0x1162   : > { %v5437_v41 = vmul.f32 %v6530_v42, %v5436_v46 }
0x1163   : > { %5510 = vst.msk [vmem:[#allocation2 + $0x70] sm:$0xff] %vm1236_vm0, %v5494_v25 }
0x1164   : > { %v5441_v5 = vsel %vm5440_vm14, %v6530_v42, %v5437_v41 }
0x1165   : > { %v5457_v48 = vmul.f32 %v5441_v5, %v9414_v10 }
0x1167   : > { %v5476_v47 = vmul.f32 %v9374_v61, %v5457_v48  ;;  %5515 = sbr.rel (%p5890_p8) target bundleno = 4476 (0x117c), region = 96 }
0x1169   : > { %v5495_v62 = vadd.f32 %v9381_v60, %v5476_v47 }
0x116b   : > { %5511 = vst.msk [vmem:[#allocation2 + $0x78] sm:$0xff] %vm1236_vm0, %v5495_v62 }
0x116c   : > { %5516 = vst.msk [vmem:[%s9753_s29] sm:$0xff] %vm1236_vm0, %v9386_v30 }
0x116d   : > { %5517 = vst.msk [vmem:[%s9753_s29 + $0x8] sm:$0xff] %vm1236_vm0, %v9447_v39 }
0x116e   : > { %5518 = vst.msk [vmem:[%s9753_s29 + $0x10] sm:$0xff] %vm1236_vm0, %v9464_v58 }
0x116f   : > { %5519 = vst.msk [vmem:[%s9753_s29 + $0x18] sm:$0xff] %vm1236_vm0, %v9393_v9 }
0x1170   : > { %5520 = vst.msk [vmem:[%s9753_s29 + $0x20] sm:$0xff] %vm1236_vm0, %v9467_v17 }
0x1171   : > { %5521 = vst.msk [vmem:[%s9753_s29 + $0x28] sm:$0xff] %vm1236_vm0, %v9481_v56 }
0x1172   : > { %5522 = vst.msk [vmem:[%s9753_s29 + $0x30] sm:$0xff] %vm1236_vm0, %v9411_v23 }
0x1173   : > { %5523 = vst.msk [vmem:[%s9753_s29 + $0x38] sm:$0xff] %vm1236_vm0, %v9484_v29 }
0x1174   : > { %5524 = vst.msk [vmem:[%s9753_s29 + $0x40] sm:$0xff] %vm1236_vm0, %v9496_v45 }
0x1175   : > { %5525 = vst.msk [vmem:[%s9753_s29 + $0x48] sm:$0xff] %vm1236_vm0, %v9442_v0 }
0x1176   : > { %5526 = vst.msk [vmem:[%s9753_s29 + $0x50] sm:$0xff] %vm1236_vm0, %v9502_v22 }
0x1177   : > { %5527 = vst.msk [vmem:[%s9753_s29 + $0x58] sm:$0xff] %vm1236_vm0, %v9510_v54 }
0x1178   : > { %5528 = vst.msk [vmem:[%s9753_s29 + $0x60] sm:$0xff] %vm1236_vm0, %v5492_v11 }
0x1179   : > { %5529 = vst.msk [vmem:[%s9753_s29 + $0x68] sm:$0xff] %vm1236_vm0, %v5493_v14 }
0x117a   : > { %5530 = vst.msk [vmem:[%s9753_s29 + $0x70] sm:$0xff] %vm1236_vm0, %v5494_v25 }
0x117b   : > { %5531 = vst.msk [vmem:[%s9753_s29 + $0x78] sm:$0xff] %vm1236_vm0, %v5495_v62 }
0x117c PF: > { %s9754_s24 = sld [smem:[#allocation8_spill]] }
0x117d   : > { %s9755_s21 = sld [smem:[#allocation6_spill]] }
0x117e   : > { %s9756_s22 = sld [smem:[#allocation7_spill]] }
0x117f   : > { %s9757_s23 = sld [smem:[#allocation9_spill]] }
0x1182   : > { %p26_p9 = scmp.ge.s32.totalorder %s9754_s24, 4  }
0x1184   :  { %28 = sbr.rel (!%p26_p9) target bundleno = 11 (0xb), region = 161 }
0x1189   :  { %5543 = vsyncpa [#allocation4], 1 }
0x118a   :  { %5545 = vsyncpa [#allocation4 + $0x1], 1 }

</bundles_post_ra>
